<compile_context>
chip_gen: v7x
topology: tpu7x:2x2x1
jax: 0.10.0
libtpu: 0.0.40
codegen_flags: <defaults>
</compile_context>

<pallas_src>
import jax
import jax.numpy as jnp
from jax.experimental import pallas as pl
from jax.experimental.pallas import tpu as pltpu

NL = 10               # number of residual layers (nl=10 default)
LAYERS_PER_STEP = 5   # residual layers per grid step (amortize pipeline overhead)
HIDDEN = 512
IN_DIM = 6            # 2 * 3
MID_DIM = 6
OUT_DIM = 1


def _elu(v):
    # torch.nn.ELU with alpha=1.0 (exp clamped to avoid spurious overflow)
    return jnp.where(v > 0, v, jnp.exp(jnp.minimum(v, 0.0)) - 1.0)


def nn_kernel(x_ref, w0_ref, b0_ref, w1_ref, b1_ref,
              rw12_ref, rb12_ref, rw3_ref, rb3_ref,
              w8_ref, b8_ref, w9_ref, b9_ref,
              out_ref, h_ref):
    step = pl.program_id(0)

    # ---- prologue: x = ELU(fc0(x)); x = ELU(fc1(x)) ----
    @pl.when(step == 0)
    def _():
        h = _elu(jnp.dot(x_ref[...], w0_ref[...],
                         preferred_element_type=jnp.float32) + b0_ref[...])
        h = _elu(jnp.dot(h, w1_ref[...],
                         preferred_element_type=jnp.float32) + b1_ref[...])
        h_ref[...] = h

    # ---- LAYERS_PER_STEP residual blocks per grid step ----
    # Weights stay bf16 and go straight to the MXU (f32 accumulate); only the
    # small (B,512) activation is cast to bf16 per matmul.
    for l in range(LAYERS_PER_STEP):
        x0 = h_ref[...]
        z = jnp.dot(x0.astype(jnp.bfloat16), rw12_ref[l],
                    preferred_element_type=jnp.float32) + rb12_ref[l]
        h1 = _elu(z[:, :HIDDEN])                       # rn_fc1 branch
        z2 = z[:, HIDDEN:]                             # rn_fc2 branch (pre-add)
        h_ref[...] = _elu(jnp.dot(h1.astype(jnp.bfloat16), rw3_ref[l],
                                  preferred_element_type=jnp.float32)
                          + rb3_ref[l] + z2)

    # ---- epilogue: x = ELU(fc8(x)); tau = abs(fc9(x)) ----
    @pl.when(step == pl.num_programs(0) - 1)
    def _():
        y = _elu(jnp.dot(h_ref[...], w8_ref[...],
                         preferred_element_type=jnp.float32) + b8_ref[...])
        out_ref[...] = jnp.abs(
            jnp.dot(y, w9_ref[...],
                    preferred_element_type=jnp.float32) + b9_ref[...])


def nn_forward(x, p):
    B = x.shape[0]
    L = LAYERS_PER_STEP
    assert NL % L == 0
    n_steps = NL // L

    const2d = lambda shape: pl.BlockSpec(shape, lambda i: (0, 0))

    grid_spec = pltpu.PrefetchScalarGridSpec(
        num_scalar_prefetch=0,
        grid=(n_steps,),
        in_specs=[
            const2d((B, IN_DIM)),                                  # x
            const2d((IN_DIM, MID_DIM)),                            # w0
            const2d((1, MID_DIM)),                                 # b0
            const2d((MID_DIM, HIDDEN)),                            # w1
            const2d((1, HIDDEN)),                                  # b1
            pl.BlockSpec((L, HIDDEN, 2 * HIDDEN), lambda i: (i, 0, 0)),  # rw12 (bf16)
            pl.BlockSpec((L, 1, 2 * HIDDEN), lambda i: (i, 0, 0)),       # rb12
            pl.BlockSpec((L, HIDDEN, HIDDEN), lambda i: (i, 0, 0)),      # rw3 (bf16)
            pl.BlockSpec((L, 1, HIDDEN), lambda i: (i, 0, 0)),           # rb3
            const2d((HIDDEN, MID_DIM)),                            # w8
            const2d((1, MID_DIM)),                                 # b8
            const2d((MID_DIM, OUT_DIM)),                           # w9
            const2d((1, OUT_DIM)),                                 # b9
        ],
        out_specs=pl.BlockSpec((B, OUT_DIM), lambda i: (0, 0)),
        scratch_shapes=[pltpu.VMEM((B, HIDDEN), jnp.float32)],
    )

    inputs = (x, p["w0"], p["b0"], p["w1"], p["b1"],
              p["rw12"], p["rb12"], p["rw3"], p["rb3"],
              p["w8"], p["b8"], p["w9"], p["b9"])

    flops = int(2 * B * (IN_DIM * MID_DIM + MID_DIM * HIDDEN
                         + 3 * NL * HIDDEN * HIDDEN
                         + HIDDEN * MID_DIM + MID_DIM * OUT_DIM))
    transcendentals = int(B * (MID_DIM + HIDDEN + 2 * NL * HIDDEN + MID_DIM))
    bytes_accessed = int(sum(a.size * a.dtype.itemsize for a in inputs)
                         + B * OUT_DIM * 4)

    return pl.pallas_call(
        nn_kernel,
        grid_spec=grid_spec,
        out_shape=jax.ShapeDtypeStruct((B, OUT_DIM), jnp.float32),
        compiler_params=pltpu.CompilerParams(
            dimension_semantics=("arbitrary",),
            # L=5 -> 7.5 MB bf16 weight block per step, double-buffered ~15 MB.
            # Explicit limit keeps v5e's 16 MiB scoped default from shrinking
            # the pipeline; well under v7x's 64 MiB physical VMEM.
            vmem_limit_bytes=32 * 1024 * 1024,
        ),
        cost_estimate=pl.CostEstimate(flops=flops,
                                      transcendentals=transcendentals,
                                      bytes_accessed=bytes_accessed),
    )(*inputs)


def nn_reference(x, q):
    # Pure-JAX reference of the same forward pass at the same precision
    # (bf16 weights x bf16 activations, f32 accumulation) so the comparison
    # isolates kernel correctness.
    h = _elu(x @ q["w0"] + q["b0"])
    h = _elu(h @ q["w1"] + q["b1"])
    for ii in range(NL):
        x0 = h
        z = jnp.dot(x0.astype(jnp.bfloat16), q["rw12"][ii],
                    preferred_element_type=jnp.float32) + q["rb12"][ii]
        h1 = _elu(z[:, :HIDDEN])
        h = _elu(jnp.dot(h1.astype(jnp.bfloat16), q["rw3"][ii],
                         preferred_element_type=jnp.float32)
                 + q["rb3"][ii] + z[:, HIDDEN:])
    h = _elu(h @ q["w8"] + q["b8"])
    return jnp.abs(h @ q["w9"] + q["b9"])


def init_params(key):
    ks = jax.random.split(key, 16)

    def lin(k, fan_in, fan_out):
        scale = 1.0 / jnp.sqrt(jnp.float32(fan_in))
        return jax.random.normal(k, (fan_in, fan_out), jnp.float32) * scale

    def lin_stack(k, n, fan_in, fan_out):
        scale = 1.0 / jnp.sqrt(jnp.float32(fan_in))
        return jax.random.normal(k, (n, fan_in, fan_out), jnp.float32) * scale

    return {
        "w0": lin(ks[0], IN_DIM, MID_DIM),
        "b0": jax.random.normal(ks[1], (1, MID_DIM), jnp.float32) * 0.01,
        "w1": lin(ks[2], MID_DIM, HIDDEN),
        "b1": jax.random.normal(ks[3], (1, HIDDEN), jnp.float32) * 0.01,
        "rw1": lin_stack(ks[4], NL, HIDDEN, HIDDEN),
        "rb1": jax.random.normal(ks[5], (NL, 1, HIDDEN), jnp.float32) * 0.01,
        "rw2": lin_stack(ks[6], NL, HIDDEN, HIDDEN),
        "rb2": jax.random.normal(ks[7], (NL, 1, HIDDEN), jnp.float32) * 0.01,
        "rw3": lin_stack(ks[8], NL, HIDDEN, HIDDEN),
        "rb3": jax.random.normal(ks[9], (NL, 1, HIDDEN), jnp.float32) * 0.01,
        "w8": lin(ks[10], HIDDEN, MID_DIM),
        "b8": jax.random.normal(ks[11], (1, MID_DIM), jnp.float32) * 0.01,
        "w9": lin(ks[12], MID_DIM, OUT_DIM),
        "b9": jax.random.normal(ks[13], (1, OUT_DIM), jnp.float32) * 0.01,
    }


def pack_params(p):
    # Fuse rn_fc1/rn_fc2 along the output dim (shared LHS x0) and store the
    # large residual weight stacks in bf16 (weight-only quantization).
    # TODO(synk): on v5e/v6e an int8 weight path (per-channel scales) would
    # halve the dominant HBM stream again; fp8 is the v7x equivalent.
    rw12 = jnp.concatenate([p["rw1"], p["rw2"]], axis=-1).astype(jnp.bfloat16)
    rb12 = jnp.concatenate([p["rb1"], p["rb2"]], axis=-1)          # f32
    return {
        "w0": p["w0"], "b0": p["b0"],
        "w1": p["w1"], "b1": p["b1"],
        "rw12": rw12, "rb12": rb12,
        "rw3": p["rw3"].astype(jnp.bfloat16), "rb3": p["rb3"],
        "w8": p["w8"], "b8": p["b8"],
        "w9": p["w9"], "b9": p["b9"],
    }


if __name__ == "__main__":
    key = jax.random.PRNGKey(0)
    k_params, k_x = jax.random.split(key)
    params = pack_params(init_params(k_params))

    B = 8
    x = jax.random.normal(k_x, (B, IN_DIM), jnp.float32)

    tau = nn_forward(x, params)
    tau = jax.block_until_ready(tau)

    ref = nn_reference(x, params)
    assert tau.shape == (B, OUT_DIM), tau.shape
    assert jnp.allclose(tau, ref, atol=2e-2, rtol=2e-2), (
        f"mismatch: max abs err {jnp.max(jnp.abs(tau - ref))}")

    print("KERNEL_OK")
</pallas_src>

<mosaic_0001>
module attributes {stable_mosaic.version = 11 : i64} {
  func.func @nn_kernel(%arg0: i32, %arg1: memref<8x6xf32, #tpu.memory_space<vmem>>, %arg2: memref<6x6xf32, #tpu.memory_space<vmem>>, %arg3: memref<1x6xf32, #tpu.memory_space<vmem>>, %arg4: memref<6x512xf32, #tpu.memory_space<vmem>>, %arg5: memref<1x512xf32, #tpu.memory_space<vmem>>, %arg6: memref<5x512x1024xbf16, #tpu.memory_space<vmem>>, %arg7: memref<5x1x1024xf32, #tpu.memory_space<vmem>>, %arg8: memref<5x512x512xbf16, #tpu.memory_space<vmem>>, %arg9: memref<5x1x512xf32, #tpu.memory_space<vmem>>, %arg10: memref<512x6xf32, #tpu.memory_space<vmem>>, %arg11: memref<1x6xf32, #tpu.memory_space<vmem>>, %arg12: memref<6x1xf32, #tpu.memory_space<vmem>>, %arg13: memref<1x1xf32, #tpu.memory_space<vmem>>, %arg14: memref<8x1xf32, #tpu.memory_space<vmem>>, %arg15: memref<8x512xf32, #tpu.memory_space<vmem>>) attributes {dimension_semantics = [#tpu.dimension_semantics<arbitrary>], iteration_bounds = array<i64: 2>, scalar_prefetch = 0 : i64, scratch_operands = 1 : i64, tpu.core_type = #tpu.core_type<tc>, window_params = [{pipeline_mode = #tpu.pipeline_mode<synchronous>, transform_indices = @transform_0, window_bounds = array<i64: 8, 6>}, {pipeline_mode = #tpu.pipeline_mode<synchronous>, transform_indices = @transform_1, window_bounds = array<i64: 6, 6>}, {pipeline_mode = #tpu.pipeline_mode<synchronous>, transform_indices = @transform_2, window_bounds = array<i64: 1, 6>}, {pipeline_mode = #tpu.pipeline_mode<synchronous>, transform_indices = @transform_3, window_bounds = array<i64: 6, 512>}, {pipeline_mode = #tpu.pipeline_mode<synchronous>, transform_indices = @transform_4, window_bounds = array<i64: 1, 512>}, {transform_indices = @transform_5, window_bounds = array<i64: 5, 512, 1024>}, {transform_indices = @transform_6, window_bounds = array<i64: 5, 1, 1024>}, {transform_indices = @transform_7, window_bounds = array<i64: 5, 512, 512>}, {transform_indices = @transform_8, window_bounds = array<i64: 5, 1, 512>}, {pipeline_mode = #tpu.pipeline_mode<synchronous>, transform_indices = @transform_9, window_bounds = array<i64: 512, 6>}, {pipeline_mode = #tpu.pipeline_mode<synchronous>, transform_indices = @transform_10, window_bounds = array<i64: 1, 6>}, {pipeline_mode = #tpu.pipeline_mode<synchronous>, transform_indices = @transform_11, window_bounds = array<i64: 6, 1>}, {pipeline_mode = #tpu.pipeline_mode<synchronous>, transform_indices = @transform_12, window_bounds = array<i64: 1, 1>}, {pipeline_mode = #tpu.pipeline_mode<synchronous>, transform_indices = @transform_13, window_bounds = array<i64: 8, 1>}]} {
    %c0_i32 = arith.constant 0 : i32
    %0 = arith.cmpi eq, %arg0, %c0_i32 : i32
    %1 = arith.extui %0 : i1 to i32
    %c0_i32_0 = arith.constant 0 : i32
    %2 = arith.cmpi ne, %1, %c0_i32_0 : i32
    scf.if %2 {
      %c0_116 = arith.constant 0 : index
      %c0_117 = arith.constant 0 : index
      %191 = vector.load %arg1[%c0_116, %c0_117] : memref<8x6xf32, #tpu.memory_space<vmem>>, vector<8x6xf32>
      %c0_118 = arith.constant 0 : index
      %c0_119 = arith.constant 0 : index
      %192 = vector.load %arg2[%c0_118, %c0_119] : memref<6x6xf32, #tpu.memory_space<vmem>>, vector<6x6xf32>
      %cst_120 = arith.constant dense<0.000000e+00> : vector<8x6xf32>
      %193 = tpu.matmul %191, %192, %cst_120 {dimension_numbers = #tpu.dot_dimension_numbers<[1], [0], [0], [1], [0, 0, 1, 1], [], []>} : vector<8x6xf32>, vector<6x6xf32>, vector<8x6xf32> -> vector<8x6xf32>
      %c0_121 = arith.constant 0 : index
      %c0_122 = arith.constant 0 : index
      %194 = vector.load %arg3[%c0_121, %c0_122] : memref<1x6xf32, #tpu.memory_space<vmem>>, vector<1x6xf32>
      %195 = vector.broadcast %194 : vector<1x6xf32> to vector<8x6xf32>
      %196 = arith.addf %193, %195 : vector<8x6xf32>
      %cst_123 = arith.constant 0.000000e+00 : f32
      %197 = vector.broadcast %cst_123 : f32 to vector<8x6xf32>
      %198 = arith.cmpf ogt, %196, %197 : vector<8x6xf32>
      %cst_124 = arith.constant 0.000000e+00 : f32
      %199 = vector.broadcast %cst_124 : f32 to vector<8x6xf32>
      %200 = arith.minimumf %196, %199 : vector<8x6xf32>
      %201 = math.exp %200 : vector<8x6xf32>
      %cst_125 = arith.constant 1.000000e+00 : f32
      %202 = vector.broadcast %cst_125 : f32 to vector<8x6xf32>
      %203 = arith.subf %201, %202 : vector<8x6xf32>
      %204 = arith.select %198, %196, %203 : vector<8x6xi1>, vector<8x6xf32>
      %c0_126 = arith.constant 0 : index
      %c0_127 = arith.constant 0 : index
      %205 = vector.load %arg4[%c0_126, %c0_127] : memref<6x512xf32, #tpu.memory_space<vmem>>, vector<6x512xf32>
      %cst_128 = arith.constant dense<0.000000e+00> : vector<8x512xf32>
      %206 = tpu.matmul %204, %205, %cst_128 {dimension_numbers = #tpu.dot_dimension_numbers<[1], [0], [0], [1], [0, 0, 1, 1], [], []>} : vector<8x6xf32>, vector<6x512xf32>, vector<8x512xf32> -> vector<8x512xf32>
      %c0_129 = arith.constant 0 : index
      %c0_130 = arith.constant 0 : index
      %207 = vector.load %arg5[%c0_129, %c0_130] : memref<1x512xf32, #tpu.memory_space<vmem>>, vector<1x512xf32>
      %208 = vector.broadcast %207 : vector<1x512xf32> to vector<8x512xf32>
      %209 = arith.addf %206, %208 : vector<8x512xf32>
      %cst_131 = arith.constant 0.000000e+00 : f32
      %210 = vector.broadcast %cst_131 : f32 to vector<8x512xf32>
      %211 = arith.cmpf ogt, %209, %210 : vector<8x512xf32>
      %cst_132 = arith.constant 0.000000e+00 : f32
      %212 = vector.broadcast %cst_132 : f32 to vector<8x512xf32>
      %213 = arith.minimumf %209, %212 : vector<8x512xf32>
      %214 = math.exp %213 : vector<8x512xf32>
      %cst_133 = arith.constant 1.000000e+00 : f32
      %215 = vector.broadcast %cst_133 : f32 to vector<8x512xf32>
      %216 = arith.subf %214, %215 : vector<8x512xf32>
      %217 = arith.select %211, %209, %216 : vector<8x512xi1>, vector<8x512xf32>
      %c0_134 = arith.constant 0 : index
      %c0_135 = arith.constant 0 : index
      %218 = vector.load %arg15[%c0_134, %c0_135] : memref<8x512xf32, #tpu.memory_space<vmem>>, vector<8x512xf32>
      tpu.vector_store %arg15[%c0_134, %c0_135], %217 {strides = array<i32>} : memref<8x512xf32, #tpu.memory_space<vmem>>, vector<8x512xf32>,
    } else {
    }
    %c0 = arith.constant 0 : index
    %c0_1 = arith.constant 0 : index
    %3 = vector.load %arg15[%c0, %c0_1] : memref<8x512xf32, #tpu.memory_space<vmem>>, vector<8x512xf32>
    %4 = arith.truncf %3 : vector<8x512xf32> to vector<8x512xbf16>
    %c0_2 = arith.constant 0 : index
    %c0_3 = arith.constant 0 : index
    %c0_4 = arith.constant 0 : index
    %5 = vector.load %arg6[%c0_2, %c0_3, %c0_4] : memref<5x512x1024xbf16, #tpu.memory_space<vmem>>, vector<1x512x1024xbf16>
    %6 = vector.shape_cast %5 : vector<1x512x1024xbf16> to vector<512x1024xbf16>
    %cst = arith.constant dense<0.000000e+00> : vector<8x1024xf32>
    %7 = tpu.matmul %4, %6, %cst {dimension_numbers = #tpu.dot_dimension_numbers<[1], [0], [0], [1], [0, 0, 1, 1], [], []>} : vector<8x512xbf16>, vector<512x1024xbf16>, vector<8x1024xf32> -> vector<8x1024xf32>
    %c0_5 = arith.constant 0 : index
    %c0_6 = arith.constant 0 : index
    %c0_7 = arith.constant 0 : index
    %8 = vector.load %arg7[%c0_5, %c0_6, %c0_7] : memref<5x1x1024xf32, #tpu.memory_space<vmem>>, vector<1x1x1024xf32>
    %9 = vector.shape_cast %8 : vector<1x1x1024xf32> to vector<1x1024xf32>
    %10 = vector.broadcast %9 : vector<1x1024xf32> to vector<8x1024xf32>
    %11 = arith.addf %7, %10 : vector<8x1024xf32>
    %12 = vector.extract_strided_slice %11 {offsets = [0, 0], sizes = [8, 512], strides = [1, 1]} : vector<8x1024xf32> to vector<8x512xf32>
    %cst_8 = arith.constant 0.000000e+00 : f32
    %13 = vector.broadcast %cst_8 : f32 to vector<8x512xf32>
    %14 = arith.cmpf ogt, %12, %13 : vector<8x512xf32>
    %cst_9 = arith.constant 0.000000e+00 : f32
    %15 = vector.broadcast %cst_9 : f32 to vector<8x512xf32>
    %16 = arith.minimumf %12, %15 : vector<8x512xf32>
    %17 = math.exp %16 : vector<8x512xf32>
    %cst_10 = arith.constant 1.000000e+00 : f32
    %18 = vector.broadcast %cst_10 : f32 to vector<8x512xf32>
    %19 = arith.subf %17, %18 : vector<8x512xf32>
    %20 = arith.select %14, %12, %19 : vector<8x512xi1>, vector<8x512xf32>
    %21 = vector.extract_strided_slice %11 {offsets = [0, 512], sizes = [8, 512], strides = [1, 1]} : vector<8x1024xf32> to vector<8x512xf32>
    %22 = arith.truncf %20 : vector<8x512xf32> to vector<8x512xbf16>
    %c0_11 = arith.constant 0 : index
    %c0_12 = arith.constant 0 : index
    %c0_13 = arith.constant 0 : index
    %23 = vector.load %arg8[%c0_11, %c0_12, %c0_13] : memref<5x512x512xbf16, #tpu.memory_space<vmem>>, vector<1x512x512xbf16>
    %24 = vector.shape_cast %23 : vector<1x512x512xbf16> to vector<512x512xbf16>
    %cst_14 = arith.constant dense<0.000000e+00> : vector<8x512xf32>
    %25 = tpu.matmul %22, %24, %cst_14 {dimension_numbers = #tpu.dot_dimension_numbers<[1], [0], [0], [1], [0, 0, 1, 1], [], []>} : vector<8x512xbf16>, vector<512x512xbf16>, vector<8x512xf32> -> vector<8x512xf32>
    %c0_15 = arith.constant 0 : index
    %c0_16 = arith.constant 0 : index
    %c0_17 = arith.constant 0 : index
    %26 = vector.load %arg9[%c0_15, %c0_16, %c0_17] : memref<5x1x512xf32, #tpu.memory_space<vmem>>, vector<1x1x512xf32>
    %27 = vector.shape_cast %26 : vector<1x1x512xf32> to vector<1x512xf32>
    %28 = vector.broadcast %27 : vector<1x512xf32> to vector<8x512xf32>
    %29 = arith.addf %25, %28 : vector<8x512xf32>
    %30 = arith.addf %29, %21 : vector<8x512xf32>
    %cst_18 = arith.constant 0.000000e+00 : f32
    %31 = vector.broadcast %cst_18 : f32 to vector<8x512xf32>
    %32 = arith.cmpf ogt, %30, %31 : vector<8x512xf32>
    %cst_19 = arith.constant 0.000000e+00 : f32
    %33 = vector.broadcast %cst_19 : f32 to vector<8x512xf32>
    %34 = arith.minimumf %30, %33 : vector<8x512xf32>
    %35 = math.exp %34 : vector<8x512xf32>
    %cst_20 = arith.constant 1.000000e+00 : f32
    %36 = vector.broadcast %cst_20 : f32 to vector<8x512xf32>
    %37 = arith.subf %35, %36 : vector<8x512xf32>
    %38 = arith.select %32, %30, %37 : vector<8x512xi1>, vector<8x512xf32>
    %c0_21 = arith.constant 0 : index
    %c0_22 = arith.constant 0 : index
    %39 = vector.load %arg15[%c0_21, %c0_22] : memref<8x512xf32, #tpu.memory_space<vmem>>, vector<8x512xf32>
    tpu.vector_store %arg15[%c0_21, %c0_22], %38 {strides = array<i32>} : memref<8x512xf32, #tpu.memory_space<vmem>>, vector<8x512xf32>,
    %c0_23 = arith.constant 0 : index
    %c0_24 = arith.constant 0 : index
    %40 = vector.load %arg15[%c0_23, %c0_24] : memref<8x512xf32, #tpu.memory_space<vmem>>, vector<8x512xf32>
    %41 = arith.truncf %40 : vector<8x512xf32> to vector<8x512xbf16>
    %c1 = arith.constant 1 : index
    %c0_25 = arith.constant 0 : index
    %c0_26 = arith.constant 0 : index
    %42 = vector.load %arg6[%c1, %c0_25, %c0_26] : memref<5x512x1024xbf16, #tpu.memory_space<vmem>>, vector<1x512x1024xbf16>
    %43 = vector.shape_cast %42 : vector<1x512x1024xbf16> to vector<512x1024xbf16>
    %cst_27 = arith.constant dense<0.000000e+00> : vector<8x1024xf32>
    %44 = tpu.matmul %41, %43, %cst_27 {dimension_numbers = #tpu.dot_dimension_numbers<[1], [0], [0], [1], [0, 0, 1, 1], [], []>} : vector<8x512xbf16>, vector<512x1024xbf16>, vector<8x1024xf32> -> vector<8x1024xf32>
    %c1_28 = arith.constant 1 : index
    %c0_29 = arith.constant 0 : index
    %c0_30 = arith.constant 0 : index
    %45 = vector.load %arg7[%c1_28, %c0_29, %c0_30] : memref<5x1x1024xf32, #tpu.memory_space<vmem>>, vector<1x1x1024xf32>
    %46 = vector.shape_cast %45 : vector<1x1x1024xf32> to vector<1x1024xf32>
    %47 = vector.broadcast %46 : vector<1x1024xf32> to vector<8x1024xf32>
    %48 = arith.addf %44, %47 : vector<8x1024xf32>
    %49 = vector.extract_strided_slice %48 {offsets = [0, 0], sizes = [8, 512], strides = [1, 1]} : vector<8x1024xf32> to vector<8x512xf32>
    %cst_31 = arith.constant 0.000000e+00 : f32
    %50 = vector.broadcast %cst_31 : f32 to vector<8x512xf32>
    %51 = arith.cmpf ogt, %49, %50 : vector<8x512xf32>
    %cst_32 = arith.constant 0.000000e+00 : f32
    %52 = vector.broadcast %cst_32 : f32 to vector<8x512xf32>
    %53 = arith.minimumf %49, %52 : vector<8x512xf32>
    %54 = math.exp %53 : vector<8x512xf32>
    %cst_33 = arith.constant 1.000000e+00 : f32
    %55 = vector.broadcast %cst_33 : f32 to vector<8x512xf32>
    %56 = arith.subf %54, %55 : vector<8x512xf32>
    %57 = arith.select %51, %49, %56 : vector<8x512xi1>, vector<8x512xf32>
    %58 = vector.extract_strided_slice %48 {offsets = [0, 512], sizes = [8, 512], strides = [1, 1]} : vector<8x1024xf32> to vector<8x512xf32>
    %59 = arith.truncf %57 : vector<8x512xf32> to vector<8x512xbf16>
    %c1_34 = arith.constant 1 : index
    %c0_35 = arith.constant 0 : index
    %c0_36 = arith.constant 0 : index
    %60 = vector.load %arg8[%c1_34, %c0_35, %c0_36] : memref<5x512x512xbf16, #tpu.memory_space<vmem>>, vector<1x512x512xbf16>
    %61 = vector.shape_cast %60 : vector<1x512x512xbf16> to vector<512x512xbf16>
    %cst_37 = arith.constant dense<0.000000e+00> : vector<8x512xf32>
    %62 = tpu.matmul %59, %61, %cst_37 {dimension_numbers = #tpu.dot_dimension_numbers<[1], [0], [0], [1], [0, 0, 1, 1], [], []>} : vector<8x512xbf16>, vector<512x512xbf16>, vector<8x512xf32> -> vector<8x512xf32>
    %c1_38 = arith.constant 1 : index
    %c0_39 = arith.constant 0 : index
    %c0_40 = arith.constant 0 : index
    %63 = vector.load %arg9[%c1_38, %c0_39, %c0_40] : memref<5x1x512xf32, #tpu.memory_space<vmem>>, vector<1x1x512xf32>
    %64 = vector.shape_cast %63 : vector<1x1x512xf32> to vector<1x512xf32>
    %65 = vector.broadcast %64 : vector<1x512xf32> to vector<8x512xf32>
    %66 = arith.addf %62, %65 : vector<8x512xf32>
    %67 = arith.addf %66, %58 : vector<8x512xf32>
    %cst_41 = arith.constant 0.000000e+00 : f32
    %68 = vector.broadcast %cst_41 : f32 to vector<8x512xf32>
    %69 = arith.cmpf ogt, %67, %68 : vector<8x512xf32>
    %cst_42 = arith.constant 0.000000e+00 : f32
    %70 = vector.broadcast %cst_42 : f32 to vector<8x512xf32>
    %71 = arith.minimumf %67, %70 : vector<8x512xf32>
    %72 = math.exp %71 : vector<8x512xf32>
    %cst_43 = arith.constant 1.000000e+00 : f32
    %73 = vector.broadcast %cst_43 : f32 to vector<8x512xf32>
    %74 = arith.subf %72, %73 : vector<8x512xf32>
    %75 = arith.select %69, %67, %74 : vector<8x512xi1>, vector<8x512xf32>
    %c0_44 = arith.constant 0 : index
    %c0_45 = arith.constant 0 : index
    %76 = vector.load %arg15[%c0_44, %c0_45] : memref<8x512xf32, #tpu.memory_space<vmem>>, vector<8x512xf32>
    tpu.vector_store %arg15[%c0_44, %c0_45], %75 {strides = array<i32>} : memref<8x512xf32, #tpu.memory_space<vmem>>, vector<8x512xf32>,
    %c0_46 = arith.constant 0 : index
    %c0_47 = arith.constant 0 : index
    %77 = vector.load %arg15[%c0_46, %c0_47] : memref<8x512xf32, #tpu.memory_space<vmem>>, vector<8x512xf32>
    %78 = arith.truncf %77 : vector<8x512xf32> to vector<8x512xbf16>
    %c2 = arith.constant 2 : index
    %c0_48 = arith.constant 0 : index
    %c0_49 = arith.constant 0 : index
    %79 = vector.load %arg6[%c2, %c0_48, %c0_49] : memref<5x512x1024xbf16, #tpu.memory_space<vmem>>, vector<1x512x1024xbf16>
    %80 = vector.shape_cast %79 : vector<1x512x1024xbf16> to vector<512x1024xbf16>
    %cst_50 = arith.constant dense<0.000000e+00> : vector<8x1024xf32>
    %81 = tpu.matmul %78, %80, %cst_50 {dimension_numbers = #tpu.dot_dimension_numbers<[1], [0], [0], [1], [0, 0, 1, 1], [], []>} : vector<8x512xbf16>, vector<512x1024xbf16>, vector<8x1024xf32> -> vector<8x1024xf32>
    %c2_51 = arith.constant 2 : index
    %c0_52 = arith.constant 0 : index
    %c0_53 = arith.constant 0 : index
    %82 = vector.load %arg7[%c2_51, %c0_52, %c0_53] : memref<5x1x1024xf32, #tpu.memory_space<vmem>>, vector<1x1x1024xf32>
    %83 = vector.shape_cast %82 : vector<1x1x1024xf32> to vector<1x1024xf32>
    %84 = vector.broadcast %83 : vector<1x1024xf32> to vector<8x1024xf32>
    %85 = arith.addf %81, %84 : vector<8x1024xf32>
    %86 = vector.extract_strided_slice %85 {offsets = [0, 0], sizes = [8, 512], strides = [1, 1]} : vector<8x1024xf32> to vector<8x512xf32>
    %cst_54 = arith.constant 0.000000e+00 : f32
    %87 = vector.broadcast %cst_54 : f32 to vector<8x512xf32>
    %88 = arith.cmpf ogt, %86, %87 : vector<8x512xf32>
    %cst_55 = arith.constant 0.000000e+00 : f32
    %89 = vector.broadcast %cst_55 : f32 to vector<8x512xf32>
    %90 = arith.minimumf %86, %89 : vector<8x512xf32>
    %91 = math.exp %90 : vector<8x512xf32>
    %cst_56 = arith.constant 1.000000e+00 : f32
    %92 = vector.broadcast %cst_56 : f32 to vector<8x512xf32>
    %93 = arith.subf %91, %92 : vector<8x512xf32>
    %94 = arith.select %88, %86, %93 : vector<8x512xi1>, vector<8x512xf32>
    %95 = vector.extract_strided_slice %85 {offsets = [0, 512], sizes = [8, 512], strides = [1, 1]} : vector<8x1024xf32> to vector<8x512xf32>
    %96 = arith.truncf %94 : vector<8x512xf32> to vector<8x512xbf16>
    %c2_57 = arith.constant 2 : index
    %c0_58 = arith.constant 0 : index
    %c0_59 = arith.constant 0 : index
    %97 = vector.load %arg8[%c2_57, %c0_58, %c0_59] : memref<5x512x512xbf16, #tpu.memory_space<vmem>>, vector<1x512x512xbf16>
    %98 = vector.shape_cast %97 : vector<1x512x512xbf16> to vector<512x512xbf16>
    %cst_60 = arith.constant dense<0.000000e+00> : vector<8x512xf32>
    %99 = tpu.matmul %96, %98, %cst_60 {dimension_numbers = #tpu.dot_dimension_numbers<[1], [0], [0], [1], [0, 0, 1, 1], [], []>} : vector<8x512xbf16>, vector<512x512xbf16>, vector<8x512xf32> -> vector<8x512xf32>
    %c2_61 = arith.constant 2 : index
    %c0_62 = arith.constant 0 : index
    %c0_63 = arith.constant 0 : index
    %100 = vector.load %arg9[%c2_61, %c0_62, %c0_63] : memref<5x1x512xf32, #tpu.memory_space<vmem>>, vector<1x1x512xf32>
    %101 = vector.shape_cast %100 : vector<1x1x512xf32> to vector<1x512xf32>
    %102 = vector.broadcast %101 : vector<1x512xf32> to vector<8x512xf32>
    %103 = arith.addf %99, %102 : vector<8x512xf32>
    %104 = arith.addf %103, %95 : vector<8x512xf32>
    %cst_64 = arith.constant 0.000000e+00 : f32
    %105 = vector.broadcast %cst_64 : f32 to vector<8x512xf32>
    %106 = arith.cmpf ogt, %104, %105 : vector<8x512xf32>
    %cst_65 = arith.constant 0.000000e+00 : f32
    %107 = vector.broadcast %cst_65 : f32 to vector<8x512xf32>
    %108 = arith.minimumf %104, %107 : vector<8x512xf32>
    %109 = math.exp %108 : vector<8x512xf32>
    %cst_66 = arith.constant 1.000000e+00 : f32
    %110 = vector.broadcast %cst_66 : f32 to vector<8x512xf32>
    %111 = arith.subf %109, %110 : vector<8x512xf32>
    %112 = arith.select %106, %104, %111 : vector<8x512xi1>, vector<8x512xf32>
    %c0_67 = arith.constant 0 : index
    %c0_68 = arith.constant 0 : index
    %113 = vector.load %arg15[%c0_67, %c0_68] : memref<8x512xf32, #tpu.memory_space<vmem>>, vector<8x512xf32>
    tpu.vector_store %arg15[%c0_67, %c0_68], %112 {strides = array<i32>} : memref<8x512xf32, #tpu.memory_space<vmem>>, vector<8x512xf32>,
    %c0_69 = arith.constant 0 : index
    %c0_70 = arith.constant 0 : index
    %114 = vector.load %arg15[%c0_69, %c0_70] : memref<8x512xf32, #tpu.memory_space<vmem>>, vector<8x512xf32>
    %115 = arith.truncf %114 : vector<8x512xf32> to vector<8x512xbf16>
    %c3 = arith.constant 3 : index
    %c0_71 = arith.constant 0 : index
    %c0_72 = arith.constant 0 : index
    %116 = vector.load %arg6[%c3, %c0_71, %c0_72] : memref<5x512x1024xbf16, #tpu.memory_space<vmem>>, vector<1x512x1024xbf16>
    %117 = vector.shape_cast %116 : vector<1x512x1024xbf16> to vector<512x1024xbf16>
    %cst_73 = arith.constant dense<0.000000e+00> : vector<8x1024xf32>
    %118 = tpu.matmul %115, %117, %cst_73 {dimension_numbers = #tpu.dot_dimension_numbers<[1], [0], [0], [1], [0, 0, 1, 1], [], []>} : vector<8x512xbf16>, vector<512x1024xbf16>, vector<8x1024xf32> -> vector<8x1024xf32>
    %c3_74 = arith.constant 3 : index
    %c0_75 = arith.constant 0 : index
    %c0_76 = arith.constant 0 : index
    %119 = vector.load %arg7[%c3_74, %c0_75, %c0_76] : memref<5x1x1024xf32, #tpu.memory_space<vmem>>, vector<1x1x1024xf32>
    %120 = vector.shape_cast %119 : vector<1x1x1024xf32> to vector<1x1024xf32>
    %121 = vector.broadcast %120 : vector<1x1024xf32> to vector<8x1024xf32>
    %122 = arith.addf %118, %121 : vector<8x1024xf32>
    %123 = vector.extract_strided_slice %122 {offsets = [0, 0], sizes = [8, 512], strides = [1, 1]} : vector<8x1024xf32> to vector<8x512xf32>
    %cst_77 = arith.constant 0.000000e+00 : f32
    %124 = vector.broadcast %cst_77 : f32 to vector<8x512xf32>
    %125 = arith.cmpf ogt, %123, %124 : vector<8x512xf32>
    %cst_78 = arith.constant 0.000000e+00 : f32
    %126 = vector.broadcast %cst_78 : f32 to vector<8x512xf32>
    %127 = arith.minimumf %123, %126 : vector<8x512xf32>
    %128 = math.exp %127 : vector<8x512xf32>
    %cst_79 = arith.constant 1.000000e+00 : f32
    %129 = vector.broadcast %cst_79 : f32 to vector<8x512xf32>
    %130 = arith.subf %128, %129 : vector<8x512xf32>
    %131 = arith.select %125, %123, %130 : vector<8x512xi1>, vector<8x512xf32>
    %132 = vector.extract_strided_slice %122 {offsets = [0, 512], sizes = [8, 512], strides = [1, 1]} : vector<8x1024xf32> to vector<8x512xf32>
    %133 = arith.truncf %131 : vector<8x512xf32> to vector<8x512xbf16>
    %c3_80 = arith.constant 3 : index
    %c0_81 = arith.constant 0 : index
    %c0_82 = arith.constant 0 : index
    %134 = vector.load %arg8[%c3_80, %c0_81, %c0_82] : memref<5x512x512xbf16, #tpu.memory_space<vmem>>, vector<1x512x512xbf16>
    %135 = vector.shape_cast %134 : vector<1x512x512xbf16> to vector<512x512xbf16>
    %cst_83 = arith.constant dense<0.000000e+00> : vector<8x512xf32>
    %136 = tpu.matmul %133, %135, %cst_83 {dimension_numbers = #tpu.dot_dimension_numbers<[1], [0], [0], [1], [0, 0, 1, 1], [], []>} : vector<8x512xbf16>, vector<512x512xbf16>, vector<8x512xf32> -> vector<8x512xf32>
    %c3_84 = arith.constant 3 : index
    %c0_85 = arith.constant 0 : index
    %c0_86 = arith.constant 0 : index
    %137 = vector.load %arg9[%c3_84, %c0_85, %c0_86] : memref<5x1x512xf32, #tpu.memory_space<vmem>>, vector<1x1x512xf32>
    %138 = vector.shape_cast %137 : vector<1x1x512xf32> to vector<1x512xf32>
    %139 = vector.broadcast %138 : vector<1x512xf32> to vector<8x512xf32>
    %140 = arith.addf %136, %139 : vector<8x512xf32>
    %141 = arith.addf %140, %132 : vector<8x512xf32>
    %cst_87 = arith.constant 0.000000e+00 : f32
    %142 = vector.broadcast %cst_87 : f32 to vector<8x512xf32>
    %143 = arith.cmpf ogt, %141, %142 : vector<8x512xf32>
    %cst_88 = arith.constant 0.000000e+00 : f32
    %144 = vector.broadcast %cst_88 : f32 to vector<8x512xf32>
    %145 = arith.minimumf %141, %144 : vector<8x512xf32>
    %146 = math.exp %145 : vector<8x512xf32>
    %cst_89 = arith.constant 1.000000e+00 : f32
    %147 = vector.broadcast %cst_89 : f32 to vector<8x512xf32>
    %148 = arith.subf %146, %147 : vector<8x512xf32>
    %149 = arith.select %143, %141, %148 : vector<8x512xi1>, vector<8x512xf32>
    %c0_90 = arith.constant 0 : index
    %c0_91 = arith.constant 0 : index
    %150 = vector.load %arg15[%c0_90, %c0_91] : memref<8x512xf32, #tpu.memory_space<vmem>>, vector<8x512xf32>
    tpu.vector_store %arg15[%c0_90, %c0_91], %149 {strides = array<i32>} : memref<8x512xf32, #tpu.memory_space<vmem>>, vector<8x512xf32>,
    %c0_92 = arith.constant 0 : index
    %c0_93 = arith.constant 0 : index
    %151 = vector.load %arg15[%c0_92, %c0_93] : memref<8x512xf32, #tpu.memory_space<vmem>>, vector<8x512xf32>
    %152 = arith.truncf %151 : vector<8x512xf32> to vector<8x512xbf16>
    %c4 = arith.constant 4 : index
    %c0_94 = arith.constant 0 : index
    %c0_95 = arith.constant 0 : index
    %153 = vector.load %arg6[%c4, %c0_94, %c0_95] : memref<5x512x1024xbf16, #tpu.memory_space<vmem>>, vector<1x512x1024xbf16>
    %154 = vector.shape_cast %153 : vector<1x512x1024xbf16> to vector<512x1024xbf16>
    %cst_96 = arith.constant dense<0.000000e+00> : vector<8x1024xf32>
    %155 = tpu.matmul %152, %154, %cst_96 {dimension_numbers = #tpu.dot_dimension_numbers<[1], [0], [0], [1], [0, 0, 1, 1], [], []>} : vector<8x512xbf16>, vector<512x1024xbf16>, vector<8x1024xf32> -> vector<8x1024xf32>
    %c4_97 = arith.constant 4 : index
    %c0_98 = arith.constant 0 : index
    %c0_99 = arith.constant 0 : index
    %156 = vector.load %arg7[%c4_97, %c0_98, %c0_99] : memref<5x1x1024xf32, #tpu.memory_space<vmem>>, vector<1x1x1024xf32>
    %157 = vector.shape_cast %156 : vector<1x1x1024xf32> to vector<1x1024xf32>
    %158 = vector.broadcast %157 : vector<1x1024xf32> to vector<8x1024xf32>
    %159 = arith.addf %155, %158 : vector<8x1024xf32>
    %160 = vector.extract_strided_slice %159 {offsets = [0, 0], sizes = [8, 512], strides = [1, 1]} : vector<8x1024xf32> to vector<8x512xf32>
    %cst_100 = arith.constant 0.000000e+00 : f32
    %161 = vector.broadcast %cst_100 : f32 to vector<8x512xf32>
    %162 = arith.cmpf ogt, %160, %161 : vector<8x512xf32>
    %cst_101 = arith.constant 0.000000e+00 : f32
    %163 = vector.broadcast %cst_101 : f32 to vector<8x512xf32>
    %164 = arith.minimumf %160, %163 : vector<8x512xf32>
    %165 = math.exp %164 : vector<8x512xf32>
    %cst_102 = arith.constant 1.000000e+00 : f32
    %166 = vector.broadcast %cst_102 : f32 to vector<8x512xf32>
    %167 = arith.subf %165, %166 : vector<8x512xf32>
    %168 = arith.select %162, %160, %167 : vector<8x512xi1>, vector<8x512xf32>
    %169 = vector.extract_strided_slice %159 {offsets = [0, 512], sizes = [8, 512], strides = [1, 1]} : vector<8x1024xf32> to vector<8x512xf32>
    %170 = arith.truncf %168 : vector<8x512xf32> to vector<8x512xbf16>
    %c4_103 = arith.constant 4 : index
    %c0_104 = arith.constant 0 : index
    %c0_105 = arith.constant 0 : index
    %171 = vector.load %arg8[%c4_103, %c0_104, %c0_105] : memref<5x512x512xbf16, #tpu.memory_space<vmem>>, vector<1x512x512xbf16>
    %172 = vector.shape_cast %171 : vector<1x512x512xbf16> to vector<512x512xbf16>
    %cst_106 = arith.constant dense<0.000000e+00> : vector<8x512xf32>
    %173 = tpu.matmul %170, %172, %cst_106 {dimension_numbers = #tpu.dot_dimension_numbers<[1], [0], [0], [1], [0, 0, 1, 1], [], []>} : vector<8x512xbf16>, vector<512x512xbf16>, vector<8x512xf32> -> vector<8x512xf32>
    %c4_107 = arith.constant 4 : index
    %c0_108 = arith.constant 0 : index
    %c0_109 = arith.constant 0 : index
    %174 = vector.load %arg9[%c4_107, %c0_108, %c0_109] : memref<5x1x512xf32, #tpu.memory_space<vmem>>, vector<1x1x512xf32>
    %175 = vector.shape_cast %174 : vector<1x1x512xf32> to vector<1x512xf32>
    %176 = vector.broadcast %175 : vector<1x512xf32> to vector<8x512xf32>
    %177 = arith.addf %173, %176 : vector<8x512xf32>
    %178 = arith.addf %177, %169 : vector<8x512xf32>
    %cst_110 = arith.constant 0.000000e+00 : f32
    %179 = vector.broadcast %cst_110 : f32 to vector<8x512xf32>
    %180 = arith.cmpf ogt, %178, %179 : vector<8x512xf32>
    %cst_111 = arith.constant 0.000000e+00 : f32
    %181 = vector.broadcast %cst_111 : f32 to vector<8x512xf32>
    %182 = arith.minimumf %178, %181 : vector<8x512xf32>
    %183 = math.exp %182 : vector<8x512xf32>
    %cst_112 = arith.constant 1.000000e+00 : f32
    %184 = vector.broadcast %cst_112 : f32 to vector<8x512xf32>
    %185 = arith.subf %183, %184 : vector<8x512xf32>
    %186 = arith.select %180, %178, %185 : vector<8x512xi1>, vector<8x512xf32>
    %c0_113 = arith.constant 0 : index
    %c0_114 = arith.constant 0 : index
    %187 = vector.load %arg15[%c0_113, %c0_114] : memref<8x512xf32, #tpu.memory_space<vmem>>, vector<8x512xf32>
    tpu.vector_store %arg15[%c0_113, %c0_114], %186 {strides = array<i32>} : memref<8x512xf32, #tpu.memory_space<vmem>>, vector<8x512xf32>,
    %c1_i32 = arith.constant 1 : i32
    %188 = arith.cmpi eq, %arg0, %c1_i32 : i32
    %189 = arith.extui %188 : i1 to i32
    %c0_i32_115 = arith.constant 0 : i32
    %190 = arith.cmpi ne, %189, %c0_i32_115 : i32
    scf.if %190 {
      %c0_116 = arith.constant 0 : index
      %c0_117 = arith.constant 0 : index
      %191 = vector.load %arg15[%c0_116, %c0_117] : memref<8x512xf32, #tpu.memory_space<vmem>>, vector<8x512xf32>
      %c0_118 = arith.constant 0 : index
      %c0_119 = arith.constant 0 : index
      %192 = vector.load %arg10[%c0_118, %c0_119] : memref<512x6xf32, #tpu.memory_space<vmem>>, vector<512x6xf32>
      %cst_120 = arith.constant dense<0.000000e+00> : vector<8x6xf32>
      %193 = tpu.matmul %191, %192, %cst_120 {dimension_numbers = #tpu.dot_dimension_numbers<[1], [0], [0], [1], [0, 0, 1, 1], [], []>} : vector<8x512xf32>, vector<512x6xf32>, vector<8x6xf32> -> vector<8x6xf32>
      %c0_121 = arith.constant 0 : index
      %c0_122 = arith.constant 0 : index
      %194 = vector.load %arg11[%c0_121, %c0_122] : memref<1x6xf32, #tpu.memory_space<vmem>>, vector<1x6xf32>
      %195 = vector.broadcast %194 : vector<1x6xf32> to vector<8x6xf32>
      %196 = arith.addf %193, %195 : vector<8x6xf32>
      %cst_123 = arith.constant 0.000000e+00 : f32
      %197 = vector.broadcast %cst_123 : f32 to vector<8x6xf32>
      %198 = arith.cmpf ogt, %196, %197 : vector<8x6xf32>
      %cst_124 = arith.constant 0.000000e+00 : f32
      %199 = vector.broadcast %cst_124 : f32 to vector<8x6xf32>
      %200 = arith.minimumf %196, %199 : vector<8x6xf32>
      %201 = math.exp %200 : vector<8x6xf32>
      %cst_125 = arith.constant 1.000000e+00 : f32
      %202 = vector.broadcast %cst_125 : f32 to vector<8x6xf32>
      %203 = arith.subf %201, %202 : vector<8x6xf32>
      %204 = arith.select %198, %196, %203 : vector<8x6xi1>, vector<8x6xf32>
      %c0_126 = arith.constant 0 : index
      %c0_127 = arith.constant 0 : index
      %205 = vector.load %arg12[%c0_126, %c0_127] : memref<6x1xf32, #tpu.memory_space<vmem>>, vector<6x1xf32>
      %cst_128 = arith.constant dense<0.000000e+00> : vector<8x1xf32>
      %206 = tpu.matmul %204, %205, %cst_128 {dimension_numbers = #tpu.dot_dimension_numbers<[1], [0], [0], [1], [0, 0, 1, 1], [], []>} : vector<8x6xf32>, vector<6x1xf32>, vector<8x1xf32> -> vector<8x1xf32>
      %c0_129 = arith.constant 0 : index
      %c0_130 = arith.constant 0 : index
      %207 = vector.load %arg13[%c0_129, %c0_130] : memref<1x1xf32, #tpu.memory_space<vmem>>, vector<1x1xf32>
      %208 = vector.broadcast %207 : vector<1x1xf32> to vector<8x1xf32>
      %209 = arith.addf %206, %208 : vector<8x1xf32>
      %210 = math.absf %209 : vector<8x1xf32>
      %c0_131 = arith.constant 0 : index
      %c0_132 = arith.constant 0 : index
      %211 = vector.load %arg14[%c0_131, %c0_132] : memref<8x1xf32, #tpu.memory_space<vmem>>, vector<8x1xf32>
      tpu.vector_store %arg14[%c0_131, %c0_132], %210 {strides = array<i32>} : memref<8x1xf32, #tpu.memory_space<vmem>>, vector<8x1xf32>,
    } else {
    }
    return
  }
  func.func @transform_0(%arg0: i32) -> (i32, i32) {
    %c0_i32 = arith.constant 0 : i32
    %c0_i32_0 = arith.constant 0 : i32
    %c0_i32_1 = arith.constant 0 : i32
    return %c0_i32, %c0_i32_0 : i32, i32
  }
  func.func @transform_1(%arg0: i32) -> (i32, i32) {
    %c0_i32 = arith.constant 0 : i32
    %c0_i32_0 = arith.constant 0 : i32
    %c0_i32_1 = arith.constant 0 : i32
    return %c0_i32, %c0_i32_0 : i32, i32
  }
  func.func @transform_2(%arg0: i32) -> (i32, i32) {
    %c0_i32 = arith.constant 0 : i32
    %c0_i32_0 = arith.constant 0 : i32
    %c0_i32_1 = arith.constant 0 : i32
    return %c0_i32, %c0_i32_0 : i32, i32
  }
  func.func @transform_3(%arg0: i32) -> (i32, i32) {
    %c0_i32 = arith.constant 0 : i32
    %c0_i32_0 = arith.constant 0 : i32
    %c0_i32_1 = arith.constant 0 : i32
    return %c0_i32, %c0_i32_0 : i32, i32
  }
  func.func @transform_4(%arg0: i32) -> (i32, i32) {
    %c0_i32 = arith.constant 0 : i32
    %c0_i32_0 = arith.constant 0 : i32
    %c0_i32_1 = arith.constant 0 : i32
    return %c0_i32, %c0_i32_0 : i32, i32
  }
  func.func @transform_5(%arg0: i32) -> (i32, i32, i32) {
    %c0_i32 = arith.constant 0 : i32
    %c0_i32_0 = arith.constant 0 : i32
    %c0_i32_1 = arith.constant 0 : i32
    return %arg0, %c0_i32, %c0_i32_0 : i32, i32, i32
  }
  func.func @transform_6(%arg0: i32) -> (i32, i32, i32) {
    %c0_i32 = arith.constant 0 : i32
    %c0_i32_0 = arith.constant 0 : i32
    %c0_i32_1 = arith.constant 0 : i32
    return %arg0, %c0_i32, %c0_i32_0 : i32, i32, i32
  }
  func.func @transform_7(%arg0: i32) -> (i32, i32, i32) {
    %c0_i32 = arith.constant 0 : i32
    %c0_i32_0 = arith.constant 0 : i32
    %c0_i32_1 = arith.constant 0 : i32
    return %arg0, %c0_i32, %c0_i32_0 : i32, i32, i32
  }
  func.func @transform_8(%arg0: i32) -> (i32, i32, i32) {
    %c0_i32 = arith.constant 0 : i32
    %c0_i32_0 = arith.constant 0 : i32
    %c0_i32_1 = arith.constant 0 : i32
    return %arg0, %c0_i32, %c0_i32_0 : i32, i32, i32
  }
  func.func @transform_9(%arg0: i32) -> (i32, i32) {
    %c0_i32 = arith.constant 0 : i32
    %c0_i32_0 = arith.constant 0 : i32
    %c0_i32_1 = arith.constant 0 : i32
    return %c0_i32, %c0_i32_0 : i32, i32
  }
  func.func @transform_10(%arg0: i32) -> (i32, i32) {
    %c0_i32 = arith.constant 0 : i32
    %c0_i32_0 = arith.constant 0 : i32
    %c0_i32_1 = arith.constant 0 : i32
    return %c0_i32, %c0_i32_0 : i32, i32
  }
  func.func @transform_11(%arg0: i32) -> (i32, i32) {
    %c0_i32 = arith.constant 0 : i32
    %c0_i32_0 = arith.constant 0 : i32
    %c0_i32_1 = arith.constant 0 : i32
    return %c0_i32, %c0_i32_0 : i32, i32
  }
  func.func @transform_12(%arg0: i32) -> (i32, i32) {
    %c0_i32 = arith.constant 0 : i32
    %c0_i32_0 = arith.constant 0 : i32
    %c0_i32_1 = arith.constant 0 : i32
    return %c0_i32, %c0_i32_0 : i32, i32
  }
  func.func @transform_13(%arg0: i32) -> (i32, i32) {
    %c0_i32 = arith.constant 0 : i32
    %c0_i32_0 = arith.constant 0 : i32
    %c0_i32_1 = arith.constant 0 : i32
    return %c0_i32, %c0_i32_0 : i32, i32
  }
}

</mosaic_0001>

<bundles_post_ra>
// kernel: tpu_custom_call.1
= control target key start
LH: loop header
LB: loop body
LE: loop exit
PB: predicated region body
PF: predicated region fallthrough
CT: control target
= control target key end

     0   :  { %s24602_s0 = inlined_call_operand.hbm [shape: f32[8,6], index: 0, kind: input, shape index: {}]   ;;  %s24603_s1 = inlined_call_operand.hbm [shape: f32[6,6], index: 1, kind: input, shape index: {}]   ;;  %s24604_s2 = inlined_call_operand.hbm [shape: f32[1,6], index: 2, kind: input, shape index: {}]   ;;  %s24605_s3 = inlined_call_operand.hbm [shape: f32[6,512], index: 3, kind: input, shape index: {}]   ;;  %s24606_s4 = inlined_call_operand.hbm [shape: f32[1,512], index: 4, kind: input, shape index: {}]   ;;  %s24607_s5 = inlined_call_operand.hbm [shape: bf16[10,512,1024], index: 5, kind: input, shape index: {}]   ;;  %s24608_s6 = inlined_call_operand.hbm [shape: f32[10,1,1024], index: 6, kind: input, shape index: {}]   ;;  %s24609_s7 = inlined_call_operand.hbm [shape: bf16[10,512,512], index: 7, kind: input, shape index: {}]   ;;  %s24610_s8 = inlined_call_operand.hbm [shape: f32[10,1,512], index: 8, kind: input, shape index: {}]   ;;  %s24611_s9 = inlined_call_operand.vmem [shape: f32[512,6], index: 9, kind: input, shape index: {}]   ;;  %s24612_s10 = inlined_call_operand.hbm [shape: f32[1,6], index: 10, kind: input, shape index: {}]   ;;  %s24613_s11 = inlined_call_operand.vmem [shape: f32[6,1], index: 11, kind: input, shape index: {}]   ;;  %s24614_s12 = inlined_call_operand.<no memory space> [shape: f32[1,1], index: 12, kind: input, shape index: {}]   ;;  %s24615_s13 = inlined_call_operand.vmem [shape: f32[8,1], index: 13, kind: output, shape index: {}]  }
   0x1   :  { %24633 = sst [smem:[#allocation30_spill]] %s24603_s1  ;;  %v18_v0 = vstv %s24614_s12 }
   0x2   :  { %24634 = sst [smem:[#allocation31_spill]] %s24605_s3  ;;  %19 = vst [vmem:[#allocation3] sm:$0x1] %v18_v0 }
   0x3   :  { %24635 = sst [smem:[#allocation32_spill]] %s24607_s5 }
   0x4   :  { %24636 = sst [smem:[#allocation33_spill]] %s24611_s9 }
   0x5   :  { %24637 = sst [smem:[#allocation34_spill]] %s24613_s11 }
   0x6   :  { %24638 = sst [smem:[#allocation35_spill]] %s24615_s13 }
   0x7   :  { %20 = vsyncpa [#allocation5], 0 }
   0x8   :  { %21 = vsyncpa [#allocation7], 0 }
   0x9   :  { %22 = vsyncpa [#allocation10], 0 }
   0xa   :  { %23 = vsyncpa [#allocation13], 0 }
   0xb   :  { %25 = vsyncpa [#allocation13 + $0x1], 0 }
   0xc   :  { %26 = vsyncpa [#allocation16], 0 }
   0xd   :  { %28 = vsyncpa [#allocation16 + $0x1], 0 }
   0xe   :  { %29 = vsyncpa [#allocation19], 0  ;;  %s21644_s27 = smov 0   ;;  %s21646_s28 = smov 0  }
   0xf   :  { %s21648_s29 = smov 0   ;;  %s21650_s30 = smov 0  }
  0x10 LB: > { %24639 = sst [smem:[#allocation26_spill]] %s21543_s29  ;;  %s21549_s12 = smov [#allocation6]   ;;  %s21547_s30 = sphi %s21650_s30, %s24674_s30   ;;  %s21543_s29 = sphi %s21648_s29, %s24676_s29   ;;  %s21539_s28 = sphi %s21646_s28, %s24678_s28   ;;  %s21535_s27 = sphi %s21644_s27, %s24677_s27  }
  0x11   : > { %s378_s14 = sshll.u32 %s21549_s12, 4  ;;  %s21665_s15 = sadd.s32 4294967295, %s21547_s30   ;;  %s379_s14 = int_to_ptr.vmem [resolvable:$true] %s378_s14 }
  0x12   : > { %p16087_p0 = scmp.ge.s32.totalorder %s21547_s30, 1  ;;  %p24616_p1 = scmp.eq.s32.totalorder %s21665_s15, 0 }
  0x13   : > { %p354_p2 = scmp.lt.s32.totalorder %s21547_s30, 3  ;;  %s21550_s17 = smov [#allocation9]  }
  0x14   : > { %s400_s18 = sshll.u32 %s21550_s17, 4  ;;  %s24642_s1 = sld [smem:[#allocation30_spill]]  ;;  %s21677_s18 = int_to_ptr.vmem [resolvable:$true] %s400_s18 }
  0x15   : > { %p21671_p4 = pnand %p16087_p0, %p354_p2 }
  0x17   : > { %s24640_s16 = scalar_select %p21671_p4, 1, 0 }
  0x18   : > { %p20057_p5 = pneg %p21671_p4 }
  0x1a   : > { %p21681_p6 = pnand %p20057_p5, %p24616_p1  ;;  %s21205_s22 = scalar_lea.hbm %s24642_s1, 128 }
  0x1b   : > { %p21206_p7 = scmp.ne.s32.totalorder %s24642_s1, %s21205_s22  ;;  %p21212_p11 = scmp.lt.u32.totalorder %s21205_s22, %s24642_s1 }
  0x1c   : > { %s24641_s19 = scalar_select %p21681_p6, 1, 0 }
  0x1d   : > { %p21693_p8 = pneg %p21681_p6 }
  0x1f   : > { %s24643_s25 = scalar_select %p21693_p8, 1, 0 }
  0x20   : > { %p21208_p9 = pnand %p21693_p8, %p21206_p7 }
  0x22   : > { %p21209_p10 = pneg %p21208_p9 }
  0x24   : > { %p21214_p12 = pnand %p21212_p11, %p21209_p10 }
  0x26   : > { %21217 = shalt.err (!%p21214_p12)
}
  0x27   : > { %s21218_s17 = scalar_lea.vmem %s379_s14, 128  ;;  %p21226_p5 = scmp.lt.s32.totalorder %s379_s14, %s379_s14 }
  0x28   : > { %p21219_p13 = scmp.ne.s32.totalorder %s379_s14, %s21218_s17  ;;  %p21227_p3 = scmp.lt.s32.totalorder %s21218_s17, %s21218_s17 }
  0x2a   : > { %p21221_p0 = pnand %p21219_p13, %p21693_p8  ;;  %p21228_p1 = por %p21227_p3, %p21226_p5 }
  0x2c   : > { %p21222_p2 = pneg %p21221_p0 }
  0x2e   : > { %p21229_p4 = pnand %p21228_p1, %p21222_p2 }
  0x30   : > { %21232 = shalt.err (!%p21229_p4)
}
  0x31   : > { %20063 = dma.hbm_to_vmem [thread:$0]  (!%p21681_p6), %s24642_s1, 128, %s379_s14, [#allocation7]  }
  0x32   : > { %s24644_s3 = sld [smem:[#allocation31_spill]] }
  0x38   : > { %s21233_s24 = scalar_lea.hbm %s24644_s3, 512 }
  0x39   : > { %p21234_p7 = scmp.ne.s32.totalorder %s24644_s3, %s21233_s24  ;;  %p21240_p1 = scmp.lt.u32.totalorder %s21233_s24, %s24644_s3 }
  0x3b   : > { %p21236_p9 = pnand %p21234_p7, %p21693_p8 }
  0x3d   : > { %p21237_p3 = pneg %p21236_p9 }
  0x3f   : > { %p21242_p4 = pnand %p21240_p1, %p21237_p3 }
  0x41   : > { %21245 = shalt.err (!%p21242_p4)
}
  0x42   : > { %s21246_s14 = scalar_lea.vmem %s21677_s18, 512  ;;  %p21254_p13 = scmp.lt.s32.totalorder %s21677_s18, %s21677_s18 }
  0x43   : > { %p21247_p10 = scmp.ne.s32.totalorder %s21677_s18, %s21246_s14  ;;  %p21255_p0 = scmp.lt.s32.totalorder %s21246_s14, %s21246_s14 }
  0x45   : > { %p21249_p11 = pnand %p21247_p10, %p21693_p8  ;;  %p21256_p2 = por %p21255_p0, %p21254_p13 }
  0x47   : > { %p21250_p12 = pneg %p21249_p11 }
  0x49   : > { %p21257_p5 = pnand %p21256_p2, %p21250_p12 }
  0x4b   : > { %21260 = shalt.err (!%p21257_p5)
}
  0x4c   : > { %20069 = dma.hbm_to_vmem [thread:$0]  (!%p21681_p6), %s24644_s3, 512, %s21677_s18, [#allocation10]  }
  0x4d   : > { %s21733_s21 = sadd.s32 1, %s21547_s30   ;;  %s147_s22 = sadd.s32 1, %s21543_s29 }
  0x4e   : > { %24645 = sst [smem:[#allocation27_spill]] %s21733_s21  ;;  %s144_s23 = ssub.s32 %s21547_s30, %s21733_s21 }
  0x4f   : > { %p154_p7 = scmp.ne.s32.totalorder %s21543_s29, %s21539_s28  ;;  %p145_p9 = scmp.eq.s32.totalorder %s144_s23, 0 }
  0x50   : > { %p155_p3 = scmp.eq.s32.totalorder %s21547_s30, 0  ;;  %p160_p1 = scmp.ne.s32.totalorder %s21539_s28, %s21535_s27 }
  0x51   : > { %p20095_p4 = scmp.lt.s32.totalorder %s21547_s30, 2  ;;  %p24647_p11 = scmp.eq.s32.totalorder %s21665_s15, 0 }
  0x52   : > { %s21745_s24 = scalar_select %p145_p9, %s21543_s29, %s147_s22  }
  0x53   : > { %p156_p10 = por %p155_p3, %p154_p7  ;;  %p21749_p12 = por %p24647_p11, %p160_p1 }
  0x54   : > { %24646 = sst [smem:[#allocation28_spill]] %s21745_s24  ;;  %s21755_s12 = sand.u32 1, %s21543_s29  }
  0x55   : > { %s24648_s26 = scalar_select %p21749_p12, 1, 0 }
  0x56   : > { %s20017_s17 = smul.u32 10240, %s21755_s12  ;;  %p21759_p13 = pnand %p20095_p4, %p156_p10 }
  0x57   : > { %24649 = sst [smem:[#allocation29_spill]] %s24648_s26  ;;  %s19645_s14 = smul.u32 163840, %s21547_s30 }
  0x58   : > { %s24650_s13 = scalar_select %p21759_p13, 1, 0 }
  0x59   : > { %s24651_s5 = sld [smem:[#allocation32_spill]]  ;;  %s446_s23 = scalar_lea.vmem [#allocation12], %s20017_s17 }
  0x5a   : > { %s454_s18 = sshll.u32 %s446_s23, 4  ;;  %s24652_s1 = sand.u32 1, %s21547_s30   ;;  %s21768_s18 = int_to_ptr.vmem [resolvable:$true] %s454_s18 }
  0x5b   : > { %s21772_s3 = scalar_lea.sflag [#allocation13], %s24652_s1  ;;  %p21778_p2 = pneg %p21759_p13 }
  0x5d   : > { %s24653_s29 = scalar_select %p21778_p2, 1, 0 }
  0x5f   : > { %s21766_s22 = scalar_lea.hbm %s24651_s5, %s19645_s14  ;;  %s21266_s17 = scalar_lea.hbm %s24651_s5, 327680 }
  0x60   : > { %s21261_s24 = scalar_lea.hbm %s21766_s22, 163840  ;;  %p21267_p9 = scmp.lt.u32.totalorder %s21766_s22, %s24651_s5 }
  0x61   : > { %p21262_p0 = scmp.ne.s32.totalorder %s21766_s22, %s21261_s24  ;;  %p21268_p3 = scmp.lt.u32.totalorder %s21266_s17, %s21261_s24 }
  0x62   : > { %p21270_p4 = scmp.lt.u32.totalorder %s21261_s24, %s21766_s22 }
  0x63   : > { %p21264_p5 = pnand %p21778_p2, %p21262_p0  ;;  %p21269_p1 = por %p21268_p3, %p21267_p9 }
  0x65   : > { %p21265_p7 = pneg %p21264_p5  ;;  %p21271_p10 = por %p21270_p4, %p21269_p1 }
  0x67   : > { %p21272_p11 = pnand %p21271_p10, %p21265_p7 }
  0x69   : > { %21275 = shalt.err (!%p21272_p11)
}
  0x6a   : > { %s21276_s1 = scalar_lea.vmem %s21768_s18, 163840  ;;  %s21551_s14 = smov [#allocation12]  }
  0x6b   : > { %p21277_p0 = scmp.ne.s32.totalorder %s21768_s18, %s21276_s1  ;;  %s21281_s27 = sshll.u32 %s21551_s14, 4  ;;  %s21282_s27 = int_to_ptr.vmem [resolvable:$false] %s21281_s27 }
  0x6c   : > { %s21283_s20 = scalar_lea.vmem %s21282_s27, 327680  ;;  %p21284_p6 = scmp.lt.s32.totalorder %s21768_s18, %s21282_s27 }
  0x6d   : > { %p21279_p5 = pnand %p21277_p0, %p21778_p2  ;;  %p21285_p8 = scmp.lt.s32.totalorder %s21283_s20, %s21276_s1 }
  0x6f   : > { %p21280_p12 = pneg %p21279_p5  ;;  %p21286_p9 = por %p21285_p8, %p21284_p6 }
  0x71   : > { %p21287_p3 = pnand %p21286_p9, %p21280_p12 }
  0x73   : > { %21290 = shalt.err (!%p21287_p3)
}
  0x74   : > { %s21552_s24 = smov 512   ;;  %s21553_s17 = smov 32  }
  0x75   : > { %20079 = dma.hbm_to_vmem [thread:$0]  (!%p21759_p13), %s21766_s22, 163840, %s21768_s18, %s21772_s3, %s21552_s24, %s21552_s24, %s21553_s17  }
  0x76   : > { %s20019_s23 = smul.u32 5120, %s21755_s12  ;;  %s21554_s11 = smov [#allocation4]  }
  0x77   : > { %s19647_s14 = smul.u32 81920, %s21547_s30  ;;  %s21811_s9 = sshll.u32 %s21554_s11, 4  ;;  %s368_s9 = int_to_ptr.vmem [resolvable:$true] %s21811_s9 }
  0x78   : > { %s490_s20 = scalar_lea.vmem [#allocation15], %s20019_s23  ;;  %s24654_s26 = sand.u32 1, %s21547_s30  }
  0x79   : > { %s21807_s1 = scalar_lea.hbm %s24609_s7, %s19647_s14  ;;  %s498_s21 = sshll.u32 %s490_s20, 4  ;;  %s21809_s21 = int_to_ptr.vmem [resolvable:$true] %s498_s21 }
  0x7a   : > { %s21815_s18 = scalar_lea.sflag [#allocation16], %s24654_s26  ;;  %s21291_s22 = scalar_lea.hbm %s21807_s1, 81920 }
  0x7b   : > { %p21292_p6 = scmp.ne.s32.totalorder %s21807_s1, %s21291_s22  ;;  %s21296_s17 = scalar_lea.hbm %s24609_s7, 163840 }
  0x7c   : > { %p21297_p7 = scmp.lt.u32.totalorder %s21807_s1, %s24609_s7  ;;  %p21298_p1 = scmp.lt.u32.totalorder %s21296_s17, %s21291_s22 }
  0x7d   : > { %p21294_p8 = pnand %p21292_p6, %p21778_p2  ;;  %p21300_p10 = scmp.lt.u32.totalorder %s21291_s22, %s21807_s1 }
  0x7e   : > { %p21299_p4 = por %p21298_p1, %p21297_p7 }
  0x7f   : > { %p21295_p12 = pneg %p21294_p8 }
  0x80   : > { %p21301_p11 = por %p21300_p10, %p21299_p4 }
  0x82   : > { %p21302_p0 = pnand %p21301_p11, %p21295_p12 }
  0x84   : > { %21305 = shalt.err (!%p21302_p0)
}
  0x85   : > { %s21306_s11 = scalar_lea.vmem %s21809_s21, 81920  ;;  %s21555_s26 = smov [#allocation15]  }
  0x86   : > { %p21307_p5 = scmp.ne.s32.totalorder %s21809_s21, %s21306_s11  ;;  %s21311_s27 = sshll.u32 %s21555_s26, 4  ;;  %s21312_s27 = int_to_ptr.vmem [resolvable:$false] %s21311_s27 }
  0x87   : > { %s21313_s20 = scalar_lea.vmem %s21312_s27, 163840  ;;  %p21314_p6 = scmp.lt.s32.totalorder %s21809_s21, %s21312_s27 }
  0x88   : > { %p21309_p9 = pnand %p21307_p5, %p21778_p2  ;;  %p21315_p8 = scmp.lt.s32.totalorder %s21313_s20, %s21306_s11 }
  0x8a   : > { %p21310_p3 = pneg %p21309_p9  ;;  %p21316_p7 = por %p21315_p8, %p21314_p6 }
  0x8c   : > { %p21317_p1 = pnand %p21316_p7, %p21310_p3 }
  0x8e   : > { %21320 = shalt.err (!%p21317_p1)
}
  0x8f   : > { %s21556_s22 = smov 256   ;;  %s21557_s5 = smov 16  }
  0x90   : > { %20085 = dma.hbm_to_vmem [thread:$0]  (!%p21759_p13), %s21807_s1, 81920, %s21809_s21, %s21815_s18, %s21556_s22, %s21556_s22, %s21557_s5  }
  0x91   : > { %s21321_s14 = scalar_lea.hbm %s24602_s0, 128  ;;  %p24655_p4 = scmp.ne.s32.totalorder %s24643_s25, 0 }
  0x92   : > { %p21322_p12 = scmp.ne.s32.totalorder %s24602_s0, %s21321_s14  ;;  %p21328_p0 = scmp.lt.u32.totalorder %s21321_s14, %s24602_s0 }
  0x94   : > { %p21324_p10 = pnand %p21322_p12, %p24655_p4 }
  0x96   : > { %p21325_p11 = pneg %p21324_p10 }
  0x98   : > { %p21330_p5 = pnand %p21328_p0, %p21325_p11 }
  0x9a   : > { %21333 = shalt.err (!%p21330_p5)
}
  0x9b   : > { %s21334_s20 = scalar_lea.vmem %s368_s9, 128  ;;  %p21342_p8 = scmp.lt.s32.totalorder %s368_s9, %s368_s9 }
  0x9c   : > { %p21335_p9 = scmp.ne.s32.totalorder %s368_s9, %s21334_s20  ;;  %p21343_p7 = scmp.lt.s32.totalorder %s21334_s20, %s21334_s20 }
  0x9e   : > { %p21337_p3 = pnand %p21335_p9, %p24655_p4  ;;  %p21344_p1 = por %p21343_p7, %p21342_p8 }
  0xa0   : > { %p21338_p6 = pneg %p21337_p3 }
  0xa2   : > { %p21345_p13 = pnand %p21344_p1, %p21338_p6 }
  0xa4   : > { %21348 = shalt.err (!%p21345_p13)
}
  0xa5   : > { %p24656_p12 = scmp.ne.s32.totalorder %s24641_s19, 0  ;;  %s21558_s22 = smov [#allocation8]  }
  0xa6   : > { %s389_s5 = sshll.u32 %s21558_s22, 4  ;;  %s21559_s24 = smov [#allocation11]   ;;  %s390_s5 = int_to_ptr.vmem [resolvable:$true] %s389_s5 }
  0xa7   : > { %20060 = dma.hbm_to_vmem [thread:$0]  (!%p24656_p12), %s24602_s0, 128, %s368_s9, [#allocation5]  }
  0xa8   : > { %s411_s17 = sshll.u32 %s21559_s24, 4  ;;  %s21349_s11 = scalar_lea.hbm %s24604_s2, 16  ;;  %s412_s17 = int_to_ptr.vmem [resolvable:$true] %s411_s17 }
  0xa9   : > { %p21350_p13 = scmp.ne.s32.totalorder %s24604_s2, %s21349_s11  ;;  %p21356_p0 = scmp.lt.u32.totalorder %s21349_s11, %s24604_s2 }
  0xab   : > { %p21352_p10 = pnand %p21350_p13, %p24655_p4 }
  0xad   : > { %p21353_p11 = pneg %p21352_p10 }
  0xaf   : > { %p21358_p5 = pnand %p21356_p0, %p21353_p11 }
  0xb1   : > { %21361 = shalt.err (!%p21358_p5)
}
  0xb2   : > { %s21362_s9 = scalar_lea.vmem %s390_s5, 16  ;;  %s21369_s1 = scalar_lea.vmem %s390_s5, 32 }
  0xb3   : > { %p21363_p9 = scmp.ne.s32.totalorder %s390_s5, %s21362_s9  ;;  %p21370_p8 = scmp.lt.s32.totalorder %s390_s5, %s390_s5 }
  0xb4   : > { %p21371_p7 = scmp.lt.s32.totalorder %s21369_s1, %s21362_s9 }
  0xb5   : > { %p21365_p3 = pnand %p21363_p9, %p24655_p4 }
  0xb6   : > { %p21372_p1 = por %p21371_p7, %p21370_p8 }
  0xb7   : > { %p21366_p6 = pneg %p21365_p3 }
  0xb9   : > { %p21373_p2 = pnand %p21372_p1, %p21366_p6 }
  0xbb   : > { %21376 = shalt.err (!%p21373_p2)
}
  0xbc   : > { %20066 = dma.hbm_to_vmem [thread:$0]  (!%p24656_p12), %s24604_s2, 16, %s390_s5, [#allocation7]  }
  0xbd   : > { %s21377_s11 = scalar_lea.hbm %s24606_s4, 64 }
  0xbe   : > { %p21378_p13 = scmp.ne.s32.totalorder %s24606_s4, %s21377_s11  ;;  %p21384_p2 = scmp.lt.u32.totalorder %s21377_s11, %s24606_s4 }
  0xc0   : > { %p21380_p10 = pnand %p21378_p13, %p24655_p4 }
  0xc2   : > { %p21381_p11 = pneg %p21380_p10 }
  0xc4   : > { %p21386_p0 = pnand %p21384_p2, %p21381_p11 }
  0xc6   : > { %21389 = shalt.err (!%p21386_p0)
}
  0xc7   : > { %s21390_s9 = scalar_lea.vmem %s412_s17, 64  ;;  %p21398_p6 = scmp.lt.s32.totalorder %s412_s17, %s412_s17 }
  0xc8   : > { %p21391_p5 = scmp.ne.s32.totalorder %s412_s17, %s21390_s9  ;;  %p21399_p8 = scmp.lt.s32.totalorder %s21390_s9, %s21390_s9 }
  0xca   : > { %p21393_p9 = pnand %p21391_p5, %p24655_p4  ;;  %p21400_p7 = por %p21399_p8, %p21398_p6 }
  0xcc   : > { %p21394_p3 = pneg %p21393_p9 }
  0xce   : > { %p21401_p1 = pnand %p21400_p7, %p21394_p3 }
  0xd0   : > { %21404 = shalt.err (!%p21401_p1)
}
  0xd1   : > { %20072 = dma.hbm_to_vmem [thread:$0]  (!%p24656_p12), %s24606_s4, 64, %s412_s17, [#allocation10]  }
  0xd2   : > { %s21560_s22 = smov [#allocation18]   ;;  %s20018_s14 = smul.u32 40, %s21755_s12 }
  0xd3   : > { %s425_s24 = sshll.u32 %s21560_s22, 4  ;;  %s19646_s23 = smul.u32 640, %s21547_s30  ;;  %s426_s24 = int_to_ptr.vmem [resolvable:$true] %s425_s24 }
  0xd4   : > { %s21405_s27 = scalar_lea.hbm %s24612_s10, 16 }
  0xd5   : > { %p21406_p13 = scmp.ne.s32.totalorder %s24612_s10, %s21405_s27  ;;  %p21412_p2 = scmp.lt.u32.totalorder %s21405_s27, %s24612_s10 }
  0xd7   : > { %p21408_p10 = pnand %p21406_p13, %p24655_p4 }
  0xd9   : > { %p21409_p11 = pneg %p21408_p10 }
  0xdb   : > { %p21414_p0 = pnand %p21412_p2, %p21409_p11 }
  0xdd   : > { %21417 = shalt.err (!%p21414_p0)
}
  0xde   : > { %s21418_s17 = scalar_lea.vmem %s426_s24, 16  ;;  %s21425_s1 = scalar_lea.vmem %s426_s24, 32 }
  0xdf   : > { %p21419_p5 = scmp.ne.s32.totalorder %s426_s24, %s21418_s17  ;;  %p21426_p6 = scmp.lt.s32.totalorder %s426_s24, %s426_s24 }
  0xe0   : > { %p21427_p8 = scmp.lt.s32.totalorder %s21425_s1, %s21418_s17 }
  0xe1   : > { %p21421_p9 = pnand %p21419_p5, %p24655_p4 }
  0xe2   : > { %p21428_p7 = por %p21427_p8, %p21426_p6 }
  0xe3   : > { %p21422_p3 = pneg %p21421_p9 }
  0xe5   : > { %p21429_p1 = pnand %p21428_p7, %p21422_p3 }
  0xe7   : > { %21432 = shalt.err (!%p21429_p1)
}
  0xe8   : > { %20075 = dma.hbm_to_vmem [thread:$0]  (!%p24656_p12), %s24612_s10, 16, %s426_s24, [#allocation19]  }
  0xe9   : > { %s21917_s20 = scalar_lea.hbm %s24608_s6, %s19646_s23  ;;  %s468_s25 = scalar_lea.vmem [#allocation14], %s20018_s14 }
  0xea   : > { %s476_s21 = sshll.u32 %s468_s25, 4  ;;  %s21433_s9 = scalar_lea.hbm %s21917_s20, 640  ;;  %s21919_s21 = int_to_ptr.vmem [resolvable:$true] %s476_s21 }
  0xeb   : > { %p21434_p4 = scmp.ne.s32.totalorder %s21917_s20, %s21433_s9  ;;  %p24657_p13 = scmp.ne.s32.totalorder %s24653_s29, 0 }
  0xec   : > { %s21438_s5 = scalar_lea.hbm %s24608_s6, 1280  ;;  %p21439_p12 = scmp.lt.u32.totalorder %s21917_s20, %s24608_s6 }
  0xed   : > { %p21436_p10 = pnand %p21434_p4, %p24657_p13  ;;  %p21440_p2 = scmp.lt.u32.totalorder %s21438_s5, %s21433_s9 }
  0xee   : > { %p21442_p5 = scmp.lt.u32.totalorder %s21433_s9, %s21917_s20 }
  0xef   : > { %p21437_p11 = pneg %p21436_p10  ;;  %p21441_p0 = por %p21440_p2, %p21439_p12 }
  0xf1   : > { %p21443_p9 = por %p21442_p5, %p21441_p0 }
  0xf3   : > { %p21444_p3 = pnand %p21443_p9, %p21437_p11 }
  0xf5   : > { %21447 = shalt.err (!%p21444_p3)
}
  0xf6   : > { %s21448_s14 = scalar_lea.vmem %s21919_s21, 640  ;;  %s21561_s1 = smov [#allocation14]  }
  0xf7   : > { %p21449_p6 = scmp.ne.s32.totalorder %s21919_s21, %s21448_s14  ;;  %s21453_s22 = sshll.u32 %s21561_s1, 4  ;;  %s21454_s22 = int_to_ptr.vmem [resolvable:$false] %s21453_s22 }
  0xf8   : > { %s21455_s11 = scalar_lea.vmem %s21454_s22, 1280  ;;  %p21456_p1 = scmp.lt.s32.totalorder %s21919_s21, %s21454_s22 }
  0xf9   : > { %p21451_p8 = pnand %p21449_p6, %p24657_p13  ;;  %p21457_p4 = scmp.lt.s32.totalorder %s21455_s11, %s21448_s14 }
  0xfb   : > { %p21452_p7 = pneg %p21451_p8  ;;  %p21458_p10 = por %p21457_p4, %p21456_p1 }
  0xfd   : > { %p21459_p12 = pnand %p21458_p10, %p21452_p7 }
  0xff   : > { %21462 = shalt.err (!%p21459_p12)
}
 0x100   : > { %s21562_s26 = smov 128   ;;  %s21563_s27 = smov 8  }
 0x101   : > { %p24658_p11 = scmp.ne.s32.totalorder %s24650_s13, 0  ;;  %s20020_s25 = smul.u32 20, %s21755_s12 }
 0x102   : > { %s19648_s9 = smul.u32 320, %s21547_s30  ;;  %s21468_s12 = scalar_lea.hbm %s24610_s8, 640 }
 0x103   : > { %20082 = dma.hbm_to_vmem [thread:$0]  (!%p24658_p11), %s21917_s20, 640, %s21919_s21, %s21772_s3, %s21562_s26, %s21562_s26, %s21563_s27  }
 0x104   : > { %s21948_s5 = scalar_lea.hbm %s24610_s8, %s19648_s9  ;;  %s512_s17 = scalar_lea.vmem [#allocation17], %s20020_s25 }
 0x105   : > { %s520_s23 = sshll.u32 %s512_s17, 4  ;;  %s21463_s14 = scalar_lea.hbm %s21948_s5, 320  ;;  %s21950_s23 = int_to_ptr.vmem [resolvable:$true] %s520_s23 }
 0x106   : > { %p21464_p2 = scmp.ne.s32.totalorder %s21948_s5, %s21463_s14  ;;  %p21469_p9 = scmp.lt.u32.totalorder %s21948_s5, %s24610_s8 }
 0x107   : > { %p21470_p3 = scmp.lt.u32.totalorder %s21468_s12, %s21463_s14  ;;  %p21472_p8 = scmp.lt.u32.totalorder %s21463_s14, %s21948_s5 }
 0x108   : > { %p21466_p0 = pnand %p21464_p2, %p24657_p13 }
 0x109   : > { %p21471_p6 = por %p21470_p3, %p21469_p9 }
 0x10a   : > { %p21467_p5 = pneg %p21466_p0 }
 0x10b   : > { %p21473_p7 = por %p21472_p8, %p21471_p6 }
 0x10d   : > { %p21474_p1 = pnand %p21473_p7, %p21467_p5 }
 0x10f   : > { %21477 = shalt.err (!%p21474_p1)
}
 0x110   : > { %s21478_s1 = scalar_lea.vmem %s21950_s23, 320  ;;  %s21564_s22 = smov [#allocation17]  }
 0x111   : > { %p21479_p4 = scmp.ne.s32.totalorder %s21950_s23, %s21478_s1  ;;  %s21483_s11 = sshll.u32 %s21564_s22, 4  ;;  %s21484_s11 = int_to_ptr.vmem [resolvable:$false] %s21483_s11 }
 0x112   : > { %s21485_s26 = scalar_lea.vmem %s21484_s11, 640  ;;  %p21486_p2 = scmp.lt.s32.totalorder %s21950_s23, %s21484_s11 }
 0x113   : > { %p21481_p10 = pnand %p21479_p4, %p24657_p13  ;;  %p21487_p0 = scmp.lt.s32.totalorder %s21485_s26, %s21478_s1 }
 0x115   : > { %p21482_p12 = pneg %p21481_p10  ;;  %p21488_p9 = por %p21487_p0, %p21486_p2 }
 0x117   : > { %p21489_p3 = pnand %p21488_p9, %p21482_p12 }
 0x119   : > { %21492 = shalt.err (!%p21489_p3)
}
 0x11a   : > { %s21565_s27 = smov 64   ;;  %s21566_s25 = smov 4  }
 0x11b   : > { %20088 = dma.hbm_to_vmem [thread:$0]  (!%p24658_p11), %s21948_s5, 320, %s21950_s23, %s21815_s18, %s21565_s27, %s21565_s27, %s21566_s25  }
 0x11c   : > { %p24659_p13 = scmp.ne.s32.totalorder %s24640_s16, 0 }
 0x11d   : > { %p24660_p5 = scmp.eq.s32.totalorder (!%p24659_p13), %s21665_s15, 0 }
 0x11e   : > { %532 = sbr.rel (%p24659_p13) target bundleno = 4333 (0x10ed), region = 72 }
 0x125   : > { %21510 = dma.done.wait (%p24660_p5), [#allocation5], 128   ;;  %p24661_p6 = pmov %p24660_p5 }
 0x126   : > { %p24662_p8 = pmov %p24660_p5 }
 0x127   : > { %21512 = vsyncadd (%p24661_p6), [#allocation5], 4294967168 }
 0x128   : > { %21514 = dma.done.wait (%p24662_p8), [#allocation7], 144   ;;  %p24663_p7 = pmov %p24660_p5 }
 0x129   : > { %p24664_p1 = pmov %p24660_p5 }
 0x12a   : > { %21516 = vsyncadd (%p24663_p7), [#allocation7], 4294967152 }
 0x12b   : > { %21518 = dma.done.wait (%p24664_p1), [#allocation10], 576   ;;  %p24665_p11 = pmov %p24664_p1 }
 0x12c   : > { %s24666_s29 = sld [smem:[#allocation29_spill]]  ;;  %s554_s16 = sand.u32 1, %s21665_s15  }
 0x12d   : > { %21520 = vsyncadd (%p24665_p11), [#allocation10], 4294966720  ;;  %s556_s13 = sand.u32 1, %s21539_s28   ;;  %s555_s9 = scalar_lea.sflag [#allocation13], %s554_s16 }
 0x12e   : > { %s20021_s18 = smul.u32 10240, %s556_s13 }
 0x130   : > { %s21990_s19 = scalar_lea.vmem [#allocation12], %s20021_s18 }
 0x132   : > { %p24667_p4 = scmp.ne.s32.totalorder %s24666_s29, 0 }
 0x134   : > { %21522 = dma.done.wait (%p24667_p4), %s555_s9, 164480  }
 0x135   : > { %21524 = vsyncadd (%p24667_p4), %s555_s9, 4294802816  ;;  %s20022_s24 = smul.u32 40, %s556_s13  ;;  %s573_s23 = scalar_lea.sflag [#allocation16], %s554_s16 }
 0x136   : > { %s20023_s5 = smul.u32 5120, %s556_s13 }
 0x137   : > { %s21996_s17 = scalar_lea.vmem [#allocation14], %s20022_s24 }
 0x138   : > { %s21998_s14 = scalar_lea.vmem [#allocation15], %s20023_s5 }
 0x139   : > { %21526 = dma.done.wait (%p24667_p4), %s573_s23, 82240  }
 0x13a   : > { %21528 = vsyncadd (%p24667_p4), %s573_s23, 4294885056  ;;  %s20024_s3 = smul.u32 20, %s556_s13  ;;  %p24668_p10 = pmov %p24664_p1 }
 0x13c   : > { %s22004_s30 = scalar_lea.vmem [#allocation17], %s20024_s3 }
 0x13d   : > { %21530 = dma.done.wait (%p24668_p10), [#allocation19], 16   ;;  %p24669_p12 = pmov %p24664_p1 }
 0x13e   : > { %p24670_p2 = scmp.ne.s32.totalorder %s21665_s15, 0 }
 0x13f   : > { %21532 = vsyncadd (%p24669_p12), [#allocation19], 4294967280  ;;  %v651_v1 = vld [vmem:[#allocation6] sm:$0x3f] (!%p24670_p2)  ;;  %vm663_vm0 = vcmask (!%p24670_p2), 1045504   ;;  %v650_v2 = vld [vmem:[#allocation4] sm:$0xff] (!%p24670_p2)  ;;  %v749_v17 = vlaneseq (!%p24670_p2) }
 0x140   : > { %649 = sbr.rel (%p24670_p2) target bundleno = 791 (0x317), region = 116  ;;  %v21567_v3 = vmov (!%p24670_p2), 0.0   ;;  %vm21568_vm1 = vmmov (!%p24670_p2), 0   ;;  %vm659_vm2 = vcmask (!%p24670_p2), 48128   ;;  %v746_v4 = vld [vmem:[#allocation9 + $0x18] sm:$0x3f] (!%p24670_p2) }
 0x141   : > { %19723 = vmatprep.subr.mxu0 (!%p24670_p2), %v21567_v3  ;;  %19725 = vmatprep.mubr.msk.f32.mxu0 (!%p24670_p2), %vm21568_vm1, %v21567_v3  ;;  %v745_v5 = vld [vmem:[#allocation9 + $0x10] sm:$0x3f] (!%p24670_p2)  ;;  %v744_v6 = vld [vmem:[#allocation9 + $0x8] sm:$0x3f] (!%p24670_p2)  ;;  %v743_v7 = vld [vmem:[#allocation9] sm:$0x3f] (!%p24670_p2) }
 0x142   : > { %19724 = vmatpush3.msk.msra.mxu0 (!%p24670_p2), %vm663_vm0, %v651_v1  ;;  %848 = vmatprep.mubr.f32.mxu1 (!%p24670_p2), %v21567_v3  ;;  %v16111_v8 = vld [vmem:[#allocation8] ss:$0 sm:$0xff] (!%p24670_p2)  ;;  %v750_v18 = vshrl.u32 (!%p24670_p2), %v749_v17, 7  ;;  %v747_v21 = vld [vmem:[#allocation11] sm:$0xf] (!%p24670_p2) }
 0x143   : > { %19726 = vmatmul.mubr.msk.f32.vlgmr.msra.gmra.mrb[0].mxu0 (!%p24670_p2), %vm659_vm2, %v650_v2  ;;  %16118 = vmatprep.subr.msk.mxu0 (!%p24670_p2), %vm663_vm0, %v746_v4 }
 0x144   : > { %919 = vmatprep.mubr.f32.mxu0 (!%p24670_p2), %v21567_v3  ;;  %16115 = vmatprep.subr.msk.mxu1 (!%p24670_p2), %vm663_vm0, %v744_v6  ;;  %v751_v19 = vsub.s32 (!%p24670_p2), 0, %v750_v18  ;;  %v759_v20 = vsub.s32 (!%p24670_p2), 2, %v750_v18  ;;  %v755_v22 = vsub.s32 (!%p24670_p2), 1, %v750_v18  ;;  %v763_v23 = vsub.s32 (!%p24670_p2), 3, %v750_v18 }
 0x145   : > { %16119 = vmatpush1.msk.msra.mxu0 (!%p24670_p2), %vm663_vm0, %v745_v5  ;;  %16116 = vmatpush1.msk.msra.mxu1 (!%p24670_p2), %vm663_vm0, %v743_v7 }
 0x146   : > { %v752_v24 = vrot.slane (!%p24670_p2), %v747_v21, %v751_v19  ;;  %v760_v25 = vrot.slane (!%p24670_p2), %v747_v21, %v759_v20  ;;  %v756_v26 = vrot.slane (!%p24670_p2), %v747_v21, %v755_v22  ;;  %v764_v27 = vrot.slane (!%p24670_p2), %v747_v21, %v763_v23 }
 0x216   : > { %v733_v9 = vpop.f32.mrb[0].mxu0 }
 0x217   : > { %v734_v10 = vadd.f32 %v16111_v8, %v733_v9  ;;  %v19727_v11 = vpop.f32.mrb[1].mxu0 }
 0x219   : > { %v738_v12 = vmin.f32 %v734_v10, 0.0  ;;  %vm737_vm3 = vcmp.gt.f32.partialorder %v734_v10, 0.0 }
 0x21b   : > { %v739_v13 = vmul.f32 1.442695, %v738_v12 }
 0x21d   : > { %20152 = vpow2.f32 %v739_v13 }
 0x227   : > { %v20153_v14 = vpop.eup %20152 }
 0x228   : > { %v16114_v15 = vadd.f32 -1.0, %v20153_v14 }
 0x22a   : > { %v742_v16 = vsel %vm737_vm3, %v734_v10, %v16114_v15 }
 0x22b   : > { %16117 = vmatmul.mubr.msk.f32.vlgmr.msra.gmra.mrb[0].mxu1 %vm659_vm2, %v742_v16  ;;  %16120 = vmatmul.mubr.msk.f32.vlgmr.msra.gmra.mrb[2].mxu0 %vm659_vm2, %v742_v16 }
 0x2fe   : > { %v850_v28 = vpop.f32.mrb[0].mxu1  ;;  %v921_v29 = vpop.f32.mrb[2].mxu0 }
 0x2ff   : > { %v851_v30 = vadd.f32 %v850_v28, %v752_v24  ;;  %v922_v31 = vadd.f32 %v921_v29, %v760_v25  ;;  %v852_v32 = vpop.f32.mrb[1].mxu1  ;;  %v923_v33 = vpop.f32.mrb[3].mxu0 }
 0x300   : > { %v853_v34 = vadd.f32 %v852_v32, %v756_v26  ;;  %v924_v35 = vadd.f32 %v923_v33, %v764_v27 }
 0x301   : > { %v930_v36 = vmin.f32 %v851_v30, 0.0  ;;  %v932_v37 = vmin.f32 %v922_v31, 0.0  ;;  %vm926_vm4 = vcmp.gt.f32.partialorder %v851_v30, 0.0  ;;  %vm928_vm5 = vcmp.gt.f32.partialorder %v922_v31, 0.0 }
 0x302   : > { %v931_v38 = vmin.f32 %v853_v34, 0.0  ;;  %v933_v39 = vmin.f32 %v924_v35, 0.0  ;;  %vm927_vm6 = vcmp.gt.f32.partialorder %v853_v34, 0.0  ;;  %vm929_vm7 = vcmp.gt.f32.partialorder %v924_v35, 0.0 }
 0x303   : > { %v934_v40 = vmul.f32 1.442695, %v930_v36  ;;  %v938_v41 = vmul.f32 1.442695, %v932_v37 }
 0x304   : > { %v936_v42 = vmul.f32 1.442695, %v931_v38  ;;  %v940_v43 = vmul.f32 1.442695, %v933_v39 }
 0x305   : > { %20154 = vpow2.f32 %v934_v40 }
 0x306   : > { %20156 = vpow2.f32 %v938_v41 }
 0x307   : > { %20158 = vpow2.f32 %v936_v42 }
 0x308   : > { %20160 = vpow2.f32 %v940_v43 }
 0x30f   : > { %v20155_v44 = vpop.eup %20154 }
 0x310   : > { %v20157_v45 = vpop.eup %20156  ;;  %v16121_v46 = vadd.f32 -1.0, %v20155_v44 }
 0x311   : > { %v20159_v47 = vpop.eup %20158  ;;  %v16123_v48 = vadd.f32 -1.0, %v20157_v45 }
 0x312   : > { %v20161_v49 = vpop.eup %20160  ;;  %v946_v50 = vsel %vm926_vm4, %v851_v30, %v16121_v46  ;;  %v16122_v51 = vadd.f32 -1.0, %v20159_v47 }
 0x313   : > { %950 = vst [vmem:[#allocation2] sm:$0xff] %v946_v50  ;;  %v948_v52 = vsel %vm928_vm5, %v922_v31, %v16123_v48  ;;  %v16124_v53 = vadd.f32 -1.0, %v20161_v49 }
 0x314   : > { %952 = vst [vmem:[#allocation2 + $0x10] sm:$0xff] %v948_v52  ;;  %v947_v54 = vsel %vm927_vm6, %v853_v34, %v16122_v51 }
 0x315   : > { %951 = vst [vmem:[#allocation2 + $0x8] sm:$0xff] %v947_v54  ;;  %v949_v55 = vsel %vm929_vm7, %v924_v35, %v16124_v53 }
 0x316   : > { %953 = vst [vmem:[#allocation2 + $0x18] sm:$0xff] %v949_v55 }
 0x317 PF: > { %v962_v56 = vld [vmem:[%s21990_s19] sm:$0xff]  ;;  %v963_v58 = vld [vmem:[%s21990_s19 + $0x8] sm:$0xff]  ;;  %p19629_p0 = scmp.ne.s32.totalorder %s21665_s15, 1 }
 0x318   : > { %v966_v57 = vld [vmem:[%s21990_s19 + $0x20] sm:$0xff]  ;;  %v967_v60 = vld [vmem:[%s21990_s19 + $0x28] sm:$0xff]  ;;  %s24671_s21 = sld [smem:[#allocation33_spill]] (!%p19629_p0)  ;;  %s24672_s3 = sld [smem:[#allocation34_spill]] (!%p19629_p0) }
 0x319   : > { %v16126_v59 = vcombine.high %v962_v56, %v966_v57  ;;  %v16125_v61 = vcombine.low %v962_v56, %v966_v57  ;;  %v970_v62 = vld [vmem:[%s21990_s19 + $0x40] sm:$0xff]  ;;  %v16128_v0 = vcombine.high %v963_v58, %v967_v60  ;;  %v16127_v1 = vcombine.low %v963_v58, %v967_v60  ;;  %v971_v3 = vld [vmem:[%s21990_s19 + $0x48] sm:$0xff]  ;;  %s24673_s20 = sld [smem:[#allocation35_spill]] (!%p19629_p0) }
 0x31a   : > { %v974_v63 = vld [vmem:[%s21990_s19 + $0x60] sm:$0xff]  ;;  %v975_v4 = vld [vmem:[%s21990_s19 + $0x68] sm:$0xff] }
 0x31b   : > { %v16134_v2 = vcombine.high %v970_v62, %v974_v63  ;;  %v978_v5 = vld [vmem:[%s21990_s19 + $0x80] sm:$0xff]  ;;  %2540 = vmatprep.subr.bf16.mxu0 %v16126_v59  ;;  %v16136_v6 = vcombine.high %v971_v3, %v975_v4  ;;  %v979_v8 = vld [vmem:[%s21990_s19 + $0x88] sm:$0xff]  ;;  %2622 = vmatprep.subr.bf16.mxu1 %v16128_v0  ;;  %v16133_v10 = vcombine.low %v970_v62, %v974_v63 }
 0x31c   : > { %v982_v7 = vld [vmem:[%s21990_s19 + $0xa0] sm:$0xff]  ;;  %v983_v9 = vld [vmem:[%s21990_s19 + $0xa8] sm:$0xff]  ;;  %2541 = vmatpush1.bf16.msra.mxu0 %v16125_v61  ;;  %2623 = vmatpush1.bf16.msra.mxu1 %v16127_v1  ;;  %v16135_v11 = vcombine.low %v971_v3, %v975_v4  ;;  %v955_v45 = vld [vmem:[#allocation2 + $0x8] sm:$0xff] }
 0x31d   : > { %2542 = vmatprep.subr.bf16.mxu0 %v16134_v2  ;;  %v16142_v12 = vcombine.high %v978_v5, %v982_v7  ;;  %2624 = vmatprep.subr.bf16.mxu1 %v16136_v6  ;;  %v16144_v13 = vcombine.high %v979_v8, %v983_v9  ;;  %v986_v14 = vld [vmem:[%s21990_s19 + $0xc0] sm:$0xff]  ;;  %v987_v16 = vld [vmem:[%s21990_s19 + $0xc8] sm:$0xff]  ;;  %v16141_v18 = vcombine.low %v978_v5, %v982_v7 }
 0x31e   : > { %v990_v15 = vld [vmem:[%s21990_s19 + $0xe0] sm:$0xff]  ;;  %v991_v17 = vld [vmem:[%s21990_s19 + $0xe8] sm:$0xff]  ;;  %v16143_v19 = vcombine.low %v979_v8, %v983_v9  ;;  %v22050_v49 = vpack.c.bf16 %v955_v45, %v955_v45 }
 0x31f   : > { %v16150_v20 = vcombine.high %v986_v14, %v990_v15  ;;  %v16152_v21 = vcombine.high %v987_v16, %v991_v17  ;;  %v994_v22 = vld [vmem:[%s21990_s19 + $0x100] sm:$0xff]  ;;  %v995_v24 = vld [vmem:[%s21990_s19 + $0x108] sm:$0xff]  ;;  %v16149_v26 = vcombine.low %v986_v14, %v990_v15  ;;  %v16151_v27 = vcombine.low %v987_v16, %v991_v17 }
 0x320   : > { %2543 = vmatpush1.bf16.msra.mxu0 %v16133_v10  ;;  %2625 = vmatpush1.bf16.msra.mxu1 %v16135_v11  ;;  %v998_v23 = vld [vmem:[%s21990_s19 + $0x120] sm:$0xff]  ;;  %v999_v25 = vld [vmem:[%s21990_s19 + $0x128] sm:$0xff] }
 0x321   : > { %2544 = vmatprep.subr.bf16.mxu0 %v16142_v12  ;;  %2626 = vmatprep.subr.bf16.mxu1 %v16144_v13  ;;  %v16158_v28 = vcombine.high %v994_v22, %v998_v23  ;;  %v16160_v29 = vcombine.high %v995_v24, %v999_v25  ;;  %v1002_v30 = vld [vmem:[%s21990_s19 + $0x140] sm:$0xff]  ;;  %v1003_v32 = vld [vmem:[%s21990_s19 + $0x148] sm:$0xff]  ;;  %v16157_v34 = vcombine.low %v994_v22, %v998_v23 }
 0x322   : > { %v1006_v31 = vld [vmem:[%s21990_s19 + $0x160] sm:$0xff]  ;;  %v1007_v33 = vld [vmem:[%s21990_s19 + $0x168] sm:$0xff]  ;;  %v16159_v35 = vcombine.low %v995_v24, %v999_v25  ;;  %2572 = vmatprep.mubr.bf16.mxu0 %v22050_v49  ;;  %2654 = vmatprep.mubr.bf16.mxu1 %v22050_v49 }
 0x323   : > { %v16166_v36 = vcombine.high %v1002_v30, %v1006_v31  ;;  %v16168_v37 = vcombine.high %v1003_v32, %v1007_v33  ;;  %v1010_v38 = vld [vmem:[%s21990_s19 + $0x180] sm:$0xff]  ;;  %v1011_v40 = vld [vmem:[%s21990_s19 + $0x188] sm:$0xff]  ;;  %v16165_v42 = vcombine.low %v1002_v30, %v1006_v31  ;;  %v16167_v43 = vcombine.low %v1003_v32, %v1007_v33 }
 0x324   : > { %2545 = vmatpush1.bf16.msra.mxu0 %v16141_v18  ;;  %2627 = vmatpush1.bf16.msra.mxu1 %v16143_v19  ;;  %v1014_v39 = vld [vmem:[%s21990_s19 + $0x1a0] sm:$0xff]  ;;  %v1015_v41 = vld [vmem:[%s21990_s19 + $0x1a8] sm:$0xff] }
 0x325   : > { %2546 = vmatprep.subr.bf16.mxu0 %v16150_v20  ;;  %2628 = vmatprep.subr.bf16.mxu1 %v16152_v21  ;;  %v16174_v44 = vcombine.high %v1010_v38, %v1014_v39  ;;  %v16176_v46 = vcombine.high %v1011_v40, %v1015_v41  ;;  %v1018_v47 = vld [vmem:[%s21990_s19 + $0x1c0] sm:$0xff]  ;;  %v1019_v50 = vld [vmem:[%s21990_s19 + $0x1c8] sm:$0xff]  ;;  %v16173_v52 = vcombine.low %v1010_v38, %v1014_v39 }
 0x326   : > { %v1022_v48 = vld [vmem:[%s21990_s19 + $0x1e0] sm:$0xff]  ;;  %v1023_v51 = vld [vmem:[%s21990_s19 + $0x1e8] sm:$0xff]  ;;  %v16175_v53 = vcombine.low %v1011_v40, %v1015_v41 }
 0x327   : > { %v16182_v54 = vcombine.high %v1018_v47, %v1022_v48  ;;  %v16184_v55 = vcombine.high %v1019_v50, %v1023_v51  ;;  %v1026_v56 = vld [vmem:[%s21990_s19 + $0x200] sm:$0xff]  ;;  %v1027_v58 = vld [vmem:[%s21990_s19 + $0x208] sm:$0xff]  ;;  %v16181_v60 = vcombine.low %v1018_v47, %v1022_v48  ;;  %v16183_v61 = vcombine.low %v1019_v50, %v1023_v51 }
 0x328   : > { %2547 = vmatpush1.bf16.msra.mxu0 %v16149_v26  ;;  %2629 = vmatpush1.bf16.msra.mxu1 %v16151_v27  ;;  %v1030_v57 = vld [vmem:[%s21990_s19 + $0x220] sm:$0xff]  ;;  %v1031_v59 = vld [vmem:[%s21990_s19 + $0x228] sm:$0xff] }
 0x329   : > { %2548 = vmatprep.subr.bf16.mxu0 %v16158_v28  ;;  %2630 = vmatprep.subr.bf16.mxu1 %v16160_v29  ;;  %v16190_v62 = vcombine.high %v1026_v56, %v1030_v57  ;;  %v16192_v63 = vcombine.high %v1027_v58, %v1031_v59  ;;  %v1034_v0 = vld [vmem:[%s21990_s19 + $0x240] sm:$0xff]  ;;  %v1035_v2 = vld [vmem:[%s21990_s19 + $0x248] sm:$0xff]  ;;  %v16189_v4 = vcombine.low %v1026_v56, %v1030_v57 }
 0x32a   : > { %v1038_v1 = vld [vmem:[%s21990_s19 + $0x260] sm:$0xff]  ;;  %v1039_v3 = vld [vmem:[%s21990_s19 + $0x268] sm:$0xff]  ;;  %v16191_v5 = vcombine.low %v1027_v58, %v1031_v59 }
 0x32b   : > { %v16198_v6 = vcombine.high %v1034_v0, %v1038_v1  ;;  %v16200_v7 = vcombine.high %v1035_v2, %v1039_v3  ;;  %v1042_v8 = vld [vmem:[%s21990_s19 + $0x280] sm:$0xff]  ;;  %v1043_v10 = vld [vmem:[%s21990_s19 + $0x288] sm:$0xff]  ;;  %v16197_v12 = vcombine.low %v1034_v0, %v1038_v1  ;;  %v16199_v13 = vcombine.low %v1035_v2, %v1039_v3 }
 0x32c   : > { %2549 = vmatpush1.bf16.msra.mxu0 %v16157_v34  ;;  %2631 = vmatpush1.bf16.msra.mxu1 %v16159_v35  ;;  %v1046_v9 = vld [vmem:[%s21990_s19 + $0x2a0] sm:$0xff]  ;;  %v1047_v11 = vld [vmem:[%s21990_s19 + $0x2a8] sm:$0xff] }
 0x32d   : > { %2550 = vmatprep.subr.bf16.mxu0 %v16166_v36  ;;  %2632 = vmatprep.subr.bf16.mxu1 %v16168_v37  ;;  %v16206_v14 = vcombine.high %v1042_v8, %v1046_v9  ;;  %v16208_v15 = vcombine.high %v1043_v10, %v1047_v11  ;;  %v1050_v16 = vld [vmem:[%s21990_s19 + $0x2c0] sm:$0xff]  ;;  %v1051_v18 = vld [vmem:[%s21990_s19 + $0x2c8] sm:$0xff]  ;;  %v16205_v20 = vcombine.low %v1042_v8, %v1046_v9 }
 0x32e   : > { %v1054_v17 = vld [vmem:[%s21990_s19 + $0x2e0] sm:$0xff]  ;;  %v1055_v19 = vld [vmem:[%s21990_s19 + $0x2e8] sm:$0xff]  ;;  %v16207_v21 = vcombine.low %v1043_v10, %v1047_v11 }
 0x32f   : > { %v16214_v22 = vcombine.high %v1050_v16, %v1054_v17  ;;  %v16216_v23 = vcombine.high %v1051_v18, %v1055_v19  ;;  %v1058_v24 = vld [vmem:[%s21990_s19 + $0x300] sm:$0xff]  ;;  %v1059_v26 = vld [vmem:[%s21990_s19 + $0x308] sm:$0xff]  ;;  %v16213_v28 = vcombine.low %v1050_v16, %v1054_v17  ;;  %v16215_v29 = vcombine.low %v1051_v18, %v1055_v19 }
 0x330   : > { %2551 = vmatpush1.bf16.msra.mxu0 %v16165_v42  ;;  %2633 = vmatpush1.bf16.msra.mxu1 %v16167_v43  ;;  %v1062_v25 = vld [vmem:[%s21990_s19 + $0x320] sm:$0xff]  ;;  %v1063_v27 = vld [vmem:[%s21990_s19 + $0x328] sm:$0xff] }
 0x331   : > { %2552 = vmatprep.subr.bf16.mxu0 %v16174_v44  ;;  %2634 = vmatprep.subr.bf16.mxu1 %v16176_v46  ;;  %v16222_v30 = vcombine.high %v1058_v24, %v1062_v25  ;;  %v16224_v31 = vcombine.high %v1059_v26, %v1063_v27  ;;  %v1066_v32 = vld [vmem:[%s21990_s19 + $0x340] sm:$0xff]  ;;  %v1067_v34 = vld [vmem:[%s21990_s19 + $0x348] sm:$0xff]  ;;  %v16221_v36 = vcombine.low %v1058_v24, %v1062_v25 }
 0x332   : > { %v1070_v33 = vld [vmem:[%s21990_s19 + $0x360] sm:$0xff]  ;;  %v1071_v35 = vld [vmem:[%s21990_s19 + $0x368] sm:$0xff]  ;;  %v16223_v37 = vcombine.low %v1059_v26, %v1063_v27 }
 0x333   : > { %v16230_v38 = vcombine.high %v1066_v32, %v1070_v33  ;;  %v16232_v39 = vcombine.high %v1067_v34, %v1071_v35  ;;  %v1074_v40 = vld [vmem:[%s21990_s19 + $0x380] sm:$0xff]  ;;  %v1075_v42 = vld [vmem:[%s21990_s19 + $0x388] sm:$0xff]  ;;  %v16229_v44 = vcombine.low %v1066_v32, %v1070_v33  ;;  %v16231_v45 = vcombine.low %v1067_v34, %v1071_v35 }
 0x334   : > { %2553 = vmatpush1.bf16.msra.mxu0 %v16173_v52  ;;  %2635 = vmatpush1.bf16.msra.mxu1 %v16175_v53  ;;  %v1078_v41 = vld [vmem:[%s21990_s19 + $0x3a0] sm:$0xff]  ;;  %v1079_v43 = vld [vmem:[%s21990_s19 + $0x3a8] sm:$0xff] }
 0x335   : > { %2554 = vmatprep.subr.bf16.mxu0 %v16182_v54  ;;  %2636 = vmatprep.subr.bf16.mxu1 %v16184_v55  ;;  %v16238_v46 = vcombine.high %v1074_v40, %v1078_v41  ;;  %v16240_v47 = vcombine.high %v1075_v42, %v1079_v43  ;;  %v1082_v48 = vld [vmem:[%s21990_s19 + $0x3c0] sm:$0xff]  ;;  %v1083_v51 = vld [vmem:[%s21990_s19 + $0x3c8] sm:$0xff]  ;;  %v16237_v53 = vcombine.low %v1074_v40, %v1078_v41 }
 0x336   : > { %v1086_v50 = vld [vmem:[%s21990_s19 + $0x3e0] sm:$0xff]  ;;  %v1087_v52 = vld [vmem:[%s21990_s19 + $0x3e8] sm:$0xff]  ;;  %v16239_v54 = vcombine.low %v1075_v42, %v1079_v43 }
 0x337   : > { %v16246_v55 = vcombine.high %v1082_v48, %v1086_v50  ;;  %v16248_v56 = vcombine.high %v1083_v51, %v1087_v52  ;;  %v1090_v57 = vld [vmem:[%s21990_s19 + $0x400] sm:$0xff]  ;;  %v1091_v59 = vld [vmem:[%s21990_s19 + $0x408] sm:$0xff] }
 0x338   : > { %2555 = vmatpush1.bf16.msra.mxu0 %v16181_v60  ;;  %2637 = vmatpush1.bf16.msra.mxu1 %v16183_v61  ;;  %v1094_v58 = vld [vmem:[%s21990_s19 + $0x420] sm:$0xff]  ;;  %v1095_v60 = vld [vmem:[%s21990_s19 + $0x428] sm:$0xff]  ;;  %v16245_v61 = vcombine.low %v1082_v48, %v1086_v50 }
 0x339   : > { %2556 = vmatprep.subr.bf16.mxu0 %v16190_v62  ;;  %2638 = vmatprep.subr.bf16.mxu1 %v16192_v63  ;;  %v954_v62 = vld [vmem:[#allocation2] sm:$0xff]  ;;  %v16247_v63 = vcombine.low %v1083_v51, %v1087_v52  ;;  %v16254_v0 = vcombine.high %v1090_v57, %v1094_v58  ;;  %v16256_v1 = vcombine.high %v1091_v59, %v1095_v60  ;;  %v1098_v2 = vld [vmem:[%s21990_s19 + $0x440] sm:$0xff] }
 0x33a   : > { %v1102_v3 = vld [vmem:[%s21990_s19 + $0x460] sm:$0xff]  ;;  %v16253_v8 = vcombine.low %v1090_v57, %v1094_v58  ;;  %v16255_v9 = vcombine.low %v1091_v59, %v1095_v60  ;;  %v1119_v24 = vld [vmem:[%s21990_s19 + $0x4e8] sm:$0xff] }
 0x33b   : > { %v16262_v10 = vcombine.high %v1098_v2, %v1102_v3  ;;  %v1106_v11 = vld [vmem:[%s21990_s19 + $0x480] sm:$0xff]  ;;  %v16261_v17 = vcombine.low %v1098_v2, %v1102_v3  ;;  %v1127_v32 = vld [vmem:[%s21990_s19 + $0x528] sm:$0xff] }
 0x33c   : > { %2557 = vmatpush1.bf16.msra.mxu0 %v16189_v4  ;;  %2639 = vmatpush1.bf16.msra.mxu1 %v16191_v5  ;;  %v22094_v4 = vpack.c.bf16 %v954_v62, %v954_v62  ;;  %v1099_v5 = vld [vmem:[%s21990_s19 + $0x448] sm:$0xff]  ;;  %v1158_v62 = vld [vmem:[%s21990_s19 + $0x620] sm:$0xff] }
 0x33d   : > { %2558 = vmatprep.subr.bf16.mxu0 %v16198_v6  ;;  %2640 = vmatprep.subr.bf16.mxu1 %v16200_v7  ;;  %v1103_v6 = vld [vmem:[%s21990_s19 + $0x468] sm:$0xff] }
 0x33e   : > { %v957_v7 = vld [vmem:[#allocation2 + $0x18] sm:$0xff]  ;;  %v16263_v18 = vcombine.low %v1099_v5, %v1103_v6 }
 0x33f   : > { %v22102_v16 = vpack.c.bf16 %v957_v7, %v957_v7  ;;  %v1135_v40 = vld [vmem:[%s21990_s19 + $0x568] sm:$0xff]  ;;  %v1166_v7 = vld [vmem:[%s21990_s19 + $0x660] sm:$0xff] }
 0x340   : > { %2559 = vmatpush1.bf16.msra.mxu0 %v16197_v12  ;;  %2641 = vmatpush1.bf16.msra.mxu1 %v16199_v13  ;;  %v1110_v12 = vld [vmem:[%s21990_s19 + $0x4a0] sm:$0xff]  ;;  %v16264_v13 = vcombine.high %v1099_v5, %v1103_v6  ;;  %v1143_v48 = vld [vmem:[%s21990_s19 + $0x5a8] sm:$0xff] }
 0x341   : > { %2560 = vmatprep.subr.bf16.mxu0 %v16206_v14  ;;  %2642 = vmatprep.subr.bf16.mxu1 %v16208_v15  ;;  %v1107_v14 = vld [vmem:[%s21990_s19 + $0x488] sm:$0xff]  ;;  %v16270_v19 = vcombine.high %v1106_v11, %v1110_v12  ;;  %v16269_v25 = vcombine.low %v1106_v11, %v1110_v12  ;;  %v1162_v6 = vld [vmem:[%s21990_s19 + $0x640] sm:$0xff] }
 0x342   : > { %v1111_v15 = vld [vmem:[%s21990_s19 + $0x4a8] sm:$0xff] }
 0x343   : > { %v16271_v26 = vcombine.low %v1107_v14, %v1111_v15  ;;  %v1151_v57 = vld [vmem:[%s21990_s19 + $0x5e8] sm:$0xff] }
 0x344   : > { %2561 = vmatpush1.bf16.msra.mxu0 %v16205_v20  ;;  %2643 = vmatpush1.bf16.msra.mxu1 %v16207_v21  ;;  %v1114_v20 = vld [vmem:[%s21990_s19 + $0x4c0] sm:$0xff] }
 0x345   : > { %2562 = vmatprep.subr.bf16.mxu0 %v16214_v22  ;;  %2644 = vmatprep.subr.bf16.mxu1 %v16216_v23  ;;  %v1118_v21 = vld [vmem:[%s21990_s19 + $0x4e0] sm:$0xff]  ;;  %v1115_v22 = vld [vmem:[%s21990_s19 + $0x4c8] sm:$0xff]  ;;  %v16272_v23 = vcombine.high %v1107_v14, %v1111_v15 }
 0x346   : > { %v16278_v27 = vcombine.high %v1114_v20, %v1118_v21  ;;  %v16277_v33 = vcombine.low %v1114_v20, %v1118_v21  ;;  %v16279_v34 = vcombine.low %v1115_v22, %v1119_v24  ;;  %v1170_v14 = vld [vmem:[%s21990_s19 + $0x680] sm:$0xff]  ;;  %v16325_v20 = vcombine.low %v1162_v6, %v1166_v7 }
 0x347   : > { %v1174_v15 = vld [vmem:[%s21990_s19 + $0x6a0] sm:$0xff] }
 0x348   : > { %2563 = vmatpush1.bf16.msra.mxu0 %v16213_v28  ;;  %2645 = vmatpush1.bf16.msra.mxu1 %v16215_v29  ;;  %v1122_v28 = vld [vmem:[%s21990_s19 + $0x500] sm:$0xff] }
 0x349   : > { %2564 = vmatprep.subr.bf16.mxu0 %v16222_v30  ;;  %2646 = vmatprep.subr.bf16.mxu1 %v16224_v31  ;;  %v1126_v29 = vld [vmem:[%s21990_s19 + $0x520] sm:$0xff]  ;;  %v1123_v30 = vld [vmem:[%s21990_s19 + $0x508] sm:$0xff]  ;;  %v16280_v31 = vcombine.high %v1115_v22, %v1119_v24  ;;  %v16334_v22 = vcombine.high %v1170_v14, %v1174_v15 }
 0x34a   : > { %v16286_v35 = vcombine.high %v1122_v28, %v1126_v29  ;;  %v16285_v41 = vcombine.low %v1122_v28, %v1126_v29  ;;  %v16287_v42 = vcombine.low %v1123_v30, %v1127_v32  ;;  %v1182_v24 = vld [vmem:[%s21990_s19 + $0x6e0] sm:$0xff]  ;;  %v16333_v28 = vcombine.low %v1170_v14, %v1174_v15  ;;  %v977_v14 = vld [vmem:[%s21990_s19 + $0x78] sm:$0xff] }
 0x34c   : > { %2565 = vmatpush1.bf16.msra.mxu0 %v16221_v36  ;;  %2647 = vmatpush1.bf16.msra.mxu1 %v16223_v37  ;;  %v1130_v36 = vld [vmem:[%s21990_s19 + $0x540] sm:$0xff] }
 0x34d   : > { %2566 = vmatprep.subr.bf16.mxu0 %v16230_v38  ;;  %2648 = vmatprep.subr.bf16.mxu1 %v16232_v39  ;;  %v1134_v37 = vld [vmem:[%s21990_s19 + $0x560] sm:$0xff]  ;;  %v1131_v38 = vld [vmem:[%s21990_s19 + $0x548] sm:$0xff]  ;;  %v16288_v39 = vcombine.high %v1123_v30, %v1127_v32 }
 0x34e   : > { %v16294_v43 = vcombine.high %v1130_v36, %v1134_v37  ;;  %v16293_v50 = vcombine.low %v1130_v36, %v1134_v37  ;;  %v16295_v51 = vcombine.low %v1131_v38, %v1135_v40  ;;  %v1190_v32 = vld [vmem:[%s21990_s19 + $0x720] sm:$0xff] }
 0x350   : > { %2567 = vmatpush1.bf16.msra.mxu0 %v16229_v44  ;;  %2649 = vmatpush1.bf16.msra.mxu1 %v16231_v45  ;;  %v1138_v44 = vld [vmem:[%s21990_s19 + $0x580] sm:$0xff] }
 0x351   : > { %2568 = vmatprep.subr.bf16.mxu0 %v16238_v46  ;;  %2650 = vmatprep.subr.bf16.mxu1 %v16240_v47  ;;  %v1142_v45 = vld [vmem:[%s21990_s19 + $0x5a0] sm:$0xff]  ;;  %v1139_v46 = vld [vmem:[%s21990_s19 + $0x588] sm:$0xff]  ;;  %v16296_v47 = vcombine.high %v1131_v38, %v1135_v40 }
 0x352   : > { %v16302_v52 = vcombine.high %v1138_v44, %v1142_v45  ;;  %v16301_v58 = vcombine.low %v1138_v44, %v1142_v45  ;;  %v16303_v59 = vcombine.low %v1139_v46, %v1143_v48  ;;  %v1198_v40 = vld [vmem:[%s21990_s19 + $0x760] sm:$0xff] }
 0x354   : > { %2569 = vmatpush1.bf16.msra.mxu0 %v16237_v53  ;;  %2651 = vmatpush1.bf16.msra.mxu1 %v16239_v54  ;;  %v1146_v53 = vld [vmem:[%s21990_s19 + $0x5c0] sm:$0xff] }
 0x355   : > { %2570 = vmatprep.subr.bf16.mxu0 %v16246_v55  ;;  %2652 = vmatprep.subr.bf16.mxu1 %v16248_v56  ;;  %v1150_v54 = vld [vmem:[%s21990_s19 + $0x5e0] sm:$0xff]  ;;  %v1147_v55 = vld [vmem:[%s21990_s19 + $0x5c8] sm:$0xff]  ;;  %v16304_v56 = vcombine.high %v1139_v46, %v1143_v48 }
 0x356   : > { %v16310_v60 = vcombine.high %v1146_v53, %v1150_v54  ;;  %v16309_v2 = vcombine.low %v1146_v53, %v1150_v54  ;;  %v16311_v3 = vcombine.low %v1147_v55, %v1151_v57  ;;  %v1206_v48 = vld [vmem:[%s21990_s19 + $0x7a0] sm:$0xff] }
 0x358   : > { %2571 = vmatpush1.bf16.msra.mxu0 %v16245_v61  ;;  %2653 = vmatpush1.bf16.msra.mxu1 %v16247_v63  ;;  %v1154_v61 = vld [vmem:[%s21990_s19 + $0x600] sm:$0xff]  ;;  %v1155_v63 = vld [vmem:[%s21990_s19 + $0x608] sm:$0xff] }
 0x359   : > { %2581 = vmatprep.subr.bf16.mxu0 %v16254_v0  ;;  %2663 = vmatprep.subr.bf16.mxu1 %v16256_v1  ;;  %v16312_v0 = vcombine.high %v1147_v55, %v1151_v57  ;;  %v1159_v1 = vld [vmem:[%s21990_s19 + $0x628] sm:$0xff]  ;;  %v16318_v5 = vcombine.high %v1154_v61, %v1158_v62  ;;  %v16317_v11 = vcombine.low %v1154_v61, %v1158_v62  ;;  %v1214_v57 = vld [vmem:[%s21990_s19 + $0x7e0] sm:$0xff] }
 0x35a   : > { %v16319_v12 = vcombine.low %v1155_v63, %v1159_v1 }
 0x35b   : > { %2573 = vmatmul.mubr.bf16.vlgmr.msra.gmra.mrb[0].mxu0 %v22094_v4  ;;  %2655 = vmatmul.mubr.bf16.vlgmr.msra.gmra.mrb[0].mxu1 %v22094_v4 }
 0x35c   : > { %2582 = vmatpush1.bf16.msra.mxu0 %v16253_v8  ;;  %2664 = vmatpush1.bf16.msra.mxu1 %v16255_v9  ;;  %v1163_v8 = vld [vmem:[%s21990_s19 + $0x648] sm:$0xff]  ;;  %v16320_v9 = vcombine.high %v1155_v63, %v1159_v1  ;;  %v968_v1 = vld [vmem:[%s21990_s19 + $0x30] sm:$0xff] }
 0x35d   : > { %2583 = vmatprep.subr.bf16.mxu0 %v16262_v10  ;;  %2665 = vmatprep.subr.bf16.mxu1 %v16264_v13  ;;  %v1167_v10 = vld [vmem:[%s21990_s19 + $0x668] sm:$0xff]  ;;  %v16326_v13 = vcombine.high %v1162_v6, %v1166_v7  ;;  %v969_v6 = vld [vmem:[%s21990_s19 + $0x38] sm:$0xff] }
 0x35e   : > { %2613 = vmatprep.mubr.bf16.mxu0 %v22102_v16  ;;  %2695 = vmatprep.mubr.bf16.mxu1 %v22102_v16  ;;  %v16327_v21 = vcombine.low %v1163_v8, %v1167_v10 }
 0x360   : > { %2584 = vmatpush1.bf16.msra.mxu0 %v16261_v17  ;;  %2666 = vmatpush1.bf16.msra.mxu1 %v16263_v18  ;;  %v1171_v17 = vld [vmem:[%s21990_s19 + $0x688] sm:$0xff]  ;;  %v16328_v18 = vcombine.high %v1163_v8, %v1167_v10  ;;  %v972_v10 = vld [vmem:[%s21990_s19 + $0x50] sm:$0xff] }
 0x361   : > { %2585 = vmatprep.subr.bf16.mxu0 %v16270_v19  ;;  %2667 = vmatprep.subr.bf16.mxu1 %v16272_v23  ;;  %v1175_v19 = vld [vmem:[%s21990_s19 + $0x6a8] sm:$0xff]  ;;  %v1178_v23 = vld [vmem:[%s21990_s19 + $0x6c0] sm:$0xff] }
 0x362   : > { %v16335_v29 = vcombine.low %v1171_v17, %v1175_v19  ;;  %v16342_v30 = vcombine.high %v1178_v23, %v1182_v24  ;;  %v16341_v36 = vcombine.low %v1178_v23, %v1182_v24  ;;  %v985_v24 = vld [vmem:[%s21990_s19 + $0xb8] sm:$0xff] }
 0x364   : > { %2586 = vmatpush1.bf16.msra.mxu0 %v16269_v25  ;;  %2668 = vmatpush1.bf16.msra.mxu1 %v16271_v26  ;;  %v1179_v25 = vld [vmem:[%s21990_s19 + $0x6c8] sm:$0xff]  ;;  %v16336_v26 = vcombine.high %v1171_v17, %v1175_v19 }
 0x365   : > { %2587 = vmatprep.subr.bf16.mxu0 %v16278_v27  ;;  %2669 = vmatprep.subr.bf16.mxu1 %v16280_v31  ;;  %v1183_v27 = vld [vmem:[%s21990_s19 + $0x6e8] sm:$0xff]  ;;  %v1186_v31 = vld [vmem:[%s21990_s19 + $0x700] sm:$0xff] }
 0x366   : > { %v16343_v37 = vcombine.low %v1179_v25, %v1183_v27  ;;  %v16350_v38 = vcombine.high %v1186_v31, %v1190_v32  ;;  %v16349_v44 = vcombine.low %v1186_v31, %v1190_v32  ;;  %v993_v32 = vld [vmem:[%s21990_s19 + $0xf8] sm:$0xff] }
 0x368   : > { %2588 = vmatpush1.bf16.msra.mxu0 %v16277_v33  ;;  %2670 = vmatpush1.bf16.msra.mxu1 %v16279_v34  ;;  %v1187_v33 = vld [vmem:[%s21990_s19 + $0x708] sm:$0xff]  ;;  %v16344_v34 = vcombine.high %v1179_v25, %v1183_v27 }
 0x369   : > { %2589 = vmatprep.subr.bf16.mxu0 %v16286_v35  ;;  %2671 = vmatprep.subr.bf16.mxu1 %v16288_v39  ;;  %v1191_v35 = vld [vmem:[%s21990_s19 + $0x728] sm:$0xff]  ;;  %v1194_v39 = vld [vmem:[%s21990_s19 + $0x740] sm:$0xff] }
 0x36a   : > { %v16351_v45 = vcombine.low %v1187_v33, %v1191_v35  ;;  %v16358_v46 = vcombine.high %v1194_v39, %v1198_v40  ;;  %v16357_v53 = vcombine.low %v1194_v39, %v1198_v40  ;;  %v1001_v40 = vld [vmem:[%s21990_s19 + $0x138] sm:$0xff] }
 0x36c   : > { %2590 = vmatpush1.bf16.msra.mxu0 %v16285_v41  ;;  %2672 = vmatpush1.bf16.msra.mxu1 %v16287_v42  ;;  %v1195_v41 = vld [vmem:[%s21990_s19 + $0x748] sm:$0xff]  ;;  %v16352_v42 = vcombine.high %v1187_v33, %v1191_v35 }
 0x36d   : > { %2591 = vmatprep.subr.bf16.mxu0 %v16294_v43  ;;  %2673 = vmatprep.subr.bf16.mxu1 %v16296_v47  ;;  %v1199_v43 = vld [vmem:[%s21990_s19 + $0x768] sm:$0xff]  ;;  %v1202_v47 = vld [vmem:[%s21990_s19 + $0x780] sm:$0xff] }
 0x36e   : > { %v16359_v54 = vcombine.low %v1195_v41, %v1199_v43  ;;  %v16366_v55 = vcombine.high %v1202_v47, %v1206_v48  ;;  %v16365_v61 = vcombine.low %v1202_v47, %v1206_v48  ;;  %v1009_v47 = vld [vmem:[%s21990_s19 + $0x178] sm:$0xff] }
 0x370   : > { %2592 = vmatpush1.bf16.msra.mxu0 %v16293_v50  ;;  %2674 = vmatpush1.bf16.msra.mxu1 %v16295_v51  ;;  %v1203_v50 = vld [vmem:[%s21990_s19 + $0x788] sm:$0xff]  ;;  %v16360_v51 = vcombine.high %v1195_v41, %v1199_v43  ;;  %v1004_v43 = vld [vmem:[%s21990_s19 + $0x150] sm:$0xff] }
 0x371   : > { %2593 = vmatprep.subr.bf16.mxu0 %v16302_v52  ;;  %2675 = vmatprep.subr.bf16.mxu1 %v16304_v56  ;;  %v1207_v52 = vld [vmem:[%s21990_s19 + $0x7a8] sm:$0xff]  ;;  %v1210_v56 = vld [vmem:[%s21990_s19 + $0x7c0] sm:$0xff] }
 0x372   : > { %v16367_v62 = vcombine.low %v1203_v50, %v1207_v52  ;;  %v16374_v63 = vcombine.high %v1210_v56, %v1214_v57  ;;  %v16373_v7 = vcombine.low %v1210_v56, %v1214_v57  ;;  %v1017_v56 = vld [vmem:[%s21990_s19 + $0x1b8] sm:$0xff] }
 0x374   : > { %2594 = vmatpush1.bf16.msra.mxu0 %v16301_v58  ;;  %2676 = vmatpush1.bf16.msra.mxu1 %v16303_v59  ;;  %v1211_v58 = vld [vmem:[%s21990_s19 + $0x7c8] sm:$0xff]  ;;  %v16368_v59 = vcombine.high %v1203_v50, %v1207_v52  ;;  %v1012_v52 = vld [vmem:[%s21990_s19 + $0x190] sm:$0xff] }
 0x375   : > { %2595 = vmatprep.subr.bf16.mxu0 %v16310_v60  ;;  %2677 = vmatprep.subr.bf16.mxu1 %v16312_v0  ;;  %v1215_v60 = vld [vmem:[%s21990_s19 + $0x7e8] sm:$0xff]  ;;  %v964_v0 = vld [vmem:[%s21990_s19 + $0x10] sm:$0xff] }
 0x376   : > { %v16375_v8 = vcombine.low %v1211_v58, %v1215_v60  ;;  %v16129_v17 = vcombine.low %v964_v0, %v968_v1 }
 0x378   : > { %2596 = vmatpush1.bf16.msra.mxu0 %v16309_v2  ;;  %2678 = vmatpush1.bf16.msra.mxu1 %v16311_v3  ;;  %v965_v2 = vld [vmem:[%s21990_s19 + $0x18] sm:$0xff]  ;;  %v16376_v3 = vcombine.high %v1211_v58, %v1215_v60  ;;  %v1020_v60 = vld [vmem:[%s21990_s19 + $0x1d0] sm:$0xff] }
 0x379   : > { %2597 = vmatprep.subr.bf16.mxu0 %v16318_v5  ;;  %2679 = vmatprep.subr.bf16.mxu1 %v16320_v9  ;;  %v956_v5 = vld [vmem:[#allocation2 + $0x10] sm:$0xff]  ;;  %v16130_v9 = vcombine.high %v964_v0, %v968_v1 }
 0x37a   : > { %v22168_v15 = vpack.c.bf16 %v956_v5, %v956_v5  ;;  %v1025_v0 = vld [vmem:[%s21990_s19 + $0x1f8] sm:$0xff]  ;;  %v1028_v5 = vld [vmem:[%s21990_s19 + $0x210] sm:$0xff] }
 0x37c   : > { %2598 = vmatpush1.bf16.msra.mxu0 %v16317_v11  ;;  %2680 = vmatpush1.bf16.msra.mxu1 %v16319_v12  ;;  %v976_v11 = vld [vmem:[%s21990_s19 + $0x70] sm:$0xff]  ;;  %v973_v12 = vld [vmem:[%s21990_s19 + $0x58] sm:$0xff] }
 0x37d   : > { %2599 = vmatprep.subr.bf16.mxu0 %v16326_v13  ;;  %2681 = vmatprep.subr.bf16.mxu1 %v16328_v18  ;;  %v16132_v13 = vcombine.high %v965_v2, %v969_v6  ;;  %v16131_v18 = vcombine.low %v965_v2, %v969_v6  ;;  %v16138_v19 = vcombine.high %v972_v10, %v976_v11  ;;  %v1032_v6 = vld [vmem:[%s21990_s19 + $0x230] sm:$0xff] }
 0x37e   : > { %v16140_v23 = vcombine.high %v973_v12, %v977_v14  ;;  %v16137_v25 = vcombine.low %v972_v10, %v976_v11 }
 0x380   : > { %2600 = vmatpush1.bf16.msra.mxu0 %v16325_v20  ;;  %2682 = vmatpush1.bf16.msra.mxu1 %v16327_v21  ;;  %v980_v20 = vld [vmem:[%s21990_s19 + $0x90] sm:$0xff] }
 0x381   : > { %2601 = vmatprep.subr.bf16.mxu0 %v16334_v22  ;;  %2683 = vmatprep.subr.bf16.mxu1 %v16336_v26  ;;  %v984_v21 = vld [vmem:[%s21990_s19 + $0xb0] sm:$0xff]  ;;  %v981_v22 = vld [vmem:[%s21990_s19 + $0x98] sm:$0xff]  ;;  %v16139_v26 = vcombine.low %v973_v12, %v977_v14  ;;  %v16194_v12 = vcombine.high %v1028_v5, %v1032_v6 }
 0x382   : > { %v16146_v27 = vcombine.high %v980_v20, %v984_v21  ;;  %v16148_v31 = vcombine.high %v981_v22, %v985_v24  ;;  %v16145_v33 = vcombine.low %v980_v20, %v984_v21  ;;  %v1040_v14 = vld [vmem:[%s21990_s19 + $0x270] sm:$0xff]  ;;  %v16193_v20 = vcombine.low %v1028_v5, %v1032_v6 }
 0x383   : > { %v1092_v6 = vld [vmem:[%s21990_s19 + $0x410] sm:$0xff] }
 0x384   : > { %2602 = vmatpush1.bf16.msra.mxu0 %v16333_v28  ;;  %2684 = vmatpush1.bf16.msra.mxu1 %v16335_v29  ;;  %v988_v28 = vld [vmem:[%s21990_s19 + $0xd0] sm:$0xff] }
 0x385   : > { %2603 = vmatprep.subr.bf16.mxu0 %v16342_v30  ;;  %2685 = vmatprep.subr.bf16.mxu1 %v16344_v34  ;;  %v992_v29 = vld [vmem:[%s21990_s19 + $0xf0] sm:$0xff]  ;;  %v989_v30 = vld [vmem:[%s21990_s19 + $0xd8] sm:$0xff]  ;;  %v16147_v34 = vcombine.low %v981_v22, %v985_v24 }
 0x386   : > { %v16154_v35 = vcombine.high %v988_v28, %v992_v29  ;;  %v16156_v39 = vcombine.high %v989_v30, %v993_v32  ;;  %v16153_v41 = vcombine.low %v988_v28, %v992_v29  ;;  %v1048_v24 = vld [vmem:[%s21990_s19 + $0x2b0] sm:$0xff] }
 0x388   : > { %2604 = vmatpush1.bf16.msra.mxu0 %v16341_v36  ;;  %2686 = vmatpush1.bf16.msra.mxu1 %v16343_v37  ;;  %v996_v36 = vld [vmem:[%s21990_s19 + $0x110] sm:$0xff] }
 0x389   : > { %2605 = vmatprep.subr.bf16.mxu0 %v16350_v38  ;;  %2687 = vmatprep.subr.bf16.mxu1 %v16352_v42  ;;  %v1000_v37 = vld [vmem:[%s21990_s19 + $0x130] sm:$0xff]  ;;  %v997_v38 = vld [vmem:[%s21990_s19 + $0x118] sm:$0xff] }
 0x38a   : > { %v16162_v42 = vcombine.high %v996_v36, %v1000_v37  ;;  %v16161_v48 = vcombine.low %v996_v36, %v1000_v37  ;;  %v16163_v50 = vcombine.low %v997_v38, %v1001_v40  ;;  %v1060_v37 = vld [vmem:[%s21990_s19 + $0x310] sm:$0xff] }
 0x38c   : > { %2606 = vmatpush1.bf16.msra.mxu0 %v16349_v44  ;;  %2688 = vmatpush1.bf16.msra.mxu1 %v16351_v45  ;;  %v1008_v44 = vld [vmem:[%s21990_s19 + $0x170] sm:$0xff]  ;;  %v1005_v45 = vld [vmem:[%s21990_s19 + $0x158] sm:$0xff] }
 0x38d   : > { %2607 = vmatprep.subr.bf16.mxu0 %v16358_v46  ;;  %2689 = vmatprep.subr.bf16.mxu1 %v16360_v51  ;;  %v16164_v46 = vcombine.high %v997_v38, %v1001_v40  ;;  %v16170_v51 = vcombine.high %v1004_v43, %v1008_v44  ;;  %v16169_v57 = vcombine.low %v1004_v43, %v1008_v44  ;;  %v1064_v38 = vld [vmem:[%s21990_s19 + $0x330] sm:$0xff] }
 0x38e   : > { %v16171_v58 = vcombine.low %v1005_v45, %v1009_v47  ;;  %v1068_v44 = vld [vmem:[%s21990_s19 + $0x350] sm:$0xff] }
 0x390   : > { %2608 = vmatpush1.bf16.msra.mxu0 %v16357_v53  ;;  %2690 = vmatpush1.bf16.msra.mxu1 %v16359_v54  ;;  %v1016_v53 = vld [vmem:[%s21990_s19 + $0x1b0] sm:$0xff]  ;;  %v1013_v54 = vld [vmem:[%s21990_s19 + $0x198] sm:$0xff] }
 0x391   : > { %2609 = vmatprep.subr.bf16.mxu0 %v16366_v55  ;;  %2691 = vmatprep.subr.bf16.mxu1 %v16368_v59  ;;  %v16172_v55 = vcombine.high %v1005_v45, %v1009_v47  ;;  %v16178_v59 = vcombine.high %v1012_v52, %v1016_v53  ;;  %v16177_v1 = vcombine.low %v1012_v52, %v1016_v53  ;;  %v1072_v45 = vld [vmem:[%s21990_s19 + $0x370] sm:$0xff] }
 0x392   : > { %v16179_v2 = vcombine.low %v1013_v54, %v1017_v56  ;;  %v16226_v47 = vcombine.high %v1060_v37, %v1064_v38  ;;  %v16225_v52 = vcombine.low %v1060_v37, %v1064_v38  ;;  %v1076_v53 = vld [vmem:[%s21990_s19 + $0x390] sm:$0xff]  ;;  %v1121_v37 = vld [vmem:[%s21990_s19 + $0x4f8] sm:$0xff] }
 0x394   : > { %2610 = vmatpush1.bf16.msra.mxu0 %v16365_v61  ;;  %2692 = vmatpush1.bf16.msra.mxu1 %v16367_v62  ;;  %v1024_v61 = vld [vmem:[%s21990_s19 + $0x1f0] sm:$0xff]  ;;  %v1021_v62 = vld [vmem:[%s21990_s19 + $0x1d8] sm:$0xff] }
 0x395   : > { %2611 = vmatprep.subr.bf16.mxu0 %v16374_v63  ;;  %2693 = vmatprep.subr.bf16.mxu1 %v16376_v3  ;;  %v16180_v63 = vcombine.high %v1013_v54, %v1017_v56  ;;  %v16186_v3 = vcombine.high %v1020_v60, %v1024_v61  ;;  %v16185_v10 = vcombine.low %v1020_v60, %v1024_v61  ;;  %v1080_v54 = vld [vmem:[%s21990_s19 + $0x3b0] sm:$0xff] }
 0x396   : > { %v16187_v11 = vcombine.low %v1021_v62, %v1025_v0  ;;  %v16234_v56 = vcombine.high %v1068_v44, %v1072_v45  ;;  %v16233_v60 = vcombine.low %v1068_v44, %v1072_v45  ;;  %v1084_v61 = vld [vmem:[%s21990_s19 + $0x3d0] sm:$0xff]  ;;  %v16241_v5 = vcombine.low %v1076_v53, %v1080_v54 }
 0x398   : > { %2612 = vmatpush1.bf16.msra.mxu0 %v16373_v7  ;;  %2694 = vmatpush1.bf16.msra.mxu1 %v16375_v8  ;;  %v1029_v7 = vld [vmem:[%s21990_s19 + $0x218] sm:$0xff]  ;;  %v16188_v8 = vcombine.high %v1021_v62, %v1025_v0  ;;  %v1088_v62 = vld [vmem:[%s21990_s19 + $0x3f0] sm:$0xff]  ;;  %v16242_v0 = vcombine.high %v1076_v53, %v1080_v54 }
 0x399   : > { %2704 = vmatprep.subr.bf16.mxu0 %v16130_v9  ;;  %2786 = vmatprep.subr.bf16.mxu1 %v16132_v13  ;;  %v1033_v9 = vld [vmem:[%s21990_s19 + $0x238] sm:$0xff]  ;;  %v1036_v13 = vld [vmem:[%s21990_s19 + $0x250] sm:$0xff] }
 0x39a   : > { %v16195_v21 = vcombine.low %v1029_v7, %v1033_v9  ;;  %v16202_v22 = vcombine.high %v1036_v13, %v1040_v14  ;;  %v16201_v28 = vcombine.low %v1036_v13, %v1040_v14  ;;  %v16249_v13 = vcombine.low %v1084_v61, %v1088_v62  ;;  %v1100_v14 = vld [vmem:[%s21990_s19 + $0x450] sm:$0xff] }
 0x39b   : > { %2614 = vmatmul.mubr.bf16.vlgmr.msra.gmra.mrb[0].mxu0 %v22168_v15  ;;  %2696 = vmatmul.mubr.bf16.vlgmr.msra.gmra.mrb[0].mxu1 %v22168_v15  ;;  %v1140_v54 = vld [vmem:[%s21990_s19 + $0x590] sm:$0xff] }
 0x39c   : > { %2705 = vmatpush1.bf16.msra.mxu0 %v16129_v17  ;;  %2787 = vmatpush1.bf16.msra.mxu1 %v16131_v18  ;;  %v1037_v17 = vld [vmem:[%s21990_s19 + $0x258] sm:$0xff]  ;;  %v16196_v18 = vcombine.high %v1029_v7, %v1033_v9  ;;  %v1096_v7 = vld [vmem:[%s21990_s19 + $0x430] sm:$0xff]  ;;  %v16250_v9 = vcombine.high %v1084_v61, %v1088_v62 }
 0x39d   : > { %2706 = vmatprep.subr.bf16.mxu0 %v16138_v19  ;;  %2788 = vmatprep.subr.bf16.mxu1 %v16140_v23  ;;  %v1041_v19 = vld [vmem:[%s21990_s19 + $0x278] sm:$0xff]  ;;  %v1044_v23 = vld [vmem:[%s21990_s19 + $0x290] sm:$0xff] }
 0x39e   : > { %2736 = vmatprep.mubr.bf16.mxu0 %v22050_v49  ;;  %2818 = vmatprep.mubr.bf16.mxu1 %v22050_v49  ;;  %v16155_v49 = vcombine.low %v989_v30, %v993_v32  ;;  %v16203_v29 = vcombine.low %v1037_v17, %v1041_v19  ;;  %v16210_v30 = vcombine.high %v1044_v23, %v1048_v24  ;;  %v1056_v32 = vld [vmem:[%s21990_s19 + $0x2f0] sm:$0xff] }
 0x39f   : > { %v16209_v36 = vcombine.low %v1044_v23, %v1048_v24  ;;  %v16257_v23 = vcombine.low %v1092_v6, %v1096_v7  ;;  %v1108_v24 = vld [vmem:[%s21990_s19 + $0x490] sm:$0xff] }
 0x3a0   : > { %2707 = vmatpush1.bf16.msra.mxu0 %v16137_v25  ;;  %2789 = vmatpush1.bf16.msra.mxu1 %v16139_v26  ;;  %v1045_v25 = vld [vmem:[%s21990_s19 + $0x298] sm:$0xff]  ;;  %v16204_v26 = vcombine.high %v1037_v17, %v1041_v19  ;;  %v1104_v17 = vld [vmem:[%s21990_s19 + $0x470] sm:$0xff]  ;;  %v16258_v19 = vcombine.high %v1092_v6, %v1096_v7 }
 0x3a1   : > { %2708 = vmatprep.subr.bf16.mxu0 %v16146_v27  ;;  %2790 = vmatprep.subr.bf16.mxu1 %v16148_v31  ;;  %v1049_v27 = vld [vmem:[%s21990_s19 + $0x2b8] sm:$0xff]  ;;  %v1052_v31 = vld [vmem:[%s21990_s19 + $0x2d0] sm:$0xff] }
 0x3a2   : > { %v16218_v40 = vcombine.high %v1052_v31, %v1056_v32  ;;  %v16217_v43 = vcombine.low %v1052_v31, %v1056_v32  ;;  %v16265_v31 = vcombine.low %v1100_v14, %v1104_v17  ;;  %v1116_v32 = vld [vmem:[%s21990_s19 + $0x4d0] sm:$0xff] }
 0x3a4   : > { %2709 = vmatpush1.bf16.msra.mxu0 %v16145_v33  ;;  %2791 = vmatpush1.bf16.msra.mxu1 %v16147_v34  ;;  %v1053_v33 = vld [vmem:[%s21990_s19 + $0x2d8] sm:$0xff]  ;;  %v16212_v34 = vcombine.high %v1045_v25, %v1049_v27 }
 0x3a5   : > { %2710 = vmatprep.subr.bf16.mxu0 %v16154_v35  ;;  %2792 = vmatprep.subr.bf16.mxu1 %v16156_v39  ;;  %v1057_v35 = vld [vmem:[%s21990_s19 + $0x2f8] sm:$0xff]  ;;  %v16211_v39 = vcombine.low %v1045_v25, %v1049_v27  ;;  %v1112_v25 = vld [vmem:[%s21990_s19 + $0x4b0] sm:$0xff]  ;;  %v16266_v27 = vcombine.high %v1100_v14, %v1104_v17 }
 0x3a8   : > { %2711 = vmatpush1.bf16.msra.mxu0 %v16153_v41  ;;  %2793 = vmatpush1.bf16.msra.mxu1 %v16155_v49  ;;  %v1061_v41 = vld [vmem:[%s21990_s19 + $0x318] sm:$0xff] }
 0x3a9   : > { %2712 = vmatprep.subr.bf16.mxu0 %v16162_v42  ;;  %2794 = vmatprep.subr.bf16.mxu1 %v16164_v46  ;;  %v1065_v49 = vld [vmem:[%s21990_s19 + $0x338] sm:$0xff]  ;;  %v16220_v42 = vcombine.high %v1053_v33, %v1057_v35  ;;  %v16219_v46 = vcombine.low %v1053_v33, %v1057_v35  ;;  %v1120_v33 = vld [vmem:[%s21990_s19 + $0x4f0] sm:$0xff]  ;;  %v16274_v35 = vcombine.high %v1108_v24, %v1112_v25 }
 0x3aa   : > { %v16281_v45 = vcombine.low %v1116_v32, %v1120_v33 }
 0x3ac   : > { %2713 = vmatpush1.bf16.msra.mxu0 %v16161_v48  ;;  %2795 = vmatpush1.bf16.msra.mxu1 %v16163_v50  ;;  %v1069_v48 = vld [vmem:[%s21990_s19 + $0x358] sm:$0xff] }
 0x3ad   : > { %2714 = vmatprep.subr.bf16.mxu0 %v16170_v51  ;;  %2796 = vmatprep.subr.bf16.mxu1 %v16172_v55  ;;  %v1073_v50 = vld [vmem:[%s21990_s19 + $0x378] sm:$0xff]  ;;  %v16228_v51 = vcombine.high %v1061_v41, %v1065_v49  ;;  %v16227_v55 = vcombine.low %v1061_v41, %v1065_v49  ;;  %v16282_v49 = vcombine.high %v1116_v32, %v1120_v33 }
 0x3b0   : > { %2715 = vmatpush1.bf16.msra.mxu0 %v16169_v57  ;;  %2797 = vmatpush1.bf16.msra.mxu1 %v16171_v58  ;;  %v1077_v57 = vld [vmem:[%s21990_s19 + $0x398] sm:$0xff] }
 0x3b1   : > { %2716 = vmatprep.subr.bf16.mxu0 %v16178_v59  ;;  %2798 = vmatprep.subr.bf16.mxu1 %v16180_v63  ;;  %v1081_v58 = vld [vmem:[%s21990_s19 + $0x3b8] sm:$0xff]  ;;  %v16236_v59 = vcombine.high %v1069_v48, %v1073_v50  ;;  %v16235_v63 = vcombine.low %v1069_v48, %v1073_v50 }
 0x3b2   : > { %v1133_v50 = vld [vmem:[%s21990_s19 + $0x558] sm:$0xff] }
 0x3b4   : > { %2717 = vmatpush1.bf16.msra.mxu0 %v16177_v1  ;;  %2799 = vmatpush1.bf16.msra.mxu1 %v16179_v2  ;;  %v1085_v1 = vld [vmem:[%s21990_s19 + $0x3d8] sm:$0xff] }
 0x3b5   : > { %2718 = vmatprep.subr.bf16.mxu0 %v16186_v3  ;;  %2800 = vmatprep.subr.bf16.mxu1 %v16188_v8  ;;  %v1089_v2 = vld [vmem:[%s21990_s19 + $0x3f8] sm:$0xff]  ;;  %v16244_v3 = vcombine.high %v1077_v57, %v1081_v58  ;;  %v16243_v8 = vcombine.low %v1077_v57, %v1081_v58 }
 0x3b6   : > { %v1141_v58 = vld [vmem:[%s21990_s19 + $0x598] sm:$0xff] }
 0x3b8   : > { %2719 = vmatpush1.bf16.msra.mxu0 %v16185_v10  ;;  %2801 = vmatpush1.bf16.msra.mxu1 %v16187_v11  ;;  %v1093_v10 = vld [vmem:[%s21990_s19 + $0x418] sm:$0xff] }
 0x3b9   : > { %2720 = vmatprep.subr.bf16.mxu0 %v16194_v12  ;;  %2802 = vmatprep.subr.bf16.mxu1 %v16196_v18  ;;  %v1097_v11 = vld [vmem:[%s21990_s19 + $0x438] sm:$0xff]  ;;  %v16252_v12 = vcombine.high %v1085_v1, %v1089_v2  ;;  %v16251_v18 = vcombine.low %v1085_v1, %v1089_v2  ;;  %v1152_v1 = vld [vmem:[%s21990_s19 + $0x5f0] sm:$0xff] }
 0x3bc   : > { %2721 = vmatpush1.bf16.msra.mxu0 %v16193_v20  ;;  %2803 = vmatpush1.bf16.msra.mxu1 %v16195_v21  ;;  %v1101_v20 = vld [vmem:[%s21990_s19 + $0x458] sm:$0xff] }
 0x3bd   : > { %2722 = vmatprep.subr.bf16.mxu0 %v16202_v22  ;;  %2804 = vmatprep.subr.bf16.mxu1 %v16204_v26  ;;  %v1105_v21 = vld [vmem:[%s21990_s19 + $0x478] sm:$0xff]  ;;  %v16260_v22 = vcombine.high %v1093_v10, %v1097_v11  ;;  %v16259_v26 = vcombine.low %v1093_v10, %v1097_v11  ;;  %v1156_v10 = vld [vmem:[%s21990_s19 + $0x610] sm:$0xff] }
 0x3be   : > { %v1160_v11 = vld [vmem:[%s21990_s19 + $0x630] sm:$0xff] }
 0x3c0   : > { %2723 = vmatpush1.bf16.msra.mxu0 %v16201_v28  ;;  %2805 = vmatpush1.bf16.msra.mxu1 %v16203_v29  ;;  %v1109_v28 = vld [vmem:[%s21990_s19 + $0x498] sm:$0xff] }
 0x3c1   : > { %2724 = vmatprep.subr.bf16.mxu0 %v16210_v30  ;;  %2806 = vmatprep.subr.bf16.mxu1 %v16212_v34  ;;  %v1113_v29 = vld [vmem:[%s21990_s19 + $0x4b8] sm:$0xff]  ;;  %v16268_v30 = vcombine.high %v1101_v20, %v1105_v21  ;;  %v16267_v34 = vcombine.low %v1101_v20, %v1105_v21  ;;  %v1164_v20 = vld [vmem:[%s21990_s19 + $0x650] sm:$0xff] }
 0x3c2   : > { %v16276_v38 = vcombine.high %v1109_v28, %v1113_v29  ;;  %v16275_v41 = vcombine.low %v1109_v28, %v1113_v29  ;;  %v1168_v21 = vld [vmem:[%s21990_s19 + $0x670] sm:$0xff] }
 0x3c3   : > { %v1172_v28 = vld [vmem:[%s21990_s19 + $0x690] sm:$0xff]  ;;  %v16329_v32 = vcombine.low %v1164_v20, %v1168_v21 }
 0x3c4   : > { %2725 = vmatpush1.bf16.msra.mxu0 %v16209_v36  ;;  %2807 = vmatpush1.bf16.msra.mxu1 %v16211_v39  ;;  %v1117_v36 = vld [vmem:[%s21990_s19 + $0x4d8] sm:$0xff]  ;;  %v1124_v39 = vld [vmem:[%s21990_s19 + $0x510] sm:$0xff] }
 0x3c5   : > { %2726 = vmatprep.subr.bf16.mxu0 %v16218_v40  ;;  %2808 = vmatprep.subr.bf16.mxu1 %v16220_v42  ;;  %v1128_v40 = vld [vmem:[%s21990_s19 + $0x530] sm:$0xff]  ;;  %v1125_v42 = vld [vmem:[%s21990_s19 + $0x518] sm:$0xff]  ;;  %v16284_v44 = vcombine.high %v1117_v36, %v1121_v37 }
 0x3c6   : > { %v16290_v48 = vcombine.high %v1124_v39, %v1128_v40  ;;  %v16289_v53 = vcombine.low %v1124_v39, %v1128_v40  ;;  %v1176_v29 = vld [vmem:[%s21990_s19 + $0x6b0] sm:$0xff] }
 0x3c7   : > { %v16337_v39 = vcombine.low %v1172_v28, %v1176_v29 }
 0x3c8   : > { %2727 = vmatpush1.bf16.msra.mxu0 %v16217_v43  ;;  %2809 = vmatpush1.bf16.msra.mxu1 %v16219_v46  ;;  %v1129_v43 = vld [vmem:[%s21990_s19 + $0x538] sm:$0xff]  ;;  %v1136_v46 = vld [vmem:[%s21990_s19 + $0x570] sm:$0xff] }
 0x3c9   : > { %2728 = vmatprep.subr.bf16.mxu0 %v16226_v47  ;;  %2810 = vmatprep.subr.bf16.mxu1 %v16228_v51  ;;  %v16283_v47 = vcombine.low %v1117_v36, %v1121_v37  ;;  %v1137_v51 = vld [vmem:[%s21990_s19 + $0x578] sm:$0xff]  ;;  %v1180_v36 = vld [vmem:[%s21990_s19 + $0x6d0] sm:$0xff] }
 0x3ca   : > { %v16299_v62 = vcombine.low %v1133_v50, %v1137_v51  ;;  %v1184_v37 = vld [vmem:[%s21990_s19 + $0x6f0] sm:$0xff] }
 0x3cc   : > { %2729 = vmatpush1.bf16.msra.mxu0 %v16225_v52  ;;  %2811 = vmatpush1.bf16.msra.mxu1 %v16227_v55  ;;  %v16292_v52 = vcombine.high %v1125_v42, %v1129_v43  ;;  %v1144_v55 = vld [vmem:[%s21990_s19 + $0x5b0] sm:$0xff] }
 0x3cd   : > { %2730 = vmatprep.subr.bf16.mxu0 %v16234_v56  ;;  %2812 = vmatprep.subr.bf16.mxu1 %v16236_v59  ;;  %v16291_v56 = vcombine.low %v1125_v42, %v1129_v43  ;;  %v1145_v59 = vld [vmem:[%s21990_s19 + $0x5b8] sm:$0xff]  ;;  %v16305_v6 = vcombine.low %v1140_v54, %v1144_v55  ;;  %v1188_v42 = vld [vmem:[%s21990_s19 + $0x710] sm:$0xff] }
 0x3ce   : > { %v16308_v2 = vcombine.high %v1141_v58, %v1145_v59  ;;  %v16307_v7 = vcombine.low %v1141_v58, %v1145_v59  ;;  %v1192_v43 = vld [vmem:[%s21990_s19 + $0x730] sm:$0xff] }
 0x3cf   : > { %v1204_v58 = vld [vmem:[%s21990_s19 + $0x790] sm:$0xff] }
 0x3d0   : > { %2731 = vmatpush1.bf16.msra.mxu0 %v16233_v60  ;;  %2813 = vmatpush1.bf16.msra.mxu1 %v16235_v63  ;;  %v16300_v60 = vcombine.high %v1133_v50, %v1137_v51  ;;  %v16306_v63 = vcombine.high %v1140_v54, %v1144_v55  ;;  %v1196_v50 = vld [vmem:[%s21990_s19 + $0x750] sm:$0xff]  ;;  %v16353_v54 = vcombine.low %v1188_v42, %v1192_v43 }
 0x3d1   : > { %2732 = vmatprep.subr.bf16.mxu0 %v16242_v0  ;;  %2814 = vmatprep.subr.bf16.mxu1 %v16244_v3  ;;  %v1148_v0 = vld [vmem:[%s21990_s19 + $0x5d0] sm:$0xff]  ;;  %v1149_v3 = vld [vmem:[%s21990_s19 + $0x5d8] sm:$0xff] }
 0x3d2   : > { %v16313_v14 = vcombine.low %v1148_v0, %v1152_v1  ;;  %v1200_v51 = vld [vmem:[%s21990_s19 + $0x770] sm:$0xff] }
 0x3d3   : > { %v1208_v59 = vld [vmem:[%s21990_s19 + $0x7b0] sm:$0xff] }
 0x3d4   : > { %2733 = vmatpush1.bf16.msra.mxu0 %v16241_v5  ;;  %2815 = vmatpush1.bf16.msra.mxu1 %v16243_v8  ;;  %v1153_v5 = vld [vmem:[%s21990_s19 + $0x5f8] sm:$0xff]  ;;  %v16314_v8 = vcombine.high %v1148_v0, %v1152_v1  ;;  %v16370_v0 = vcombine.high %v1204_v58, %v1208_v59  ;;  %v1212_v1 = vld [vmem:[%s21990_s19 + $0x7d0] sm:$0xff] }
 0x3d5   : > { %2734 = vmatprep.subr.bf16.mxu0 %v16250_v9  ;;  %2816 = vmatprep.subr.bf16.mxu1 %v16252_v12  ;;  %v16316_v9 = vcombine.high %v1149_v3, %v1153_v5  ;;  %v1157_v12 = vld [vmem:[%s21990_s19 + $0x618] sm:$0xff]  ;;  %v16315_v17 = vcombine.low %v1149_v3, %v1153_v5 }
 0x3d6   : > { %v1213_v5 = vld [vmem:[%s21990_s19 + $0x7d8] sm:$0xff] }
 0x3d8   : > { %2735 = vmatpush1.bf16.msra.mxu0 %v16249_v13  ;;  %2817 = vmatpush1.bf16.msra.mxu1 %v16251_v18  ;;  %v1161_v13 = vld [vmem:[%s21990_s19 + $0x638] sm:$0xff]  ;;  %v16322_v18 = vcombine.high %v1156_v10, %v1160_v11 }
 0x3d9   : > { %2745 = vmatprep.subr.bf16.mxu0 %v16258_v19  ;;  %2827 = vmatprep.subr.bf16.mxu1 %v16260_v22  ;;  %v16324_v19 = vcombine.high %v1157_v12, %v1161_v13  ;;  %v1165_v22 = vld [vmem:[%s21990_s19 + $0x658] sm:$0xff] }
 0x3db   : > { %2737 = vmatmul.mubr.bf16.vlgmr.msra.gmra.mrb[4].mxu0 %v22094_v4  ;;  %2819 = vmatmul.mubr.bf16.vlgmr.msra.gmra.mrb[4].mxu1 %v22094_v4  ;;  %v16273_v4 = vcombine.low %v1108_v24, %v1112_v25  ;;  %v16321_v24 = vcombine.low %v1156_v10, %v1160_v11  ;;  %v16323_v25 = vcombine.low %v1157_v12, %v1161_v13  ;;  %v20164_v13 = vld [vmem:[%s21998_s14 + $0x4] ss:$16 sps:$4 sm:$0xff]  }
 0x3dc   : > { %2746 = vmatpush1.bf16.msra.mxu0 %v16257_v23  ;;  %2828 = vmatpush1.bf16.msra.mxu1 %v16259_v26  ;;  %v1169_v23 = vld [vmem:[%s21990_s19 + $0x678] sm:$0xff]  ;;  %v16330_v26 = vcombine.high %v1164_v20, %v1168_v21  ;;  %v20168_v20 = vld [vmem:[%s21998_s14 + $0x20] ss:$16 sps:$4 sm:$0xff]  }
 0x3dd   : > { %2747 = vmatprep.subr.bf16.mxu0 %v16266_v27  ;;  %2829 = vmatprep.subr.bf16.mxu1 %v16268_v30  ;;  %v16332_v27 = vcombine.high %v1165_v22, %v1169_v23  ;;  %v1173_v30 = vld [vmem:[%s21990_s19 + $0x698] sm:$0xff]  ;;  %v16331_v33 = vcombine.low %v1165_v22, %v1169_v23  ;;  %v20176_v23 = vld [vmem:[%s21998_s14 + $0x44] ss:$16 sps:$4 sm:$0xff]  }
 0x3de   : > { %2777 = vmatprep.mubr.bf16.mxu0 %v22102_v16  ;;  %2859 = vmatprep.mubr.bf16.mxu1 %v22102_v16  ;;  %v1132_v16 = vld [vmem:[%s21990_s19 + $0x550] sm:$0xff]  ;;  %v20173_v21 = vld [vmem:[%s21998_s14 + $0x2c] ss:$16 sps:$4 sm:$0xff]   ;;  %v20171_v22 = vld [vmem:[%s21998_s14 + $0x28] ss:$16 sps:$4 sm:$0xff]  }
 0x3df   : > { %v16298_v57 = vcombine.high %v1132_v16, %v1136_v46  ;;  %v16297_v61 = vcombine.low %v1132_v16, %v1136_v46  ;;  %v16345_v16 = vcombine.low %v1180_v36, %v1184_v37 }
 0x3e0   : > { %2748 = vmatpush1.bf16.msra.mxu0 %v16265_v31  ;;  %2830 = vmatpush1.bf16.msra.mxu1 %v16267_v34  ;;  %v1177_v31 = vld [vmem:[%s21990_s19 + $0x6b8] sm:$0xff]  ;;  %v16338_v34 = vcombine.high %v1172_v28, %v1176_v29 }
 0x3e1   : > { %2749 = vmatprep.subr.bf16.mxu0 %v16274_v35  ;;  %2831 = vmatprep.subr.bf16.mxu1 %v16276_v38  ;;  %v16340_v35 = vcombine.high %v1173_v30, %v1177_v31  ;;  %v1181_v38 = vld [vmem:[%s21990_s19 + $0x6d8] sm:$0xff]  ;;  %v16339_v40 = vcombine.low %v1173_v30, %v1177_v31  ;;  %v20188_v30 = vld [vmem:[%s21998_s14 + $0x84] ss:$16 sps:$4 sm:$0xff]   ;;  %v20186_v31 = vld [vmem:[%s21998_s14 + $0x80] ss:$16 sps:$4 sm:$0xff]  }
 0x3e2   : > { %v20185_v28 = vld [vmem:[%s21998_s14 + $0x6c] ss:$16 sps:$4 sm:$0xff]   ;;  %v20183_v29 = vld [vmem:[%s21998_s14 + $0x68] ss:$16 sps:$4 sm:$0xff]  }
 0x3e4   : > { %2750 = vmatpush1.bf16.msra.mxu0 %v16273_v4  ;;  %2832 = vmatpush1.bf16.msra.mxu1 %v16275_v41  ;;  %v1185_v4 = vld [vmem:[%s21990_s19 + $0x6f8] sm:$0xff]  ;;  %v16346_v41 = vcombine.high %v1180_v36, %v1184_v37 }
 0x3e5   : > { %2751 = vmatprep.subr.bf16.mxu0 %v16282_v49  ;;  %2833 = vmatprep.subr.bf16.mxu1 %v16284_v44  ;;  %v16348_v49 = vcombine.high %v1181_v38, %v1185_v4  ;;  %v1189_v44 = vld [vmem:[%s21990_s19 + $0x718] sm:$0xff]  ;;  %v16347_v46 = vcombine.low %v1181_v38, %v1185_v4  ;;  %v20200_v38 = vld [vmem:[%s21998_s14 + $0xc4] ss:$16 sps:$4 sm:$0xff]   ;;  %v20198_v4 = vld [vmem:[%s21998_s14 + $0xc0] ss:$16 sps:$4 sm:$0xff]  }
 0x3e6   : > { %v20197_v36 = vld [vmem:[%s21998_s14 + $0xac] ss:$16 sps:$4 sm:$0xff]   ;;  %v20195_v37 = vld [vmem:[%s21998_s14 + $0xa8] ss:$16 sps:$4 sm:$0xff]  }
 0x3e8   : > { %2752 = vmatpush1.bf16.msra.mxu0 %v16281_v45  ;;  %2834 = vmatpush1.bf16.msra.mxu1 %v16283_v47  ;;  %v1193_v45 = vld [vmem:[%s21990_s19 + $0x738] sm:$0xff]  ;;  %v16354_v47 = vcombine.high %v1188_v42, %v1192_v43 }
 0x3e9   : > { %2753 = vmatprep.subr.bf16.mxu0 %v16290_v48  ;;  %2835 = vmatprep.subr.bf16.mxu1 %v16292_v52  ;;  %v16356_v48 = vcombine.high %v1189_v44, %v1193_v45  ;;  %v1197_v52 = vld [vmem:[%s21990_s19 + $0x758] sm:$0xff]  ;;  %v16355_v55 = vcombine.low %v1189_v44, %v1193_v45  ;;  %v20212_v44 = vld [vmem:[%s21998_s14 + $0x104] ss:$16 sps:$4 sm:$0xff]   ;;  %v20210_v45 = vld [vmem:[%s21998_s14 + $0x100] ss:$16 sps:$4 sm:$0xff]  }
 0x3ea   : > { %v20209_v42 = vld [vmem:[%s21998_s14 + $0xec] ss:$16 sps:$4 sm:$0xff]   ;;  %v20207_v43 = vld [vmem:[%s21998_s14 + $0xe8] ss:$16 sps:$4 sm:$0xff]  }
 0x3ec   : > { %2754 = vmatpush1.bf16.msra.mxu0 %v16289_v53  ;;  %2836 = vmatpush1.bf16.msra.mxu1 %v16291_v56  ;;  %v1201_v53 = vld [vmem:[%s21990_s19 + $0x778] sm:$0xff]  ;;  %v16362_v56 = vcombine.high %v1196_v50, %v1200_v51 }
 0x3ed   : > { %2755 = vmatprep.subr.bf16.mxu0 %v16298_v57  ;;  %2837 = vmatprep.subr.bf16.mxu1 %v16300_v60  ;;  %v16364_v57 = vcombine.high %v1197_v52, %v1201_v53  ;;  %v1205_v60 = vld [vmem:[%s21990_s19 + $0x798] sm:$0xff] }
 0x3f0   : > { %2756 = vmatpush1.bf16.msra.mxu0 %v16297_v61  ;;  %2838 = vmatpush1.bf16.msra.mxu1 %v16299_v62  ;;  %v1209_v61 = vld [vmem:[%s21990_s19 + $0x7b8] sm:$0xff]  ;;  %v16361_v62 = vcombine.low %v1196_v50, %v1200_v51 }
 0x3f1   : > { %2757 = vmatprep.subr.bf16.mxu0 %v16306_v63  ;;  %2839 = vmatprep.subr.bf16.mxu1 %v16308_v2  ;;  %v16363_v63 = vcombine.low %v1197_v52, %v1201_v53  ;;  %v1216_v2 = vld [vmem:[%s21990_s19 + $0x7f0] sm:$0xff]  ;;  %v16372_v3 = vcombine.high %v1205_v60, %v1209_v61  ;;  %v20221_v50 = vld [vmem:[%s21998_s14 + $0x12c] ss:$16 sps:$4 sm:$0xff]   ;;  %v20219_v51 = vld [vmem:[%s21998_s14 + $0x128] ss:$16 sps:$4 sm:$0xff]  }
 0x3f2   : > { %v16377_v11 = vcombine.low %v1212_v1, %v1216_v2  ;;  %v20224_v52 = vld [vmem:[%s21998_s14 + $0x144] ss:$16 sps:$4 sm:$0xff]   ;;  %v20222_v53 = vld [vmem:[%s21998_s14 + $0x140] ss:$16 sps:$4 sm:$0xff]  }
 0x3f4   : > { %2758 = vmatpush1.bf16.msra.mxu0 %v16305_v6  ;;  %2840 = vmatpush1.bf16.msra.mxu1 %v16307_v7  ;;  %v1217_v6 = vld [vmem:[%s21990_s19 + $0x7f8] sm:$0xff]  ;;  %v16369_v7 = vcombine.low %v1204_v58, %v1208_v59 }
 0x3f5   : > { %2759 = vmatprep.subr.bf16.mxu0 %v16314_v8  ;;  %2841 = vmatprep.subr.bf16.mxu1 %v16316_v9  ;;  %v16371_v8 = vcombine.low %v1205_v60, %v1209_v61  ;;  %v16378_v9 = vcombine.high %v1212_v1, %v1216_v2  ;;  %v16380_v10 = vcombine.high %v1213_v5, %v1217_v6  ;;  %v20233_v58 = vld [vmem:[%s21998_s14 + $0x16c] ss:$16 sps:$4 sm:$0xff]   ;;  %v20231_v59 = vld [vmem:[%s21998_s14 + $0x168] ss:$16 sps:$4 sm:$0xff]   ;;  %v20236_v60 = vld [vmem:[%s21998_s14 + $0x184] ss:$16 sps:$4 sm:$0xff]  }
 0x3f6   : > { %v16379_v12 = vcombine.low %v1213_v5, %v1217_v6  ;;  %v20239_v61 = vld [vmem:[%s21998_s14 + $0x18c] ss:$16 sps:$4 sm:$0xff]   ;;  %v20240_v1 = vld [vmem:[%s21998_s14 + $0x1a0] ss:$16 sps:$4 sm:$0xff]   ;;  %v20248_v5 = vld [vmem:[%s21998_s14 + $0x1c4] ss:$16 sps:$4 sm:$0xff]  }
 0x3f7   : > { %v20245_v2 = vld [vmem:[%s21998_s14 + $0x1ac] ss:$16 sps:$4 sm:$0xff]   ;;  %v20246_v6 = vld [vmem:[%s21998_s14 + $0x1c0] ss:$16 sps:$4 sm:$0xff]  }
 0x3f8   : > { %2760 = vmatpush1.bf16.msra.mxu0 %v16313_v14  ;;  %2842 = vmatpush1.bf16.msra.mxu1 %v16315_v17  ;;  %v20162_v14 = vld [vmem:[%s21998_s14] ss:$16 sps:$4 sm:$0xff]   ;;  %v20167_v17 = vld [vmem:[%s21998_s14 + $0xc] ss:$16 sps:$4 sm:$0xff]  }
 0x3f9   : > { %2761 = vmatprep.subr.bf16.mxu0 %v16322_v18  ;;  %2843 = vmatprep.subr.bf16.mxu1 %v16324_v19  ;;  %v20165_v18 = vld [vmem:[%s21998_s14 + $0x8] ss:$16 sps:$4 sm:$0xff]   ;;  %v20170_v19 = vld [vmem:[%s21998_s14 + $0x24] ss:$16 sps:$4 sm:$0xff]  }
 0x3fc   : > { %2762 = vmatpush1.bf16.msra.mxu0 %v16321_v24  ;;  %2844 = vmatpush1.bf16.msra.mxu1 %v16323_v25  ;;  %v20174_v24 = vld [vmem:[%s21998_s14 + $0x40] ss:$16 sps:$4 sm:$0xff]   ;;  %v20179_v25 = vld [vmem:[%s21998_s14 + $0x4c] ss:$16 sps:$4 sm:$0xff]  }
 0x3fd   : > { %2763 = vmatprep.subr.bf16.mxu0 %v16330_v26  ;;  %2845 = vmatprep.subr.bf16.mxu1 %v16332_v27  ;;  %v20177_v26 = vld [vmem:[%s21998_s14 + $0x48] ss:$16 sps:$4 sm:$0xff]   ;;  %v20182_v27 = vld [vmem:[%s21998_s14 + $0x64] ss:$16 sps:$4 sm:$0xff]  }
 0x400   : > { %2764 = vmatpush1.bf16.msra.mxu0 %v16329_v32  ;;  %2846 = vmatpush1.bf16.msra.mxu1 %v16331_v33  ;;  %v20191_v32 = vld [vmem:[%s21998_s14 + $0x8c] ss:$16 sps:$4 sm:$0xff]   ;;  %v20189_v33 = vld [vmem:[%s21998_s14 + $0x88] ss:$16 sps:$4 sm:$0xff]  }
 0x401   : > { %2765 = vmatprep.subr.bf16.mxu0 %v16338_v34  ;;  %2847 = vmatprep.subr.bf16.mxu1 %v16340_v35  ;;  %v20194_v34 = vld [vmem:[%s21998_s14 + $0xa4] ss:$16 sps:$4 sm:$0xff]   ;;  %v20192_v35 = vld [vmem:[%s21998_s14 + $0xa0] ss:$16 sps:$4 sm:$0xff]  }
 0x404   : > { %2766 = vmatpush1.bf16.msra.mxu0 %v16337_v39  ;;  %2848 = vmatpush1.bf16.msra.mxu1 %v16339_v40  ;;  %v20203_v39 = vld [vmem:[%s21998_s14 + $0xcc] ss:$16 sps:$4 sm:$0xff]   ;;  %v20201_v40 = vld [vmem:[%s21998_s14 + $0xc8] ss:$16 sps:$4 sm:$0xff]  }
 0x405   : > { %2767 = vmatprep.subr.bf16.mxu0 %v16346_v41  ;;  %2849 = vmatprep.subr.bf16.mxu1 %v16348_v49  ;;  %v20206_v41 = vld [vmem:[%s21998_s14 + $0xe4] ss:$16 sps:$4 sm:$0xff]   ;;  %v20204_v49 = vld [vmem:[%s21998_s14 + $0xe0] ss:$16 sps:$4 sm:$0xff]  }
 0x408   : > { %2768 = vmatpush1.bf16.msra.mxu0 %v16345_v16  ;;  %2850 = vmatpush1.bf16.msra.mxu1 %v16347_v46  ;;  %v20215_v16 = vld [vmem:[%s21998_s14 + $0x10c] ss:$16 sps:$4 sm:$0xff]   ;;  %v20213_v46 = vld [vmem:[%s21998_s14 + $0x108] ss:$16 sps:$4 sm:$0xff]  }
 0x409   : > { %2769 = vmatprep.subr.bf16.mxu0 %v16354_v47  ;;  %2851 = vmatprep.subr.bf16.mxu1 %v16356_v48  ;;  %v20218_v47 = vld [vmem:[%s21998_s14 + $0x124] ss:$16 sps:$4 sm:$0xff]   ;;  %v20216_v48 = vld [vmem:[%s21998_s14 + $0x120] ss:$16 sps:$4 sm:$0xff]  }
 0x40c   : > { %2770 = vmatpush1.bf16.msra.mxu0 %v16353_v54  ;;  %2852 = vmatpush1.bf16.msra.mxu1 %v16355_v55  ;;  %v20227_v54 = vld [vmem:[%s21998_s14 + $0x14c] ss:$16 sps:$4 sm:$0xff]   ;;  %v20225_v55 = vld [vmem:[%s21998_s14 + $0x148] ss:$16 sps:$4 sm:$0xff]  }
 0x40d   : > { %2771 = vmatprep.subr.bf16.mxu0 %v16362_v56  ;;  %2853 = vmatprep.subr.bf16.mxu1 %v16364_v57  ;;  %v20230_v56 = vld [vmem:[%s21998_s14 + $0x164] ss:$16 sps:$4 sm:$0xff]   ;;  %v20228_v57 = vld [vmem:[%s21998_s14 + $0x160] ss:$16 sps:$4 sm:$0xff]  }
 0x410   : > { %2772 = vmatpush1.bf16.msra.mxu0 %v16361_v62  ;;  %2854 = vmatpush1.bf16.msra.mxu1 %v16363_v63  ;;  %v20234_v62 = vld [vmem:[%s21998_s14 + $0x180] ss:$16 sps:$4 sm:$0xff]   ;;  %v20237_v63 = vld [vmem:[%s21998_s14 + $0x188] ss:$16 sps:$4 sm:$0xff]  }
 0x411   : > { %2773 = vmatprep.subr.bf16.mxu0 %v16370_v0  ;;  %2855 = vmatprep.subr.bf16.mxu1 %v16372_v3  ;;  %v20242_v0 = vld [vmem:[%s21998_s14 + $0x1a4] ss:$16 sps:$4 sm:$0xff]   ;;  %v20243_v3 = vld [vmem:[%s21998_s14 + $0x1a8] ss:$16 sps:$4 sm:$0xff]  }
 0x414   : > { %2774 = vmatpush1.bf16.msra.mxu0 %v16369_v7  ;;  %2856 = vmatpush1.bf16.msra.mxu1 %v16371_v8  ;;  %v20251_v7 = vld [vmem:[%s21998_s14 + $0x1cc] ss:$16 sps:$4 sm:$0xff]   ;;  %v20249_v8 = vld [vmem:[%s21998_s14 + $0x1c8] ss:$16 sps:$4 sm:$0xff]  }
 0x415   : > { %2775 = vmatprep.subr.bf16.mxu0 %v16378_v9  ;;  %2857 = vmatprep.subr.bf16.mxu1 %v16380_v10  ;;  %v20254_v9 = vld [vmem:[%s21998_s14 + $0x1e4] ss:$16 sps:$4 sm:$0xff]   ;;  %v20252_v10 = vld [vmem:[%s21998_s14 + $0x1e0] ss:$16 sps:$4 sm:$0xff]  }
 0x418   : > { %2776 = vmatpush1.bf16.msra.mxu0 %v16377_v11  ;;  %2858 = vmatpush1.bf16.msra.mxu1 %v16379_v12  ;;  %v20257_v11 = vld [vmem:[%s21998_s14 + $0x1ec] ss:$16 sps:$4 sm:$0xff]   ;;  %v20255_v12 = vld [vmem:[%s21998_s14 + $0x1e8] ss:$16 sps:$4 sm:$0xff]  }
 0x419   : > { %3686 = vmatprep.subr.bf16.mxu0 %v20164_v13  ;;  %3768 = vmatprep.subr.bf16.mxu1 %v20167_v17  ;;  %v20260_v13 = vld [vmem:[%s21998_s14 + $0x204] ss:$16 sps:$4 sm:$0xff]   ;;  %v1220_v17 = vlaneseq }
 0x41b   : > { %2778 = vmatmul.mubr.bf16.vlgmr.msra.gmra.mrb[4].mxu0 %v22168_v15  ;;  %2860 = vmatmul.mubr.bf16.vlgmr.msra.gmra.mrb[4].mxu1 %v22168_v15  ;;  %v20180_v15 = vld [vmem:[%s21998_s14 + $0x60] ss:$16 sps:$4 sm:$0xff]  }
 0x41c   : > { %3687 = vmatpush1.bf16.msra.mxu0 %v20162_v14  ;;  %3769 = vmatpush1.bf16.msra.mxu1 %v20165_v18  ;;  %v20263_v14 = vld [vmem:[%s21998_s14 + $0x20c] ss:$16 sps:$4 sm:$0xff]   ;;  %v22366_v18 = vshrl.u32 %v1220_v17, 7 }
 0x41d   : > { %3688 = vmatprep.subr.bf16.mxu0 %v20170_v19  ;;  %3770 = vmatprep.subr.bf16.mxu1 %v20173_v21  ;;  %v22369_v19 = vld [vmem:[%s21996_s17] sm:$0xff] }
 0x41e   : > { %v22375_v21 = vsub.s32 1, %v22366_v18  ;;  %v22415_v17 = vsub.s32 2, %v22366_v18 }
 0x420   : > { %3689 = vmatpush1.bf16.msra.mxu0 %v20168_v20  ;;  %3771 = vmatpush1.bf16.msra.mxu1 %v20171_v22  ;;  %v22372_v20 = vsub.s32 0, %v22366_v18  ;;  %v22378_v22 = vsub.s32 3, %v22366_v18 }
 0x421   : > { %3690 = vmatprep.subr.bf16.mxu0 %v20176_v23  ;;  %3772 = vmatprep.subr.bf16.mxu1 %v20179_v25 }
 0x422   : > { %v1223_v23 = vrot.slane %v22369_v19, %v22372_v20  ;;  %v1235_v25 = vrot.slane %v22369_v19, %v22378_v22 }
 0x424   : > { %3691 = vmatpush1.bf16.msra.mxu0 %v20174_v24  ;;  %3773 = vmatpush1.bf16.msra.mxu1 %v20177_v26  ;;  %v1227_v24 = vrot.slane %v22369_v19, %v22375_v21 }
 0x425   : > { %3692 = vmatprep.subr.bf16.mxu0 %v20182_v27  ;;  %3774 = vmatprep.subr.bf16.mxu1 %v20185_v28 }
 0x428   : > { %3693 = vmatpush1.bf16.msra.mxu0 %v20180_v15  ;;  %3775 = vmatpush1.bf16.msra.mxu1 %v20183_v29 }
 0x429   : > { %3694 = vmatprep.subr.bf16.mxu0 %v20188_v30  ;;  %3776 = vmatprep.subr.bf16.mxu1 %v20191_v32 }
 0x42c   : > { %3695 = vmatpush1.bf16.msra.mxu0 %v20186_v31  ;;  %3777 = vmatpush1.bf16.msra.mxu1 %v20189_v33 }
 0x42d   : > { %3696 = vmatprep.subr.bf16.mxu0 %v20194_v34  ;;  %3778 = vmatprep.subr.bf16.mxu1 %v20197_v36 }
 0x430   : > { %3697 = vmatpush1.bf16.msra.mxu0 %v20192_v35  ;;  %3779 = vmatpush1.bf16.msra.mxu1 %v20195_v37 }
 0x431   : > { %3698 = vmatprep.subr.bf16.mxu0 %v20200_v38  ;;  %3780 = vmatprep.subr.bf16.mxu1 %v20203_v39 }
 0x434   : > { %3699 = vmatpush1.bf16.msra.mxu0 %v20198_v4  ;;  %3781 = vmatpush1.bf16.msra.mxu1 %v20201_v40 }
 0x435   : > { %3700 = vmatprep.subr.bf16.mxu0 %v20206_v41  ;;  %3782 = vmatprep.subr.bf16.mxu1 %v20209_v42 }
 0x438   : > { %3701 = vmatpush1.bf16.msra.mxu0 %v20204_v49  ;;  %3783 = vmatpush1.bf16.msra.mxu1 %v20207_v43 }
 0x439   : > { %3702 = vmatprep.subr.bf16.mxu0 %v20212_v44  ;;  %3784 = vmatprep.subr.bf16.mxu1 %v20215_v16 }
 0x43c   : > { %3703 = vmatpush1.bf16.msra.mxu0 %v20210_v45  ;;  %3785 = vmatpush1.bf16.msra.mxu1 %v20213_v46 }
 0x43d   : > { %3704 = vmatprep.subr.bf16.mxu0 %v20218_v47  ;;  %3786 = vmatprep.subr.bf16.mxu1 %v20221_v50  ;;  %v20261_v50 = vld [vmem:[%s21998_s14 + $0x208] ss:$16 sps:$4 sm:$0xff]  }
 0x440   : > { %3705 = vmatpush1.bf16.msra.mxu0 %v20216_v48  ;;  %3787 = vmatpush1.bf16.msra.mxu1 %v20219_v51  ;;  %v20258_v48 = vld [vmem:[%s21998_s14 + $0x200] ss:$16 sps:$4 sm:$0xff]  }
 0x441   : > { %3706 = vmatprep.subr.bf16.mxu0 %v20224_v52  ;;  %3788 = vmatprep.subr.bf16.mxu1 %v20227_v54  ;;  %v20269_v54 = vld [vmem:[%s21998_s14 + $0x22c] ss:$16 sps:$4 sm:$0xff]  }
 0x444   : > { %3707 = vmatpush1.bf16.msra.mxu0 %v20222_v53  ;;  %3789 = vmatpush1.bf16.msra.mxu1 %v20225_v55  ;;  %v20266_v53 = vld [vmem:[%s21998_s14 + $0x224] ss:$16 sps:$4 sm:$0xff]  }
 0x445   : > { %3708 = vmatprep.subr.bf16.mxu0 %v20230_v56  ;;  %3790 = vmatprep.subr.bf16.mxu1 %v20233_v58  ;;  %v20264_v56 = vld [vmem:[%s21998_s14 + $0x220] ss:$16 sps:$4 sm:$0xff]   ;;  %v20272_v58 = vld [vmem:[%s21998_s14 + $0x244] ss:$16 sps:$4 sm:$0xff]  }
 0x448   : > { %3709 = vmatpush1.bf16.msra.mxu0 %v20228_v57  ;;  %3791 = vmatpush1.bf16.msra.mxu1 %v20231_v59  ;;  %v20267_v57 = vld [vmem:[%s21998_s14 + $0x228] ss:$16 sps:$4 sm:$0xff]   ;;  %v20275_v59 = vld [vmem:[%s21998_s14 + $0x24c] ss:$16 sps:$4 sm:$0xff]  }
 0x449   : > { %3710 = vmatprep.subr.bf16.mxu0 %v20236_v60  ;;  %3792 = vmatprep.subr.bf16.mxu1 %v20239_v61  ;;  %v20270_v60 = vld [vmem:[%s21998_s14 + $0x240] ss:$16 sps:$4 sm:$0xff]   ;;  %v20273_v61 = vld [vmem:[%s21998_s14 + $0x248] ss:$16 sps:$4 sm:$0xff]  }
 0x44c   : > { %3711 = vmatpush1.bf16.msra.mxu0 %v20234_v62  ;;  %3793 = vmatpush1.bf16.msra.mxu1 %v20237_v63  ;;  %v20278_v62 = vld [vmem:[%s21998_s14 + $0x264] ss:$16 sps:$4 sm:$0xff]   ;;  %v20281_v63 = vld [vmem:[%s21998_s14 + $0x26c] ss:$16 sps:$4 sm:$0xff]  }
 0x44d   : > { %3712 = vmatprep.subr.bf16.mxu0 %v20242_v0  ;;  %3794 = vmatprep.subr.bf16.mxu1 %v20245_v2  ;;  %v20276_v0 = vld [vmem:[%s21998_s14 + $0x260] ss:$16 sps:$4 sm:$0xff]   ;;  %v20284_v2 = vld [vmem:[%s21998_s14 + $0x284] ss:$16 sps:$4 sm:$0xff]  }
 0x450   : > { %3713 = vmatpush1.bf16.msra.mxu0 %v20240_v1  ;;  %3795 = vmatpush1.bf16.msra.mxu1 %v20243_v3  ;;  %v20279_v1 = vld [vmem:[%s21998_s14 + $0x268] ss:$16 sps:$4 sm:$0xff]   ;;  %v20287_v3 = vld [vmem:[%s21998_s14 + $0x28c] ss:$16 sps:$4 sm:$0xff]  }
 0x451   : > { %3714 = vmatprep.subr.bf16.mxu0 %v20248_v5  ;;  %3796 = vmatprep.subr.bf16.mxu1 %v20251_v7  ;;  %v20282_v5 = vld [vmem:[%s21998_s14 + $0x280] ss:$16 sps:$4 sm:$0xff]   ;;  %v20290_v7 = vld [vmem:[%s21998_s14 + $0x2a4] ss:$16 sps:$4 sm:$0xff]  }
 0x454   : > { %3715 = vmatpush1.bf16.msra.mxu0 %v20246_v6  ;;  %3797 = vmatpush1.bf16.msra.mxu1 %v20249_v8  ;;  %v20285_v6 = vld [vmem:[%s21998_s14 + $0x288] ss:$16 sps:$4 sm:$0xff]   ;;  %v20293_v8 = vld [vmem:[%s21998_s14 + $0x2ac] ss:$16 sps:$4 sm:$0xff]  }
 0x455   : > { %3716 = vmatprep.subr.bf16.mxu0 %v20254_v9  ;;  %3798 = vmatprep.subr.bf16.mxu1 %v20257_v11  ;;  %v20288_v9 = vld [vmem:[%s21998_s14 + $0x2a0] ss:$16 sps:$4 sm:$0xff]   ;;  %v20296_v11 = vld [vmem:[%s21998_s14 + $0x2c4] ss:$16 sps:$4 sm:$0xff]  }
 0x458   : > { %3717 = vmatpush1.bf16.msra.mxu0 %v20252_v10  ;;  %3799 = vmatpush1.bf16.msra.mxu1 %v20255_v12  ;;  %v20291_v10 = vld [vmem:[%s21998_s14 + $0x2a8] ss:$16 sps:$4 sm:$0xff]   ;;  %v20299_v12 = vld [vmem:[%s21998_s14 + $0x2cc] ss:$16 sps:$4 sm:$0xff]  }
 0x459   : > { %3727 = vmatprep.subr.bf16.mxu0 %v20260_v13  ;;  %3809 = vmatprep.subr.bf16.mxu1 %v20263_v14  ;;  %v20294_v13 = vld [vmem:[%s21998_s14 + $0x2c0] ss:$16 sps:$4 sm:$0xff]   ;;  %v20297_v14 = vld [vmem:[%s21998_s14 + $0x2c8] ss:$16 sps:$4 sm:$0xff]  }
 0x46e   : > { %v2615_v26 = vpop.f32.mrb[0].mxu0  ;;  %v22386_v15 = vpop.f32.mrb[0].mxu1 }
 0x46f   : > { %v19797_v27 = vadd.f32 %v2615_v26, %v1223_v23  ;;  %v2617_v28 = vpop.f32.mrb[1].mxu0  ;;  %v2699_v30 = vpop.f32.mrb[1].mxu1  ;;  %v20302_v23 = vld [vmem:[%s21998_s14 + $0x2e4] ss:$16 sps:$4 sm:$0xff]   ;;  %v20303_v26 = vld [vmem:[%s21998_s14 + $0x2e8] ss:$16 sps:$4 sm:$0xff]  }
 0x470   : > { %v19798_v29 = vadd.f32 %v2617_v28, %v1227_v24  ;;  %v2619_v31 = vpop.f32.mrb[2].mxu0  ;;  %v19800_v33 = vadd.f32 %v2699_v30, %v1235_v25  ;;  %v2701_v34 = vpop.f32.mrb[2].mxu1  ;;  %v20305_v24 = vld [vmem:[%s21998_s14 + $0x2ec] ss:$16 sps:$4 sm:$0xff]   ;;  %v20300_v25 = vld [vmem:[%s21998_s14 + $0x2e0] ss:$16 sps:$4 sm:$0xff]  }
 0x471   : > { %v2872_v32 = vmin.f32 %v19797_v27, 0.0  ;;  %v2620_v35 = vpop.f32.mrb[3].mxu0  ;;  %v2702_v37 = vpop.f32.mrb[3].mxu1  ;;  %vm2868_vm8 = vcmp.gt.f32.partialorder %v19797_v27, 0.0  ;;  %v20308_v28 = vld [vmem:[%s21998_s14 + $0x304] ss:$16 sps:$4 sm:$0xff]  }
 0x472   : > { %v2873_v36 = vmin.f32 %v19798_v29, 0.0  ;;  %v2875_v4 = vmin.f32 %v19800_v33, 0.0  ;;  %vm2869_vm9 = vcmp.gt.f32.partialorder %v19798_v29, 0.0  ;;  %vm2871_vm10 = vcmp.gt.f32.partialorder %v19800_v33, 0.0  ;;  %v20306_v30 = vld [vmem:[%s21998_s14 + $0x300] ss:$16 sps:$4 sm:$0xff]  }
 0x473   : > { %v2876_v38 = vmul.f32 1.442695, %v2872_v32  ;;  %v20309_v31 = vld [vmem:[%s21998_s14 + $0x308] ss:$16 sps:$4 sm:$0xff]   ;;  %v20317_v34 = vld [vmem:[%s21998_s14 + $0x32c] ss:$16 sps:$4 sm:$0xff]  }
 0x474   : > { %v2878_v39 = vmul.f32 1.442695, %v2873_v36  ;;  %v2882_v40 = vmul.f32 1.442695, %v2875_v4  ;;  %v20312_v35 = vld [vmem:[%s21998_s14 + $0x320] ss:$16 sps:$4 sm:$0xff]  }
 0x475   : > { %21122 = vpow2.f32 %v2876_v38  ;;  %v20315_v36 = vld [vmem:[%s21998_s14 + $0x328] ss:$16 sps:$4 sm:$0xff]   ;;  %v20323_v38 = vld [vmem:[%s21998_s14 + $0x34c] ss:$16 sps:$4 sm:$0xff]   ;;  %v20318_v4 = vld [vmem:[%s21998_s14 + $0x340] ss:$16 sps:$4 sm:$0xff]  }
 0x476   : > { %21124 = vpow2.f32 %v2878_v39  ;;  %v20321_v39 = vld [vmem:[%s21998_s14 + $0x348] ss:$16 sps:$4 sm:$0xff]  }
 0x477   : > { %21126 = vpow2.f32 %v2882_v40 }
 0x47f   : > { %v21123_v41 = vpop.eup %21122 }
 0x480   : > { %v16381_v49 = vadd.f32 -1.0, %v21123_v41  ;;  %v21125_v42 = vpop.eup %21124  ;;  %v20326_v41 = vld [vmem:[%s21998_s14 + $0x364] ss:$16 sps:$4 sm:$0xff]  }
 0x481   : > { %v21127_v43 = vpop.eup %21126  ;;  %v16382_v44 = vadd.f32 -1.0, %v21125_v42  ;;  %v20324_v42 = vld [vmem:[%s21998_s14 + $0x360] ss:$16 sps:$4 sm:$0xff]  }
 0x482   : > { %v2888_v45 = vsel %vm2868_vm8, %v19797_v27, %v16381_v49  ;;  %v16384_v16 = vadd.f32 -1.0, %v21127_v43  ;;  %v1231_v27 = vrot.slane %v22369_v19, %v22415_v17  ;;  %v20329_v49 = vld [vmem:[%s21998_s14 + $0x36c] ss:$16 sps:$4 sm:$0xff]   ;;  %v20327_v43 = vld [vmem:[%s21998_s14 + $0x368] ss:$16 sps:$4 sm:$0xff]  }
 0x483   : > { %v2889_v46 = vsel %vm2869_vm9, %v19798_v29, %v16382_v44  ;;  %v2892_v52 = vpack.c.bf16 %v2888_v45, %v2888_v45  ;;  %v20311_v29 = vld [vmem:[%s21998_s14 + $0x30c] ss:$16 sps:$4 sm:$0xff]   ;;  %v20332_v44 = vld [vmem:[%s21998_s14 + $0x384] ss:$16 sps:$4 sm:$0xff]  }
 0x484   : > { %v2893_v47 = vpack.c.bf16 %v2889_v46, %v2889_v46  ;;  %v2891_v51 = vsel %vm2871_vm10, %v19800_v33, %v16384_v16  ;;  %v22428_v32 = vadd.f32 %v22386_v15, %v1231_v27  ;;  %v20314_v33 = vld [vmem:[%s21998_s14 + $0x324] ss:$16 sps:$4 sm:$0xff]   ;;  %v20335_v45 = vld [vmem:[%s21998_s14 + $0x38c] ss:$16 sps:$4 sm:$0xff]   ;;  %v20330_v16 = vld [vmem:[%s21998_s14 + $0x380] ss:$16 sps:$4 sm:$0xff]  }
 0x485   : > { %v2895_v55 = vpack.c.bf16 %v2891_v51, %v2891_v51  ;;  %v20320_v15 = vld [vmem:[%s21998_s14 + $0x344] ss:$16 sps:$4 sm:$0xff]   ;;  %v20333_v46 = vld [vmem:[%s21998_s14 + $0x388] ss:$16 sps:$4 sm:$0xff]  }
 0x486   : > { %3718 = vmatprep.mubr.bf16.mxu0 %v2893_v47  ;;  %3800 = vmatprep.mubr.bf16.mxu1 %v2893_v47  ;;  %v2874_v37 = vmin.f32 %v22428_v32, 0.0  ;;  %v20338_v47 = vld [vmem:[%s21998_s14 + $0x3a4] ss:$16 sps:$4 sm:$0xff]   ;;  %v20339_v51 = vld [vmem:[%s21998_s14 + $0x3a8] ss:$16 sps:$4 sm:$0xff]   ;;  %vm2870_vm11 = vcmp.gt.f32.partialorder %v22428_v32, 0.0 }
 0x487   : > { %3719 = vmatmul.mubr.bf16.vlgmr.msra.gmra.mrb[4].mxu0 %v2892_v52  ;;  %3801 = vmatmul.mubr.bf16.vlgmr.msra.gmra.mrb[4].mxu1 %v2892_v52  ;;  %v20344_v52 = vld [vmem:[%s21998_s14 + $0x3c4] ss:$16 sps:$4 sm:$0xff]  }
 0x488   : > { %3728 = vmatpush1.bf16.msra.mxu0 %v20258_v48  ;;  %3810 = vmatpush1.bf16.msra.mxu1 %v20261_v50  ;;  %v2880_v40 = vmul.f32 1.442695, %v2874_v37  ;;  %v20341_v48 = vld [vmem:[%s21998_s14 + $0x3ac] ss:$16 sps:$4 sm:$0xff]   ;;  %v20336_v50 = vld [vmem:[%s21998_s14 + $0x3a0] ss:$16 sps:$4 sm:$0xff]  }
 0x489   : > { %3759 = vmatprep.mubr.bf16.mxu0 %v2895_v55  ;;  %3841 = vmatprep.mubr.bf16.mxu1 %v2895_v55  ;;  %v20342_v55 = vld [vmem:[%s21998_s14 + $0x3c0] ss:$16 sps:$4 sm:$0xff]  }
 0x48a   : > { %3729 = vmatprep.subr.bf16.mxu0 %v20266_v53  ;;  %3811 = vmatprep.subr.bf16.mxu1 %v20269_v54  ;;  %21128 = vpow2.f32 %v2880_v40  ;;  %v20347_v53 = vld [vmem:[%s21998_s14 + $0x3cc] ss:$16 sps:$4 sm:$0xff]  }
 0x48b   : > { %v16554_v40 = vld [vmem:[%s21990_s19 + $0x928] sm:$0xff] }
 0x48c   : > { %3730 = vmatpush1.bf16.msra.mxu0 %v20264_v56  ;;  %3812 = vmatpush1.bf16.msra.mxu1 %v20267_v57  ;;  %v20345_v56 = vld [vmem:[%s21998_s14 + $0x3c8] ss:$16 sps:$4 sm:$0xff]   ;;  %v20350_v57 = vld [vmem:[%s21998_s14 + $0x3e4] ss:$16 sps:$4 sm:$0xff]  }
 0x48d   : > { %3731 = vmatprep.subr.bf16.mxu0 %v20272_v58  ;;  %3813 = vmatprep.subr.bf16.mxu1 %v20275_v59  ;;  %v20353_v58 = vld [vmem:[%s21998_s14 + $0x3ec] ss:$16 sps:$4 sm:$0xff]   ;;  %v16517_v59 = vld [vmem:[%s21990_s19 + $0x800] sm:$0xff] }
 0x490   : > { %3732 = vmatpush1.bf16.msra.mxu0 %v20270_v60  ;;  %3814 = vmatpush1.bf16.msra.mxu1 %v20273_v61  ;;  %v16521_v61 = vld [vmem:[%s21990_s19 + $0x820] sm:$0xff] }
 0x491   : > { %3733 = vmatprep.subr.bf16.mxu0 %v20278_v62  ;;  %3815 = vmatprep.subr.bf16.mxu1 %v20281_v63  ;;  %v16518_v62 = vld [vmem:[%s21990_s19 + $0x808] sm:$0xff] }
 0x492   : > { %v16522_v63 = vld [vmem:[%s21990_s19 + $0x828] sm:$0xff] }
 0x494   : > { %3734 = vmatpush1.bf16.msra.mxu0 %v20276_v0  ;;  %3816 = vmatpush1.bf16.msra.mxu1 %v20279_v1  ;;  %v21129_v54 = vpop.eup %21128  ;;  %v20348_v0 = vld [vmem:[%s21998_s14 + $0x3e0] ss:$16 sps:$4 sm:$0xff]   ;;  %v20351_v1 = vld [vmem:[%s21998_s14 + $0x3e8] ss:$16 sps:$4 sm:$0xff]  }
 0x495   : > { %3735 = vmatprep.subr.bf16.mxu0 %v20284_v2  ;;  %3817 = vmatprep.subr.bf16.mxu1 %v20287_v3  ;;  %v16383_v60 = vadd.f32 -1.0, %v21129_v54  ;;  %v16775_v2 = vcombine.high %v16517_v59, %v16521_v61  ;;  %v16777_v3 = vcombine.high %v16518_v62, %v16522_v63  ;;  %v16566_v54 = vld [vmem:[%s21990_s19 + $0x988] sm:$0xff] }
 0x498   : > { %3736 = vmatpush1.bf16.msra.mxu0 %v20282_v5  ;;  %3818 = vmatpush1.bf16.msra.mxu1 %v20285_v6  ;;  %v16525_v5 = vld [vmem:[%s21990_s19 + $0x840] sm:$0xff]  ;;  %v2890_v6 = vsel %vm2870_vm11, %v22428_v32, %v16383_v60 }
 0x499   : > { %3737 = vmatprep.subr.bf16.mxu0 %v20290_v7  ;;  %3819 = vmatprep.subr.bf16.mxu1 %v20293_v8  ;;  %v16529_v7 = vld [vmem:[%s21990_s19 + $0x860] sm:$0xff]  ;;  %v16526_v8 = vld [vmem:[%s21990_s19 + $0x848] sm:$0xff] }
 0x49a   : > { %v16782_v27 = vcombine.low %v16525_v5, %v16529_v7  ;;  %v16545_v32 = vld [vmem:[%s21990_s19 + $0x8e0] sm:$0xff] }
 0x49b   : > { %v16573_v60 = vld [vmem:[%s21990_s19 + $0x9c0] sm:$0xff] }
 0x49c   : > { %3738 = vmatpush1.bf16.msra.mxu0 %v20288_v9  ;;  %3820 = vmatpush1.bf16.msra.mxu1 %v20291_v10  ;;  %v16530_v9 = vld [vmem:[%s21990_s19 + $0x868] sm:$0xff]  ;;  %v16774_v10 = vcombine.low %v16517_v59, %v16521_v61  ;;  %v16577_v61 = vld [vmem:[%s21990_s19 + $0x9e0] sm:$0xff] }
 0x49d   : > { %3739 = vmatprep.subr.bf16.mxu0 %v20296_v11  ;;  %3821 = vmatprep.subr.bf16.mxu1 %v20299_v12  ;;  %v16776_v11 = vcombine.low %v16518_v62, %v16522_v63  ;;  %v2894_v12 = vpack.c.bf16 %v2890_v6, %v2890_v6  ;;  %v16574_v62 = vld [vmem:[%s21990_s19 + $0x9c8] sm:$0xff] }
 0x49e   : > { %v16578_v63 = vld [vmem:[%s21990_s19 + $0x9e8] sm:$0xff] }
 0x49f   : > { %v16832_v6 = vcombine.low %v16574_v62, %v16578_v63 }
 0x4a0   : > { %3740 = vmatpush1.bf16.msra.mxu0 %v20294_v13  ;;  %3822 = vmatpush1.bf16.msra.mxu1 %v20297_v14  ;;  %v16783_v13 = vcombine.high %v16525_v5, %v16529_v7  ;;  %v16785_v14 = vcombine.high %v16526_v8, %v16530_v9  ;;  %v16830_v5 = vcombine.low %v16573_v60, %v16577_v61  ;;  %v16581_v7 = vld [vmem:[%s21990_s19 + $0xa00] sm:$0xff] }
 0x4a1   : > { %3741 = vmatprep.subr.bf16.mxu0 %v20302_v23  ;;  %3823 = vmatprep.subr.bf16.mxu1 %v20305_v24  ;;  %v16533_v23 = vld [vmem:[%s21990_s19 + $0x880] sm:$0xff] }
 0x4a2   : > { %v16537_v24 = vld [vmem:[%s21990_s19 + $0x8a0] sm:$0xff] }
 0x4a4   : > { %3742 = vmatpush1.bf16.msra.mxu0 %v20300_v25  ;;  %3824 = vmatpush1.bf16.msra.mxu1 %v20303_v26  ;;  %v16534_v25 = vld [vmem:[%s21990_s19 + $0x888] sm:$0xff] }
 0x4a5   : > { %3743 = vmatprep.subr.bf16.mxu0 %v20308_v28  ;;  %3825 = vmatprep.subr.bf16.mxu1 %v20311_v29  ;;  %v16538_v26 = vld [vmem:[%s21990_s19 + $0x8a8] sm:$0xff]  ;;  %v16784_v28 = vcombine.low %v16526_v8, %v16530_v9  ;;  %v16791_v29 = vcombine.high %v16533_v23, %v16537_v24  ;;  %v16585_v8 = vld [vmem:[%s21990_s19 + $0xa20] sm:$0xff] }
 0x4a6   : > { %v16582_v9 = vld [vmem:[%s21990_s19 + $0xa08] sm:$0xff] }
 0x4a8   : > { %3744 = vmatpush1.bf16.msra.mxu0 %v20306_v30  ;;  %3826 = vmatpush1.bf16.msra.mxu1 %v20309_v31  ;;  %v16793_v30 = vcombine.high %v16534_v25, %v16538_v26  ;;  %v16541_v31 = vld [vmem:[%s21990_s19 + $0x8c0] sm:$0xff] }
 0x4a9   : > { %3745 = vmatprep.subr.bf16.mxu0 %v20314_v33  ;;  %3827 = vmatprep.subr.bf16.mxu1 %v20317_v34  ;;  %v16542_v33 = vld [vmem:[%s21990_s19 + $0x8c8] sm:$0xff]  ;;  %v16799_v37 = vcombine.high %v16541_v31, %v16545_v32 }
 0x4aa   : > { %v16546_v34 = vld [vmem:[%s21990_s19 + $0x8e8] sm:$0xff] }
 0x4ac   : > { %3746 = vmatpush1.bf16.msra.mxu0 %v20312_v35  ;;  %3828 = vmatpush1.bf16.msra.mxu1 %v20315_v36  ;;  %v16790_v35 = vcombine.low %v16533_v23, %v16537_v24  ;;  %v16792_v36 = vcombine.low %v16534_v25, %v16538_v26  ;;  %v16589_v23 = vld [vmem:[%s21990_s19 + $0xa40] sm:$0xff]  ;;  %v16590_v25 = vld [vmem:[%s21990_s19 + $0xa48] sm:$0xff] }
 0x4ad   : > { %3747 = vmatprep.subr.bf16.mxu0 %v20320_v15  ;;  %3829 = vmatprep.subr.bf16.mxu1 %v20323_v38  ;;  %v16801_v15 = vcombine.high %v16542_v33, %v16546_v34  ;;  %v16549_v38 = vld [vmem:[%s21990_s19 + $0x900] sm:$0xff] }
 0x4ae   : > { %v16593_v24 = vld [vmem:[%s21990_s19 + $0xa60] sm:$0xff] }
 0x4af   : > { %v16847_v26 = vcombine.high %v16589_v23, %v16593_v24 }
 0x4b0   : > { %3748 = vmatpush1.bf16.msra.mxu0 %v20318_v4  ;;  %3830 = vmatpush1.bf16.msra.mxu1 %v20321_v39  ;;  %v16553_v4 = vld [vmem:[%s21990_s19 + $0x920] sm:$0xff]  ;;  %v16550_v39 = vld [vmem:[%s21990_s19 + $0x908] sm:$0xff] }
 0x4b1   : > { %3749 = vmatprep.subr.bf16.mxu0 %v20326_v41  ;;  %3831 = vmatprep.subr.bf16.mxu1 %v20329_v49  ;;  %v16798_v41 = vcombine.low %v16541_v31, %v16545_v32  ;;  %v16800_v49 = vcombine.low %v16542_v33, %v16546_v34  ;;  %v16597_v31 = vld [vmem:[%s21990_s19 + $0xa80] sm:$0xff]  ;;  %v16598_v33 = vld [vmem:[%s21990_s19 + $0xa88] sm:$0xff] }
 0x4b2   : > { %v16601_v32 = vld [vmem:[%s21990_s19 + $0xaa0] sm:$0xff] }
 0x4b3   : > { %v16855_v34 = vcombine.high %v16597_v31, %v16601_v32 }
 0x4b4   : > { %3750 = vmatpush1.bf16.msra.mxu0 %v20324_v42  ;;  %3832 = vmatpush1.bf16.msra.mxu1 %v20327_v43  ;;  %v16807_v42 = vcombine.high %v16549_v38, %v16553_v4  ;;  %v16809_v43 = vcombine.high %v16550_v39, %v16554_v40 }
 0x4b5   : > { %3751 = vmatprep.subr.bf16.mxu0 %v20332_v44  ;;  %3833 = vmatprep.subr.bf16.mxu1 %v20335_v45  ;;  %v16557_v44 = vld [vmem:[%s21990_s19 + $0x940] sm:$0xff] }
 0x4b6   : > { %v16561_v45 = vld [vmem:[%s21990_s19 + $0x960] sm:$0xff] }
 0x4b8   : > { %3752 = vmatpush1.bf16.msra.mxu0 %v20330_v16  ;;  %3834 = vmatpush1.bf16.msra.mxu1 %v20333_v46  ;;  %v16558_v16 = vld [vmem:[%s21990_s19 + $0x948] sm:$0xff] }
 0x4b9   : > { %3753 = vmatprep.subr.bf16.mxu0 %v20338_v47  ;;  %3835 = vmatprep.subr.bf16.mxu1 %v20341_v48  ;;  %v16562_v46 = vld [vmem:[%s21990_s19 + $0x968] sm:$0xff]  ;;  %v16806_v47 = vcombine.low %v16549_v38, %v16553_v4  ;;  %v16808_v48 = vcombine.low %v16550_v39, %v16554_v40  ;;  %v16605_v38 = vld [vmem:[%s21990_s19 + $0xac0] sm:$0xff] }
 0x4ba   : > { %v16609_v4 = vld [vmem:[%s21990_s19 + $0xae0] sm:$0xff]  ;;  %v16606_v39 = vld [vmem:[%s21990_s19 + $0xac8] sm:$0xff] }
 0x4bb   : > { %v16863_v40 = vcombine.high %v16605_v38, %v16609_v4 }
 0x4bc   : > { %3754 = vmatpush1.bf16.msra.mxu0 %v20336_v50  ;;  %3836 = vmatpush1.bf16.msra.mxu1 %v20339_v51  ;;  %v16815_v50 = vcombine.high %v16557_v44, %v16561_v45  ;;  %v16817_v51 = vcombine.high %v16558_v16, %v16562_v46 }
 0x4bd   : > { %3755 = vmatprep.subr.bf16.mxu0 %v20344_v52  ;;  %3837 = vmatprep.subr.bf16.mxu1 %v20347_v53  ;;  %v16565_v52 = vld [vmem:[%s21990_s19 + $0x980] sm:$0xff] }
 0x4be   : > { %v16569_v53 = vld [vmem:[%s21990_s19 + $0x9a0] sm:$0xff] }
 0x4c0   : > { %3756 = vmatpush1.bf16.msra.mxu0 %v20342_v55  ;;  %3838 = vmatpush1.bf16.msra.mxu1 %v20345_v56  ;;  %v16570_v55 = vld [vmem:[%s21990_s19 + $0x9a8] sm:$0xff]  ;;  %v16814_v56 = vcombine.low %v16557_v44, %v16561_v45  ;;  %v16613_v44 = vld [vmem:[%s21990_s19 + $0xb00] sm:$0xff] }
 0x4c1   : > { %3757 = vmatprep.subr.bf16.mxu0 %v20350_v57  ;;  %3839 = vmatprep.subr.bf16.mxu1 %v20353_v58  ;;  %v16816_v57 = vcombine.low %v16558_v16, %v16562_v46  ;;  %v16823_v58 = vcombine.high %v16565_v52, %v16569_v53  ;;  %v16825_v59 = vcombine.high %v16566_v54, %v16570_v55  ;;  %v16617_v45 = vld [vmem:[%s21990_s19 + $0xb20] sm:$0xff]  ;;  %v16614_v16 = vld [vmem:[%s21990_s19 + $0xb08] sm:$0xff] }
 0x4c2   : > { %v16871_v46 = vcombine.high %v16613_v44, %v16617_v45 }
 0x4c4   : > { %3758 = vmatpush1.bf16.msra.mxu0 %v20348_v0  ;;  %3840 = vmatpush1.bf16.msra.mxu1 %v20351_v1  ;;  %v16822_v0 = vcombine.low %v16565_v52, %v16569_v53  ;;  %v16824_v1 = vcombine.low %v16566_v54, %v16570_v55  ;;  %v16621_v52 = vld [vmem:[%s21990_s19 + $0xb40] sm:$0xff]  ;;  %v16622_v54 = vld [vmem:[%s21990_s19 + $0xb48] sm:$0xff] }
 0x4c5   : > { %5470 = vmatprep.subr.bf16.mxu0 %v16775_v2  ;;  %5552 = vmatprep.subr.bf16.mxu1 %v16777_v3  ;;  %v16831_v2 = vcombine.high %v16573_v60, %v16577_v61  ;;  %v16833_v3 = vcombine.high %v16574_v62, %v16578_v63  ;;  %v16625_v53 = vld [vmem:[%s21990_s19 + $0xb60] sm:$0xff]  ;;  %v16630_v62 = vld [vmem:[%s21990_s19 + $0xb88] sm:$0xff] }
 0x4c6   : > { %v16879_v55 = vcombine.high %v16621_v52, %v16625_v53  ;;  %v16629_v60 = vld [vmem:[%s21990_s19 + $0xb80] sm:$0xff] }
 0x4c7   : > { %3760 = vmatmul.mubr.bf16.vlgmr.msra.gmra.mrb[4].mxu0 %v2894_v12  ;;  %3842 = vmatmul.mubr.bf16.vlgmr.msra.gmra.mrb[4].mxu1 %v2894_v12  ;;  %v16838_v12 = vcombine.low %v16581_v7, %v16585_v8  ;;  %v16633_v61 = vld [vmem:[%s21990_s19 + $0xba0] sm:$0xff] }
 0x4c8   : > { %5471 = vmatpush1.bf16.msra.mxu0 %v16774_v10  ;;  %5553 = vmatpush1.bf16.msra.mxu1 %v16776_v11  ;;  %v16839_v10 = vcombine.high %v16581_v7, %v16585_v8  ;;  %v16586_v11 = vld [vmem:[%s21990_s19 + $0xa28] sm:$0xff]  ;;  %v16887_v63 = vcombine.high %v16629_v60, %v16633_v61 }
 0x4c9   : > { %5472 = vmatprep.subr.bf16.mxu0 %v16783_v13  ;;  %5554 = vmatprep.subr.bf16.mxu1 %v16785_v14  ;;  %v16840_v13 = vcombine.low %v16582_v9, %v16586_v11  ;;  %v16841_v14 = vcombine.high %v16582_v9, %v16586_v11  ;;  %v16638_v7 = vld [vmem:[%s21990_s19 + $0xbc8] sm:$0xff] }
 0x4ca   : > { %v16642_v9 = vld [vmem:[%s21990_s19 + $0xbe8] sm:$0xff] }
 0x4cb   : > { %v16896_v11 = vcombine.low %v16638_v7, %v16642_v9 }
 0x4cc   : > { %5473 = vmatpush1.bf16.msra.mxu0 %v16782_v27  ;;  %5555 = vmatpush1.bf16.msra.mxu1 %v16784_v28  ;;  %v16594_v27 = vld [vmem:[%s21990_s19 + $0xa68] sm:$0xff]  ;;  %v16846_v28 = vcombine.low %v16589_v23, %v16593_v24 }
 0x4cd   : > { %5474 = vmatprep.subr.bf16.mxu0 %v16791_v29  ;;  %5556 = vmatprep.subr.bf16.mxu1 %v16793_v30  ;;  %v16848_v29 = vcombine.low %v16590_v25, %v16594_v27  ;;  %v16849_v30 = vcombine.high %v16590_v25, %v16594_v27  ;;  %v22532_v23 = vld [vmem:[%s21990_s19 + $0xc08] sm:$0xff] }
 0x4ce   : > { %v22537_v25 = vld [vmem:[%s21990_s19 + $0xc28] sm:$0xff] }
 0x4cf   : > { %v16904_v27 = vcombine.low %v22532_v23, %v22537_v25 }
 0x4d0   : > { %5475 = vmatpush1.bf16.msra.mxu0 %v16790_v35  ;;  %5557 = vmatpush1.bf16.msra.mxu1 %v16792_v36  ;;  %v16602_v35 = vld [vmem:[%s21990_s19 + $0xaa8] sm:$0xff]  ;;  %v16854_v36 = vcombine.low %v16597_v31, %v16601_v32  ;;  %v22552_v31 = vsub.s32 5, %v22366_v18  ;;  %v22555_v32 = vsub.s32 7, %v22366_v18 }
 0x4d1   : > { %5476 = vmatprep.subr.bf16.mxu0 %v16799_v37  ;;  %5558 = vmatprep.subr.bf16.mxu1 %v16801_v15  ;;  %v16856_v37 = vcombine.low %v16598_v33, %v16602_v35  ;;  %v16857_v15 = vcombine.high %v16598_v33, %v16602_v35 }
 0x4d2   : > { %v1243_v35 = vrot.slane %v22369_v19, %v22552_v31 }
 0x4d4   : > { %5477 = vmatpush1.bf16.msra.mxu0 %v16798_v41  ;;  %5559 = vmatpush1.bf16.msra.mxu1 %v16800_v49  ;;  %v16610_v41 = vld [vmem:[%s21990_s19 + $0xae8] sm:$0xff]  ;;  %v16862_v49 = vcombine.low %v16605_v38, %v16609_v4 }
 0x4d5   : > { %5478 = vmatprep.subr.bf16.mxu0 %v16807_v42  ;;  %5560 = vmatprep.subr.bf16.mxu1 %v16809_v43  ;;  %v16864_v42 = vcombine.low %v16606_v39, %v16610_v41  ;;  %v16865_v43 = vcombine.high %v16606_v39, %v16610_v41 }
 0x4d8   : > { %5479 = vmatpush1.bf16.msra.mxu0 %v16806_v47  ;;  %5561 = vmatpush1.bf16.msra.mxu1 %v16808_v48  ;;  %v16618_v47 = vld [vmem:[%s21990_s19 + $0xb28] sm:$0xff]  ;;  %v16870_v48 = vcombine.low %v16613_v44, %v16617_v45 }
 0x4d9   : > { %5480 = vmatprep.subr.bf16.mxu0 %v16815_v50  ;;  %5562 = vmatprep.subr.bf16.mxu1 %v16817_v51  ;;  %v16872_v50 = vcombine.low %v16614_v16, %v16618_v47  ;;  %v16873_v51 = vcombine.high %v16614_v16, %v16618_v47 }
 0x4dc   : > { %5481 = vmatpush1.bf16.msra.mxu0 %v16814_v56  ;;  %5563 = vmatpush1.bf16.msra.mxu1 %v16816_v57  ;;  %v16626_v56 = vld [vmem:[%s21990_s19 + $0xb68] sm:$0xff]  ;;  %v16878_v57 = vcombine.low %v16621_v52, %v16625_v53 }
 0x4dd   : > { %5482 = vmatprep.subr.bf16.mxu0 %v16823_v58  ;;  %5564 = vmatprep.subr.bf16.mxu1 %v16825_v59  ;;  %v16880_v58 = vcombine.low %v16622_v54, %v16626_v56  ;;  %v16881_v59 = vcombine.high %v16622_v54, %v16626_v56 }
 0x4e0   : > { %5483 = vmatpush1.bf16.msra.mxu0 %v16822_v0  ;;  %5565 = vmatpush1.bf16.msra.mxu1 %v16824_v1  ;;  %v16634_v0 = vld [vmem:[%s21990_s19 + $0xba8] sm:$0xff]  ;;  %v16886_v1 = vcombine.low %v16629_v60, %v16633_v61 }
 0x4e1   : > { %5484 = vmatprep.subr.bf16.mxu0 %v16831_v2  ;;  %5566 = vmatprep.subr.bf16.mxu1 %v16833_v3  ;;  %v16888_v2 = vcombine.low %v16630_v62, %v16634_v0  ;;  %v16889_v3 = vcombine.high %v16630_v62, %v16634_v0  ;;  %v16653_v62 = vld [vmem:[%s21990_s19 + $0xc40] sm:$0xff] }
 0x4e2   : > { %v16657_v0 = vld [vmem:[%s21990_s19 + $0xc60] sm:$0xff] }
 0x4e4   : > { %5485 = vmatpush1.bf16.msra.mxu0 %v16830_v5  ;;  %5567 = vmatpush1.bf16.msra.mxu1 %v16832_v6  ;;  %v16637_v5 = vld [vmem:[%s21990_s19 + $0xbc0] sm:$0xff] }
 0x4e5   : > { %5486 = vmatprep.subr.bf16.mxu0 %v16839_v10  ;;  %5568 = vmatprep.subr.bf16.mxu1 %v16841_v14  ;;  %v16641_v6 = vld [vmem:[%s21990_s19 + $0xbe0] sm:$0xff] }
 0x4e6   : > { %v16895_v8 = vcombine.high %v16637_v5, %v16641_v6  ;;  %v16894_v10 = vcombine.low %v16637_v5, %v16641_v6  ;;  %v22529_v14 = vld [vmem:[%s21990_s19 + $0xc20] sm:$0xff] }
 0x4e8   : > { %5487 = vmatpush1.bf16.msra.mxu0 %v16838_v12  ;;  %5569 = vmatpush1.bf16.msra.mxu1 %v16840_v13  ;;  %v16897_v12 = vcombine.high %v16638_v7, %v16642_v9  ;;  %v22526_v13 = vld [vmem:[%s21990_s19 + $0xc00] sm:$0xff] }
 0x4e9   : > { %5488 = vmatprep.subr.bf16.mxu0 %v16847_v26  ;;  %5570 = vmatprep.subr.bf16.mxu1 %v16849_v30  ;;  %v16903_v24 = vcombine.high %v22526_v13, %v22529_v14  ;;  %v16902_v26 = vcombine.low %v22526_v13, %v22529_v14  ;;  %v22549_v30 = vld [vmem:[%s22004_s30] sm:$0xf]  ;;  %v16670_v14 = vld [vmem:[%s21990_s19 + $0xcc8] sm:$0xff] }
 0x4ea   : > { %v16661_v7 = vld [vmem:[%s21990_s19 + $0xc80] sm:$0xff] }
 0x4eb   : > { %v16673_v13 = vld [vmem:[%s21990_s19 + $0xce0] sm:$0xff] }
 0x4ec   : > { %5489 = vmatpush1.bf16.msra.mxu0 %v16846_v28  ;;  %5571 = vmatpush1.bf16.msra.mxu1 %v16848_v29  ;;  %v16905_v28 = vcombine.high %v22532_v23, %v22537_v25  ;;  %v22546_v29 = vsub.s32 4, %v22366_v18 }
 0x4ed   : > { %5490 = vmatprep.subr.bf16.mxu0 %v16855_v34  ;;  %5572 = vmatprep.subr.bf16.mxu1 %v16857_v15  ;;  %v3029_v34 = vrot.slane %v22549_v30, %v22372_v20  ;;  %v3041_v15 = vrot.slane %v22549_v30, %v22378_v22 }
 0x4ee   : > { %v1239_v33 = vrot.slane %v22369_v19, %v22546_v29 }
 0x4f0   : > { %5491 = vmatpush1.bf16.msra.mxu0 %v16854_v36  ;;  %5573 = vmatpush1.bf16.msra.mxu1 %v16856_v37  ;;  %v3033_v36 = vrot.slane %v22549_v30, %v22375_v21  ;;  %v1251_v37 = vrot.slane %v22369_v19, %v22555_v32  ;;  %v19801_v38 = vadd.f32 %v3029_v34, %v1239_v33 }
 0x4f1   : > { %5492 = vmatprep.subr.bf16.mxu0 %v16863_v40  ;;  %5574 = vmatprep.subr.bf16.mxu1 %v16865_v43 }
 0x4f2   : > { %v19803_v4 = vadd.f32 %v3033_v36, %v1243_v35  ;;  %v19807_v39 = vadd.f32 %v3041_v15, %v1251_v37  ;;  %v16669_v36 = vld [vmem:[%s21990_s19 + $0xcc0] sm:$0xff] }
 0x4f3   : > { %v16677_v15 = vld [vmem:[%s21990_s19 + $0xd00] sm:$0xff] }
 0x4f4   : > { %5493 = vmatpush1.bf16.msra.mxu0 %v16862_v49  ;;  %5575 = vmatpush1.bf16.msra.mxu1 %v16864_v42 }
 0x4f5   : > { %5494 = vmatprep.subr.bf16.mxu0 %v16871_v46  ;;  %5576 = vmatprep.subr.bf16.mxu1 %v16873_v51 }
 0x4f8   : > { %5495 = vmatpush1.bf16.msra.mxu0 %v16870_v48  ;;  %5577 = vmatpush1.bf16.msra.mxu1 %v16872_v50 }
 0x4f9   : > { %5496 = vmatprep.subr.bf16.mxu0 %v16879_v55  ;;  %5578 = vmatprep.subr.bf16.mxu1 %v16881_v59 }
 0x4fc   : > { %5497 = vmatpush1.bf16.msra.mxu0 %v16878_v57  ;;  %5579 = vmatpush1.bf16.msra.mxu1 %v16880_v58 }
 0x4fd   : > { %5498 = vmatprep.subr.bf16.mxu0 %v16887_v63  ;;  %5580 = vmatprep.subr.bf16.mxu1 %v16889_v3 }
 0x500   : > { %5499 = vmatpush1.bf16.msra.mxu0 %v16886_v1  ;;  %5581 = vmatpush1.bf16.msra.mxu1 %v16888_v2  ;;  %v16654_v1 = vld [vmem:[%s21990_s19 + $0xc48] sm:$0xff] }
 0x501   : > { %5500 = vmatprep.subr.bf16.mxu0 %v16895_v8  ;;  %5582 = vmatprep.subr.bf16.mxu1 %v16897_v12  ;;  %v16658_v2 = vld [vmem:[%s21990_s19 + $0xc68] sm:$0xff]  ;;  %v16911_v8 = vcombine.high %v16653_v62, %v16657_v0 }
 0x502   : > { %v16913_v9 = vcombine.high %v16654_v1, %v16658_v2  ;;  %v16666_v12 = vld [vmem:[%s21990_s19 + $0xca8] sm:$0xff]  ;;  %v16912_v33 = vcombine.low %v16654_v1, %v16658_v2 }
 0x504   : > { %5501 = vmatpush1.bf16.msra.mxu0 %v16894_v10  ;;  %5583 = vmatpush1.bf16.msra.mxu1 %v16896_v11  ;;  %v16665_v10 = vld [vmem:[%s21990_s19 + $0xca0] sm:$0xff]  ;;  %v16662_v11 = vld [vmem:[%s21990_s19 + $0xc88] sm:$0xff] }
 0x505   : > { %5511 = vmatprep.subr.bf16.mxu0 %v16903_v24  ;;  %5593 = vmatprep.subr.bf16.mxu1 %v16905_v28  ;;  %v16910_v28 = vcombine.low %v16653_v62, %v16657_v0  ;;  %v16919_v34 = vcombine.high %v16661_v7, %v16665_v10  ;;  %v16921_v35 = vcombine.high %v16662_v11, %v16666_v12  ;;  %v16702_v62 = vld [vmem:[%s21990_s19 + $0xdc8] sm:$0xff] }
 0x506   : > { %v16918_v23 = vcombine.low %v16661_v7, %v16665_v10  ;;  %v16920_v25 = vcombine.low %v16662_v11, %v16666_v12  ;;  %v21202_v0 = vld [vmem:[%s21996_s17] sm:$0xff] }
 0x507   : > { %v16713_v10 = vld [vmem:[%s21990_s19 + $0xe20] sm:$0xff]  ;;  %v16710_v11 = vld [vmem:[%s21990_s19 + $0xe08] sm:$0xff] }
 0x508   : > { %v16714_v12 = vld [vmem:[%s21990_s19 + $0xe28] sm:$0xff] }
 0x59a   : > { %v3761_v40 = vpop.f32.mrb[4].mxu0  ;;  %v22569_v41 = vpop.f32.mrb[4].mxu1 }
 0x59b   : > { %v19802_v49 = vadd.f32 %v19801_v38, %v3761_v40  ;;  %v3763_v42 = vpop.f32.mrb[5].mxu0  ;;  %v3845_v43 = vpop.f32.mrb[5].mxu1  ;;  %v16681_v38 = vld [vmem:[%s21990_s19 + $0xd20] sm:$0xff]  ;;  %v16926_v40 = vcombine.low %v16669_v36, %v16673_v13 }
 0x59c   : > { %v19804_v44 = vadd.f32 %v19803_v4, %v3763_v42  ;;  %v19808_v45 = vadd.f32 %v19807_v39, %v3845_v43  ;;  %v3765_v16 = vpop.f32.mrb[6].mxu0  ;;  %v3847_v46 = vpop.f32.mrb[6].mxu1  ;;  %v16678_v4 = vld [vmem:[%s21990_s19 + $0xd08] sm:$0xff]  ;;  %v16935_v42 = vcombine.high %v16677_v15, %v16681_v38 }
 0x59d   : > { %v3858_v47 = vmin.f32 %v19802_v49, 0.0  ;;  %v3766_v48 = vpop.f32.mrb[7].mxu0  ;;  %v3848_v50 = vpop.f32.mrb[7].mxu1  ;;  %vm3854_vm12 = vcmp.gt.f32.partialorder %v19802_v49, 0.0  ;;  %v16682_v39 = vld [vmem:[%s21990_s19 + $0xd28] sm:$0xff] }
 0x59e   : > { %v3859_v19 = vmin.f32 %v19804_v44, 0.0  ;;  %v3861_v51 = vmin.f32 %v19808_v45, 0.0  ;;  %vm3855_vm13 = vcmp.gt.f32.partialorder %v19804_v44, 0.0  ;;  %vm3857_vm14 = vcmp.gt.f32.partialorder %v19808_v45, 0.0  ;;  %v16686_v16 = vld [vmem:[%s21990_s19 + $0xd48] sm:$0xff] }
 0x59f   : > { %v3862_v52 = vmul.f32 1.442695, %v3858_v47  ;;  %v16937_v43 = vcombine.high %v16678_v4, %v16682_v39  ;;  %v16690_v46 = vld [vmem:[%s21990_s19 + $0xd68] sm:$0xff]  ;;  %v16934_v47 = vcombine.low %v16677_v15, %v16681_v38  ;;  %v16936_v48 = vcombine.low %v16678_v4, %v16682_v39  ;;  %v16725_v38 = vld [vmem:[%s21990_s19 + $0xe80] sm:$0xff] }
 0x5a0   : > { %v3864_v53 = vmul.f32 1.442695, %v3859_v19  ;;  %v3868_v54 = vmul.f32 1.442695, %v3861_v51  ;;  %v16945_v19 = vcombine.high %v16686_v16, %v16690_v46  ;;  %v16693_v51 = vld [vmem:[%s21990_s19 + $0xd80] sm:$0xff]  ;;  %v16726_v39 = vld [vmem:[%s21990_s19 + $0xe88] sm:$0xff] }
 0x5a1   : > { %21130 = vpow2.f32 %v3862_v52  ;;  %v16697_v52 = vld [vmem:[%s21990_s19 + $0xda0] sm:$0xff] }
 0x5a2   : > { %21132 = vpow2.f32 %v3864_v53  ;;  %v16694_v53 = vld [vmem:[%s21990_s19 + $0xd88] sm:$0xff]  ;;  %v16950_v1 = vcombine.low %v16693_v51, %v16697_v52  ;;  %v16729_v4 = vld [vmem:[%s21990_s19 + $0xea0] sm:$0xff] }
 0x5a3   : > { %21134 = vpow2.f32 %v3868_v54  ;;  %v16698_v54 = vld [vmem:[%s21990_s19 + $0xda8] sm:$0xff] }
 0x5a4   : > { %v16952_v2 = vcombine.low %v16694_v53, %v16698_v54 }
 0x5ab   : > { %v21131_v55 = vpop.eup %21130 }
 0x5ac   : > { %v16513_v56 = vadd.f32 -1.0, %v21131_v55  ;;  %v21133_v57 = vpop.eup %21132  ;;  %v22614_v55 = vsub.s32 6, %v22366_v18 }
 0x5ad   : > { %v21135_v58 = vpop.eup %21134  ;;  %v16514_v59 = vadd.f32 -1.0, %v21133_v57  ;;  %v16944_v57 = vcombine.low %v16686_v16, %v16690_v46  ;;  %v16737_v16 = vld [vmem:[%s21990_s19 + $0xee0] sm:$0xff]  ;;  %v16734_v46 = vld [vmem:[%s21990_s19 + $0xec8] sm:$0xff] }
 0x5ae   : > { %v3874_v60 = vsel %vm3854_vm12, %v19802_v49, %v16513_v56  ;;  %v16516_v61 = vadd.f32 -1.0, %v21135_v58  ;;  %v16951_v58 = vcombine.high %v16693_v51, %v16697_v52  ;;  %v1247_v18 = vrot.slane %v21202_v0, %v22614_v55  ;;  %v16750_v0 = vld [vmem:[%s21990_s19 + $0xf48] sm:$0xff] }
 0x5af   : > { %v3875_v63 = vsel %vm3855_vm13, %v19804_v44, %v16514_v59  ;;  %v22577_v6 = vpack.c.bf16 %v3874_v60, %v3874_v60  ;;  %v16685_v44 = vld [vmem:[%s21990_s19 + $0xd40] sm:$0xff]  ;;  %v16953_v59 = vcombine.high %v16694_v53, %v16698_v54 }
 0x5b0   : > { %v3877_v3 = vsel %vm3857_vm14, %v19808_v45, %v16516_v61  ;;  %v22575_v5 = vpack.c.bf16 %v3875_v63, %v3875_v63  ;;  %v16689_v45 = vld [vmem:[%s21990_s19 + $0xd60] sm:$0xff]  ;;  %v16706_v63 = vld [vmem:[%s21990_s19 + $0xde8] sm:$0xff] }
 0x5b1   : > { %v22587_v24 = vpack.c.bf16 %v3877_v3, %v3877_v3  ;;  %v16943_v50 = vcombine.high %v16685_v44, %v16689_v45  ;;  %v16942_v56 = vcombine.low %v16685_v44, %v16689_v45  ;;  %v16701_v60 = vld [vmem:[%s21990_s19 + $0xdc0] sm:$0xff]  ;;  %v3037_v3 = vrot.slane %v22549_v30, %v22415_v17 }
 0x5b2   : > { %5502 = vmatprep.mubr.bf16.mxu0 %v22575_v5  ;;  %5584 = vmatprep.mubr.bf16.mxu1 %v22575_v5  ;;  %v16705_v61 = vld [vmem:[%s21990_s19 + $0xde0] sm:$0xff] }
 0x5b3   : > { %5503 = vmatmul.mubr.bf16.vlgmr.msra.gmra.mrb[8].mxu0 %v22577_v6  ;;  %5585 = vmatmul.mubr.bf16.vlgmr.msra.gmra.mrb[8].mxu1 %v22577_v6  ;;  %v16959_v7 = vcombine.high %v16701_v60, %v16705_v61  ;;  %v16733_v45 = vld [vmem:[%s21990_s19 + $0xec0] sm:$0xff] }
 0x5b4   : > { %5512 = vmatpush1.bf16.msra.mxu0 %v16902_v26  ;;  %5594 = vmatpush1.bf16.msra.mxu1 %v16904_v27  ;;  %v16674_v26 = vld [vmem:[%s21990_s19 + $0xce8] sm:$0xff]  ;;  %v16927_v27 = vcombine.high %v16669_v36, %v16673_v13  ;;  %v16717_v36 = vld [vmem:[%s21990_s19 + $0xe40] sm:$0xff]  ;;  %v16991_v51 = vcombine.high %v16733_v45, %v16737_v16 }
 0x5b5   : > { %5543 = vmatprep.mubr.bf16.mxu0 %v22587_v24  ;;  %5625 = vmatprep.mubr.bf16.mxu1 %v22587_v24  ;;  %v16929_v37 = vcombine.high %v16670_v14, %v16674_v26  ;;  %v16928_v49 = vcombine.low %v16670_v14, %v16674_v26  ;;  %v16721_v13 = vld [vmem:[%s21990_s19 + $0xe60] sm:$0xff]  ;;  %v16718_v14 = vld [vmem:[%s21990_s19 + $0xe48] sm:$0xff] }
 0x5b6   : > { %5513 = vmatprep.subr.bf16.mxu0 %v16911_v8  ;;  %5595 = vmatprep.subr.bf16.mxu1 %v16913_v9  ;;  %v16961_v8 = vcombine.high %v16702_v62, %v16706_v63  ;;  %v16709_v9 = vld [vmem:[%s21990_s19 + $0xe00] sm:$0xff]  ;;  %v16722_v26 = vld [vmem:[%s21990_s19 + $0xe68] sm:$0xff] }
 0x5b7   : > { %v16967_v30 = vcombine.high %v16709_v9, %v16713_v10  ;;  %v16977_v15 = vcombine.high %v16718_v14, %v16722_v26  ;;  %v16741_v53 = vld [vmem:[%s21990_s19 + $0xf00] sm:$0xff] }
 0x5b8   : > { %5514 = vmatpush1.bf16.msra.mxu0 %v16910_v28  ;;  %5596 = vmatpush1.bf16.msra.mxu1 %v16912_v33  ;;  %v16958_v28 = vcombine.low %v16701_v60, %v16705_v61  ;;  %v16960_v33 = vcombine.low %v16702_v62, %v16706_v63  ;;  %v16745_v54 = vld [vmem:[%s21990_s19 + $0xf20] sm:$0xff] }
 0x5b9   : > { %5515 = vmatprep.subr.bf16.mxu0 %v16919_v34  ;;  %5597 = vmatprep.subr.bf16.mxu1 %v16921_v35  ;;  %v19805_v34 = vadd.f32 %v3037_v3, %v1247_v18  ;;  %v16969_v35 = vcombine.high %v16710_v11, %v16714_v12  ;;  %v16999_v60 = vcombine.high %v16741_v53, %v16745_v54  ;;  %v16749_v62 = vld [vmem:[%s21990_s19 + $0xf40] sm:$0xff]  ;;  %v16754_v18 = vld [vmem:[%s21990_s19 + $0xf68] sm:$0xff] }
 0x5ba   : > { %v16753_v63 = vld [vmem:[%s21990_s19 + $0xf60] sm:$0xff] }
 0x5bb   : > { %v17007_v3 = vcombine.high %v16749_v62, %v16753_v63 }
 0x5bc   : > { %5516 = vmatpush1.bf16.msra.mxu0 %v16918_v23  ;;  %5598 = vmatpush1.bf16.msra.mxu1 %v16920_v25  ;;  %v16966_v23 = vcombine.low %v16709_v9, %v16713_v10  ;;  %v16968_v25 = vcombine.low %v16710_v11, %v16714_v12  ;;  %v16761_v9 = vld [vmem:[%s21990_s19 + $0xfa0] sm:$0xff]  ;;  %v16758_v10 = vld [vmem:[%s21990_s19 + $0xf88] sm:$0xff]  ;;  %v17006_v12 = vcombine.low %v16749_v62, %v16753_v63  ;;  %v16547_v62 = vld [vmem:[%s21990_s19 + $0x8f0] sm:$0xff] }
 0x5bd   : > { %5517 = vmatprep.subr.bf16.mxu0 %v16927_v27  ;;  %5599 = vmatprep.subr.bf16.mxu1 %v16929_v37  ;;  %v22633_v27 = vadd.f32 %v19805_v34, %v22569_v41  ;;  %v16975_v37 = vcombine.high %v16717_v36, %v16721_v13  ;;  %v16983_v41 = vcombine.high %v16725_v38, %v16729_v4  ;;  %v16762_v11 = vld [vmem:[%s21990_s19 + $0xfa8] sm:$0xff]  ;;  %v16544_v63 = vld [vmem:[%s21990_s19 + $0x8d8] sm:$0xff] }
 0x5be   : > { %v17017_v34 = vcombine.high %v16758_v10, %v16762_v11 }
 0x5bf   : > { %vm3856_vm15 = vcmp.gt.f32.partialorder %v22633_v27, 0.0 }
 0x5c0   : > { %5518 = vmatpush1.bf16.msra.mxu0 %v16926_v40  ;;  %5600 = vmatpush1.bf16.msra.mxu1 %v16928_v49  ;;  %v16730_v40 = vld [vmem:[%s21990_s19 + $0xea8] sm:$0xff]  ;;  %v16974_v49 = vcombine.low %v16717_v36, %v16721_v13 }
 0x5c1   : > { %5519 = vmatprep.subr.bf16.mxu0 %v16935_v42  ;;  %5601 = vmatprep.subr.bf16.mxu1 %v16937_v43  ;;  %v16976_v42 = vcombine.low %v16718_v14, %v16722_v26  ;;  %v3860_v43 = vmin.f32 %v22633_v27, 0.0  ;;  %v16985_v44 = vcombine.high %v16726_v39, %v16730_v40  ;;  %v16766_v36 = vld [vmem:[%s21990_s19 + $0xfc8] sm:$0xff] }
 0x5c2   : > { %v16770_v13 = vld [vmem:[%s21990_s19 + $0xfe8] sm:$0xff] }
 0x5c4   : > { %5520 = vmatpush1.bf16.msra.mxu0 %v16934_v47  ;;  %5602 = vmatpush1.bf16.msra.mxu1 %v16936_v48  ;;  %v16738_v47 = vld [vmem:[%s21990_s19 + $0xee8] sm:$0xff]  ;;  %v16982_v48 = vcombine.low %v16725_v38, %v16729_v4  ;;  %v16523_v4 = vld [vmem:[%s21990_s19 + $0x830] sm:$0xff] }
 0x5c5   : > { %5521 = vmatprep.subr.bf16.mxu0 %v16943_v50  ;;  %5603 = vmatprep.subr.bf16.mxu1 %v16945_v19  ;;  %v16984_v50 = vcombine.low %v16726_v39, %v16730_v40  ;;  %v3866_v19 = vmul.f32 1.442695, %v3860_v43  ;;  %v16993_v52 = vcombine.high %v16734_v46, %v16738_v47  ;;  %v16520_v39 = vld [vmem:[%s21990_s19 + $0x818] sm:$0xff] }
 0x5c6   : > { %v16524_v40 = vld [vmem:[%s21990_s19 + $0x838] sm:$0xff] }
 0x5c7   : > { %21136 = vpow2.f32 %v3866_v19  ;;  %v16780_v19 = vcombine.low %v16520_v39, %v16524_v40 }
 0x5c8   : > { %5522 = vmatpush1.bf16.msra.mxu0 %v16942_v56  ;;  %5604 = vmatpush1.bf16.msra.mxu1 %v16944_v57  ;;  %v16742_v56 = vld [vmem:[%s21990_s19 + $0xf08] sm:$0xff] }
 0x5c9   : > { %5523 = vmatprep.subr.bf16.mxu0 %v16951_v58  ;;  %5605 = vmatprep.subr.bf16.mxu1 %v16953_v59  ;;  %v16746_v57 = vld [vmem:[%s21990_s19 + $0xf28] sm:$0xff]  ;;  %v16990_v58 = vcombine.low %v16733_v45, %v16737_v16  ;;  %v16992_v59 = vcombine.low %v16734_v46, %v16738_v47  ;;  %v16527_v45 = vld [vmem:[%s21990_s19 + $0x850] sm:$0xff]  ;;  %v16528_v46 = vld [vmem:[%s21990_s19 + $0x858] sm:$0xff] }
 0x5ca   : > { %v17001_v61 = vcombine.high %v16742_v56, %v16746_v57  ;;  %v16531_v16 = vld [vmem:[%s21990_s19 + $0x870] sm:$0xff]  ;;  %v16532_v47 = vld [vmem:[%s21990_s19 + $0x878] sm:$0xff] }
 0x5cc   : > { %5524 = vmatpush1.bf16.msra.mxu0 %v16950_v1  ;;  %5606 = vmatpush1.bf16.msra.mxu1 %v16952_v2  ;;  %v16998_v1 = vcombine.low %v16741_v53, %v16745_v54  ;;  %v17000_v2 = vcombine.low %v16742_v56, %v16746_v57  ;;  %v16535_v53 = vld [vmem:[%s21990_s19 + $0x890] sm:$0xff]  ;;  %v16540_v56 = vld [vmem:[%s21990_s19 + $0x8b8] sm:$0xff]  ;;  %v16786_v57 = vcombine.low %v16527_v45, %v16531_v16 }
 0x5cd   : > { %5525 = vmatprep.subr.bf16.mxu0 %v16959_v7  ;;  %5607 = vmatprep.subr.bf16.mxu1 %v16961_v8  ;;  %v17009_v7 = vcombine.high %v16750_v0, %v16754_v18  ;;  %v16757_v8 = vld [vmem:[%s21990_s19 + $0xf80] sm:$0xff]  ;;  %v16539_v54 = vld [vmem:[%s21990_s19 + $0x8b0] sm:$0xff] }
 0x5ce   : > { %v17014_v26 = vcombine.low %v16757_v8, %v16761_v9 }
 0x5d0   : > { %5526 = vmatpush1.bf16.msra.mxu0 %v16958_v28  ;;  %5608 = vmatpush1.bf16.msra.mxu1 %v16960_v33  ;;  %v17008_v28 = vcombine.low %v16750_v0, %v16754_v18  ;;  %v17015_v33 = vcombine.high %v16757_v8, %v16761_v9  ;;  %v16548_v0 = vld [vmem:[%s21990_s19 + $0x8f8] sm:$0xff]  ;;  %v16794_v18 = vcombine.low %v16535_v53, %v16539_v54 }
 0x5d1   : > { %5527 = vmatprep.subr.bf16.mxu0 %v16967_v30  ;;  %5609 = vmatprep.subr.bf16.mxu1 %v16969_v35  ;;  %v16765_v30 = vld [vmem:[%s21990_s19 + $0xfc0] sm:$0xff]  ;;  %v21137_v14 = vpop.eup %21136  ;;  %v16552_v8 = vld [vmem:[%s21990_s19 + $0x918] sm:$0xff] }
 0x5d2   : > { %v16769_v35 = vld [vmem:[%s21990_s19 + $0xfe0] sm:$0xff]  ;;  %v16515_v38 = vadd.f32 -1.0, %v21137_v14  ;;  %v16556_v9 = vld [vmem:[%s21990_s19 + $0x938] sm:$0xff] }
 0x5d4   : > { %5528 = vmatpush1.bf16.msra.mxu0 %v16966_v23  ;;  %5610 = vmatpush1.bf16.msra.mxu1 %v16968_v25  ;;  %v17016_v23 = vcombine.low %v16758_v10, %v16762_v11  ;;  %v17023_v25 = vcombine.high %v16765_v30, %v16769_v35  ;;  %v16804_v11 = vcombine.low %v16544_v63, %v16548_v0 }
 0x5d5   : > { %5529 = vmatprep.subr.bf16.mxu0 %v16975_v37  ;;  %5611 = vmatprep.subr.bf16.mxu1 %v16977_v15  ;;  %v17025_v37 = vcombine.high %v16766_v36, %v16770_v13  ;;  %v16519_v15 = vld [vmem:[%s21990_s19 + $0x810] sm:$0xff] }
 0x5d6   : > { %v16779_v43 = vcombine.high %v16519_v15, %v16523_v4 }
 0x5d8   : > { %5530 = vmatpush1.bf16.msra.mxu0 %v16974_v49  ;;  %5612 = vmatpush1.bf16.msra.mxu1 %v16976_v42  ;;  %v17022_v49 = vcombine.low %v16765_v30, %v16769_v35  ;;  %v17024_v42 = vcombine.low %v16766_v36, %v16770_v13  ;;  %v16560_v30 = vld [vmem:[%s21990_s19 + $0x958] sm:$0xff]  ;;  %v16812_v13 = vcombine.low %v16552_v8, %v16556_v9 }
 0x5d9   : > { %5531 = vmatprep.subr.bf16.mxu0 %v16983_v41  ;;  %5613 = vmatprep.subr.bf16.mxu1 %v16985_v44  ;;  %v16781_v41 = vcombine.high %v16520_v39, %v16524_v40  ;;  %v3876_v44 = vsel %vm3856_vm15, %v22633_v27, %v16515_v38  ;;  %v16536_v27 = vld [vmem:[%s21990_s19 + $0x898] sm:$0xff] }
 0x5da   : > { %v16564_v35 = vld [vmem:[%s21990_s19 + $0x978] sm:$0xff] }
 0x5dc   : > { %5532 = vmatpush1.bf16.msra.mxu0 %v16982_v48  ;;  %5614 = vmatpush1.bf16.msra.mxu1 %v16984_v50  ;;  %v16778_v48 = vcombine.low %v16519_v15, %v16523_v4  ;;  %v22670_v50 = vpack.c.bf16 %v3876_v44, %v3876_v44  ;;  %v16572_v15 = vld [vmem:[%s21990_s19 + $0x9b8] sm:$0xff]  ;;  %v16820_v4 = vcombine.low %v16560_v30, %v16564_v35 }
 0x5dd   : > { %5533 = vmatprep.subr.bf16.mxu0 %v16991_v51  ;;  %5615 = vmatprep.subr.bf16.mxu1 %v16993_v52  ;;  %v16787_v51 = vcombine.high %v16527_v45, %v16531_v16  ;;  %v16789_v52 = vcombine.high %v16528_v46, %v16532_v47 }
 0x5e0   : > { %5534 = vmatpush1.bf16.msra.mxu0 %v16990_v58  ;;  %5616 = vmatpush1.bf16.msra.mxu1 %v16992_v59  ;;  %v16788_v58 = vcombine.low %v16528_v46, %v16532_v47  ;;  %v16795_v59 = vcombine.high %v16535_v53, %v16539_v54  ;;  %v16583_v47 = vld [vmem:[%s21990_s19 + $0xa10] sm:$0xff] }
 0x5e1   : > { %5535 = vmatprep.subr.bf16.mxu0 %v16999_v60  ;;  %5617 = vmatprep.subr.bf16.mxu1 %v17001_v61  ;;  %v16797_v60 = vcombine.high %v16536_v27, %v16540_v56  ;;  %v16543_v61 = vld [vmem:[%s21990_s19 + $0x8d0] sm:$0xff] }
 0x5e2   : > { %v16802_v10 = vcombine.low %v16543_v61, %v16547_v62 }
 0x5e4   : > { %5536 = vmatpush1.bf16.msra.mxu0 %v16998_v1  ;;  %5618 = vmatpush1.bf16.msra.mxu1 %v17000_v2  ;;  %v16796_v1 = vcombine.low %v16536_v27, %v16540_v56  ;;  %v16805_v2 = vcombine.high %v16544_v63, %v16548_v0  ;;  %v16591_v56 = vld [vmem:[%s21990_s19 + $0xa50] sm:$0xff] }
 0x5e5   : > { %5537 = vmatprep.subr.bf16.mxu0 %v17007_v3  ;;  %5619 = vmatprep.subr.bf16.mxu1 %v17009_v7  ;;  %v16551_v3 = vld [vmem:[%s21990_s19 + $0x910] sm:$0xff] }
 0x5e6   : > { %v16555_v7 = vld [vmem:[%s21990_s19 + $0x930] sm:$0xff] }
 0x5e7   : > { %v16810_v36 = vcombine.low %v16551_v3, %v16555_v7  ;;  %v16599_v0 = vld [vmem:[%s21990_s19 + $0xa90] sm:$0xff] }
 0x5e8   : > { %5538 = vmatpush1.bf16.msra.mxu0 %v17006_v12  ;;  %5620 = vmatpush1.bf16.msra.mxu1 %v17008_v28  ;;  %v16811_v12 = vcombine.high %v16551_v3, %v16555_v7  ;;  %v16813_v28 = vcombine.high %v16552_v8, %v16556_v9  ;;  %v16607_v9 = vld [vmem:[%s21990_s19 + $0xad0] sm:$0xff] }
 0x5e9   : > { %5539 = vmatprep.subr.bf16.mxu0 %v17015_v33  ;;  %5621 = vmatprep.subr.bf16.mxu1 %v17017_v34  ;;  %v16559_v33 = vld [vmem:[%s21990_s19 + $0x950] sm:$0xff] }
 0x5ea   : > { %v16563_v34 = vld [vmem:[%s21990_s19 + $0x970] sm:$0xff] }
 0x5eb   : > { %v16819_v14 = vcombine.high %v16559_v33, %v16563_v34  ;;  %v16818_v38 = vcombine.low %v16559_v33, %v16563_v34 }
 0x5ec   : > { %5540 = vmatpush1.bf16.msra.mxu0 %v17014_v26  ;;  %5622 = vmatpush1.bf16.msra.mxu1 %v17016_v23  ;;  %v16821_v26 = vcombine.high %v16560_v30, %v16564_v35  ;;  %v16567_v23 = vld [vmem:[%s21990_s19 + $0x990] sm:$0xff] }
 0x5ed   : > { %5541 = vmatprep.subr.bf16.mxu0 %v17023_v25  ;;  %5623 = vmatprep.subr.bf16.mxu1 %v17025_v37  ;;  %v16571_v25 = vld [vmem:[%s21990_s19 + $0x9b0] sm:$0xff]  ;;  %v16568_v37 = vld [vmem:[%s21990_s19 + $0x998] sm:$0xff] }
 0x5ee   : > { %v16827_v39 = vcombine.high %v16567_v23, %v16571_v25  ;;  %v16829_v40 = vcombine.high %v16568_v37, %v16572_v15  ;;  %v16826_v44 = vcombine.low %v16567_v23, %v16571_v25  ;;  %v16828_v45 = vcombine.low %v16568_v37, %v16572_v15  ;;  %v16615_v35 = vld [vmem:[%s21990_s19 + $0xb10] sm:$0xff] }
 0x5ef   : > { %v16623_v15 = vld [vmem:[%s21990_s19 + $0xb50] sm:$0xff] }
 0x5f0   : > { %5542 = vmatpush1.bf16.msra.mxu0 %v17022_v49  ;;  %5624 = vmatpush1.bf16.msra.mxu1 %v17024_v42  ;;  %v16575_v49 = vld [vmem:[%s21990_s19 + $0x9d0] sm:$0xff] }
 0x5f1   : > { %5634 = vmatprep.subr.bf16.mxu0 %v16779_v43  ;;  %5716 = vmatprep.subr.bf16.mxu1 %v16781_v41  ;;  %v16579_v42 = vld [vmem:[%s21990_s19 + $0x9f0] sm:$0xff]  ;;  %v16576_v43 = vld [vmem:[%s21990_s19 + $0x9d8] sm:$0xff] }
 0x5f2   : > { %v16580_v41 = vld [vmem:[%s21990_s19 + $0x9f8] sm:$0xff]  ;;  %v16835_v16 = vcombine.high %v16575_v49, %v16579_v42 }
 0x5f3   : > { %5544 = vmatmul.mubr.bf16.vlgmr.msra.gmra.mrb[8].mxu0 %v22670_v50  ;;  %5626 = vmatmul.mubr.bf16.vlgmr.msra.gmra.mrb[8].mxu1 %v22670_v50  ;;  %v16837_v46 = vcombine.high %v16576_v43, %v16580_v41  ;;  %v16836_v53 = vcombine.low %v16576_v43, %v16580_v41  ;;  %v16631_v41 = vld [vmem:[%s21990_s19 + $0xb90] sm:$0xff] }
 0x5f4   : > { %5635 = vmatpush1.bf16.msra.mxu0 %v16778_v48  ;;  %5666 = vmatprep.mubr.bf16.mxu0 %v22575_v5  ;;  %v16587_v48 = vld [vmem:[%s21990_s19 + $0xa30] sm:$0xff] }
 0x5f5   : > { %5717 = vmatpush1.bf16.msra.mxu1 %v16780_v19  ;;  %5748 = vmatprep.mubr.bf16.mxu1 %v22575_v5  ;;  %v16803_v5 = vcombine.high %v16543_v61, %v16547_v62  ;;  %v16584_v19 = vld [vmem:[%s21990_s19 + $0xa18] sm:$0xff]  ;;  %v16843_v54 = vcombine.high %v16583_v47, %v16587_v48 }
 0x5f6   : > { %5636 = vmatprep.subr.bf16.mxu0 %v16787_v51  ;;  %5718 = vmatprep.subr.bf16.mxu1 %v16789_v52  ;;  %v16588_v51 = vld [vmem:[%s21990_s19 + $0xa38] sm:$0xff]  ;;  %v16834_v52 = vcombine.low %v16575_v49, %v16579_v42 }
 0x5f7   : > { %v16845_v27 = vcombine.high %v16584_v19, %v16588_v51  ;;  %v16844_v61 = vcombine.low %v16584_v19, %v16588_v51  ;;  %v16639_v51 = vld [vmem:[%s21990_s19 + $0xbd0] sm:$0xff] }
 0x5f8   : > { %5637 = vmatpush1.bf16.msra.mxu0 %v16786_v57  ;;  %v16595_v57 = vld [vmem:[%s21990_s19 + $0xa70] sm:$0xff] }
 0x5f9   : > { %5719 = vmatpush1.bf16.msra.mxu1 %v16788_v58  ;;  %5638 = vmatprep.subr.bf16.mxu0 %v16795_v59  ;;  %v16592_v58 = vld [vmem:[%s21990_s19 + $0xa58] sm:$0xff]  ;;  %v16851_v62 = vcombine.high %v16591_v56, %v16595_v57 }
 0x5fa   : > { %5720 = vmatprep.subr.bf16.mxu1 %v16797_v60  ;;  %v16596_v59 = vld [vmem:[%s21990_s19 + $0xa78] sm:$0xff]  ;;  %v16842_v60 = vcombine.low %v16583_v47, %v16587_v48 }
 0x5fb   : > { %v16853_v63 = vcombine.high %v16592_v58, %v16596_v59  ;;  %v16852_v3 = vcombine.low %v16592_v58, %v16596_v59  ;;  %v16647_v59 = vld [vmem:[%s21990_s19 + $0xc10] sm:$0xff] }
 0x5fc   : > { %5639 = vmatpush1.bf16.msra.mxu0 %v16794_v18  ;;  %v16603_v18 = vld [vmem:[%s21990_s19 + $0xab0] sm:$0xff] }
 0x5fd   : > { %5721 = vmatpush1.bf16.msra.mxu1 %v16796_v1  ;;  %5640 = vmatprep.subr.bf16.mxu0 %v16803_v5  ;;  %v16600_v1 = vld [vmem:[%s21990_s19 + $0xa98] sm:$0xff]  ;;  %v16859_v7 = vcombine.high %v16599_v0, %v16603_v18 }
 0x5fe   : > { %5722 = vmatprep.subr.bf16.mxu1 %v16805_v2  ;;  %v16604_v5 = vld [vmem:[%s21990_s19 + $0xab8] sm:$0xff]  ;;  %v16850_v2 = vcombine.low %v16591_v56, %v16595_v57 }
 0x5ff   : > { %v16861_v8 = vcombine.high %v16600_v1, %v16604_v5  ;;  %v16860_v33 = vcombine.low %v16600_v1, %v16604_v5  ;;  %v16655_v5 = vld [vmem:[%s21990_s19 + $0xc50] sm:$0xff] }
 0x600   : > { %5641 = vmatpush1.bf16.msra.mxu0 %v16802_v10  ;;  %v16611_v10 = vld [vmem:[%s21990_s19 + $0xaf0] sm:$0xff] }
 0x601   : > { %5723 = vmatpush1.bf16.msra.mxu1 %v16804_v11  ;;  %5642 = vmatprep.subr.bf16.mxu0 %v16811_v12  ;;  %v16608_v11 = vld [vmem:[%s21990_s19 + $0xad8] sm:$0xff]  ;;  %v16867_v34 = vcombine.high %v16607_v9, %v16611_v10 }
 0x602   : > { %5724 = vmatprep.subr.bf16.mxu1 %v16813_v28  ;;  %v16612_v12 = vld [vmem:[%s21990_s19 + $0xaf8] sm:$0xff]  ;;  %v16858_v28 = vcombine.low %v16599_v0, %v16603_v18 }
 0x603   : > { %v16869_v30 = vcombine.high %v16608_v11, %v16612_v12  ;;  %v16868_v23 = vcombine.low %v16608_v11, %v16612_v12  ;;  %v16663_v11 = vld [vmem:[%s21990_s19 + $0xc90] sm:$0xff] }
 0x604   : > { %5643 = vmatpush1.bf16.msra.mxu0 %v16810_v36  ;;  %v16619_v36 = vld [vmem:[%s21990_s19 + $0xb30] sm:$0xff] }
 0x605   : > { %5725 = vmatpush1.bf16.msra.mxu1 %v16812_v13  ;;  %5644 = vmatprep.subr.bf16.mxu0 %v16819_v14  ;;  %v16616_v13 = vld [vmem:[%s21990_s19 + $0xb18] sm:$0xff]  ;;  %v16875_v25 = vcombine.high %v16615_v35, %v16619_v36  ;;  %v16667_v12 = vld [vmem:[%s21990_s19 + $0xcb0] sm:$0xff] }
 0x606   : > { %5726 = vmatprep.subr.bf16.mxu1 %v16821_v26  ;;  %v16620_v14 = vld [vmem:[%s21990_s19 + $0xb38] sm:$0xff]  ;;  %v16866_v26 = vcombine.low %v16607_v9, %v16611_v10 }
 0x607   : > { %v16877_v37 = vcombine.high %v16616_v13, %v16620_v14  ;;  %v16876_v49 = vcombine.low %v16616_v13, %v16620_v14  ;;  %v16671_v14 = vld [vmem:[%s21990_s19 + $0xcd0] sm:$0xff] }
 0x608   : > { %5645 = vmatpush1.bf16.msra.mxu0 %v16818_v38  ;;  %v16627_v38 = vld [vmem:[%s21990_s19 + $0xb70] sm:$0xff] }
 0x609   : > { %5727 = vmatpush1.bf16.msra.mxu1 %v16820_v4  ;;  %5646 = vmatprep.subr.bf16.mxu0 %v16827_v39  ;;  %v16624_v4 = vld [vmem:[%s21990_s19 + $0xb58] sm:$0xff]  ;;  %v16883_v42 = vcombine.high %v16623_v15, %v16627_v38 }
 0x60a   : > { %5728 = vmatprep.subr.bf16.mxu1 %v16829_v40  ;;  %v16628_v39 = vld [vmem:[%s21990_s19 + $0xb78] sm:$0xff]  ;;  %v16874_v40 = vcombine.low %v16615_v35, %v16619_v36  ;;  %v16923_v36 = vcombine.high %v16663_v11, %v16667_v12 }
 0x60b   : > { %v16885_v43 = vcombine.high %v16624_v4, %v16628_v39  ;;  %v16884_v47 = vcombine.low %v16624_v4, %v16628_v39  ;;  %v16683_v4 = vld [vmem:[%s21990_s19 + $0xd30] sm:$0xff]  ;;  %v16680_v39 = vld [vmem:[%s21990_s19 + $0xd18] sm:$0xff] }
 0x60c   : > { %5647 = vmatpush1.bf16.msra.mxu0 %v16826_v44  ;;  %v16635_v44 = vld [vmem:[%s21990_s19 + $0xbb0] sm:$0xff] }
 0x60d   : > { %5729 = vmatpush1.bf16.msra.mxu1 %v16828_v45  ;;  %5648 = vmatprep.subr.bf16.mxu0 %v16835_v16  ;;  %v16632_v45 = vld [vmem:[%s21990_s19 + $0xb98] sm:$0xff]  ;;  %v16891_v48 = vcombine.high %v16631_v41, %v16635_v44 }
 0x60e   : > { %5730 = vmatprep.subr.bf16.mxu1 %v16837_v46  ;;  %v16636_v16 = vld [vmem:[%s21990_s19 + $0xbb8] sm:$0xff]  ;;  %v16882_v46 = vcombine.low %v16623_v15, %v16627_v38  ;;  %v16679_v38 = vld [vmem:[%s21990_s19 + $0xd10] sm:$0xff] }
 0x60f   : > { %v16893_v19 = vcombine.high %v16632_v45, %v16636_v16  ;;  %v16892_v56 = vcombine.low %v16632_v45, %v16636_v16  ;;  %v16691_v45 = vld [vmem:[%s21990_s19 + $0xd70] sm:$0xff]  ;;  %v16688_v16 = vld [vmem:[%s21990_s19 + $0xd58] sm:$0xff] }
 0x610   : > { %5649 = vmatpush1.bf16.msra.mxu0 %v16834_v52  ;;  %v16643_v52 = vld [vmem:[%s21990_s19 + $0xbf0] sm:$0xff] }
 0x611   : > { %5731 = vmatpush1.bf16.msra.mxu1 %v16836_v53  ;;  %5650 = vmatprep.subr.bf16.mxu0 %v16843_v54  ;;  %v16640_v53 = vld [vmem:[%s21990_s19 + $0xbd8] sm:$0xff]  ;;  %v16899_v57 = vcombine.high %v16639_v51, %v16643_v52 }
 0x612   : > { %5732 = vmatprep.subr.bf16.mxu1 %v16845_v27  ;;  %v16644_v54 = vld [vmem:[%s21990_s19 + $0xbf8] sm:$0xff]  ;;  %v16890_v27 = vcombine.low %v16631_v41, %v16635_v44  ;;  %v16687_v44 = vld [vmem:[%s21990_s19 + $0xd50] sm:$0xff] }
 0x613   : > { %v16901_v58 = vcombine.high %v16640_v53, %v16644_v54  ;;  %v16900_v0 = vcombine.low %v16640_v53, %v16644_v54  ;;  %v16699_v53 = vld [vmem:[%s21990_s19 + $0xdb0] sm:$0xff]  ;;  %v16696_v54 = vld [vmem:[%s21990_s19 + $0xd98] sm:$0xff] }
 0x614   : > { %5651 = vmatpush1.bf16.msra.mxu0 %v16842_v60  ;;  %v16651_v60 = vld [vmem:[%s21990_s19 + $0xc30] sm:$0xff] }
 0x615   : > { %5733 = vmatpush1.bf16.msra.mxu1 %v16844_v61  ;;  %5652 = vmatprep.subr.bf16.mxu0 %v16851_v62  ;;  %v16648_v61 = vld [vmem:[%s21990_s19 + $0xc18] sm:$0xff]  ;;  %v16907_v18 = vcombine.high %v16647_v59, %v16651_v60 }
 0x616   : > { %5734 = vmatprep.subr.bf16.mxu1 %v16853_v63  ;;  %v16652_v62 = vld [vmem:[%s21990_s19 + $0xc38] sm:$0xff]  ;;  %v16898_v63 = vcombine.low %v16639_v51, %v16643_v52  ;;  %v16695_v52 = vld [vmem:[%s21990_s19 + $0xd90] sm:$0xff] }
 0x617   : > { %v16909_v1 = vcombine.high %v16648_v61, %v16652_v62  ;;  %v16908_v9 = vcombine.low %v16648_v61, %v16652_v62  ;;  %v16707_v61 = vld [vmem:[%s21990_s19 + $0xdf0] sm:$0xff]  ;;  %v16704_v62 = vld [vmem:[%s21990_s19 + $0xdd8] sm:$0xff] }
 0x618   : > { %5653 = vmatpush1.bf16.msra.mxu0 %v16850_v2  ;;  %v16659_v2 = vld [vmem:[%s21990_s19 + $0xc70] sm:$0xff] }
 0x619   : > { %5735 = vmatpush1.bf16.msra.mxu1 %v16852_v3  ;;  %5654 = vmatprep.subr.bf16.mxu0 %v16859_v7  ;;  %v16906_v3 = vcombine.low %v16647_v59, %v16651_v60  ;;  %v16656_v7 = vld [vmem:[%s21990_s19 + $0xc58] sm:$0xff]  ;;  %v16915_v10 = vcombine.high %v16655_v5, %v16659_v2  ;;  %v16703_v60 = vld [vmem:[%s21990_s19 + $0xdd0] sm:$0xff] }
 0x61a   : > { %5736 = vmatprep.subr.bf16.mxu1 %v16861_v8  ;;  %v16660_v8 = vld [vmem:[%s21990_s19 + $0xc78] sm:$0xff] }
 0x61b   : > { %v16916_v35 = vcombine.low %v16656_v7, %v16660_v8 }
 0x61c   : > { %5655 = vmatpush1.bf16.msra.mxu0 %v16858_v28  ;;  %v16917_v28 = vcombine.high %v16656_v7, %v16660_v8  ;;  %v16712_v7 = vld [vmem:[%s21990_s19 + $0xe18] sm:$0xff] }
 0x61d   : > { %5737 = vmatpush1.bf16.msra.mxu1 %v16860_v33  ;;  %5656 = vmatprep.subr.bf16.mxu0 %v16867_v34  ;;  %v16664_v33 = vld [vmem:[%s21990_s19 + $0xc98] sm:$0xff] }
 0x61e   : > { %5738 = vmatprep.subr.bf16.mxu1 %v16869_v30  ;;  %v16668_v34 = vld [vmem:[%s21990_s19 + $0xcb8] sm:$0xff]  ;;  %v16914_v30 = vcombine.low %v16655_v5, %v16659_v2  ;;  %v16711_v2 = vld [vmem:[%s21990_s19 + $0xe10] sm:$0xff] }
 0x61f   : > { %v16925_v13 = vcombine.high %v16664_v33, %v16668_v34  ;;  %v16716_v8 = vld [vmem:[%s21990_s19 + $0xe38] sm:$0xff] }
 0x620   : > { %5657 = vmatpush1.bf16.msra.mxu0 %v16866_v26  ;;  %v16675_v26 = vld [vmem:[%s21990_s19 + $0xcf0] sm:$0xff] }
 0x621   : > { %5739 = vmatpush1.bf16.msra.mxu1 %v16868_v23  ;;  %5658 = vmatprep.subr.bf16.mxu0 %v16875_v25  ;;  %v16672_v23 = vld [vmem:[%s21990_s19 + $0xcd8] sm:$0xff]  ;;  %v16922_v25 = vcombine.low %v16663_v11, %v16667_v12  ;;  %v16931_v15 = vcombine.high %v16671_v14, %v16675_v26  ;;  %v16973_v12 = vcombine.high %v16712_v7, %v16716_v8 }
 0x622   : > { %5740 = vmatprep.subr.bf16.mxu1 %v16877_v37  ;;  %v16924_v37 = vcombine.low %v16664_v33, %v16668_v34  ;;  %v16723_v33 = vld [vmem:[%s21990_s19 + $0xe70] sm:$0xff]  ;;  %v16720_v34 = vld [vmem:[%s21990_s19 + $0xe58] sm:$0xff] }
 0x624   : > { %5659 = vmatpush1.bf16.msra.mxu0 %v16874_v40  ;;  %v16684_v40 = vld [vmem:[%s21990_s19 + $0xd38] sm:$0xff] }
 0x625   : > { %5741 = vmatpush1.bf16.msra.mxu1 %v16876_v49  ;;  %5660 = vmatprep.subr.bf16.mxu0 %v16883_v42  ;;  %v16930_v49 = vcombine.low %v16671_v14, %v16675_v26  ;;  %v16941_v41 = vcombine.high %v16680_v39, %v16684_v40  ;;  %v16727_v26 = vld [vmem:[%s21990_s19 + $0xe90] sm:$0xff] }
 0x626   : > { %5742 = vmatprep.subr.bf16.mxu1 %v16885_v43  ;;  %v16939_v43 = vcombine.high %v16679_v38, %v16683_v4 }
 0x628   : > { %5661 = vmatpush1.bf16.msra.mxu0 %v16882_v46  ;;  %v16692_v46 = vld [vmem:[%s21990_s19 + $0xd78] sm:$0xff] }
 0x629   : > { %5743 = vmatpush1.bf16.msra.mxu1 %v16884_v47  ;;  %5662 = vmatprep.subr.bf16.mxu0 %v16891_v48  ;;  %v16938_v47 = vcombine.low %v16679_v38, %v16683_v4  ;;  %v16940_v48 = vcombine.low %v16680_v39, %v16684_v40  ;;  %v16949_v51 = vcombine.high %v16688_v16, %v16692_v46  ;;  %v16735_v4 = vld [vmem:[%s21990_s19 + $0xed0] sm:$0xff]  ;;  %v16736_v40 = vld [vmem:[%s21990_s19 + $0xed8] sm:$0xff] }
 0x62a   : > { %5744 = vmatprep.subr.bf16.mxu1 %v16893_v19  ;;  %v16947_v19 = vcombine.high %v16687_v44, %v16691_v45  ;;  %v16739_v39 = vld [vmem:[%s21990_s19 + $0xef0] sm:$0xff] }
 0x62c   : > { %5663 = vmatpush1.bf16.msra.mxu0 %v16890_v27  ;;  %v16700_v27 = vld [vmem:[%s21990_s19 + $0xdb8] sm:$0xff] }
 0x62d   : > { %5745 = vmatpush1.bf16.msra.mxu1 %v16892_v56  ;;  %5664 = vmatprep.subr.bf16.mxu0 %v16899_v57  ;;  %v16946_v56 = vcombine.low %v16687_v44, %v16691_v45  ;;  %v16948_v57 = vcombine.low %v16688_v16, %v16692_v46  ;;  %v16957_v59 = vcombine.high %v16696_v54, %v16700_v27  ;;  %v16743_v45 = vld [vmem:[%s21990_s19 + $0xf10] sm:$0xff]  ;;  %v16744_v46 = vld [vmem:[%s21990_s19 + $0xf18] sm:$0xff] }
 0x62e   : > { %5746 = vmatprep.subr.bf16.mxu1 %v16901_v58  ;;  %v16955_v58 = vcombine.high %v16695_v52, %v16699_v53  ;;  %v16747_v16 = vld [vmem:[%s21990_s19 + $0xf30] sm:$0xff] }
 0x630   : > { %5665 = vmatpush1.bf16.msra.mxu0 %v16898_v63  ;;  %v16708_v63 = vld [vmem:[%s21990_s19 + $0xdf8] sm:$0xff] }
 0x631   : > { %5747 = vmatpush1.bf16.msra.mxu1 %v16900_v0  ;;  %5675 = vmatprep.subr.bf16.mxu0 %v16907_v18  ;;  %v16954_v0 = vcombine.low %v16695_v52, %v16699_v53  ;;  %v16956_v18 = vcombine.low %v16696_v54, %v16700_v27  ;;  %v16965_v5 = vcombine.high %v16704_v62, %v16708_v63  ;;  %v16751_v53 = vld [vmem:[%s21990_s19 + $0xf50] sm:$0xff]  ;;  %v16752_v27 = vld [vmem:[%s21990_s19 + $0xf58] sm:$0xff] }
 0x632   : > { %5757 = vmatprep.subr.bf16.mxu1 %v16909_v1  ;;  %v16963_v1 = vcombine.high %v16703_v60, %v16707_v61  ;;  %v16755_v54 = vld [vmem:[%s21990_s19 + $0xf70] sm:$0xff] }
 0x633   : > { %5667 = vmatmul.mubr.bf16.vlgmr.msra.gmra.mrb[12].mxu0 %v22577_v6 }
 0x634   : > { %5749 = vmatmul.mubr.bf16.vlgmr.msra.gmra.mrb[12].mxu1 %v22577_v6  ;;  %5676 = vmatpush1.bf16.msra.mxu0 %v16906_v3  ;;  %v16676_v6 = vld [vmem:[%s21990_s19 + $0xcf8] sm:$0xff]  ;;  %v16715_v3 = vld [vmem:[%s21990_s19 + $0xe30] sm:$0xff] }
 0x635   : > { %5707 = vmatprep.mubr.bf16.mxu0 %v22587_v24  ;;  %5758 = vmatpush1.bf16.msra.mxu1 %v16908_v9  ;;  %v16932_v42 = vcombine.low %v16672_v23, %v16676_v6  ;;  %v16962_v9 = vcombine.low %v16703_v60, %v16707_v61  ;;  %v16971_v11 = vcombine.high %v16711_v2, %v16715_v3  ;;  %v16759_v61 = vld [vmem:[%s21990_s19 + $0xf90] sm:$0xff] }
 0x636   : > { %5789 = vmatprep.mubr.bf16.mxu1 %v22587_v24  ;;  %5677 = vmatprep.subr.bf16.mxu0 %v16915_v10  ;;  %v16933_v24 = vcombine.high %v16672_v23, %v16676_v6  ;;  %v16964_v10 = vcombine.low %v16704_v62, %v16708_v63  ;;  %v16731_v23 = vld [vmem:[%s21990_s19 + $0xeb0] sm:$0xff]  ;;  %v16728_v6 = vld [vmem:[%s21990_s19 + $0xe98] sm:$0xff] }
 0x637   : > { %5759 = vmatprep.subr.bf16.mxu1 %v16917_v28  ;;  %v16719_v28 = vld [vmem:[%s21990_s19 + $0xe50] sm:$0xff]  ;;  %v16760_v63 = vld [vmem:[%s21990_s19 + $0xf98] sm:$0xff] }
 0x638   : > { %5678 = vmatpush1.bf16.msra.mxu0 %v16914_v30  ;;  %v16724_v30 = vld [vmem:[%s21990_s19 + $0xe78] sm:$0xff]  ;;  %v16763_v62 = vld [vmem:[%s21990_s19 + $0xfb0] sm:$0xff] }
 0x639   : > { %5760 = vmatpush1.bf16.msra.mxu1 %v16916_v35  ;;  %5679 = vmatprep.subr.bf16.mxu0 %v16923_v36  ;;  %v16970_v35 = vcombine.low %v16711_v2, %v16715_v3  ;;  %v16972_v36 = vcombine.low %v16712_v7, %v16716_v8  ;;  %v16981_v14 = vcombine.high %v16720_v34, %v16724_v30  ;;  %v16767_v3 = vld [vmem:[%s21990_s19 + $0xfd0] sm:$0xff]  ;;  %v16768_v8 = vld [vmem:[%s21990_s19 + $0xfd8] sm:$0xff] }
 0x63a   : > { %5761 = vmatprep.subr.bf16.mxu1 %v16925_v13  ;;  %v16979_v13 = vcombine.high %v16719_v28, %v16723_v33  ;;  %v16771_v7 = vld [vmem:[%s21990_s19 + $0xff0] sm:$0xff] }
 0x63c   : > { %5680 = vmatpush1.bf16.msra.mxu0 %v16922_v25  ;;  %v16732_v25 = vld [vmem:[%s21990_s19 + $0xeb8] sm:$0xff] }
 0x63d   : > { %5762 = vmatpush1.bf16.msra.mxu1 %v16924_v37  ;;  %5681 = vmatprep.subr.bf16.mxu0 %v16931_v15  ;;  %v16978_v37 = vcombine.low %v16719_v28, %v16723_v33  ;;  %v16980_v15 = vcombine.low %v16720_v34, %v16724_v30  ;;  %v16989_v38 = vcombine.high %v16728_v6, %v16732_v25  ;;  %v20356_v30 = vld [vmem:[%s21998_s14 + $0x404] ss:$16 sps:$4 sm:$0xff]  }
 0x63e   : > { %5763 = vmatprep.subr.bf16.mxu1 %v16933_v24  ;;  %v16987_v24 = vcombine.high %v16727_v26, %v16731_v23  ;;  %v17026_v33 = vcombine.low %v16767_v3, %v16771_v7 }
 0x640   : > { %5682 = vmatpush1.bf16.msra.mxu0 %v16930_v49  ;;  %v16740_v49 = vld [vmem:[%s21990_s19 + $0xef8] sm:$0xff] }
 0x641   : > { %5764 = vmatpush1.bf16.msra.mxu1 %v16932_v42  ;;  %5683 = vmatprep.subr.bf16.mxu0 %v16939_v43  ;;  %v16986_v42 = vcombine.low %v16727_v26, %v16731_v23  ;;  %v16988_v43 = vcombine.low %v16728_v6, %v16732_v25  ;;  %v16997_v44 = vcombine.high %v16736_v40, %v16740_v49  ;;  %v20365_v26 = vld [vmem:[%s21998_s14 + $0x42c] ss:$16 sps:$4 sm:$0xff]   ;;  %v20360_v23 = vld [vmem:[%s21998_s14 + $0x420] ss:$16 sps:$4 sm:$0xff]   ;;  %v20363_v6 = vld [vmem:[%s21998_s14 + $0x428] ss:$16 sps:$4 sm:$0xff]  }
 0x642   : > { %5765 = vmatprep.subr.bf16.mxu1 %v16941_v41  ;;  %v16995_v41 = vcombine.high %v16735_v4, %v16739_v39  ;;  %v20368_v25 = vld [vmem:[%s21998_s14 + $0x444] ss:$16 sps:$4 sm:$0xff]  }
 0x644   : > { %5684 = vmatpush1.bf16.msra.mxu0 %v16938_v47  ;;  %v16748_v47 = vld [vmem:[%s21990_s19 + $0xf38] sm:$0xff] }
 0x645   : > { %5766 = vmatpush1.bf16.msra.mxu1 %v16940_v48  ;;  %5685 = vmatprep.subr.bf16.mxu0 %v16947_v19  ;;  %v16994_v48 = vcombine.low %v16735_v4, %v16739_v39  ;;  %v16996_v19 = vcombine.low %v16736_v40, %v16740_v49  ;;  %v17005_v52 = vcombine.high %v16744_v46, %v16748_v47  ;;  %v20372_v4 = vld [vmem:[%s21998_s14 + $0x460] ss:$16 sps:$4 sm:$0xff]   ;;  %v20375_v39 = vld [vmem:[%s21998_s14 + $0x468] ss:$16 sps:$4 sm:$0xff]   ;;  %v20380_v40 = vld [vmem:[%s21998_s14 + $0x484] ss:$16 sps:$4 sm:$0xff]  }
 0x646   : > { %5767 = vmatprep.subr.bf16.mxu1 %v16949_v51  ;;  %v17003_v51 = vcombine.high %v16743_v45, %v16747_v16  ;;  %v20383_v49 = vld [vmem:[%s21998_s14 + $0x48c] ss:$16 sps:$4 sm:$0xff]  }
 0x648   : > { %5686 = vmatpush1.bf16.msra.mxu0 %v16946_v56  ;;  %v16756_v56 = vld [vmem:[%s21990_s19 + $0xf78] sm:$0xff] }
 0x649   : > { %5768 = vmatpush1.bf16.msra.mxu1 %v16948_v57  ;;  %5687 = vmatprep.subr.bf16.mxu0 %v16955_v58  ;;  %v17002_v57 = vcombine.low %v16743_v45, %v16747_v16  ;;  %v17004_v58 = vcombine.low %v16744_v46, %v16748_v47  ;;  %v17013_v60 = vcombine.high %v16752_v27, %v16756_v56  ;;  %v20384_v45 = vld [vmem:[%s21998_s14 + $0x4a0] ss:$16 sps:$4 sm:$0xff]   ;;  %v20387_v16 = vld [vmem:[%s21998_s14 + $0x4a8] ss:$16 sps:$4 sm:$0xff]   ;;  %v20392_v46 = vld [vmem:[%s21998_s14 + $0x4c4] ss:$16 sps:$4 sm:$0xff]  }
 0x64a   : > { %5769 = vmatprep.subr.bf16.mxu1 %v16957_v59  ;;  %v17011_v59 = vcombine.high %v16751_v53, %v16755_v54  ;;  %v20395_v47 = vld [vmem:[%s21998_s14 + $0x4cc] ss:$16 sps:$4 sm:$0xff]  }
 0x64c   : > { %5688 = vmatpush1.bf16.msra.mxu0 %v16954_v0  ;;  %v16764_v0 = vld [vmem:[%s21990_s19 + $0xfb8] sm:$0xff] }
 0x64d   : > { %5770 = vmatpush1.bf16.msra.mxu1 %v16956_v18  ;;  %5689 = vmatprep.subr.bf16.mxu0 %v16963_v1  ;;  %v17010_v18 = vcombine.low %v16751_v53, %v16755_v54  ;;  %v17012_v1 = vcombine.low %v16752_v27, %v16756_v56  ;;  %v17021_v2 = vcombine.high %v16760_v63, %v16764_v0  ;;  %v20396_v53 = vld [vmem:[%s21998_s14 + $0x4e0] ss:$16 sps:$4 sm:$0xff]   ;;  %v20399_v54 = vld [vmem:[%s21998_s14 + $0x4e8] ss:$16 sps:$4 sm:$0xff]   ;;  %v20404_v27 = vld [vmem:[%s21998_s14 + $0x504] ss:$16 sps:$4 sm:$0xff]  }
 0x64e   : > { %5771 = vmatprep.subr.bf16.mxu1 %v16965_v5  ;;  %v17019_v5 = vcombine.high %v16759_v61, %v16763_v62  ;;  %v20407_v56 = vld [vmem:[%s21998_s14 + $0x50c] ss:$16 sps:$4 sm:$0xff]  }
 0x650   : > { %5690 = vmatpush1.bf16.msra.mxu0 %v16962_v9  ;;  %v16772_v9 = vld [vmem:[%s21990_s19 + $0xff8] sm:$0xff] }
 0x651   : > { %5772 = vmatpush1.bf16.msra.mxu1 %v16964_v10  ;;  %5691 = vmatprep.subr.bf16.mxu0 %v16971_v11  ;;  %v17018_v10 = vcombine.low %v16759_v61, %v16763_v62  ;;  %v17020_v11 = vcombine.low %v16760_v63, %v16764_v0  ;;  %v17029_v28 = vcombine.high %v16768_v8, %v16772_v9  ;;  %v20408_v61 = vld [vmem:[%s21998_s14 + $0x520] ss:$16 sps:$4 sm:$0xff]   ;;  %v20411_v62 = vld [vmem:[%s21998_s14 + $0x528] ss:$16 sps:$4 sm:$0xff]   ;;  %v20416_v63 = vld [vmem:[%s21998_s14 + $0x544] ss:$16 sps:$4 sm:$0xff]  }
 0x652   : > { %5773 = vmatprep.subr.bf16.mxu1 %v16973_v12  ;;  %v17027_v12 = vcombine.high %v16767_v3, %v16771_v7  ;;  %v17028_v34 = vcombine.low %v16768_v8, %v16772_v9  ;;  %v20419_v0 = vld [vmem:[%s21998_s14 + $0x54c] ss:$16 sps:$4 sm:$0xff]   ;;  %v20420_v3 = vld [vmem:[%s21998_s14 + $0x560] ss:$16 sps:$4 sm:$0xff]   ;;  %v20423_v7 = vld [vmem:[%s21998_s14 + $0x568] ss:$16 sps:$4 sm:$0xff]  }
 0x653   : > { %v20428_v8 = vld [vmem:[%s21998_s14 + $0x584] ss:$16 sps:$4 sm:$0xff]   ;;  %v20431_v9 = vld [vmem:[%s21998_s14 + $0x58c] ss:$16 sps:$4 sm:$0xff]  }
 0x654   : > { %5692 = vmatpush1.bf16.msra.mxu0 %v16970_v35  ;;  %v20359_v35 = vld [vmem:[%s21998_s14 + $0x40c] ss:$16 sps:$4 sm:$0xff]  }
 0x655   : > { %5774 = vmatpush1.bf16.msra.mxu1 %v16972_v36  ;;  %5693 = vmatprep.subr.bf16.mxu0 %v16979_v13  ;;  %v20354_v36 = vld [vmem:[%s21998_s14 + $0x400] ss:$16 sps:$4 sm:$0xff]   ;;  %v20357_v13 = vld [vmem:[%s21998_s14 + $0x408] ss:$16 sps:$4 sm:$0xff]  }
 0x656   : > { %5775 = vmatprep.subr.bf16.mxu1 %v16981_v14  ;;  %v20362_v14 = vld [vmem:[%s21998_s14 + $0x424] ss:$16 sps:$4 sm:$0xff]  }
 0x658   : > { %5694 = vmatpush1.bf16.msra.mxu0 %v16978_v37  ;;  %v20371_v37 = vld [vmem:[%s21998_s14 + $0x44c] ss:$16 sps:$4 sm:$0xff]  }
 0x659   : > { %5776 = vmatpush1.bf16.msra.mxu1 %v16980_v15  ;;  %5695 = vmatprep.subr.bf16.mxu0 %v16987_v24  ;;  %v20366_v15 = vld [vmem:[%s21998_s14 + $0x440] ss:$16 sps:$4 sm:$0xff]   ;;  %v20369_v24 = vld [vmem:[%s21998_s14 + $0x448] ss:$16 sps:$4 sm:$0xff]  }
 0x65a   : > { %5777 = vmatprep.subr.bf16.mxu1 %v16989_v38  ;;  %v20377_v38 = vld [vmem:[%s21998_s14 + $0x46c] ss:$16 sps:$4 sm:$0xff]  }
 0x65c   : > { %5696 = vmatpush1.bf16.msra.mxu0 %v16986_v42  ;;  %v20378_v42 = vld [vmem:[%s21998_s14 + $0x480] ss:$16 sps:$4 sm:$0xff]  }
 0x65d   : > { %5778 = vmatpush1.bf16.msra.mxu1 %v16988_v43  ;;  %5697 = vmatprep.subr.bf16.mxu0 %v16995_v41  ;;  %v20381_v43 = vld [vmem:[%s21998_s14 + $0x488] ss:$16 sps:$4 sm:$0xff]   ;;  %v20386_v41 = vld [vmem:[%s21998_s14 + $0x4a4] ss:$16 sps:$4 sm:$0xff]  }
 0x65e   : > { %5779 = vmatprep.subr.bf16.mxu1 %v16997_v44  ;;  %v20389_v44 = vld [vmem:[%s21998_s14 + $0x4ac] ss:$16 sps:$4 sm:$0xff]  }
 0x660   : > { %5698 = vmatpush1.bf16.msra.mxu0 %v16994_v48  ;;  %v20390_v48 = vld [vmem:[%s21998_s14 + $0x4c0] ss:$16 sps:$4 sm:$0xff]  }
 0x661   : > { %5780 = vmatpush1.bf16.msra.mxu1 %v16996_v19  ;;  %5699 = vmatprep.subr.bf16.mxu0 %v17003_v51  ;;  %v20393_v19 = vld [vmem:[%s21998_s14 + $0x4c8] ss:$16 sps:$4 sm:$0xff]   ;;  %v20398_v51 = vld [vmem:[%s21998_s14 + $0x4e4] ss:$16 sps:$4 sm:$0xff]  }
 0x662   : > { %5781 = vmatprep.subr.bf16.mxu1 %v17005_v52  ;;  %v20401_v52 = vld [vmem:[%s21998_s14 + $0x4ec] ss:$16 sps:$4 sm:$0xff]  }
 0x664   : > { %5700 = vmatpush1.bf16.msra.mxu0 %v17002_v57  ;;  %v20402_v57 = vld [vmem:[%s21998_s14 + $0x500] ss:$16 sps:$4 sm:$0xff]  }
 0x665   : > { %5782 = vmatpush1.bf16.msra.mxu1 %v17004_v58  ;;  %5701 = vmatprep.subr.bf16.mxu0 %v17011_v59  ;;  %v20405_v58 = vld [vmem:[%s21998_s14 + $0x508] ss:$16 sps:$4 sm:$0xff]   ;;  %v20410_v59 = vld [vmem:[%s21998_s14 + $0x524] ss:$16 sps:$4 sm:$0xff]  }
 0x666   : > { %5783 = vmatprep.subr.bf16.mxu1 %v17013_v60  ;;  %v20413_v60 = vld [vmem:[%s21998_s14 + $0x52c] ss:$16 sps:$4 sm:$0xff]  }
 0x668   : > { %5702 = vmatpush1.bf16.msra.mxu0 %v17010_v18  ;;  %v20414_v18 = vld [vmem:[%s21998_s14 + $0x540] ss:$16 sps:$4 sm:$0xff]  }
 0x669   : > { %5784 = vmatpush1.bf16.msra.mxu1 %v17012_v1  ;;  %5703 = vmatprep.subr.bf16.mxu0 %v17019_v5  ;;  %v20417_v1 = vld [vmem:[%s21998_s14 + $0x548] ss:$16 sps:$4 sm:$0xff]   ;;  %v20422_v5 = vld [vmem:[%s21998_s14 + $0x564] ss:$16 sps:$4 sm:$0xff]  }
 0x66a   : > { %5785 = vmatprep.subr.bf16.mxu1 %v17021_v2  ;;  %v20425_v2 = vld [vmem:[%s21998_s14 + $0x56c] ss:$16 sps:$4 sm:$0xff]  }
 0x66c   : > { %5704 = vmatpush1.bf16.msra.mxu0 %v17018_v10  ;;  %v20426_v10 = vld [vmem:[%s21998_s14 + $0x580] ss:$16 sps:$4 sm:$0xff]  }
 0x66d   : > { %5786 = vmatpush1.bf16.msra.mxu1 %v17020_v11  ;;  %5705 = vmatprep.subr.bf16.mxu0 %v17027_v12  ;;  %v20429_v11 = vld [vmem:[%s21998_s14 + $0x588] ss:$16 sps:$4 sm:$0xff]   ;;  %v20434_v12 = vld [vmem:[%s21998_s14 + $0x5a4] ss:$16 sps:$4 sm:$0xff]  }
 0x66e   : > { %5787 = vmatprep.subr.bf16.mxu1 %v17029_v28  ;;  %v20437_v28 = vld [vmem:[%s21998_s14 + $0x5ac] ss:$16 sps:$4 sm:$0xff]  }
 0x670   : > { %5706 = vmatpush1.bf16.msra.mxu0 %v17026_v33  ;;  %v20432_v33 = vld [vmem:[%s21998_s14 + $0x5a0] ss:$16 sps:$4 sm:$0xff]  }
 0x671   : > { %5788 = vmatpush1.bf16.msra.mxu1 %v17028_v34  ;;  %6618 = vmatprep.subr.bf16.mxu0 %v20356_v30  ;;  %v20435_v34 = vld [vmem:[%s21998_s14 + $0x5a8] ss:$16 sps:$4 sm:$0xff]   ;;  %v20440_v30 = vld [vmem:[%s21998_s14 + $0x5c4] ss:$16 sps:$4 sm:$0xff]  }
 0x672   : > { %6700 = vmatprep.subr.bf16.mxu1 %v20359_v35  ;;  %v20443_v35 = vld [vmem:[%s21998_s14 + $0x5cc] ss:$16 sps:$4 sm:$0xff]  }
 0x673   : > { %5708 = vmatmul.mubr.bf16.vlgmr.msra.gmra.mrb[12].mxu0 %v22670_v50 }
 0x674   : > { %5790 = vmatmul.mubr.bf16.vlgmr.msra.gmra.mrb[12].mxu1 %v22670_v50  ;;  %6619 = vmatpush1.bf16.msra.mxu0 %v20354_v36  ;;  %v20374_v50 = vld [vmem:[%s21998_s14 + $0x464] ss:$16 sps:$4 sm:$0xff]   ;;  %v20438_v36 = vld [vmem:[%s21998_s14 + $0x5c0] ss:$16 sps:$4 sm:$0xff]  }
 0x675   : > { %6701 = vmatpush1.bf16.msra.mxu1 %v20357_v13  ;;  %6620 = vmatprep.subr.bf16.mxu0 %v20362_v14  ;;  %v20441_v13 = vld [vmem:[%s21998_s14 + $0x5c8] ss:$16 sps:$4 sm:$0xff]   ;;  %v20446_v14 = vld [vmem:[%s21998_s14 + $0x5e4] ss:$16 sps:$4 sm:$0xff]  }
 0x676   : > { %6702 = vmatprep.subr.bf16.mxu1 %v20365_v26  ;;  %v20449_v26 = vld [vmem:[%s21998_s14 + $0x5ec] ss:$16 sps:$4 sm:$0xff]  }
 0x678   : > { %6621 = vmatpush1.bf16.msra.mxu0 %v20360_v23  ;;  %v20444_v23 = vld [vmem:[%s21998_s14 + $0x5e0] ss:$16 sps:$4 sm:$0xff]  }
 0x679   : > { %6703 = vmatpush1.bf16.msra.mxu1 %v20363_v6  ;;  %6622 = vmatprep.subr.bf16.mxu0 %v20368_v25  ;;  %v20447_v6 = vld [vmem:[%s21998_s14 + $0x5e8] ss:$16 sps:$4 sm:$0xff]   ;;  %v20452_v25 = vld [vmem:[%s21998_s14 + $0x604] ss:$16 sps:$4 sm:$0xff]  }
 0x67a   : > { %6704 = vmatprep.subr.bf16.mxu1 %v20371_v37  ;;  %v20455_v37 = vld [vmem:[%s21998_s14 + $0x60c] ss:$16 sps:$4 sm:$0xff]  }
 0x67c   : > { %6623 = vmatpush1.bf16.msra.mxu0 %v20366_v15  ;;  %v22869_v15 = vld [vmem:[%s21996_s17 + $0x8] sm:$0xff] }
 0x67d   : > { %6705 = vmatpush1.bf16.msra.mxu1 %v20369_v24  ;;  %6624 = vmatprep.subr.bf16.mxu0 %v20374_v50  ;;  %v4153_v24 = vrot.slane %v22869_v15, %v22372_v20  ;;  %v4157_v50 = vrot.slane %v22869_v15, %v22375_v21 }
 0x67e   : > { %6706 = vmatprep.subr.bf16.mxu1 %v20377_v38  ;;  %v4165_v38 = vrot.slane %v22869_v15, %v22378_v22 }
 0x680   : > { %6625 = vmatpush1.bf16.msra.mxu0 %v20372_v4 }
 0x681   : > { %6707 = vmatpush1.bf16.msra.mxu1 %v20375_v39  ;;  %6626 = vmatprep.subr.bf16.mxu0 %v20380_v40 }
 0x682   : > { %6708 = vmatprep.subr.bf16.mxu1 %v20383_v49 }
 0x684   : > { %6627 = vmatpush1.bf16.msra.mxu0 %v20378_v42 }
 0x685   : > { %6709 = vmatpush1.bf16.msra.mxu1 %v20381_v43  ;;  %6628 = vmatprep.subr.bf16.mxu0 %v20386_v41 }
 0x686   : > { %6710 = vmatprep.subr.bf16.mxu1 %v20389_v44 }
 0x688   : > { %6629 = vmatpush1.bf16.msra.mxu0 %v20384_v45 }
 0x689   : > { %6711 = vmatpush1.bf16.msra.mxu1 %v20387_v16  ;;  %6630 = vmatprep.subr.bf16.mxu0 %v20392_v46 }
 0x68a   : > { %6712 = vmatprep.subr.bf16.mxu1 %v20395_v47 }
 0x68c   : > { %6631 = vmatpush1.bf16.msra.mxu0 %v20390_v48 }
 0x68d   : > { %6713 = vmatpush1.bf16.msra.mxu1 %v20393_v19  ;;  %6632 = vmatprep.subr.bf16.mxu0 %v20398_v51 }
 0x68e   : > { %6714 = vmatprep.subr.bf16.mxu1 %v20401_v52 }
 0x690   : > { %6633 = vmatpush1.bf16.msra.mxu0 %v20396_v53 }
 0x691   : > { %6715 = vmatpush1.bf16.msra.mxu1 %v20399_v54  ;;  %6634 = vmatprep.subr.bf16.mxu0 %v20404_v27 }
 0x692   : > { %6716 = vmatprep.subr.bf16.mxu1 %v20407_v56 }
 0x694   : > { %6635 = vmatpush1.bf16.msra.mxu0 %v20402_v57 }
 0x695   : > { %6717 = vmatpush1.bf16.msra.mxu1 %v20405_v58  ;;  %6636 = vmatprep.subr.bf16.mxu0 %v20410_v59 }
 0x696   : > { %6718 = vmatprep.subr.bf16.mxu1 %v20413_v60 }
 0x698   : > { %6637 = vmatpush1.bf16.msra.mxu0 %v20408_v61 }
 0x699   : > { %6719 = vmatpush1.bf16.msra.mxu1 %v20411_v62  ;;  %6638 = vmatprep.subr.bf16.mxu0 %v20416_v63  ;;  %v20450_v63 = vld [vmem:[%s21998_s14 + $0x600] ss:$16 sps:$4 sm:$0xff]  }
 0x69a   : > { %6720 = vmatprep.subr.bf16.mxu1 %v20419_v0  ;;  %v20453_v0 = vld [vmem:[%s21998_s14 + $0x608] ss:$16 sps:$4 sm:$0xff]  }
 0x69c   : > { %6639 = vmatpush1.bf16.msra.mxu0 %v20414_v18 }
 0x69d   : > { %6721 = vmatpush1.bf16.msra.mxu1 %v20417_v1  ;;  %6640 = vmatprep.subr.bf16.mxu0 %v20422_v5  ;;  %v20458_v5 = vld [vmem:[%s21998_s14 + $0x624] ss:$16 sps:$4 sm:$0xff]  }
 0x69e   : > { %6722 = vmatprep.subr.bf16.mxu1 %v20425_v2  ;;  %v20461_v2 = vld [vmem:[%s21998_s14 + $0x62c] ss:$16 sps:$4 sm:$0xff]  }
 0x6a0   : > { %6641 = vmatpush1.bf16.msra.mxu0 %v20420_v3 }
 0x6a1   : > { %6723 = vmatpush1.bf16.msra.mxu1 %v20423_v7  ;;  %6642 = vmatprep.subr.bf16.mxu0 %v20428_v8  ;;  %v20456_v7 = vld [vmem:[%s21998_s14 + $0x620] ss:$16 sps:$4 sm:$0xff]   ;;  %v20459_v8 = vld [vmem:[%s21998_s14 + $0x628] ss:$16 sps:$4 sm:$0xff]  }
 0x6a2   : > { %6724 = vmatprep.subr.bf16.mxu1 %v20431_v9  ;;  %v20464_v9 = vld [vmem:[%s21998_s14 + $0x644] ss:$16 sps:$4 sm:$0xff]  }
 0x6a4   : > { %6643 = vmatpush1.bf16.msra.mxu0 %v20426_v10  ;;  %v20467_v10 = vld [vmem:[%s21998_s14 + $0x64c] ss:$16 sps:$4 sm:$0xff]  }
 0x6a5   : > { %6725 = vmatpush1.bf16.msra.mxu1 %v20429_v11  ;;  %6644 = vmatprep.subr.bf16.mxu0 %v20434_v12  ;;  %v20462_v11 = vld [vmem:[%s21998_s14 + $0x640] ss:$16 sps:$4 sm:$0xff]   ;;  %v20465_v12 = vld [vmem:[%s21998_s14 + $0x648] ss:$16 sps:$4 sm:$0xff]  }
 0x6a6   : > { %6726 = vmatprep.subr.bf16.mxu1 %v20437_v28  ;;  %v20470_v28 = vld [vmem:[%s21998_s14 + $0x664] ss:$16 sps:$4 sm:$0xff]  }
 0x6a8   : > { %6645 = vmatpush1.bf16.msra.mxu0 %v20432_v33  ;;  %v20473_v33 = vld [vmem:[%s21998_s14 + $0x66c] ss:$16 sps:$4 sm:$0xff]  }
 0x6a9   : > { %6727 = vmatpush1.bf16.msra.mxu1 %v20435_v34  ;;  %6646 = vmatprep.subr.bf16.mxu0 %v20440_v30  ;;  %v20468_v34 = vld [vmem:[%s21998_s14 + $0x660] ss:$16 sps:$4 sm:$0xff]   ;;  %v20471_v30 = vld [vmem:[%s21998_s14 + $0x668] ss:$16 sps:$4 sm:$0xff]  }
 0x6aa   : > { %6728 = vmatprep.subr.bf16.mxu1 %v20443_v35  ;;  %v20476_v35 = vld [vmem:[%s21998_s14 + $0x684] ss:$16 sps:$4 sm:$0xff]  }
 0x6ac   : > { %6647 = vmatpush1.bf16.msra.mxu0 %v20438_v36  ;;  %v20479_v36 = vld [vmem:[%s21998_s14 + $0x68c] ss:$16 sps:$4 sm:$0xff]  }
 0x6ad   : > { %6729 = vmatpush1.bf16.msra.mxu1 %v20441_v13  ;;  %6648 = vmatprep.subr.bf16.mxu0 %v20446_v14  ;;  %v20474_v13 = vld [vmem:[%s21998_s14 + $0x680] ss:$16 sps:$4 sm:$0xff]   ;;  %v20477_v14 = vld [vmem:[%s21998_s14 + $0x688] ss:$16 sps:$4 sm:$0xff]  }
 0x6ae   : > { %6730 = vmatprep.subr.bf16.mxu1 %v20449_v26  ;;  %v20482_v26 = vld [vmem:[%s21998_s14 + $0x6a4] ss:$16 sps:$4 sm:$0xff]  }
 0x6b0   : > { %6649 = vmatpush1.bf16.msra.mxu0 %v20444_v23  ;;  %v20485_v23 = vld [vmem:[%s21998_s14 + $0x6ac] ss:$16 sps:$4 sm:$0xff]  }
 0x6b1   : > { %6731 = vmatpush1.bf16.msra.mxu1 %v20447_v6  ;;  %6659 = vmatprep.subr.bf16.mxu0 %v20452_v25  ;;  %v20480_v6 = vld [vmem:[%s21998_s14 + $0x6a0] ss:$16 sps:$4 sm:$0xff]   ;;  %v20483_v25 = vld [vmem:[%s21998_s14 + $0x6a8] ss:$16 sps:$4 sm:$0xff]  }
 0x6b2   : > { %6741 = vmatprep.subr.bf16.mxu1 %v20455_v37  ;;  %v20488_v37 = vld [vmem:[%s21998_s14 + $0x6c4] ss:$16 sps:$4 sm:$0xff]  }
 0x6c6   : > { %v5545_v4 = vpop.f32.mrb[8].mxu0  ;;  %v22877_v39 = vpop.f32.mrb[8].mxu1 }
 0x6c7   : > { %v19809_v40 = vadd.f32 %v5545_v4, %v4153_v24  ;;  %v5547_v49 = vpop.f32.mrb[9].mxu0  ;;  %v5629_v42 = vpop.f32.mrb[9].mxu1  ;;  %v20491_v24 = vld [vmem:[%s21998_s14 + $0x6cc] ss:$16 sps:$4 sm:$0xff]   ;;  %v20494_v4 = vld [vmem:[%s21998_s14 + $0x6e4] ss:$16 sps:$4 sm:$0xff]  }
 0x6c8   : > { %v19810_v43 = vadd.f32 %v5547_v49, %v4157_v50  ;;  %v19812_v41 = vadd.f32 %v5629_v42, %v4165_v38  ;;  %v5549_v44 = vpop.f32.mrb[10].mxu0  ;;  %v5631_v45 = vpop.f32.mrb[10].mxu1  ;;  %v20486_v50 = vld [vmem:[%s21998_s14 + $0x6c0] ss:$16 sps:$4 sm:$0xff]   ;;  %v20489_v38 = vld [vmem:[%s21998_s14 + $0x6c8] ss:$16 sps:$4 sm:$0xff]  }
 0x6c9   : > { %v5802_v16 = vmin.f32 %v19809_v40, 0.0  ;;  %v5550_v46 = vpop.f32.mrb[11].mxu0  ;;  %v5632_v47 = vpop.f32.mrb[11].mxu1  ;;  %vm5798_vm0 = vcmp.gt.f32.partialorder %v19809_v40, 0.0  ;;  %v20492_v49 = vld [vmem:[%s21998_s14 + $0x6e0] ss:$16 sps:$4 sm:$0xff]  }
 0x6ca   : > { %v5803_v48 = vmin.f32 %v19810_v43, 0.0  ;;  %v5805_v19 = vmin.f32 %v19812_v41, 0.0  ;;  %vm5799_vm1 = vcmp.gt.f32.partialorder %v19810_v43, 0.0  ;;  %vm5801_vm2 = vcmp.gt.f32.partialorder %v19812_v41, 0.0  ;;  %v20495_v42 = vld [vmem:[%s21998_s14 + $0x6e8] ss:$16 sps:$4 sm:$0xff]  }
 0x6cb   : > { %v5806_v51 = vmul.f32 1.442695, %v5802_v16  ;;  %v20503_v44 = vld [vmem:[%s21998_s14 + $0x70c] ss:$16 sps:$4 sm:$0xff]   ;;  %v20498_v45 = vld [vmem:[%s21998_s14 + $0x700] ss:$16 sps:$4 sm:$0xff]  }
 0x6cc   : > { %v5808_v52 = vmul.f32 1.442695, %v5803_v48  ;;  %v5812_v53 = vmul.f32 1.442695, %v5805_v19  ;;  %v20501_v16 = vld [vmem:[%s21998_s14 + $0x708] ss:$16 sps:$4 sm:$0xff]  }
 0x6cd   : > { %21138 = vpow2.f32 %v5806_v51  ;;  %v20506_v47 = vld [vmem:[%s21998_s14 + $0x724] ss:$16 sps:$4 sm:$0xff]   ;;  %v20509_v48 = vld [vmem:[%s21998_s14 + $0x72c] ss:$16 sps:$4 sm:$0xff]   ;;  %v20504_v19 = vld [vmem:[%s21998_s14 + $0x720] ss:$16 sps:$4 sm:$0xff]  }
 0x6ce   : > { %21140 = vpow2.f32 %v5808_v52  ;;  %v20507_v51 = vld [vmem:[%s21998_s14 + $0x728] ss:$16 sps:$4 sm:$0xff]  }
 0x6cf   : > { %21142 = vpow2.f32 %v5812_v53  ;;  %v20515_v53 = vld [vmem:[%s21998_s14 + $0x74c] ss:$16 sps:$4 sm:$0xff]  }
 0x6d7   : > { %v21139_v54 = vpop.eup %21138 }
 0x6d8   : > { %v17030_v27 = vadd.f32 -1.0, %v21139_v54  ;;  %v21141_v56 = vpop.eup %21140  ;;  %v20510_v54 = vld [vmem:[%s21998_s14 + $0x740] ss:$16 sps:$4 sm:$0xff]  }
 0x6d9   : > { %v21143_v57 = vpop.eup %21142  ;;  %v17031_v58 = vadd.f32 -1.0, %v21141_v56 }
 0x6da   : > { %v5818_v59 = vsel %vm5798_vm0, %v19809_v40, %v17030_v27  ;;  %v17033_v60 = vadd.f32 -1.0, %v21143_v57  ;;  %v20497_v40 = vld [vmem:[%s21998_s14 + $0x6ec] ss:$16 sps:$4 sm:$0xff]   ;;  %v20513_v27 = vld [vmem:[%s21998_s14 + $0x748] ss:$16 sps:$4 sm:$0xff]  }
 0x6db   : > { %v5819_v61 = vsel %vm5799_vm1, %v19810_v43, %v17031_v58  ;;  %v5822_v1 = vpack.c.bf16 %v5818_v59, %v5818_v59  ;;  %v4161_v43 = vrot.slane %v22869_v15, %v22415_v17  ;;  %v20518_v57 = vld [vmem:[%s21998_s14 + $0x764] ss:$16 sps:$4 sm:$0xff]   ;;  %v20521_v58 = vld [vmem:[%s21998_s14 + $0x76c] ss:$16 sps:$4 sm:$0xff]   ;;  %v20516_v59 = vld [vmem:[%s21998_s14 + $0x760] ss:$16 sps:$4 sm:$0xff]  }
 0x6dc   : > { %v5823_v62 = vpack.c.bf16 %v5819_v61, %v5819_v61  ;;  %v5821_v18 = vsel %vm5801_vm2, %v19812_v41, %v17033_v60  ;;  %v20500_v41 = vld [vmem:[%s21998_s14 + $0x704] ss:$16 sps:$4 sm:$0xff]   ;;  %v20519_v60 = vld [vmem:[%s21998_s14 + $0x768] ss:$16 sps:$4 sm:$0xff]  }
 0x6dd   : > { %v5825_v3 = vpack.c.bf16 %v5821_v18, %v5821_v18  ;;  %v22916_v46 = vadd.f32 %v22877_v39, %v4161_v43  ;;  %v20512_v39 = vld [vmem:[%s21998_s14 + $0x744] ss:$16 sps:$4 sm:$0xff]  }
 0x6de   : > { %6650 = vmatprep.mubr.bf16.mxu0 %v5823_v62  ;;  %6732 = vmatprep.mubr.bf16.mxu1 %v5823_v62  ;;  %v20524_v61 = vld [vmem:[%s21998_s14 + $0x784] ss:$16 sps:$4 sm:$0xff]   ;;  %v20527_v62 = vld [vmem:[%s21998_s14 + $0x78c] ss:$16 sps:$4 sm:$0xff]  }
 0x6df   : > { %6651 = vmatmul.mubr.bf16.vlgmr.msra.gmra.mrb[12].mxu0 %v5822_v1  ;;  %6733 = vmatmul.mubr.bf16.vlgmr.msra.gmra.mrb[12].mxu1 %v5822_v1  ;;  %v5804_v52 = vmin.f32 %v22916_v46, 0.0  ;;  %v20530_v18 = vld [vmem:[%s21998_s14 + $0x7a4] ss:$16 sps:$4 sm:$0xff]   ;;  %v20533_v1 = vld [vmem:[%s21998_s14 + $0x7ac] ss:$16 sps:$4 sm:$0xff]   ;;  %vm5800_vm3 = vcmp.gt.f32.partialorder %v22916_v46, 0.0 }
 0x6e0   : > { %6660 = vmatpush1.bf16.msra.mxu0 %v20450_v63  ;;  %6742 = vmatpush1.bf16.msra.mxu1 %v20453_v0  ;;  %v20522_v63 = vld [vmem:[%s21998_s14 + $0x780] ss:$16 sps:$4 sm:$0xff]   ;;  %v20525_v0 = vld [vmem:[%s21998_s14 + $0x788] ss:$16 sps:$4 sm:$0xff]  }
 0x6e1   : > { %6691 = vmatprep.mubr.bf16.mxu0 %v5825_v3  ;;  %6773 = vmatprep.mubr.bf16.mxu1 %v5825_v3  ;;  %v5810_v56 = vmul.f32 1.442695, %v5804_v52  ;;  %v20536_v3 = vld [vmem:[%s21998_s14 + $0x7c4] ss:$16 sps:$4 sm:$0xff]   ;;  %v17324_v52 = vld [vmem:[%s21990_s19 + $0x10e8] sm:$0xff] }
 0x6e2   : > { %6661 = vmatprep.subr.bf16.mxu0 %v20458_v5  ;;  %6743 = vmatprep.subr.bf16.mxu1 %v20461_v2  ;;  %v20528_v5 = vld [vmem:[%s21998_s14 + $0x7a0] ss:$16 sps:$4 sm:$0xff]   ;;  %v20531_v2 = vld [vmem:[%s21998_s14 + $0x7a8] ss:$16 sps:$4 sm:$0xff]  }
 0x6e3   : > { %21144 = vpow2.f32 %v5810_v56  ;;  %v17315_v43 = vld [vmem:[%s21990_s19 + $0x10a0] sm:$0xff] }
 0x6e4   : > { %6662 = vmatpush1.bf16.msra.mxu0 %v20456_v7  ;;  %6744 = vmatpush1.bf16.msra.mxu1 %v20459_v8  ;;  %v20539_v7 = vld [vmem:[%s21998_s14 + $0x7cc] ss:$16 sps:$4 sm:$0xff]   ;;  %v17327_v56 = vld [vmem:[%s21990_s19 + $0x1100] sm:$0xff] }
 0x6e5   : > { %6663 = vmatprep.subr.bf16.mxu0 %v20464_v9  ;;  %6745 = vmatprep.subr.bf16.mxu1 %v20467_v10  ;;  %v20534_v9 = vld [vmem:[%s21998_s14 + $0x7c0] ss:$16 sps:$4 sm:$0xff]   ;;  %v20537_v10 = vld [vmem:[%s21998_s14 + $0x7c8] ss:$16 sps:$4 sm:$0xff]  }
 0x6e8   : > { %6664 = vmatpush1.bf16.msra.mxu0 %v20462_v11  ;;  %6746 = vmatpush1.bf16.msra.mxu1 %v20465_v12  ;;  %v20542_v11 = vld [vmem:[%s21998_s14 + $0x7e4] ss:$16 sps:$4 sm:$0xff]   ;;  %v20545_v12 = vld [vmem:[%s21998_s14 + $0x7ec] ss:$16 sps:$4 sm:$0xff]  }
 0x6e9   : > { %6665 = vmatprep.subr.bf16.mxu0 %v20470_v28  ;;  %6747 = vmatprep.subr.bf16.mxu1 %v20473_v33  ;;  %v17295_v28 = vld [vmem:[%s21990_s19 + $0x1000] sm:$0xff] }
 0x6ec   : > { %6666 = vmatpush1.bf16.msra.mxu0 %v20468_v34  ;;  %6748 = vmatpush1.bf16.msra.mxu1 %v20471_v30  ;;  %v17299_v34 = vld [vmem:[%s21990_s19 + $0x1020] sm:$0xff]  ;;  %v17296_v30 = vld [vmem:[%s21990_s19 + $0x1008] sm:$0xff] }
 0x6ed   : > { %6667 = vmatprep.subr.bf16.mxu0 %v20476_v35  ;;  %6749 = vmatprep.subr.bf16.mxu1 %v20479_v36  ;;  %v21145_v8 = vpop.eup %21144  ;;  %v17300_v35 = vld [vmem:[%s21990_s19 + $0x1028] sm:$0xff]  ;;  %v20540_v36 = vld [vmem:[%s21998_s14 + $0x7e0] ss:$16 sps:$4 sm:$0xff]  }
 0x6ee   : > { %v17032_v33 = vadd.f32 -1.0, %v21145_v8 }
 0x6f0   : > { %6668 = vmatpush1.bf16.msra.mxu0 %v20474_v13  ;;  %6750 = vmatpush1.bf16.msra.mxu1 %v20477_v14  ;;  %v20543_v13 = vld [vmem:[%s21998_s14 + $0x7e8] ss:$16 sps:$4 sm:$0xff]   ;;  %v17553_v14 = vcombine.high %v17295_v28, %v17299_v34 }
 0x6f1   : > { %6669 = vmatprep.subr.bf16.mxu0 %v20482_v26  ;;  %6751 = vmatprep.subr.bf16.mxu1 %v20485_v23  ;;  %v17555_v26 = vcombine.high %v17296_v30, %v17300_v35  ;;  %v17303_v23 = vld [vmem:[%s21990_s19 + $0x1040] sm:$0xff] }
 0x6f4   : > { %6670 = vmatpush1.bf16.msra.mxu0 %v20480_v6  ;;  %6752 = vmatpush1.bf16.msra.mxu1 %v20483_v25  ;;  %v5820_v6 = vsel %vm5800_vm3, %v22916_v46, %v17032_v33  ;;  %v17307_v25 = vld [vmem:[%s21990_s19 + $0x1060] sm:$0xff] }
 0x6f5   : > { %6671 = vmatprep.subr.bf16.mxu0 %v20488_v37  ;;  %6753 = vmatprep.subr.bf16.mxu1 %v20491_v24  ;;  %v17304_v37 = vld [vmem:[%s21990_s19 + $0x1048] sm:$0xff] }
 0x6f6   : > { %v17308_v24 = vld [vmem:[%s21990_s19 + $0x1068] sm:$0xff] }
 0x6f8   : > { %6672 = vmatpush1.bf16.msra.mxu0 %v20486_v50  ;;  %6754 = vmatpush1.bf16.msra.mxu1 %v20489_v38  ;;  %v17552_v50 = vcombine.low %v17295_v28, %v17299_v34  ;;  %v17554_v38 = vcombine.low %v17296_v30, %v17300_v35  ;;  %v17351_v35 = vld [vmem:[%s21990_s19 + $0x11c0] sm:$0xff] }
 0x6f9   : > { %6673 = vmatprep.subr.bf16.mxu0 %v20494_v4  ;;  %6755 = vmatprep.subr.bf16.mxu1 %v20497_v40  ;;  %v5824_v4 = vpack.c.bf16 %v5820_v6, %v5820_v6  ;;  %v17561_v40 = vcombine.high %v17303_v23, %v17307_v25 }
 0x6fc   : > { %6674 = vmatpush1.bf16.msra.mxu0 %v20492_v49  ;;  %6756 = vmatpush1.bf16.msra.mxu1 %v20495_v42  ;;  %v17563_v49 = vcombine.high %v17304_v37, %v17308_v24  ;;  %v17311_v42 = vld [vmem:[%s21990_s19 + $0x1080] sm:$0xff] }
 0x6fd   : > { %6675 = vmatprep.subr.bf16.mxu0 %v20500_v41  ;;  %6757 = vmatprep.subr.bf16.mxu1 %v20503_v44  ;;  %v17312_v41 = vld [vmem:[%s21990_s19 + $0x1088] sm:$0xff]  ;;  %v17569_v46 = vcombine.high %v17311_v42, %v17315_v43 }
 0x6fe   : > { %v17316_v44 = vld [vmem:[%s21990_s19 + $0x10a8] sm:$0xff] }
 0x700   : > { %6676 = vmatpush1.bf16.msra.mxu0 %v20498_v45  ;;  %6758 = vmatpush1.bf16.msra.mxu1 %v20501_v16  ;;  %v17560_v45 = vcombine.low %v17303_v23, %v17307_v25  ;;  %v17562_v16 = vcombine.low %v17304_v37, %v17308_v24 }
 0x701   : > { %6677 = vmatprep.subr.bf16.mxu0 %v20506_v47  ;;  %6759 = vmatprep.subr.bf16.mxu1 %v20509_v48  ;;  %v17571_v47 = vcombine.high %v17312_v41, %v17316_v44  ;;  %v17319_v48 = vld [vmem:[%s21990_s19 + $0x10c0] sm:$0xff] }
 0x704   : > { %6678 = vmatpush1.bf16.msra.mxu0 %v20504_v19  ;;  %6760 = vmatpush1.bf16.msra.mxu1 %v20507_v51  ;;  %v17323_v19 = vld [vmem:[%s21990_s19 + $0x10e0] sm:$0xff]  ;;  %v17320_v51 = vld [vmem:[%s21990_s19 + $0x10c8] sm:$0xff] }
 0x705   : > { %6679 = vmatprep.subr.bf16.mxu0 %v20512_v39  ;;  %6761 = vmatprep.subr.bf16.mxu1 %v20515_v53  ;;  %v17568_v39 = vcombine.low %v17311_v42, %v17315_v43  ;;  %v17570_v53 = vcombine.low %v17312_v41, %v17316_v44  ;;  %v17367_v44 = vld [vmem:[%s21990_s19 + $0x1240] sm:$0xff] }
 0x708   : > { %6680 = vmatpush1.bf16.msra.mxu0 %v20510_v54  ;;  %6762 = vmatpush1.bf16.msra.mxu1 %v20513_v27  ;;  %v17577_v54 = vcombine.high %v17319_v48, %v17323_v19  ;;  %v17579_v27 = vcombine.high %v17320_v51, %v17324_v52 }
 0x709   : > { %6681 = vmatprep.subr.bf16.mxu0 %v20518_v57  ;;  %6763 = vmatprep.subr.bf16.mxu1 %v20521_v58  ;;  %v17331_v57 = vld [vmem:[%s21990_s19 + $0x1120] sm:$0xff]  ;;  %v17328_v58 = vld [vmem:[%s21990_s19 + $0x1108] sm:$0xff] }
 0x70c   : > { %6682 = vmatpush1.bf16.msra.mxu0 %v20516_v59  ;;  %6764 = vmatpush1.bf16.msra.mxu1 %v20519_v60  ;;  %v17332_v59 = vld [vmem:[%s21990_s19 + $0x1128] sm:$0xff]  ;;  %v17576_v60 = vcombine.low %v17319_v48, %v17323_v19 }
 0x70d   : > { %6683 = vmatprep.subr.bf16.mxu0 %v20524_v61  ;;  %6765 = vmatprep.subr.bf16.mxu1 %v20527_v62  ;;  %v17578_v61 = vcombine.low %v17320_v51, %v17324_v52  ;;  %v17585_v62 = vcombine.high %v17327_v56, %v17331_v57  ;;  %v17375_v52 = vld [vmem:[%s21990_s19 + $0x1280] sm:$0xff] }
 0x710   : > { %6684 = vmatpush1.bf16.msra.mxu0 %v20522_v63  ;;  %6766 = vmatpush1.bf16.msra.mxu1 %v20525_v0  ;;  %v17587_v63 = vcombine.high %v17328_v58, %v17332_v59  ;;  %v17335_v0 = vld [vmem:[%s21990_s19 + $0x1140] sm:$0xff] }
 0x711   : > { %6685 = vmatprep.subr.bf16.mxu0 %v20530_v18  ;;  %6767 = vmatprep.subr.bf16.mxu1 %v20533_v1  ;;  %v17339_v18 = vld [vmem:[%s21990_s19 + $0x1160] sm:$0xff]  ;;  %v17336_v1 = vld [vmem:[%s21990_s19 + $0x1148] sm:$0xff] }
 0x712   : > { %v17592_v28 = vcombine.low %v17335_v0, %v17339_v18 }
 0x714   : > { %6686 = vmatpush1.bf16.msra.mxu0 %v20528_v5  ;;  %6768 = vmatpush1.bf16.msra.mxu1 %v20531_v2  ;;  %v17340_v5 = vld [vmem:[%s21990_s19 + $0x1168] sm:$0xff]  ;;  %v17584_v2 = vcombine.low %v17327_v56, %v17331_v57 }
 0x715   : > { %6687 = vmatprep.subr.bf16.mxu0 %v20536_v3  ;;  %6769 = vmatprep.subr.bf16.mxu1 %v20539_v7  ;;  %v17586_v3 = vcombine.low %v17328_v58, %v17332_v59  ;;  %v17593_v7 = vcombine.high %v17335_v0, %v17339_v18  ;;  %v17595_v8 = vcombine.high %v17336_v1, %v17340_v5  ;;  %v17383_v59 = vld [vmem:[%s21990_s19 + $0x12c0] sm:$0xff] }
 0x716   : > { %v17594_v33 = vcombine.low %v17336_v1, %v17340_v5  ;;  %v17391_v5 = vld [vmem:[%s21990_s19 + $0x1300] sm:$0xff] }
 0x718   : > { %6688 = vmatpush1.bf16.msra.mxu0 %v20534_v9  ;;  %6770 = vmatpush1.bf16.msra.mxu1 %v20537_v10  ;;  %v17343_v9 = vld [vmem:[%s21990_s19 + $0x1180] sm:$0xff] }
 0x719   : > { %6689 = vmatprep.subr.bf16.mxu0 %v20542_v11  ;;  %6771 = vmatprep.subr.bf16.mxu1 %v20545_v12  ;;  %v17347_v10 = vld [vmem:[%s21990_s19 + $0x11a0] sm:$0xff]  ;;  %v17344_v11 = vld [vmem:[%s21990_s19 + $0x1188] sm:$0xff] }
 0x71a   : > { %v17348_v12 = vld [vmem:[%s21990_s19 + $0x11a8] sm:$0xff]  ;;  %v17601_v34 = vcombine.high %v17343_v9, %v17347_v10 }
 0x71b   : > { %v17603_v30 = vcombine.high %v17344_v11, %v17348_v12  ;;  %v17602_v23 = vcombine.low %v17344_v11, %v17348_v12  ;;  %v17399_v12 = vld [vmem:[%s21990_s19 + $0x1340] sm:$0xff] }
 0x71c   : > { %6690 = vmatpush1.bf16.msra.mxu0 %v20540_v36  ;;  %6772 = vmatpush1.bf16.msra.mxu1 %v20543_v13  ;;  %v17355_v36 = vld [vmem:[%s21990_s19 + $0x11e0] sm:$0xff]  ;;  %v17352_v13 = vld [vmem:[%s21990_s19 + $0x11c8] sm:$0xff] }
 0x71d   : > { %8402 = vmatprep.subr.bf16.mxu0 %v17553_v14  ;;  %8484 = vmatprep.subr.bf16.mxu1 %v17555_v26  ;;  %v17356_v14 = vld [vmem:[%s21990_s19 + $0x11e8] sm:$0xff]  ;;  %v17600_v26 = vcombine.low %v17343_v9, %v17347_v10  ;;  %v17609_v6 = vcombine.high %v17351_v35, %v17355_v36  ;;  %v17608_v37 = vcombine.low %v17351_v35, %v17355_v36 }
 0x71e   : > { %v17611_v25 = vcombine.high %v17352_v13, %v17356_v14  ;;  %v17610_v24 = vcombine.low %v17352_v13, %v17356_v14  ;;  %v17407_v14 = vld [vmem:[%s21990_s19 + $0x1380] sm:$0xff] }
 0x71f   : > { %6692 = vmatmul.mubr.bf16.vlgmr.msra.gmra.mrb[12].mxu0 %v5824_v4  ;;  %6774 = vmatmul.mubr.bf16.vlgmr.msra.gmra.mrb[12].mxu1 %v5824_v4  ;;  %v17360_v4 = vld [vmem:[%s21990_s19 + $0x1208] sm:$0xff] }
 0x720   : > { %8403 = vmatpush1.bf16.msra.mxu0 %v17552_v50  ;;  %8485 = vmatpush1.bf16.msra.mxu1 %v17554_v38  ;;  %v17359_v50 = vld [vmem:[%s21990_s19 + $0x1200] sm:$0xff] }
 0x721   : > { %8404 = vmatprep.subr.bf16.mxu0 %v17561_v40  ;;  %8486 = vmatprep.subr.bf16.mxu1 %v17563_v49  ;;  %v17363_v38 = vld [vmem:[%s21990_s19 + $0x1220] sm:$0xff]  ;;  %v17364_v49 = vld [vmem:[%s21990_s19 + $0x1228] sm:$0xff] }
 0x722   : > { %v17617_v40 = vcombine.high %v17359_v50, %v17363_v38  ;;  %v17616_v42 = vcombine.low %v17359_v50, %v17363_v38  ;;  %v17618_v43 = vcombine.low %v17360_v4, %v17364_v49  ;;  %v17619_v41 = vcombine.high %v17360_v4, %v17364_v49  ;;  %v17415_v38 = vld [vmem:[%s21990_s19 + $0x13c0] sm:$0xff] }
 0x723   : > { %v17419_v4 = vld [vmem:[%s21990_s19 + $0x13e0] sm:$0xff] }
 0x724   : > { %8405 = vmatpush1.bf16.msra.mxu0 %v17560_v45  ;;  %8487 = vmatpush1.bf16.msra.mxu1 %v17562_v16  ;;  %v17371_v45 = vld [vmem:[%s21990_s19 + $0x1260] sm:$0xff]  ;;  %v17368_v16 = vld [vmem:[%s21990_s19 + $0x1248] sm:$0xff]  ;;  %v17673_v49 = vcombine.high %v17415_v38, %v17419_v4 }
 0x725   : > { %8406 = vmatprep.subr.bf16.mxu0 %v17569_v46  ;;  %8488 = vmatprep.subr.bf16.mxu1 %v17571_v47  ;;  %v17625_v46 = vcombine.high %v17367_v44, %v17371_v45  ;;  %v17372_v47 = vld [vmem:[%s21990_s19 + $0x1268] sm:$0xff]  ;;  %v17624_v48 = vcombine.low %v17367_v44, %v17371_v45  ;;  %v23014_v45 = vld [vmem:[%s21990_s19 + $0x1400] sm:$0xff] }
 0x726   : > { %v17626_v19 = vcombine.low %v17368_v16, %v17372_v47  ;;  %v17627_v51 = vcombine.high %v17368_v16, %v17372_v47  ;;  %v23017_v16 = vld [vmem:[%s21990_s19 + $0x1420] sm:$0xff] }
 0x727   : > { %v17681_v47 = vcombine.high %v23014_v45, %v23017_v16 }
 0x728   : > { %8407 = vmatpush1.bf16.msra.mxu0 %v17568_v39  ;;  %8489 = vmatpush1.bf16.msra.mxu1 %v17570_v53  ;;  %v17379_v39 = vld [vmem:[%s21990_s19 + $0x12a0] sm:$0xff]  ;;  %v17376_v53 = vld [vmem:[%s21990_s19 + $0x1288] sm:$0xff] }
 0x729   : > { %8408 = vmatprep.subr.bf16.mxu0 %v17577_v54  ;;  %8490 = vmatprep.subr.bf16.mxu1 %v17579_v27  ;;  %v17633_v54 = vcombine.high %v17375_v52, %v17379_v39  ;;  %v17380_v27 = vld [vmem:[%s21990_s19 + $0x12a8] sm:$0xff]  ;;  %v17632_v56 = vcombine.low %v17375_v52, %v17379_v39 }
 0x72a   : > { %v17634_v57 = vcombine.low %v17376_v53, %v17380_v27  ;;  %v17635_v58 = vcombine.high %v17376_v53, %v17380_v27  ;;  %v23034_v39 = vld [vmem:[%s22004_s30 + $0x4] sm:$0xf]  ;;  %v4169_v53 = vrot.slane %v22869_v15, %v22546_v29  ;;  %v4173_v27 = vrot.slane %v22869_v15, %v22552_v31 }
 0x72c   : > { %8409 = vmatpush1.bf16.msra.mxu0 %v17576_v60  ;;  %8491 = vmatpush1.bf16.msra.mxu1 %v17578_v61  ;;  %v17387_v60 = vld [vmem:[%s21990_s19 + $0x12e0] sm:$0xff]  ;;  %v17384_v61 = vld [vmem:[%s21990_s19 + $0x12c8] sm:$0xff] }
 0x72d   : > { %8410 = vmatprep.subr.bf16.mxu0 %v17585_v62  ;;  %8492 = vmatprep.subr.bf16.mxu1 %v17587_v63  ;;  %v17641_v62 = vcombine.high %v17383_v59, %v17387_v60  ;;  %v17388_v63 = vld [vmem:[%s21990_s19 + $0x12e8] sm:$0xff]  ;;  %v17640_v0 = vcombine.low %v17383_v59, %v17387_v60 }
 0x72e   : > { %v17642_v18 = vcombine.low %v17384_v61, %v17388_v63  ;;  %v17643_v1 = vcombine.high %v17384_v61, %v17388_v63 }
 0x730   : > { %8411 = vmatpush1.bf16.msra.mxu0 %v17584_v2  ;;  %8493 = vmatpush1.bf16.msra.mxu1 %v17586_v3  ;;  %v17395_v2 = vld [vmem:[%s21990_s19 + $0x1320] sm:$0xff]  ;;  %v17392_v3 = vld [vmem:[%s21990_s19 + $0x1308] sm:$0xff] }
 0x731   : > { %8412 = vmatprep.subr.bf16.mxu0 %v17593_v7  ;;  %8494 = vmatprep.subr.bf16.mxu1 %v17595_v8  ;;  %v17649_v7 = vcombine.high %v17391_v5, %v17395_v2  ;;  %v17396_v8 = vld [vmem:[%s21990_s19 + $0x1328] sm:$0xff]  ;;  %v17648_v9 = vcombine.low %v17391_v5, %v17395_v2 }
 0x732   : > { %v17650_v10 = vcombine.low %v17392_v3, %v17396_v8  ;;  %v17651_v11 = vcombine.high %v17392_v3, %v17396_v8 }
 0x734   : > { %8413 = vmatpush1.bf16.msra.mxu0 %v17592_v28  ;;  %8495 = vmatpush1.bf16.msra.mxu1 %v17594_v33  ;;  %v17403_v28 = vld [vmem:[%s21990_s19 + $0x1360] sm:$0xff]  ;;  %v17400_v33 = vld [vmem:[%s21990_s19 + $0x1348] sm:$0xff] }
 0x735   : > { %8414 = vmatprep.subr.bf16.mxu0 %v17601_v34  ;;  %8496 = vmatprep.subr.bf16.mxu1 %v17603_v30  ;;  %v17657_v34 = vcombine.high %v17399_v12, %v17403_v28  ;;  %v17404_v30 = vld [vmem:[%s21990_s19 + $0x1368] sm:$0xff]  ;;  %v17656_v35 = vcombine.low %v17399_v12, %v17403_v28 }
 0x736   : > { %v17658_v36 = vcombine.low %v17400_v33, %v17404_v30  ;;  %v17659_v13 = vcombine.high %v17400_v33, %v17404_v30 }
 0x738   : > { %8415 = vmatpush1.bf16.msra.mxu0 %v17600_v26  ;;  %8497 = vmatpush1.bf16.msra.mxu1 %v17602_v23  ;;  %v17411_v26 = vld [vmem:[%s21990_s19 + $0x13a0] sm:$0xff]  ;;  %v17408_v23 = vld [vmem:[%s21990_s19 + $0x1388] sm:$0xff] }
 0x739   : > { %8416 = vmatprep.subr.bf16.mxu0 %v17609_v6  ;;  %8498 = vmatprep.subr.bf16.mxu1 %v17611_v25  ;;  %v17665_v6 = vcombine.high %v17407_v14, %v17411_v26  ;;  %v17412_v25 = vld [vmem:[%s21990_s19 + $0x13a8] sm:$0xff] }
 0x73a   : > { %v17667_v50 = vcombine.high %v17408_v23, %v17412_v25 }
 0x73c   : > { %8417 = vmatpush1.bf16.msra.mxu0 %v17608_v37  ;;  %8499 = vmatpush1.bf16.msra.mxu1 %v17610_v24  ;;  %v17664_v37 = vcombine.low %v17407_v14, %v17411_v26  ;;  %v17666_v24 = vcombine.low %v17408_v23, %v17412_v25 }
 0x73d   : > { %8418 = vmatprep.subr.bf16.mxu0 %v17617_v40  ;;  %8500 = vmatprep.subr.bf16.mxu1 %v17619_v41  ;;  %v17416_v40 = vld [vmem:[%s21990_s19 + $0x13c8] sm:$0xff] }
 0x740   : > { %8419 = vmatpush1.bf16.msra.mxu0 %v17616_v42  ;;  %8501 = vmatpush1.bf16.msra.mxu1 %v17618_v43  ;;  %v17420_v42 = vld [vmem:[%s21990_s19 + $0x13e8] sm:$0xff]  ;;  %v17672_v43 = vcombine.low %v17415_v38, %v17419_v4 }
 0x741   : > { %8420 = vmatprep.subr.bf16.mxu0 %v17625_v46  ;;  %8502 = vmatprep.subr.bf16.mxu1 %v17627_v51  ;;  %v17674_v41 = vcombine.low %v17416_v40, %v17420_v42  ;;  %v17675_v44 = vcombine.high %v17416_v40, %v17420_v42  ;;  %v23020_v46 = vld [vmem:[%s21990_s19 + $0x1408] sm:$0xff] }
 0x744   : > { %8421 = vmatpush1.bf16.msra.mxu0 %v17624_v48  ;;  %8503 = vmatpush1.bf16.msra.mxu1 %v17626_v19  ;;  %v23025_v48 = vld [vmem:[%s21990_s19 + $0x1428] sm:$0xff]  ;;  %v17680_v19 = vcombine.low %v23014_v45, %v23017_v16  ;;  %v17451_v45 = vld [vmem:[%s21990_s19 + $0x14e0] sm:$0xff] }
 0x745   : > { %8422 = vmatprep.subr.bf16.mxu0 %v17633_v54  ;;  %8504 = vmatprep.subr.bf16.mxu1 %v17635_v58  ;;  %v17682_v51 = vcombine.low %v23020_v46, %v23025_v48  ;;  %v17683_v52 = vcombine.high %v23020_v46, %v23025_v48  ;;  %v5961_v54 = vrot.slane %v23034_v39, %v22372_v20  ;;  %v17448_v16 = vld [vmem:[%s21990_s19 + $0x14c8] sm:$0xff] }
 0x746   : > { %v5973_v58 = vrot.slane %v23034_v39, %v22378_v22 }
 0x747   : > { %v19813_v59 = vadd.f32 %v5961_v54, %v4169_v53 }
 0x748   : > { %8423 = vmatpush1.bf16.msra.mxu0 %v17632_v56  ;;  %8505 = vmatpush1.bf16.msra.mxu1 %v17634_v57  ;;  %v5965_v56 = vrot.slane %v23034_v39, %v22375_v21  ;;  %v4181_v57 = vrot.slane %v22869_v15, %v22555_v32 }
 0x749   : > { %8424 = vmatprep.subr.bf16.mxu0 %v17641_v62  ;;  %8506 = vmatprep.subr.bf16.mxu1 %v17643_v1 }
 0x74a   : > { %v19815_v60 = vadd.f32 %v5965_v56, %v4173_v27  ;;  %v19819_v61 = vadd.f32 %v5973_v58, %v4181_v57  ;;  %v17447_v57 = vld [vmem:[%s21990_s19 + $0x14c0] sm:$0xff] }
 0x74c   : > { %8425 = vmatpush1.bf16.msra.mxu0 %v17640_v0  ;;  %8507 = vmatpush1.bf16.msra.mxu1 %v17642_v18 }
 0x74d   : > { %8426 = vmatprep.subr.bf16.mxu0 %v17649_v7  ;;  %8508 = vmatprep.subr.bf16.mxu1 %v17651_v11 }
 0x750   : > { %8427 = vmatpush1.bf16.msra.mxu0 %v17648_v9  ;;  %8509 = vmatpush1.bf16.msra.mxu1 %v17650_v10 }
 0x751   : > { %8428 = vmatprep.subr.bf16.mxu0 %v17657_v34  ;;  %8510 = vmatprep.subr.bf16.mxu1 %v17659_v13 }
 0x754   : > { %8429 = vmatpush1.bf16.msra.mxu0 %v17656_v35  ;;  %8511 = vmatpush1.bf16.msra.mxu1 %v17658_v36 }
 0x755   : > { %8430 = vmatprep.subr.bf16.mxu0 %v17665_v6  ;;  %8512 = vmatprep.subr.bf16.mxu1 %v17667_v50  ;;  %v17431_v6 = vld [vmem:[%s21990_s19 + $0x1440] sm:$0xff]  ;;  %v17436_v50 = vld [vmem:[%s21990_s19 + $0x1468] sm:$0xff] }
 0x758   : > { %8431 = vmatpush1.bf16.msra.mxu0 %v17664_v37  ;;  %8513 = vmatpush1.bf16.msra.mxu1 %v17666_v24  ;;  %v17435_v37 = vld [vmem:[%s21990_s19 + $0x1460] sm:$0xff]  ;;  %v17432_v24 = vld [vmem:[%s21990_s19 + $0x1448] sm:$0xff] }
 0x759   : > { %8432 = vmatprep.subr.bf16.mxu0 %v17673_v49  ;;  %8514 = vmatprep.subr.bf16.mxu1 %v17675_v44  ;;  %v17439_v49 = vld [vmem:[%s21990_s19 + $0x1480] sm:$0xff]  ;;  %v17689_v42 = vcombine.high %v17431_v6, %v17435_v37  ;;  %v17440_v44 = vld [vmem:[%s21990_s19 + $0x1488] sm:$0xff]  ;;  %v17688_v53 = vcombine.low %v17431_v6, %v17435_v37  ;;  %v17690_v54 = vcombine.low %v17432_v24, %v17436_v50 }
 0x75a   : > { %v17480_v6 = vld [vmem:[%s21990_s19 + $0x15c8] sm:$0xff]  ;;  %v4177_v37 = vrot.slane %v22869_v15, %v22614_v55 }
 0x75c   : > { %8433 = vmatpush1.bf16.msra.mxu0 %v17672_v43  ;;  %8515 = vmatpush1.bf16.msra.mxu1 %v17674_v41  ;;  %v17691_v43 = vcombine.high %v17432_v24, %v17436_v50  ;;  %v17443_v41 = vld [vmem:[%s21990_s19 + $0x14a0] sm:$0xff] }
 0x75d   : > { %8443 = vmatprep.subr.bf16.mxu0 %v17681_v47  ;;  %8525 = vmatprep.subr.bf16.mxu1 %v17683_v52  ;;  %v17444_v47 = vld [vmem:[%s21990_s19 + $0x14a8] sm:$0xff]  ;;  %v17697_v27 = vcombine.high %v17439_v49, %v17443_v41  ;;  %v17696_v46 = vcombine.low %v17439_v49, %v17443_v41  ;;  %v17491_v41 = vld [vmem:[%s21990_s19 + $0x1620] sm:$0xff] }
 0x75e   : > { %v17699_v56 = vcombine.high %v17440_v44, %v17444_v47  ;;  %v17698_v48 = vcombine.low %v17440_v44, %v17444_v47  ;;  %v17488_v44 = vld [vmem:[%s21990_s19 + $0x1608] sm:$0xff] }
 0x75f   : > { %v17492_v47 = vld [vmem:[%s21990_s19 + $0x1628] sm:$0xff] }
 0x7f2   : > { %v6693_v62 = vpop.f32.mrb[12].mxu0  ;;  %v23048_v63 = vpop.f32.mrb[12].mxu1 }
 0x7f3   : > { %v19814_v0 = vadd.f32 %v19813_v59, %v6693_v62  ;;  %v6695_v18 = vpop.f32.mrb[13].mxu0  ;;  %v6777_v1 = vpop.f32.mrb[13].mxu1  ;;  %v17455_v59 = vld [vmem:[%s21990_s19 + $0x1500] sm:$0xff]  ;;  %v17460_v62 = vld [vmem:[%s21990_s19 + $0x1528] sm:$0xff] }
 0x7f4   : > { %v19816_v5 = vadd.f32 %v19815_v60, %v6695_v18  ;;  %v19820_v2 = vadd.f32 %v19819_v61, %v6777_v1  ;;  %v6697_v3 = vpop.f32.mrb[14].mxu0  ;;  %v6779_v7 = vpop.f32.mrb[14].mxu1  ;;  %v17459_v60 = vld [vmem:[%s21990_s19 + $0x1520] sm:$0xff]  ;;  %v17456_v61 = vld [vmem:[%s21990_s19 + $0x1508] sm:$0xff] }
 0x7f5   : > { %v6790_v8 = vmin.f32 %v19814_v0, 0.0  ;;  %v6698_v9 = vpop.f32.mrb[15].mxu0  ;;  %v6780_v10 = vpop.f32.mrb[15].mxu1  ;;  %vm6786_vm4 = vcmp.gt.f32.partialorder %v19814_v0, 0.0  ;;  %v17713_v1 = vcombine.high %v17455_v59, %v17459_v60  ;;  %v17467_v3 = vld [vmem:[%s21990_s19 + $0x1560] sm:$0xff]  ;;  %v17464_v7 = vld [vmem:[%s21990_s19 + $0x1548] sm:$0xff] }
 0x7f6   : > { %v6791_v11 = vmin.f32 %v19816_v5, 0.0  ;;  %v6793_v12 = vmin.f32 %v19820_v2, 0.0  ;;  %vm6787_vm5 = vcmp.gt.f32.partialorder %v19816_v5, 0.0  ;;  %vm6789_vm6 = vcmp.gt.f32.partialorder %v19820_v2, 0.0 }
 0x7f7   : > { %v6794_v28 = vmul.f32 1.442695, %v6790_v8  ;;  %v17468_v8 = vld [vmem:[%s21990_s19 + $0x1568] sm:$0xff]  ;;  %v17712_v9 = vcombine.low %v17455_v59, %v17459_v60  ;;  %v17714_v10 = vcombine.low %v17456_v61, %v17460_v62  ;;  %v17503_v59 = vld [vmem:[%s21990_s19 + $0x1680] sm:$0xff] }
 0x7f8   : > { %v6796_v33 = vmul.f32 1.442695, %v6791_v11  ;;  %v6800_v34 = vmul.f32 1.442695, %v6793_v12  ;;  %v17723_v12 = vcombine.high %v17464_v7, %v17468_v8  ;;  %v17507_v60 = vld [vmem:[%s21990_s19 + $0x16a0] sm:$0xff] }
 0x7f9   : > { %21146 = vpow2.f32 %v6794_v28  ;;  %v17471_v28 = vld [vmem:[%s21990_s19 + $0x1580] sm:$0xff] }
 0x7fa   : > { %21148 = vpow2.f32 %v6796_v33  ;;  %v17475_v33 = vld [vmem:[%s21990_s19 + $0x15a0] sm:$0xff] }
 0x7fb   : > { %21150 = vpow2.f32 %v6800_v34  ;;  %v17472_v34 = vld [vmem:[%s21990_s19 + $0x1588] sm:$0xff]  ;;  %v17728_v24 = vcombine.low %v17471_v28, %v17475_v33 }
 0x803   : > { %v21147_v30 = vpop.eup %21146 }
 0x804   : > { %v17291_v35 = vadd.f32 -1.0, %v21147_v30  ;;  %v21149_v36 = vpop.eup %21148  ;;  %v17476_v30 = vld [vmem:[%s21990_s19 + $0x15a8] sm:$0xff] }
 0x805   : > { %v21151_v13 = vpop.eup %21150  ;;  %v17292_v14 = vadd.f32 -1.0, %v21149_v36  ;;  %v17722_v36 = vcombine.low %v17464_v7, %v17468_v8  ;;  %v17730_v50 = vcombine.low %v17472_v34, %v17476_v30  ;;  %v17512_v7 = vld [vmem:[%s21990_s19 + $0x16c8] sm:$0xff] }
 0x806   : > { %v6806_v26 = vsel %vm6786_vm4, %v19814_v0, %v17291_v35  ;;  %v17294_v23 = vadd.f32 -1.0, %v21151_v13  ;;  %v17704_v0 = vcombine.low %v17447_v57, %v17451_v45  ;;  %v17729_v13 = vcombine.high %v17471_v28, %v17475_v33  ;;  %v17516_v8 = vld [vmem:[%s21990_s19 + $0x16e8] sm:$0xff]  ;;  %v17519_v33 = vld [vmem:[%s21990_s19 + $0x1700] sm:$0xff] }
 0x807   : > { %v6807_v25 = vsel %vm6787_vm5, %v19816_v5, %v17292_v14  ;;  %v23056_v40 = vpack.c.bf16 %v6806_v26, %v6806_v26  ;;  %v17715_v5 = vcombine.high %v17456_v61, %v17460_v62  ;;  %v17731_v14 = vcombine.high %v17472_v34, %v17476_v30  ;;  %v17479_v26 = vld [vmem:[%s21990_s19 + $0x15c0] sm:$0xff]  ;;  %v17504_v61 = vld [vmem:[%s21990_s19 + $0x1688] sm:$0xff] }
 0x808   : > { %v6809_v38 = vsel %vm6789_vm6, %v19820_v2, %v17294_v23  ;;  %v23054_v4 = vpack.c.bf16 %v6807_v25, %v6807_v25  ;;  %v17463_v2 = vld [vmem:[%s21990_s19 + $0x1540] sm:$0xff]  ;;  %v17484_v25 = vld [vmem:[%s21990_s19 + $0x15e8] sm:$0xff]  ;;  %v17771_v28 = vcombine.high %v17512_v7, %v17516_v8 }
 0x809   : > { %v23066_v52 = vpack.c.bf16 %v6809_v38, %v6809_v38  ;;  %v17721_v11 = vcombine.high %v17463_v2, %v17467_v3  ;;  %v17720_v35 = vcombine.low %v17463_v2, %v17467_v3  ;;  %v17483_v23 = vld [vmem:[%s21990_s19 + $0x15e0] sm:$0xff]  ;;  %v5969_v38 = vrot.slane %v23034_v39, %v22415_v17  ;;  %v17508_v62 = vld [vmem:[%s21990_s19 + $0x16a8] sm:$0xff] }
 0x80a   : > { %8434 = vmatprep.mubr.bf16.mxu0 %v23054_v4  ;;  %8516 = vmatprep.mubr.bf16.mxu1 %v23054_v4  ;;  %v17737_v49 = vcombine.high %v17479_v26, %v17483_v23  ;;  %v17736_v15 = vcombine.low %v17479_v26, %v17483_v23  ;;  %v17511_v2 = vld [vmem:[%s21990_s19 + $0x16c0] sm:$0xff]  ;;  %v17520_v30 = vld [vmem:[%s21990_s19 + $0x1708] sm:$0xff] }
 0x80b   : > { %8435 = vmatmul.mubr.bf16.vlgmr.msra.gmra.mrb[16].mxu0 %v23056_v40  ;;  %8517 = vmatmul.mubr.bf16.vlgmr.msra.gmra.mrb[16].mxu1 %v23056_v40  ;;  %v17515_v3 = vld [vmem:[%s21990_s19 + $0x16e0] sm:$0xff] }
 0x80c   : > { %8444 = vmatpush1.bf16.msra.mxu0 %v17680_v19  ;;  %8526 = vmatpush1.bf16.msra.mxu1 %v17682_v51  ;;  %v17452_v19 = vld [vmem:[%s21990_s19 + $0x14e8] sm:$0xff]  ;;  %v17705_v51 = vcombine.high %v17447_v57, %v17451_v45  ;;  %v17499_v57 = vld [vmem:[%s21990_s19 + $0x1660] sm:$0xff] }
 0x80d   : > { %8475 = vmatprep.mubr.bf16.mxu0 %v23066_v52  ;;  %8557 = vmatprep.mubr.bf16.mxu1 %v23066_v52  ;;  %v17707_v58 = vcombine.high %v17448_v16, %v17452_v19  ;;  %v17706_v18 = vcombine.low %v17448_v16, %v17452_v19  ;;  %v17496_v45 = vld [vmem:[%s21990_s19 + $0x1648] sm:$0xff]  ;;  %v17523_v34 = vld [vmem:[%s21990_s19 + $0x1720] sm:$0xff] }
 0x80e   : > { %8445 = vmatprep.subr.bf16.mxu0 %v17689_v42  ;;  %8527 = vmatprep.subr.bf16.mxu1 %v17691_v43  ;;  %v17739_v42 = vcombine.high %v17480_v6, %v17484_v25  ;;  %v17487_v43 = vld [vmem:[%s21990_s19 + $0x1600] sm:$0xff]  ;;  %v17500_v16 = vld [vmem:[%s21990_s19 + $0x1668] sm:$0xff] }
 0x80f   : > { %v17745_v39 = vcombine.high %v17487_v43, %v17491_v41  ;;  %v17744_v19 = vcombine.low %v17487_v43, %v17491_v41  ;;  %v17527_v23 = vld [vmem:[%s21990_s19 + $0x1740] sm:$0xff]  ;;  %v17536_v41 = vld [vmem:[%s21990_s19 + $0x1788] sm:$0xff] }
 0x810   : > { %8446 = vmatpush1.bf16.msra.mxu0 %v17688_v53  ;;  %8528 = vmatpush1.bf16.msra.mxu1 %v17690_v54  ;;  %v17738_v53 = vcombine.low %v17480_v6, %v17484_v25  ;;  %v19817_v54 = vadd.f32 %v5969_v38, %v4177_v37  ;;  %v17531_v6 = vld [vmem:[%s21990_s19 + $0x1760] sm:$0xff]  ;;  %v17528_v25 = vld [vmem:[%s21990_s19 + $0x1748] sm:$0xff] }
 0x811   : > { %8447 = vmatprep.subr.bf16.mxu0 %v17697_v27  ;;  %8529 = vmatprep.subr.bf16.mxu1 %v17699_v56  ;;  %v17747_v27 = vcombine.high %v17488_v44, %v17492_v47  ;;  %v17495_v56 = vld [vmem:[%s21990_s19 + $0x1640] sm:$0xff]  ;;  %v17532_v37 = vld [vmem:[%s21990_s19 + $0x1768] sm:$0xff]  ;;  %v17785_v38 = vcombine.high %v17527_v23, %v17531_v6 }
 0x812   : > { %v17539_v43 = vld [vmem:[%s21990_s19 + $0x17a0] sm:$0xff] }
 0x814   : > { %8448 = vmatpush1.bf16.msra.mxu0 %v17696_v46  ;;  %8530 = vmatpush1.bf16.msra.mxu1 %v17698_v48  ;;  %v17746_v46 = vcombine.low %v17488_v44, %v17492_v47  ;;  %v23109_v48 = vadd.f32 %v19817_v54, %v23048_v63  ;;  %v17761_v63 = vcombine.high %v17503_v59, %v17507_v60  ;;  %v17540_v44 = vld [vmem:[%s21990_s19 + $0x17a8] sm:$0xff] }
 0x815   : > { %8449 = vmatprep.subr.bf16.mxu0 %v17705_v51  ;;  %8531 = vmatprep.subr.bf16.mxu1 %v17707_v58  ;;  %v17753_v51 = vcombine.high %v17495_v56, %v17499_v57  ;;  %v17755_v58 = vcombine.high %v17496_v45, %v17500_v16  ;;  %v17784_v47 = vcombine.low %v17527_v23, %v17531_v6  ;;  %v17325_v23 = vld [vmem:[%s21990_s19 + $0x10f0] sm:$0xff]  ;;  %v17322_v6 = vld [vmem:[%s21990_s19 + $0x10d8] sm:$0xff] }
 0x816   : > { %v17795_v54 = vcombine.high %v17536_v41, %v17540_v44  ;;  %vm6788_vm7 = vcmp.gt.f32.partialorder %v23109_v48, 0.0 }
 0x818   : > { %8450 = vmatpush1.bf16.msra.mxu0 %v17704_v0  ;;  %8532 = vmatpush1.bf16.msra.mxu1 %v17706_v18  ;;  %v17752_v0 = vcombine.low %v17495_v56, %v17499_v57  ;;  %v17754_v18 = vcombine.low %v17496_v45, %v17500_v16  ;;  %v17544_v56 = vld [vmem:[%s21990_s19 + $0x17c8] sm:$0xff] }
 0x819   : > { %8451 = vmatprep.subr.bf16.mxu0 %v17713_v1  ;;  %8533 = vmatprep.subr.bf16.mxu1 %v17715_v5  ;;  %v6792_v1 = vmin.f32 %v23109_v48, 0.0  ;;  %v17763_v5 = vcombine.high %v17504_v61, %v17508_v62  ;;  %v17548_v57 = vld [vmem:[%s21990_s19 + $0x17e8] sm:$0xff] }
 0x81c   : > { %8452 = vmatpush1.bf16.msra.mxu0 %v17712_v9  ;;  %8534 = vmatpush1.bf16.msra.mxu1 %v17714_v10  ;;  %v17760_v9 = vcombine.low %v17503_v59, %v17507_v60  ;;  %v17762_v10 = vcombine.low %v17504_v61, %v17508_v62  ;;  %v17301_v60 = vld [vmem:[%s21990_s19 + $0x1030] sm:$0xff]  ;;  %v17298_v61 = vld [vmem:[%s21990_s19 + $0x1018] sm:$0xff] }
 0x81d   : > { %8453 = vmatprep.subr.bf16.mxu0 %v17721_v11  ;;  %8535 = vmatprep.subr.bf16.mxu1 %v17723_v12  ;;  %v6798_v11 = vmul.f32 1.442695, %v6792_v1  ;;  %v17769_v12 = vcombine.high %v17511_v2, %v17515_v3  ;;  %v17302_v62 = vld [vmem:[%s21990_s19 + $0x1038] sm:$0xff] }
 0x81f   : > { %21152 = vpow2.f32 %v6798_v11  ;;  %v17558_v11 = vcombine.low %v17298_v61, %v17302_v62 }
 0x820   : > { %8454 = vmatpush1.bf16.msra.mxu0 %v17720_v35  ;;  %8536 = vmatpush1.bf16.msra.mxu1 %v17722_v36  ;;  %v17524_v35 = vld [vmem:[%s21990_s19 + $0x1728] sm:$0xff]  ;;  %v17768_v36 = vcombine.low %v17511_v2, %v17515_v3  ;;  %v17305_v2 = vld [vmem:[%s21990_s19 + $0x1050] sm:$0xff] }
 0x821   : > { %8455 = vmatprep.subr.bf16.mxu0 %v17729_v13  ;;  %8537 = vmatprep.subr.bf16.mxu1 %v17731_v14  ;;  %v17770_v13 = vcombine.low %v17512_v7, %v17516_v8  ;;  %v17777_v14 = vcombine.high %v17519_v33, %v17523_v34  ;;  %v17779_v26 = vcombine.high %v17520_v30, %v17524_v35  ;;  %v17309_v3 = vld [vmem:[%s21990_s19 + $0x1070] sm:$0xff]  ;;  %v17306_v7 = vld [vmem:[%s21990_s19 + $0x1058] sm:$0xff] }
 0x822   : > { %v17310_v8 = vld [vmem:[%s21990_s19 + $0x1078] sm:$0xff] }
 0x824   : > { %8456 = vmatpush1.bf16.msra.mxu0 %v17728_v24  ;;  %8538 = vmatpush1.bf16.msra.mxu1 %v17730_v50  ;;  %v17776_v24 = vcombine.low %v17519_v33, %v17523_v34  ;;  %v17778_v50 = vcombine.low %v17520_v30, %v17524_v35  ;;  %v17313_v33 = vld [vmem:[%s21990_s19 + $0x1090] sm:$0xff]  ;;  %v17318_v30 = vld [vmem:[%s21990_s19 + $0x10b8] sm:$0xff]  ;;  %v17564_v35 = vcombine.low %v17305_v2, %v17309_v3 }
 0x825   : > { %8457 = vmatprep.subr.bf16.mxu0 %v17737_v49  ;;  %8539 = vmatprep.subr.bf16.mxu1 %v17739_v42  ;;  %v17787_v49 = vcombine.high %v17528_v25, %v17532_v37  ;;  %v17535_v42 = vld [vmem:[%s21990_s19 + $0x1780] sm:$0xff]  ;;  %v17317_v34 = vld [vmem:[%s21990_s19 + $0x10b0] sm:$0xff] }
 0x826   : > { %v17792_v16 = vcombine.low %v17535_v42, %v17539_v43 }
 0x828   : > { %8458 = vmatpush1.bf16.msra.mxu0 %v17736_v15  ;;  %8540 = vmatpush1.bf16.msra.mxu1 %v17738_v53  ;;  %v17786_v15 = vcombine.low %v17528_v25, %v17532_v37  ;;  %v17793_v53 = vcombine.high %v17535_v42, %v17539_v43  ;;  %v17326_v25 = vld [vmem:[%s21990_s19 + $0x10f8] sm:$0xff]  ;;  %v17572_v37 = vcombine.low %v17313_v33, %v17317_v34 }
 0x829   : > { %8459 = vmatprep.subr.bf16.mxu0 %v17745_v39  ;;  %8541 = vmatprep.subr.bf16.mxu1 %v17747_v27  ;;  %v17543_v39 = vld [vmem:[%s21990_s19 + $0x17c0] sm:$0xff]  ;;  %v21153_v45 = vpop.eup %21152  ;;  %v17330_v42 = vld [vmem:[%s21990_s19 + $0x1118] sm:$0xff] }
 0x82a   : > { %v17547_v27 = vld [vmem:[%s21990_s19 + $0x17e0] sm:$0xff]  ;;  %v17293_v59 = vadd.f32 -1.0, %v21153_v45  ;;  %v17334_v43 = vld [vmem:[%s21990_s19 + $0x1138] sm:$0xff] }
 0x82c   : > { %8460 = vmatpush1.bf16.msra.mxu0 %v17744_v19  ;;  %8542 = vmatpush1.bf16.msra.mxu1 %v17746_v46  ;;  %v17794_v19 = vcombine.low %v17536_v41, %v17540_v44  ;;  %v17801_v46 = vcombine.high %v17543_v39, %v17547_v27  ;;  %v17582_v44 = vcombine.low %v17322_v6, %v17326_v25 }
 0x82d   : > { %8461 = vmatprep.subr.bf16.mxu0 %v17753_v51  ;;  %8543 = vmatprep.subr.bf16.mxu1 %v17755_v58  ;;  %v17803_v51 = vcombine.high %v17544_v56, %v17548_v57  ;;  %v17297_v58 = vld [vmem:[%s21990_s19 + $0x1010] sm:$0xff] }
 0x82e   : > { %v17557_v1 = vcombine.high %v17297_v58, %v17301_v60 }
 0x830   : > { %8462 = vmatpush1.bf16.msra.mxu0 %v17752_v0  ;;  %8544 = vmatpush1.bf16.msra.mxu1 %v17754_v18  ;;  %v17800_v0 = vcombine.low %v17543_v39, %v17547_v27  ;;  %v17802_v18 = vcombine.low %v17544_v56, %v17548_v57  ;;  %v17338_v39 = vld [vmem:[%s21990_s19 + $0x1158] sm:$0xff]  ;;  %v17590_v57 = vcombine.low %v17330_v42, %v17334_v43 }
 0x831   : > { %8463 = vmatprep.subr.bf16.mxu0 %v17761_v63  ;;  %8545 = vmatprep.subr.bf16.mxu1 %v17763_v5  ;;  %v17559_v63 = vcombine.high %v17298_v61, %v17302_v62  ;;  %v6808_v5 = vsel %vm6788_vm7, %v23109_v48, %v17293_v59  ;;  %v17314_v48 = vld [vmem:[%s21990_s19 + $0x1098] sm:$0xff] }
 0x832   : > { %v17342_v27 = vld [vmem:[%s21990_s19 + $0x1178] sm:$0xff] }
 0x834   : > { %8464 = vmatpush1.bf16.msra.mxu0 %v17760_v9  ;;  %8546 = vmatpush1.bf16.msra.mxu1 %v17762_v10  ;;  %v17556_v9 = vcombine.low %v17297_v58, %v17301_v60  ;;  %v23146_v10 = vpack.c.bf16 %v6808_v5, %v6808_v5  ;;  %v17350_v58 = vld [vmem:[%s21990_s19 + $0x11b8] sm:$0xff]  ;;  %v17598_v60 = vcombine.low %v17338_v39, %v17342_v27 }
 0x835   : > { %8465 = vmatprep.subr.bf16.mxu0 %v17769_v12  ;;  %8547 = vmatprep.subr.bf16.mxu1 %v17771_v28  ;;  %v17565_v12 = vcombine.high %v17305_v2, %v17309_v3  ;;  %v17567_v28 = vcombine.high %v17306_v7, %v17310_v8 }
 0x838   : > { %8466 = vmatpush1.bf16.msra.mxu0 %v17768_v36  ;;  %8548 = vmatpush1.bf16.msra.mxu1 %v17770_v13  ;;  %v17566_v36 = vcombine.low %v17306_v7, %v17310_v8  ;;  %v17573_v13 = vcombine.high %v17313_v33, %v17317_v34  ;;  %v17361_v8 = vld [vmem:[%s21990_s19 + $0x1210] sm:$0xff] }
 0x839   : > { %8467 = vmatprep.subr.bf16.mxu0 %v17777_v14  ;;  %8549 = vmatprep.subr.bf16.mxu1 %v17779_v26  ;;  %v17575_v14 = vcombine.high %v17314_v48, %v17318_v30  ;;  %v17321_v26 = vld [vmem:[%s21990_s19 + $0x10d0] sm:$0xff] }
 0x83a   : > { %v17580_v41 = vcombine.low %v17321_v26, %v17325_v23 }
 0x83c   : > { %8468 = vmatpush1.bf16.msra.mxu0 %v17776_v24  ;;  %8550 = vmatpush1.bf16.msra.mxu1 %v17778_v50  ;;  %v17574_v24 = vcombine.low %v17314_v48, %v17318_v30  ;;  %v17583_v50 = vcombine.high %v17322_v6, %v17326_v25  ;;  %v17369_v30 = vld [vmem:[%s21990_s19 + $0x1250] sm:$0xff] }
 0x83d   : > { %8469 = vmatprep.subr.bf16.mxu0 %v17785_v38  ;;  %8551 = vmatprep.subr.bf16.mxu1 %v17787_v49  ;;  %v17329_v38 = vld [vmem:[%s21990_s19 + $0x1110] sm:$0xff] }
 0x83e   : > { %v17333_v49 = vld [vmem:[%s21990_s19 + $0x1130] sm:$0xff] }
 0x83f   : > { %v17588_v56 = vcombine.low %v17329_v38, %v17333_v49  ;;  %v17377_v25 = vld [vmem:[%s21990_s19 + $0x1290] sm:$0xff] }
 0x840   : > { %8470 = vmatpush1.bf16.msra.mxu0 %v17784_v47  ;;  %8552 = vmatpush1.bf16.msra.mxu1 %v17786_v15  ;;  %v17589_v47 = vcombine.high %v17329_v38, %v17333_v49  ;;  %v17591_v15 = vcombine.high %v17330_v42, %v17334_v43  ;;  %v17385_v43 = vld [vmem:[%s21990_s19 + $0x12d0] sm:$0xff] }
 0x841   : > { %8471 = vmatprep.subr.bf16.mxu0 %v17793_v53  ;;  %8553 = vmatprep.subr.bf16.mxu1 %v17795_v54  ;;  %v17337_v53 = vld [vmem:[%s21990_s19 + $0x1150] sm:$0xff] }
 0x842   : > { %v17341_v54 = vld [vmem:[%s21990_s19 + $0x1170] sm:$0xff] }
 0x843   : > { %v17597_v45 = vcombine.high %v17337_v53, %v17341_v54  ;;  %v17596_v59 = vcombine.low %v17337_v53, %v17341_v54 }
 0x844   : > { %8472 = vmatpush1.bf16.msra.mxu0 %v17792_v16  ;;  %8554 = vmatpush1.bf16.msra.mxu1 %v17794_v19  ;;  %v17599_v16 = vcombine.high %v17338_v39, %v17342_v27  ;;  %v17345_v19 = vld [vmem:[%s21990_s19 + $0x1190] sm:$0xff] }
 0x845   : > { %8473 = vmatprep.subr.bf16.mxu0 %v17801_v46  ;;  %8555 = vmatprep.subr.bf16.mxu1 %v17803_v51  ;;  %v17349_v46 = vld [vmem:[%s21990_s19 + $0x11b0] sm:$0xff]  ;;  %v17346_v51 = vld [vmem:[%s21990_s19 + $0x1198] sm:$0xff] }
 0x846   : > { %v17605_v61 = vcombine.high %v17345_v19, %v17349_v46  ;;  %v17607_v62 = vcombine.high %v17346_v51, %v17350_v58  ;;  %v17604_v5 = vcombine.low %v17345_v19, %v17349_v46  ;;  %v17606_v2 = vcombine.low %v17346_v51, %v17350_v58  ;;  %v17393_v27 = vld [vmem:[%s21990_s19 + $0x1310] sm:$0xff] }
 0x847   : > { %v17401_v58 = vld [vmem:[%s21990_s19 + $0x1350] sm:$0xff] }
 0x848   : > { %8474 = vmatpush1.bf16.msra.mxu0 %v17800_v0  ;;  %8556 = vmatpush1.bf16.msra.mxu1 %v17802_v18  ;;  %v17353_v0 = vld [vmem:[%s21990_s19 + $0x11d0] sm:$0xff] }
 0x849   : > { %8566 = vmatprep.subr.bf16.mxu0 %v17557_v1  ;;  %8648 = vmatprep.subr.bf16.mxu1 %v17559_v63  ;;  %v17357_v18 = vld [vmem:[%s21990_s19 + $0x11f0] sm:$0xff]  ;;  %v17354_v1 = vld [vmem:[%s21990_s19 + $0x11d8] sm:$0xff] }
 0x84a   : > { %v17358_v63 = vld [vmem:[%s21990_s19 + $0x11f8] sm:$0xff]  ;;  %v17613_v3 = vcombine.high %v17353_v0, %v17357_v18 }
 0x84b   : > { %8476 = vmatmul.mubr.bf16.vlgmr.msra.gmra.mrb[16].mxu0 %v23146_v10  ;;  %8558 = vmatmul.mubr.bf16.vlgmr.msra.gmra.mrb[16].mxu1 %v23146_v10  ;;  %v17615_v7 = vcombine.high %v17354_v1, %v17358_v63  ;;  %v17614_v33 = vcombine.low %v17354_v1, %v17358_v63  ;;  %v17409_v63 = vld [vmem:[%s21990_s19 + $0x1390] sm:$0xff] }
 0x84c   : > { %8567 = vmatpush1.bf16.msra.mxu0 %v17556_v9  ;;  %8598 = vmatprep.mubr.bf16.mxu0 %v23054_v4  ;;  %v17365_v9 = vld [vmem:[%s21990_s19 + $0x1230] sm:$0xff] }
 0x84d   : > { %8649 = vmatpush1.bf16.msra.mxu1 %v17558_v11  ;;  %8680 = vmatprep.mubr.bf16.mxu1 %v23054_v4  ;;  %v17581_v4 = vcombine.high %v17321_v26, %v17325_v23  ;;  %v17362_v11 = vld [vmem:[%s21990_s19 + $0x1218] sm:$0xff]  ;;  %v17621_v34 = vcombine.high %v17361_v8, %v17365_v9 }
 0x84e   : > { %8568 = vmatprep.subr.bf16.mxu0 %v17565_v12  ;;  %8650 = vmatprep.subr.bf16.mxu1 %v17567_v28  ;;  %v17366_v12 = vld [vmem:[%s21990_s19 + $0x1238] sm:$0xff]  ;;  %v17612_v28 = vcombine.low %v17353_v0, %v17357_v18 }
 0x84f   : > { %v17623_v48 = vcombine.high %v17362_v11, %v17366_v12  ;;  %v17622_v26 = vcombine.low %v17362_v11, %v17366_v12  ;;  %v17417_v12 = vld [vmem:[%s21990_s19 + $0x13d0] sm:$0xff] }
 0x850   : > { %8569 = vmatpush1.bf16.msra.mxu0 %v17564_v35  ;;  %v17373_v35 = vld [vmem:[%s21990_s19 + $0x1270] sm:$0xff] }
 0x851   : > { %8651 = vmatpush1.bf16.msra.mxu1 %v17566_v36  ;;  %8570 = vmatprep.subr.bf16.mxu0 %v17573_v13  ;;  %v17370_v36 = vld [vmem:[%s21990_s19 + $0x1258] sm:$0xff]  ;;  %v17629_v23 = vcombine.high %v17369_v30, %v17373_v35 }
 0x852   : > { %8652 = vmatprep.subr.bf16.mxu1 %v17575_v14  ;;  %v17374_v13 = vld [vmem:[%s21990_s19 + $0x1278] sm:$0xff]  ;;  %v17620_v14 = vcombine.low %v17361_v8, %v17365_v9 }
 0x853   : > { %v17631_v6 = vcombine.high %v17370_v36, %v17374_v13  ;;  %v17630_v38 = vcombine.low %v17370_v36, %v17374_v13  ;;  %v17425_v13 = vld [vmem:[%s21990_s19 + $0x1410] sm:$0xff] }
 0x854   : > { %8571 = vmatpush1.bf16.msra.mxu0 %v17572_v37  ;;  %v17381_v37 = vld [vmem:[%s21990_s19 + $0x12b0] sm:$0xff] }
 0x855   : > { %8653 = vmatpush1.bf16.msra.mxu1 %v17574_v24  ;;  %8572 = vmatprep.subr.bf16.mxu0 %v17581_v4  ;;  %v17378_v24 = vld [vmem:[%s21990_s19 + $0x1298] sm:$0xff]  ;;  %v17637_v49 = vcombine.high %v17377_v25, %v17381_v37 }
 0x856   : > { %8654 = vmatprep.subr.bf16.mxu1 %v17583_v50  ;;  %v17382_v4 = vld [vmem:[%s21990_s19 + $0x12b8] sm:$0xff]  ;;  %v17628_v50 = vcombine.low %v17369_v30, %v17373_v35 }
 0x857   : > { %v17639_v42 = vcombine.high %v17378_v24, %v17382_v4  ;;  %v17638_v53 = vcombine.low %v17378_v24, %v17382_v4  ;;  %v17433_v4 = vld [vmem:[%s21990_s19 + $0x1450] sm:$0xff] }
 0x858   : > { %8573 = vmatpush1.bf16.msra.mxu0 %v17580_v41  ;;  %v17389_v41 = vld [vmem:[%s21990_s19 + $0x12f0] sm:$0xff] }
 0x859   : > { %8655 = vmatpush1.bf16.msra.mxu1 %v17582_v44  ;;  %8574 = vmatprep.subr.bf16.mxu0 %v17589_v47  ;;  %v17386_v44 = vld [vmem:[%s21990_s19 + $0x12d8] sm:$0xff]  ;;  %v17645_v54 = vcombine.high %v17385_v43, %v17389_v41 }
 0x85a   : > { %8656 = vmatprep.subr.bf16.mxu1 %v17591_v15  ;;  %v17390_v47 = vld [vmem:[%s21990_s19 + $0x12f8] sm:$0xff]  ;;  %v17636_v15 = vcombine.low %v17377_v25, %v17381_v37 }
 0x85b   : > { %v17647_v39 = vcombine.high %v17386_v44, %v17390_v47  ;;  %v17646_v19 = vcombine.low %v17386_v44, %v17390_v47  ;;  %v17441_v44 = vld [vmem:[%s21990_s19 + $0x1490] sm:$0xff] }
 0x85c   : > { %8575 = vmatpush1.bf16.msra.mxu0 %v17588_v56  ;;  %v17397_v56 = vld [vmem:[%s21990_s19 + $0x1330] sm:$0xff] }
 0x85d   : > { %8657 = vmatpush1.bf16.msra.mxu1 %v17590_v57  ;;  %8576 = vmatprep.subr.bf16.mxu0 %v17597_v45  ;;  %v17394_v57 = vld [vmem:[%s21990_s19 + $0x1318] sm:$0xff]  ;;  %v17653_v46 = vcombine.high %v17393_v27, %v17397_v56  ;;  %v17445_v47 = vld [vmem:[%s21990_s19 + $0x14b0] sm:$0xff] }
 0x85e   : > { %8658 = vmatprep.subr.bf16.mxu1 %v17599_v16  ;;  %v17398_v45 = vld [vmem:[%s21990_s19 + $0x1338] sm:$0xff]  ;;  %v17644_v16 = vcombine.low %v17385_v43, %v17389_v41 }
 0x85f   : > { %v17655_v51 = vcombine.high %v17394_v57, %v17398_v45  ;;  %v17654_v0 = vcombine.low %v17394_v57, %v17398_v45  ;;  %v17449_v45 = vld [vmem:[%s21990_s19 + $0x14d0] sm:$0xff] }
 0x860   : > { %8577 = vmatpush1.bf16.msra.mxu0 %v17596_v59  ;;  %v17405_v59 = vld [vmem:[%s21990_s19 + $0x1370] sm:$0xff] }
 0x861   : > { %8659 = vmatpush1.bf16.msra.mxu1 %v17598_v60  ;;  %8578 = vmatprep.subr.bf16.mxu0 %v17605_v61  ;;  %v17402_v60 = vld [vmem:[%s21990_s19 + $0x1358] sm:$0xff]  ;;  %v17661_v18 = vcombine.high %v17401_v58, %v17405_v59 }
 0x862   : > { %8660 = vmatprep.subr.bf16.mxu1 %v17607_v62  ;;  %v17406_v61 = vld [vmem:[%s21990_s19 + $0x1378] sm:$0xff]  ;;  %v17652_v62 = vcombine.low %v17393_v27, %v17397_v56  ;;  %v17701_v56 = vcombine.high %v17441_v44, %v17445_v47 }
 0x863   : > { %v17663_v1 = vcombine.high %v17402_v60, %v17406_v61  ;;  %v17662_v8 = vcombine.low %v17402_v60, %v17406_v61  ;;  %v17461_v60 = vld [vmem:[%s21990_s19 + $0x1530] sm:$0xff]  ;;  %v17458_v61 = vld [vmem:[%s21990_s19 + $0x1518] sm:$0xff] }
 0x864   : > { %8579 = vmatpush1.bf16.msra.mxu0 %v17604_v5  ;;  %v17413_v5 = vld [vmem:[%s21990_s19 + $0x13b0] sm:$0xff] }
 0x865   : > { %8661 = vmatpush1.bf16.msra.mxu1 %v17606_v2  ;;  %8580 = vmatprep.subr.bf16.mxu0 %v17613_v3  ;;  %v17410_v2 = vld [vmem:[%s21990_s19 + $0x1398] sm:$0xff]  ;;  %v17669_v9 = vcombine.high %v17409_v63, %v17413_v5 }
 0x866   : > { %8662 = vmatprep.subr.bf16.mxu1 %v17615_v7  ;;  %v17414_v3 = vld [vmem:[%s21990_s19 + $0x13b8] sm:$0xff]  ;;  %v17660_v7 = vcombine.low %v17401_v58, %v17405_v59  ;;  %v17457_v59 = vld [vmem:[%s21990_s19 + $0x1510] sm:$0xff] }
 0x867   : > { %v17671_v11 = vcombine.high %v17410_v2, %v17414_v3  ;;  %v17670_v30 = vcombine.low %v17410_v2, %v17414_v3  ;;  %v17469_v2 = vld [vmem:[%s21990_s19 + $0x1570] sm:$0xff]  ;;  %v17466_v3 = vld [vmem:[%s21990_s19 + $0x1558] sm:$0xff] }
 0x868   : > { %8581 = vmatpush1.bf16.msra.mxu0 %v17612_v28  ;;  %v17421_v28 = vld [vmem:[%s21990_s19 + $0x13f0] sm:$0xff] }
 0x869   : > { %8663 = vmatpush1.bf16.msra.mxu1 %v17614_v33  ;;  %8582 = vmatprep.subr.bf16.mxu0 %v17621_v34  ;;  %v17418_v33 = vld [vmem:[%s21990_s19 + $0x13d8] sm:$0xff]  ;;  %v17677_v35 = vcombine.high %v17417_v12, %v17421_v28 }
 0x86a   : > { %8664 = vmatprep.subr.bf16.mxu1 %v17623_v48  ;;  %v17422_v34 = vld [vmem:[%s21990_s19 + $0x13f8] sm:$0xff]  ;;  %v17668_v48 = vcombine.low %v17409_v63, %v17413_v5  ;;  %v17465_v5 = vld [vmem:[%s21990_s19 + $0x1550] sm:$0xff] }
 0x86b   : > { %v17679_v36 = vcombine.high %v17418_v33, %v17422_v34  ;;  %v17678_v25 = vcombine.low %v17418_v33, %v17422_v34  ;;  %v17477_v33 = vld [vmem:[%s21990_s19 + $0x15b0] sm:$0xff]  ;;  %v17474_v34 = vld [vmem:[%s21990_s19 + $0x1598] sm:$0xff] }
 0x86c   : > { %8583 = vmatpush1.bf16.msra.mxu0 %v17620_v14  ;;  %v17429_v14 = vld [vmem:[%s21990_s19 + $0x1430] sm:$0xff] }
 0x86d   : > { %8665 = vmatpush1.bf16.msra.mxu1 %v17622_v26  ;;  %8584 = vmatprep.subr.bf16.mxu0 %v17629_v23  ;;  %v17426_v26 = vld [vmem:[%s21990_s19 + $0x1418] sm:$0xff]  ;;  %v17685_v37 = vcombine.high %v17425_v13, %v17429_v14 }
 0x86e   : > { %8666 = vmatprep.subr.bf16.mxu1 %v17631_v6  ;;  %v17430_v23 = vld [vmem:[%s21990_s19 + $0x1438] sm:$0xff]  ;;  %v17676_v6 = vcombine.low %v17417_v12, %v17421_v28  ;;  %v17473_v28 = vld [vmem:[%s21990_s19 + $0x1590] sm:$0xff] }
 0x86f   : > { %v17687_v24 = vcombine.high %v17426_v26, %v17430_v23  ;;  %v17686_v43 = vcombine.low %v17426_v26, %v17430_v23  ;;  %v17485_v26 = vld [vmem:[%s21990_s19 + $0x15f0] sm:$0xff]  ;;  %v17482_v23 = vld [vmem:[%s21990_s19 + $0x15d8] sm:$0xff] }
 0x870   : > { %8585 = vmatpush1.bf16.msra.mxu0 %v17628_v50  ;;  %v17437_v50 = vld [vmem:[%s21990_s19 + $0x1470] sm:$0xff] }
 0x871   : > { %8667 = vmatpush1.bf16.msra.mxu1 %v17630_v38  ;;  %8586 = vmatprep.subr.bf16.mxu0 %v17637_v49  ;;  %v17684_v38 = vcombine.low %v17425_v13, %v17429_v14  ;;  %v17434_v49 = vld [vmem:[%s21990_s19 + $0x1458] sm:$0xff]  ;;  %v17693_v41 = vcombine.high %v17433_v4, %v17437_v50  ;;  %v17481_v14 = vld [vmem:[%s21990_s19 + $0x15d0] sm:$0xff] }
 0x872   : > { %8668 = vmatprep.subr.bf16.mxu1 %v17639_v42  ;;  %v17438_v42 = vld [vmem:[%s21990_s19 + $0x1478] sm:$0xff] }
 0x873   : > { %v17694_v27 = vcombine.low %v17434_v49, %v17438_v42 }
 0x874   : > { %8587 = vmatpush1.bf16.msra.mxu0 %v17636_v15  ;;  %v17695_v15 = vcombine.high %v17434_v49, %v17438_v42  ;;  %v17490_v49 = vld [vmem:[%s21990_s19 + $0x1618] sm:$0xff] }
 0x875   : > { %8669 = vmatpush1.bf16.msra.mxu1 %v17638_v53  ;;  %8588 = vmatprep.subr.bf16.mxu0 %v17645_v54  ;;  %v17442_v53 = vld [vmem:[%s21990_s19 + $0x1498] sm:$0xff] }
 0x876   : > { %8670 = vmatprep.subr.bf16.mxu1 %v17647_v39  ;;  %v17446_v54 = vld [vmem:[%s21990_s19 + $0x14b8] sm:$0xff]  ;;  %v17692_v39 = vcombine.low %v17433_v4, %v17437_v50  ;;  %v17489_v50 = vld [vmem:[%s21990_s19 + $0x1610] sm:$0xff] }
 0x877   : > { %v17703_v57 = vcombine.high %v17442_v53, %v17446_v54  ;;  %v17494_v42 = vld [vmem:[%s21990_s19 + $0x1638] sm:$0xff] }
 0x878   : > { %8589 = vmatpush1.bf16.msra.mxu0 %v17644_v16  ;;  %v17453_v16 = vld [vmem:[%s21990_s19 + $0x14f0] sm:$0xff] }
 0x879   : > { %8671 = vmatpush1.bf16.msra.mxu1 %v17646_v19  ;;  %8590 = vmatprep.subr.bf16.mxu0 %v17653_v46  ;;  %v17450_v19 = vld [vmem:[%s21990_s19 + $0x14d8] sm:$0xff]  ;;  %v17700_v46 = vcombine.low %v17441_v44, %v17445_v47  ;;  %v17709_v58 = vcombine.high %v17449_v45, %v17453_v16  ;;  %v17751_v47 = vcombine.high %v17490_v49, %v17494_v42 }
 0x87a   : > { %8672 = vmatprep.subr.bf16.mxu1 %v17655_v51  ;;  %v17702_v51 = vcombine.low %v17442_v53, %v17446_v54  ;;  %v17501_v53 = vld [vmem:[%s21990_s19 + $0x1670] sm:$0xff]  ;;  %v17498_v54 = vld [vmem:[%s21990_s19 + $0x1658] sm:$0xff] }
 0x87c   : > { %8591 = vmatpush1.bf16.msra.mxu0 %v17652_v62  ;;  %v17462_v62 = vld [vmem:[%s21990_s19 + $0x1538] sm:$0xff] }
 0x87d   : > { %8673 = vmatpush1.bf16.msra.mxu1 %v17654_v0  ;;  %8592 = vmatprep.subr.bf16.mxu0 %v17661_v18  ;;  %v17708_v0 = vcombine.low %v17449_v45, %v17453_v16  ;;  %v17719_v63 = vcombine.high %v17458_v61, %v17462_v62  ;;  %v17505_v16 = vld [vmem:[%s21990_s19 + $0x1690] sm:$0xff] }
 0x87e   : > { %8674 = vmatprep.subr.bf16.mxu1 %v17663_v1  ;;  %v17717_v1 = vcombine.high %v17457_v59, %v17461_v60 }
 0x880   : > { %8593 = vmatpush1.bf16.msra.mxu0 %v17660_v7  ;;  %v17470_v7 = vld [vmem:[%s21990_s19 + $0x1578] sm:$0xff] }
 0x881   : > { %8675 = vmatpush1.bf16.msra.mxu1 %v17662_v8  ;;  %8594 = vmatprep.subr.bf16.mxu0 %v17669_v9  ;;  %v17716_v8 = vcombine.low %v17457_v59, %v17461_v60  ;;  %v17718_v9 = vcombine.low %v17458_v61, %v17462_v62  ;;  %v17727_v12 = vcombine.high %v17466_v3, %v17470_v7  ;;  %v17513_v60 = vld [vmem:[%s21990_s19 + $0x16d0] sm:$0xff]  ;;  %v17514_v62 = vld [vmem:[%s21990_s19 + $0x16d8] sm:$0xff] }
 0x882   : > { %8676 = vmatprep.subr.bf16.mxu1 %v17671_v11  ;;  %v17725_v11 = vcombine.high %v17465_v5, %v17469_v2  ;;  %v17517_v61 = vld [vmem:[%s21990_s19 + $0x16f0] sm:$0xff] }
 0x884   : > { %8595 = vmatpush1.bf16.msra.mxu0 %v17668_v48  ;;  %v17478_v48 = vld [vmem:[%s21990_s19 + $0x15b8] sm:$0xff] }
 0x885   : > { %8677 = vmatpush1.bf16.msra.mxu1 %v17670_v30  ;;  %8596 = vmatprep.subr.bf16.mxu0 %v17677_v35  ;;  %v17724_v30 = vcombine.low %v17465_v5, %v17469_v2  ;;  %v17726_v35 = vcombine.low %v17466_v3, %v17470_v7  ;;  %v17735_v13 = vcombine.high %v17474_v34, %v17478_v48  ;;  %v17521_v2 = vld [vmem:[%s21990_s19 + $0x1710] sm:$0xff]  ;;  %v17522_v7 = vld [vmem:[%s21990_s19 + $0x1718] sm:$0xff] }
 0x886   : > { %8678 = vmatprep.subr.bf16.mxu1 %v17679_v36  ;;  %v17733_v36 = vcombine.high %v17473_v28, %v17477_v33  ;;  %v17525_v3 = vld [vmem:[%s21990_s19 + $0x1730] sm:$0xff] }
 0x888   : > { %8597 = vmatpush1.bf16.msra.mxu0 %v17676_v6  ;;  %v17486_v6 = vld [vmem:[%s21990_s19 + $0x15f8] sm:$0xff] }
 0x889   : > { %8679 = vmatpush1.bf16.msra.mxu1 %v17678_v25  ;;  %8607 = vmatprep.subr.bf16.mxu0 %v17685_v37  ;;  %v17732_v25 = vcombine.low %v17473_v28, %v17477_v33  ;;  %v17734_v37 = vcombine.low %v17474_v34, %v17478_v48  ;;  %v17743_v4 = vcombine.high %v17482_v23, %v17486_v6  ;;  %v17529_v33 = vld [vmem:[%s21990_s19 + $0x1750] sm:$0xff]  ;;  %v17530_v48 = vld [vmem:[%s21990_s19 + $0x1758] sm:$0xff] }
 0x88a   : > { %8689 = vmatprep.subr.bf16.mxu1 %v17687_v24  ;;  %v17741_v24 = vcombine.high %v17481_v14, %v17485_v26  ;;  %v17533_v34 = vld [vmem:[%s21990_s19 + $0x1770] sm:$0xff] }
 0x88b   : > { %8599 = vmatmul.mubr.bf16.vlgmr.msra.gmra.mrb[20].mxu0 %v23056_v40 }
 0x88c   : > { %8681 = vmatmul.mubr.bf16.vlgmr.msra.gmra.mrb[20].mxu1 %v23056_v40  ;;  %8608 = vmatpush1.bf16.msra.mxu0 %v17684_v38  ;;  %v17454_v40 = vld [vmem:[%s21990_s19 + $0x14f8] sm:$0xff]  ;;  %v17493_v38 = vld [vmem:[%s21990_s19 + $0x1630] sm:$0xff] }
 0x88d   : > { %8639 = vmatprep.mubr.bf16.mxu0 %v23066_v52  ;;  %8690 = vmatpush1.bf16.msra.mxu1 %v17686_v43  ;;  %v17710_v18 = vcombine.low %v17450_v19, %v17454_v40  ;;  %v17740_v43 = vcombine.low %v17481_v14, %v17485_v26  ;;  %v17749_v44 = vcombine.high %v17489_v50, %v17493_v38  ;;  %v17537_v26 = vld [vmem:[%s21990_s19 + $0x1790] sm:$0xff] }
 0x88e   : > { %8721 = vmatprep.mubr.bf16.mxu1 %v23066_v52  ;;  %8609 = vmatprep.subr.bf16.mxu0 %v17693_v41  ;;  %v17711_v52 = vcombine.high %v17450_v19, %v17454_v40  ;;  %v17742_v41 = vcombine.low %v17482_v23, %v17486_v6  ;;  %v17509_v19 = vld [vmem:[%s21990_s19 + $0x16b0] sm:$0xff]  ;;  %v17506_v40 = vld [vmem:[%s21990_s19 + $0x1698] sm:$0xff] }
 0x88f   : > { %8691 = vmatprep.subr.bf16.mxu1 %v17695_v15  ;;  %v17497_v15 = vld [vmem:[%s21990_s19 + $0x1650] sm:$0xff]  ;;  %v17538_v6 = vld [vmem:[%s21990_s19 + $0x1798] sm:$0xff] }
 0x890   : > { %8610 = vmatpush1.bf16.msra.mxu0 %v17692_v39  ;;  %v17502_v39 = vld [vmem:[%s21990_s19 + $0x1678] sm:$0xff]  ;;  %v17541_v23 = vld [vmem:[%s21990_s19 + $0x17b0] sm:$0xff] }
 0x891   : > { %8692 = vmatpush1.bf16.msra.mxu1 %v17694_v27  ;;  %8611 = vmatprep.subr.bf16.mxu0 %v17701_v56  ;;  %v17748_v27 = vcombine.low %v17489_v50, %v17493_v38  ;;  %v17750_v56 = vcombine.low %v17490_v49, %v17494_v42  ;;  %v17759_v45 = vcombine.high %v17498_v54, %v17502_v39  ;;  %v17545_v38 = vld [vmem:[%s21990_s19 + $0x17d0] sm:$0xff]  ;;  %v17546_v42 = vld [vmem:[%s21990_s19 + $0x17d8] sm:$0xff] }
 0x892   : > { %8693 = vmatprep.subr.bf16.mxu1 %v17703_v57  ;;  %v17757_v57 = vcombine.high %v17497_v15, %v17501_v53  ;;  %v17549_v49 = vld [vmem:[%s21990_s19 + $0x17f0] sm:$0xff] }
 0x894   : > { %8612 = vmatpush1.bf16.msra.mxu0 %v17700_v46  ;;  %v17510_v46 = vld [vmem:[%s21990_s19 + $0x16b8] sm:$0xff] }
 0x895   : > { %8694 = vmatpush1.bf16.msra.mxu1 %v17702_v51  ;;  %8613 = vmatprep.subr.bf16.mxu0 %v17709_v58  ;;  %v17756_v51 = vcombine.low %v17497_v15, %v17501_v53  ;;  %v17758_v58 = vcombine.low %v17498_v54, %v17502_v39  ;;  %v17767_v59 = vcombine.high %v17506_v40, %v17510_v46  ;;  %v20548_v39 = vld [vmem:[%s21998_s14 + $0x804] ss:$16 sps:$4 sm:$0xff]  }
 0x896   : > { %8695 = vmatprep.subr.bf16.mxu1 %v17711_v52  ;;  %v17765_v52 = vcombine.high %v17505_v16, %v17509_v19  ;;  %v17804_v53 = vcombine.low %v17545_v38, %v17549_v49 }
 0x898   : > { %8614 = vmatpush1.bf16.msra.mxu0 %v17708_v0  ;;  %v17518_v0 = vld [vmem:[%s21990_s19 + $0x16f8] sm:$0xff] }
 0x899   : > { %8696 = vmatpush1.bf16.msra.mxu1 %v17710_v18  ;;  %8615 = vmatprep.subr.bf16.mxu0 %v17717_v1  ;;  %v17764_v18 = vcombine.low %v17505_v16, %v17509_v19  ;;  %v17766_v1 = vcombine.low %v17506_v40, %v17510_v46  ;;  %v17775_v5 = vcombine.high %v17514_v62, %v17518_v0  ;;  %v20557_v16 = vld [vmem:[%s21998_s14 + $0x82c] ss:$16 sps:$4 sm:$0xff]   ;;  %v20552_v19 = vld [vmem:[%s21998_s14 + $0x820] ss:$16 sps:$4 sm:$0xff]   ;;  %v20555_v40 = vld [vmem:[%s21998_s14 + $0x828] ss:$16 sps:$4 sm:$0xff]  }
 0x89a   : > { %8697 = vmatprep.subr.bf16.mxu1 %v17719_v63  ;;  %v17773_v63 = vcombine.high %v17513_v60, %v17517_v61  ;;  %v20560_v46 = vld [vmem:[%s21998_s14 + $0x844] ss:$16 sps:$4 sm:$0xff]  }
 0x89c   : > { %8616 = vmatpush1.bf16.msra.mxu0 %v17716_v8  ;;  %v17526_v8 = vld [vmem:[%s21990_s19 + $0x1738] sm:$0xff] }
 0x89d   : > { %8698 = vmatpush1.bf16.msra.mxu1 %v17718_v9  ;;  %8617 = vmatprep.subr.bf16.mxu0 %v17725_v11  ;;  %v17772_v9 = vcombine.low %v17513_v60, %v17517_v61  ;;  %v17774_v11 = vcombine.low %v17514_v62, %v17518_v0  ;;  %v17783_v28 = vcombine.high %v17522_v7, %v17526_v8  ;;  %v20564_v60 = vld [vmem:[%s21998_s14 + $0x860] ss:$16 sps:$4 sm:$0xff]   ;;  %v20567_v61 = vld [vmem:[%s21998_s14 + $0x868] ss:$16 sps:$4 sm:$0xff]   ;;  %v20572_v62 = vld [vmem:[%s21998_s14 + $0x884] ss:$16 sps:$4 sm:$0xff]  }
 0x89e   : > { %8699 = vmatprep.subr.bf16.mxu1 %v17727_v12  ;;  %v17781_v12 = vcombine.high %v17521_v2, %v17525_v3  ;;  %v20575_v0 = vld [vmem:[%s21998_s14 + $0x88c] ss:$16 sps:$4 sm:$0xff]  }
 0x8a0   : > { %8618 = vmatpush1.bf16.msra.mxu0 %v17724_v30  ;;  %v17534_v30 = vld [vmem:[%s21990_s19 + $0x1778] sm:$0xff] }
 0x8a1   : > { %8700 = vmatpush1.bf16.msra.mxu1 %v17726_v35  ;;  %8619 = vmatprep.subr.bf16.mxu0 %v17733_v36  ;;  %v17780_v35 = vcombine.low %v17521_v2, %v17525_v3  ;;  %v17782_v36 = vcombine.low %v17522_v7, %v17526_v8  ;;  %v17791_v14 = vcombine.high %v17530_v48, %v17534_v30  ;;  %v20576_v2 = vld [vmem:[%s21998_s14 + $0x8a0] ss:$16 sps:$4 sm:$0xff]   ;;  %v20579_v3 = vld [vmem:[%s21998_s14 + $0x8a8] ss:$16 sps:$4 sm:$0xff]   ;;  %v20584_v7 = vld [vmem:[%s21998_s14 + $0x8c4] ss:$16 sps:$4 sm:$0xff]  }
 0x8a2   : > { %8701 = vmatprep.subr.bf16.mxu1 %v17735_v13  ;;  %v17789_v13 = vcombine.high %v17529_v33, %v17533_v34  ;;  %v20587_v8 = vld [vmem:[%s21998_s14 + $0x8cc] ss:$16 sps:$4 sm:$0xff]  }
 0x8a4   : > { %8620 = vmatpush1.bf16.msra.mxu0 %v17732_v25  ;;  %v17542_v25 = vld [vmem:[%s21990_s19 + $0x17b8] sm:$0xff] }
 0x8a5   : > { %8702 = vmatpush1.bf16.msra.mxu1 %v17734_v37  ;;  %8621 = vmatprep.subr.bf16.mxu0 %v17741_v24  ;;  %v17788_v37 = vcombine.low %v17529_v33, %v17533_v34  ;;  %v17790_v24 = vcombine.low %v17530_v48, %v17534_v30  ;;  %v17799_v50 = vcombine.high %v17538_v6, %v17542_v25  ;;  %v20588_v33 = vld [vmem:[%s21998_s14 + $0x8e0] ss:$16 sps:$4 sm:$0xff]   ;;  %v20591_v34 = vld [vmem:[%s21998_s14 + $0x8e8] ss:$16 sps:$4 sm:$0xff]   ;;  %v20596_v48 = vld [vmem:[%s21998_s14 + $0x904] ss:$16 sps:$4 sm:$0xff]  }
 0x8a6   : > { %8703 = vmatprep.subr.bf16.mxu1 %v17743_v4  ;;  %v17797_v4 = vcombine.high %v17537_v26, %v17541_v23  ;;  %v20599_v30 = vld [vmem:[%s21998_s14 + $0x90c] ss:$16 sps:$4 sm:$0xff]  }
 0x8a8   : > { %8622 = vmatpush1.bf16.msra.mxu0 %v17740_v43  ;;  %v17550_v43 = vld [vmem:[%s21990_s19 + $0x17f8] sm:$0xff] }
 0x8a9   : > { %8704 = vmatpush1.bf16.msra.mxu1 %v17742_v41  ;;  %8623 = vmatprep.subr.bf16.mxu0 %v17749_v44  ;;  %v17796_v41 = vcombine.low %v17537_v26, %v17541_v23  ;;  %v17798_v44 = vcombine.low %v17538_v6, %v17542_v25  ;;  %v17807_v15 = vcombine.high %v17546_v42, %v17550_v43  ;;  %v20600_v26 = vld [vmem:[%s21998_s14 + $0x920] ss:$16 sps:$4 sm:$0xff]   ;;  %v20603_v23 = vld [vmem:[%s21998_s14 + $0x928] ss:$16 sps:$4 sm:$0xff]   ;;  %v20608_v6 = vld [vmem:[%s21998_s14 + $0x944] ss:$16 sps:$4 sm:$0xff]  }
 0x8aa   : > { %8705 = vmatprep.subr.bf16.mxu1 %v17751_v47  ;;  %v17805_v47 = vcombine.high %v17545_v38, %v17549_v49  ;;  %v17806_v54 = vcombine.low %v17546_v42, %v17550_v43  ;;  %v20611_v25 = vld [vmem:[%s21998_s14 + $0x94c] ss:$16 sps:$4 sm:$0xff]   ;;  %v20612_v38 = vld [vmem:[%s21998_s14 + $0x960] ss:$16 sps:$4 sm:$0xff]   ;;  %v20615_v49 = vld [vmem:[%s21998_s14 + $0x968] ss:$16 sps:$4 sm:$0xff]  }
 0x8ab   : > { %v20620_v42 = vld [vmem:[%s21998_s14 + $0x984] ss:$16 sps:$4 sm:$0xff]   ;;  %v20623_v43 = vld [vmem:[%s21998_s14 + $0x98c] ss:$16 sps:$4 sm:$0xff]  }
 0x8ac   : > { %8624 = vmatpush1.bf16.msra.mxu0 %v17748_v27  ;;  %v20551_v27 = vld [vmem:[%s21998_s14 + $0x80c] ss:$16 sps:$4 sm:$0xff]  }
 0x8ad   : > { %8706 = vmatpush1.bf16.msra.mxu1 %v17750_v56  ;;  %8625 = vmatprep.subr.bf16.mxu0 %v17757_v57  ;;  %v20546_v56 = vld [vmem:[%s21998_s14 + $0x800] ss:$16 sps:$4 sm:$0xff]   ;;  %v20549_v57 = vld [vmem:[%s21998_s14 + $0x808] ss:$16 sps:$4 sm:$0xff]  }
 0x8ae   : > { %8707 = vmatprep.subr.bf16.mxu1 %v17759_v45  ;;  %v20554_v45 = vld [vmem:[%s21998_s14 + $0x824] ss:$16 sps:$4 sm:$0xff]  }
 0x8b0   : > { %8626 = vmatpush1.bf16.msra.mxu0 %v17756_v51  ;;  %v20563_v51 = vld [vmem:[%s21998_s14 + $0x84c] ss:$16 sps:$4 sm:$0xff]  }
 0x8b1   : > { %8708 = vmatpush1.bf16.msra.mxu1 %v17758_v58  ;;  %8627 = vmatprep.subr.bf16.mxu0 %v17765_v52  ;;  %v20558_v58 = vld [vmem:[%s21998_s14 + $0x840] ss:$16 sps:$4 sm:$0xff]   ;;  %v20561_v52 = vld [vmem:[%s21998_s14 + $0x848] ss:$16 sps:$4 sm:$0xff]  }
 0x8b2   : > { %8709 = vmatprep.subr.bf16.mxu1 %v17767_v59  ;;  %v20569_v59 = vld [vmem:[%s21998_s14 + $0x86c] ss:$16 sps:$4 sm:$0xff]  }
 0x8b4   : > { %8628 = vmatpush1.bf16.msra.mxu0 %v17764_v18  ;;  %v20570_v18 = vld [vmem:[%s21998_s14 + $0x880] ss:$16 sps:$4 sm:$0xff]  }
 0x8b5   : > { %8710 = vmatpush1.bf16.msra.mxu1 %v17766_v1  ;;  %8629 = vmatprep.subr.bf16.mxu0 %v17773_v63  ;;  %v20573_v1 = vld [vmem:[%s21998_s14 + $0x888] ss:$16 sps:$4 sm:$0xff]   ;;  %v20578_v63 = vld [vmem:[%s21998_s14 + $0x8a4] ss:$16 sps:$4 sm:$0xff]  }
 0x8b6   : > { %8711 = vmatprep.subr.bf16.mxu1 %v17775_v5  ;;  %v20581_v5 = vld [vmem:[%s21998_s14 + $0x8ac] ss:$16 sps:$4 sm:$0xff]  }
 0x8b8   : > { %8630 = vmatpush1.bf16.msra.mxu0 %v17772_v9  ;;  %v20582_v9 = vld [vmem:[%s21998_s14 + $0x8c0] ss:$16 sps:$4 sm:$0xff]  }
 0x8b9   : > { %8712 = vmatpush1.bf16.msra.mxu1 %v17774_v11  ;;  %8631 = vmatprep.subr.bf16.mxu0 %v17781_v12  ;;  %v20585_v11 = vld [vmem:[%s21998_s14 + $0x8c8] ss:$16 sps:$4 sm:$0xff]   ;;  %v20590_v12 = vld [vmem:[%s21998_s14 + $0x8e4] ss:$16 sps:$4 sm:$0xff]  }
 0x8ba   : > { %8713 = vmatprep.subr.bf16.mxu1 %v17783_v28  ;;  %v20593_v28 = vld [vmem:[%s21998_s14 + $0x8ec] ss:$16 sps:$4 sm:$0xff]  }
 0x8bc   : > { %8632 = vmatpush1.bf16.msra.mxu0 %v17780_v35  ;;  %v20594_v35 = vld [vmem:[%s21998_s14 + $0x900] ss:$16 sps:$4 sm:$0xff]  }
 0x8bd   : > { %8714 = vmatpush1.bf16.msra.mxu1 %v17782_v36  ;;  %8633 = vmatprep.subr.bf16.mxu0 %v17789_v13  ;;  %v20597_v36 = vld [vmem:[%s21998_s14 + $0x908] ss:$16 sps:$4 sm:$0xff]   ;;  %v20602_v13 = vld [vmem:[%s21998_s14 + $0x924] ss:$16 sps:$4 sm:$0xff]  }
 0x8be   : > { %8715 = vmatprep.subr.bf16.mxu1 %v17791_v14  ;;  %v20605_v14 = vld [vmem:[%s21998_s14 + $0x92c] ss:$16 sps:$4 sm:$0xff]  }
 0x8c0   : > { %8634 = vmatpush1.bf16.msra.mxu0 %v17788_v37  ;;  %v20606_v37 = vld [vmem:[%s21998_s14 + $0x940] ss:$16 sps:$4 sm:$0xff]  }
 0x8c1   : > { %8716 = vmatpush1.bf16.msra.mxu1 %v17790_v24  ;;  %8635 = vmatprep.subr.bf16.mxu0 %v17797_v4  ;;  %v20609_v24 = vld [vmem:[%s21998_s14 + $0x948] ss:$16 sps:$4 sm:$0xff]   ;;  %v20614_v4 = vld [vmem:[%s21998_s14 + $0x964] ss:$16 sps:$4 sm:$0xff]  }
 0x8c2   : > { %8717 = vmatprep.subr.bf16.mxu1 %v17799_v50  ;;  %v20617_v50 = vld [vmem:[%s21998_s14 + $0x96c] ss:$16 sps:$4 sm:$0xff]  }
 0x8c4   : > { %8636 = vmatpush1.bf16.msra.mxu0 %v17796_v41  ;;  %v20618_v41 = vld [vmem:[%s21998_s14 + $0x980] ss:$16 sps:$4 sm:$0xff]  }
 0x8c5   : > { %8718 = vmatpush1.bf16.msra.mxu1 %v17798_v44  ;;  %8637 = vmatprep.subr.bf16.mxu0 %v17805_v47  ;;  %v20621_v44 = vld [vmem:[%s21998_s14 + $0x988] ss:$16 sps:$4 sm:$0xff]   ;;  %v20626_v47 = vld [vmem:[%s21998_s14 + $0x9a4] ss:$16 sps:$4 sm:$0xff]  }
 0x8c6   : > { %8719 = vmatprep.subr.bf16.mxu1 %v17807_v15  ;;  %v20629_v15 = vld [vmem:[%s21998_s14 + $0x9ac] ss:$16 sps:$4 sm:$0xff]  }
 0x8c8   : > { %8638 = vmatpush1.bf16.msra.mxu0 %v17804_v53  ;;  %v20624_v53 = vld [vmem:[%s21998_s14 + $0x9a0] ss:$16 sps:$4 sm:$0xff]  }
 0x8c9   : > { %8720 = vmatpush1.bf16.msra.mxu1 %v17806_v54  ;;  %9550 = vmatprep.subr.bf16.mxu0 %v20548_v39  ;;  %v20627_v54 = vld [vmem:[%s21998_s14 + $0x9a8] ss:$16 sps:$4 sm:$0xff]   ;;  %v20632_v39 = vld [vmem:[%s21998_s14 + $0x9c4] ss:$16 sps:$4 sm:$0xff]  }
 0x8ca   : > { %9632 = vmatprep.subr.bf16.mxu1 %v20551_v27  ;;  %v20635_v27 = vld [vmem:[%s21998_s14 + $0x9cc] ss:$16 sps:$4 sm:$0xff]  }
 0x8cb   : > { %8640 = vmatmul.mubr.bf16.vlgmr.msra.gmra.mrb[20].mxu0 %v23146_v10 }
 0x8cc   : > { %8722 = vmatmul.mubr.bf16.vlgmr.msra.gmra.mrb[20].mxu1 %v23146_v10  ;;  %9551 = vmatpush1.bf16.msra.mxu0 %v20546_v56  ;;  %v20566_v10 = vld [vmem:[%s21998_s14 + $0x864] ss:$16 sps:$4 sm:$0xff]   ;;  %v20630_v56 = vld [vmem:[%s21998_s14 + $0x9c0] ss:$16 sps:$4 sm:$0xff]  }
 0x8cd   : > { %9633 = vmatpush1.bf16.msra.mxu1 %v20549_v57  ;;  %9552 = vmatprep.subr.bf16.mxu0 %v20554_v45  ;;  %v20633_v57 = vld [vmem:[%s21998_s14 + $0x9c8] ss:$16 sps:$4 sm:$0xff]   ;;  %v20638_v45 = vld [vmem:[%s21998_s14 + $0x9e4] ss:$16 sps:$4 sm:$0xff]  }
 0x8ce   : > { %9634 = vmatprep.subr.bf16.mxu1 %v20557_v16  ;;  %v20641_v16 = vld [vmem:[%s21998_s14 + $0x9ec] ss:$16 sps:$4 sm:$0xff]  }
 0x8d0   : > { %9553 = vmatpush1.bf16.msra.mxu0 %v20552_v19  ;;  %v20636_v19 = vld [vmem:[%s21998_s14 + $0x9e0] ss:$16 sps:$4 sm:$0xff]  }
 0x8d1   : > { %9635 = vmatpush1.bf16.msra.mxu1 %v20555_v40  ;;  %9554 = vmatprep.subr.bf16.mxu0 %v20560_v46  ;;  %v20639_v40 = vld [vmem:[%s21998_s14 + $0x9e8] ss:$16 sps:$4 sm:$0xff]   ;;  %v20644_v46 = vld [vmem:[%s21998_s14 + $0xa04] ss:$16 sps:$4 sm:$0xff]  }
 0x8d2   : > { %9636 = vmatprep.subr.bf16.mxu1 %v20563_v51  ;;  %v20647_v51 = vld [vmem:[%s21998_s14 + $0xa0c] ss:$16 sps:$4 sm:$0xff]  }
 0x8d4   : > { %9555 = vmatpush1.bf16.msra.mxu0 %v20558_v58  ;;  %v23345_v58 = vld [vmem:[%s21996_s17 + $0x10] sm:$0xff] }
 0x8d5   : > { %9637 = vmatpush1.bf16.msra.mxu1 %v20561_v52  ;;  %9556 = vmatprep.subr.bf16.mxu0 %v20566_v10  ;;  %v7085_v52 = vrot.slane %v23345_v58, %v22372_v20  ;;  %v7089_v10 = vrot.slane %v23345_v58, %v22375_v21 }
 0x8d6   : > { %9638 = vmatprep.subr.bf16.mxu1 %v20569_v59  ;;  %v7097_v59 = vrot.slane %v23345_v58, %v22378_v22 }
 0x8d8   : > { %9557 = vmatpush1.bf16.msra.mxu0 %v20564_v60 }
 0x8d9   : > { %9639 = vmatpush1.bf16.msra.mxu1 %v20567_v61  ;;  %9558 = vmatprep.subr.bf16.mxu0 %v20572_v62 }
 0x8da   : > { %9640 = vmatprep.subr.bf16.mxu1 %v20575_v0 }
 0x8dc   : > { %9559 = vmatpush1.bf16.msra.mxu0 %v20570_v18 }
 0x8dd   : > { %9641 = vmatpush1.bf16.msra.mxu1 %v20573_v1  ;;  %9560 = vmatprep.subr.bf16.mxu0 %v20578_v63 }
 0x8de   : > { %9642 = vmatprep.subr.bf16.mxu1 %v20581_v5 }
 0x8e0   : > { %9561 = vmatpush1.bf16.msra.mxu0 %v20576_v2 }
 0x8e1   : > { %9643 = vmatpush1.bf16.msra.mxu1 %v20579_v3  ;;  %9562 = vmatprep.subr.bf16.mxu0 %v20584_v7 }
 0x8e2   : > { %9644 = vmatprep.subr.bf16.mxu1 %v20587_v8 }
 0x8e4   : > { %9563 = vmatpush1.bf16.msra.mxu0 %v20582_v9 }
 0x8e5   : > { %9645 = vmatpush1.bf16.msra.mxu1 %v20585_v11  ;;  %9564 = vmatprep.subr.bf16.mxu0 %v20590_v12 }
 0x8e6   : > { %9646 = vmatprep.subr.bf16.mxu1 %v20593_v28 }
 0x8e8   : > { %9565 = vmatpush1.bf16.msra.mxu0 %v20588_v33 }
 0x8e9   : > { %9647 = vmatpush1.bf16.msra.mxu1 %v20591_v34  ;;  %9566 = vmatprep.subr.bf16.mxu0 %v20596_v48 }
 0x8ea   : > { %9648 = vmatprep.subr.bf16.mxu1 %v20599_v30 }
 0x8ec   : > { %9567 = vmatpush1.bf16.msra.mxu0 %v20594_v35 }
 0x8ed   : > { %9649 = vmatpush1.bf16.msra.mxu1 %v20597_v36  ;;  %9568 = vmatprep.subr.bf16.mxu0 %v20602_v13 }
 0x8ee   : > { %9650 = vmatprep.subr.bf16.mxu1 %v20605_v14 }
 0x8f0   : > { %9569 = vmatpush1.bf16.msra.mxu0 %v20600_v26 }
 0x8f1   : > { %9651 = vmatpush1.bf16.msra.mxu1 %v20603_v23  ;;  %9570 = vmatprep.subr.bf16.mxu0 %v20608_v6  ;;  %v20642_v6 = vld [vmem:[%s21998_s14 + $0xa00] ss:$16 sps:$4 sm:$0xff]  }
 0x8f2   : > { %9652 = vmatprep.subr.bf16.mxu1 %v20611_v25  ;;  %v20645_v25 = vld [vmem:[%s21998_s14 + $0xa08] ss:$16 sps:$4 sm:$0xff]  }
 0x8f4   : > { %9571 = vmatpush1.bf16.msra.mxu0 %v20606_v37 }
 0x8f5   : > { %9653 = vmatpush1.bf16.msra.mxu1 %v20609_v24  ;;  %9572 = vmatprep.subr.bf16.mxu0 %v20614_v4  ;;  %v20650_v4 = vld [vmem:[%s21998_s14 + $0xa24] ss:$16 sps:$4 sm:$0xff]  }
 0x8f6   : > { %9654 = vmatprep.subr.bf16.mxu1 %v20617_v50  ;;  %v20653_v50 = vld [vmem:[%s21998_s14 + $0xa2c] ss:$16 sps:$4 sm:$0xff]  }
 0x8f8   : > { %9573 = vmatpush1.bf16.msra.mxu0 %v20612_v38 }
 0x8f9   : > { %9655 = vmatpush1.bf16.msra.mxu1 %v20615_v49  ;;  %9574 = vmatprep.subr.bf16.mxu0 %v20620_v42  ;;  %v20648_v49 = vld [vmem:[%s21998_s14 + $0xa20] ss:$16 sps:$4 sm:$0xff]   ;;  %v20651_v42 = vld [vmem:[%s21998_s14 + $0xa28] ss:$16 sps:$4 sm:$0xff]  }
 0x8fa   : > { %9656 = vmatprep.subr.bf16.mxu1 %v20623_v43  ;;  %v20656_v43 = vld [vmem:[%s21998_s14 + $0xa44] ss:$16 sps:$4 sm:$0xff]  }
 0x8fc   : > { %9575 = vmatpush1.bf16.msra.mxu0 %v20618_v41  ;;  %v20659_v41 = vld [vmem:[%s21998_s14 + $0xa4c] ss:$16 sps:$4 sm:$0xff]  }
 0x8fd   : > { %9657 = vmatpush1.bf16.msra.mxu1 %v20621_v44  ;;  %9576 = vmatprep.subr.bf16.mxu0 %v20626_v47  ;;  %v20654_v44 = vld [vmem:[%s21998_s14 + $0xa40] ss:$16 sps:$4 sm:$0xff]   ;;  %v20657_v47 = vld [vmem:[%s21998_s14 + $0xa48] ss:$16 sps:$4 sm:$0xff]  }
 0x8fe   : > { %9658 = vmatprep.subr.bf16.mxu1 %v20629_v15  ;;  %v20662_v15 = vld [vmem:[%s21998_s14 + $0xa64] ss:$16 sps:$4 sm:$0xff]  }
 0x900   : > { %9577 = vmatpush1.bf16.msra.mxu0 %v20624_v53  ;;  %v20665_v53 = vld [vmem:[%s21998_s14 + $0xa6c] ss:$16 sps:$4 sm:$0xff]  }
 0x901   : > { %9659 = vmatpush1.bf16.msra.mxu1 %v20627_v54  ;;  %9578 = vmatprep.subr.bf16.mxu0 %v20632_v39  ;;  %v20660_v54 = vld [vmem:[%s21998_s14 + $0xa60] ss:$16 sps:$4 sm:$0xff]   ;;  %v20663_v39 = vld [vmem:[%s21998_s14 + $0xa68] ss:$16 sps:$4 sm:$0xff]  }
 0x902   : > { %9660 = vmatprep.subr.bf16.mxu1 %v20635_v27  ;;  %v20668_v27 = vld [vmem:[%s21998_s14 + $0xa84] ss:$16 sps:$4 sm:$0xff]  }
 0x904   : > { %9579 = vmatpush1.bf16.msra.mxu0 %v20630_v56  ;;  %v20671_v56 = vld [vmem:[%s21998_s14 + $0xa8c] ss:$16 sps:$4 sm:$0xff]  }
 0x905   : > { %9661 = vmatpush1.bf16.msra.mxu1 %v20633_v57  ;;  %9580 = vmatprep.subr.bf16.mxu0 %v20638_v45  ;;  %v20666_v57 = vld [vmem:[%s21998_s14 + $0xa80] ss:$16 sps:$4 sm:$0xff]   ;;  %v20669_v45 = vld [vmem:[%s21998_s14 + $0xa88] ss:$16 sps:$4 sm:$0xff]  }
 0x906   : > { %9662 = vmatprep.subr.bf16.mxu1 %v20641_v16  ;;  %v20674_v16 = vld [vmem:[%s21998_s14 + $0xaa4] ss:$16 sps:$4 sm:$0xff]  }
 0x908   : > { %9581 = vmatpush1.bf16.msra.mxu0 %v20636_v19  ;;  %v20677_v19 = vld [vmem:[%s21998_s14 + $0xaac] ss:$16 sps:$4 sm:$0xff]  }
 0x909   : > { %9663 = vmatpush1.bf16.msra.mxu1 %v20639_v40  ;;  %9591 = vmatprep.subr.bf16.mxu0 %v20644_v46  ;;  %v20672_v40 = vld [vmem:[%s21998_s14 + $0xaa0] ss:$16 sps:$4 sm:$0xff]   ;;  %v20675_v46 = vld [vmem:[%s21998_s14 + $0xaa8] ss:$16 sps:$4 sm:$0xff]  }
 0x90a   : > { %9673 = vmatprep.subr.bf16.mxu1 %v20647_v51  ;;  %v20680_v51 = vld [vmem:[%s21998_s14 + $0xac4] ss:$16 sps:$4 sm:$0xff]  }
 0x91e   : > { %v8477_v60 = vpop.f32.mrb[16].mxu0  ;;  %v23353_v61 = vpop.f32.mrb[16].mxu1 }
 0x91f   : > { %v19821_v62 = vadd.f32 %v8477_v60, %v7085_v52  ;;  %v8479_v0 = vpop.f32.mrb[17].mxu0  ;;  %v8561_v18 = vpop.f32.mrb[17].mxu1  ;;  %v20683_v52 = vld [vmem:[%s21998_s14 + $0xacc] ss:$16 sps:$4 sm:$0xff]   ;;  %v20686_v60 = vld [vmem:[%s21998_s14 + $0xae4] ss:$16 sps:$4 sm:$0xff]  }
 0x920   : > { %v19822_v1 = vadd.f32 %v8479_v0, %v7089_v10  ;;  %v19824_v63 = vadd.f32 %v8561_v18, %v7097_v59  ;;  %v8481_v5 = vpop.f32.mrb[18].mxu0  ;;  %v8563_v2 = vpop.f32.mrb[18].mxu1  ;;  %v20678_v10 = vld [vmem:[%s21998_s14 + $0xac0] ss:$16 sps:$4 sm:$0xff]   ;;  %v20681_v59 = vld [vmem:[%s21998_s14 + $0xac8] ss:$16 sps:$4 sm:$0xff]  }
 0x921   : > { %v8734_v3 = vmin.f32 %v19821_v62, 0.0  ;;  %v8482_v7 = vpop.f32.mrb[19].mxu0  ;;  %v8564_v8 = vpop.f32.mrb[19].mxu1  ;;  %vm8730_vm8 = vcmp.gt.f32.partialorder %v19821_v62, 0.0  ;;  %v20684_v0 = vld [vmem:[%s21998_s14 + $0xae0] ss:$16 sps:$4 sm:$0xff]  }
 0x922   : > { %v8735_v9 = vmin.f32 %v19822_v1, 0.0  ;;  %v8737_v11 = vmin.f32 %v19824_v63, 0.0  ;;  %vm8731_vm9 = vcmp.gt.f32.partialorder %v19822_v1, 0.0  ;;  %vm8733_vm10 = vcmp.gt.f32.partialorder %v19824_v63, 0.0  ;;  %v20687_v18 = vld [vmem:[%s21998_s14 + $0xae8] ss:$16 sps:$4 sm:$0xff]  }
 0x923   : > { %v8738_v12 = vmul.f32 1.442695, %v8734_v3  ;;  %v20695_v5 = vld [vmem:[%s21998_s14 + $0xb0c] ss:$16 sps:$4 sm:$0xff]   ;;  %v20690_v2 = vld [vmem:[%s21998_s14 + $0xb00] ss:$16 sps:$4 sm:$0xff]  }
 0x924   : > { %v8740_v28 = vmul.f32 1.442695, %v8735_v9  ;;  %v8744_v33 = vmul.f32 1.442695, %v8737_v11  ;;  %v20693_v3 = vld [vmem:[%s21998_s14 + $0xb08] ss:$16 sps:$4 sm:$0xff]  }
 0x925   : > { %21154 = vpow2.f32 %v8738_v12  ;;  %v20698_v8 = vld [vmem:[%s21998_s14 + $0xb24] ss:$16 sps:$4 sm:$0xff]   ;;  %v20701_v9 = vld [vmem:[%s21998_s14 + $0xb2c] ss:$16 sps:$4 sm:$0xff]   ;;  %v20696_v11 = vld [vmem:[%s21998_s14 + $0xb20] ss:$16 sps:$4 sm:$0xff]  }
 0x926   : > { %21156 = vpow2.f32 %v8740_v28  ;;  %v20699_v12 = vld [vmem:[%s21998_s14 + $0xb28] ss:$16 sps:$4 sm:$0xff]  }
 0x927   : > { %21158 = vpow2.f32 %v8744_v33  ;;  %v20707_v33 = vld [vmem:[%s21998_s14 + $0xb4c] ss:$16 sps:$4 sm:$0xff]  }
 0x92f   : > { %v21155_v34 = vpop.eup %21154 }
 0x930   : > { %v17808_v48 = vadd.f32 -1.0, %v21155_v34  ;;  %v21157_v30 = vpop.eup %21156  ;;  %v20702_v34 = vld [vmem:[%s21998_s14 + $0xb40] ss:$16 sps:$4 sm:$0xff]  }
 0x931   : > { %v21159_v35 = vpop.eup %21158  ;;  %v17809_v36 = vadd.f32 -1.0, %v21157_v30 }
 0x932   : > { %v8750_v13 = vsel %vm8730_vm8, %v19821_v62, %v17808_v48  ;;  %v17811_v14 = vadd.f32 -1.0, %v21159_v35  ;;  %v20689_v62 = vld [vmem:[%s21998_s14 + $0xaec] ss:$16 sps:$4 sm:$0xff]   ;;  %v20705_v48 = vld [vmem:[%s21998_s14 + $0xb48] ss:$16 sps:$4 sm:$0xff]  }
 0x933   : > { %v8751_v26 = vsel %vm8731_vm9, %v19822_v1, %v17809_v36  ;;  %v8754_v24 = vpack.c.bf16 %v8750_v13, %v8750_v13  ;;  %v7093_v1 = vrot.slane %v23345_v58, %v22415_v17  ;;  %v20710_v35 = vld [vmem:[%s21998_s14 + $0xb64] ss:$16 sps:$4 sm:$0xff]   ;;  %v20713_v36 = vld [vmem:[%s21998_s14 + $0xb6c] ss:$16 sps:$4 sm:$0xff]   ;;  %v20708_v13 = vld [vmem:[%s21998_s14 + $0xb60] ss:$16 sps:$4 sm:$0xff]  }
 0x934   : > { %v8755_v23 = vpack.c.bf16 %v8751_v26, %v8751_v26  ;;  %v8753_v37 = vsel %vm8733_vm10, %v19824_v63, %v17811_v14  ;;  %v20692_v63 = vld [vmem:[%s21998_s14 + $0xb04] ss:$16 sps:$4 sm:$0xff]   ;;  %v20711_v14 = vld [vmem:[%s21998_s14 + $0xb68] ss:$16 sps:$4 sm:$0xff]  }
 0x935   : > { %v8757_v38 = vpack.c.bf16 %v8753_v37, %v8753_v37  ;;  %v23392_v7 = vadd.f32 %v23353_v61, %v7093_v1  ;;  %v20704_v61 = vld [vmem:[%s21998_s14 + $0xb44] ss:$16 sps:$4 sm:$0xff]  }
 0x936   : > { %9582 = vmatprep.mubr.bf16.mxu0 %v8755_v23  ;;  %9664 = vmatprep.mubr.bf16.mxu1 %v8755_v23  ;;  %v20716_v26 = vld [vmem:[%s21998_s14 + $0xb84] ss:$16 sps:$4 sm:$0xff]   ;;  %v20719_v23 = vld [vmem:[%s21998_s14 + $0xb8c] ss:$16 sps:$4 sm:$0xff]  }
 0x937   : > { %9583 = vmatmul.mubr.bf16.vlgmr.msra.gmra.mrb[20].mxu0 %v8754_v24  ;;  %9665 = vmatmul.mubr.bf16.vlgmr.msra.gmra.mrb[20].mxu1 %v8754_v24  ;;  %v8736_v28 = vmin.f32 %v23392_v7, 0.0  ;;  %v20722_v37 = vld [vmem:[%s21998_s14 + $0xba4] ss:$16 sps:$4 sm:$0xff]   ;;  %v20725_v24 = vld [vmem:[%s21998_s14 + $0xbac] ss:$16 sps:$4 sm:$0xff]   ;;  %vm8732_vm11 = vcmp.gt.f32.partialorder %v23392_v7, 0.0 }
 0x938   : > { %9592 = vmatpush1.bf16.msra.mxu0 %v20642_v6  ;;  %9674 = vmatpush1.bf16.msra.mxu1 %v20645_v25  ;;  %v20714_v6 = vld [vmem:[%s21998_s14 + $0xb80] ss:$16 sps:$4 sm:$0xff]   ;;  %v20717_v25 = vld [vmem:[%s21998_s14 + $0xb88] ss:$16 sps:$4 sm:$0xff]  }
 0x939   : > { %9623 = vmatprep.mubr.bf16.mxu0 %v8757_v38  ;;  %9705 = vmatprep.mubr.bf16.mxu1 %v8757_v38  ;;  %v8742_v30 = vmul.f32 1.442695, %v8736_v28  ;;  %v20728_v38 = vld [vmem:[%s21998_s14 + $0xbc4] ss:$16 sps:$4 sm:$0xff]   ;;  %v18102_v28 = vld [vmem:[%s21990_s19 + $0x18e8] sm:$0xff] }
 0x93a   : > { %9593 = vmatprep.subr.bf16.mxu0 %v20650_v4  ;;  %9675 = vmatprep.subr.bf16.mxu1 %v20653_v50  ;;  %v20720_v4 = vld [vmem:[%s21998_s14 + $0xba0] ss:$16 sps:$4 sm:$0xff]   ;;  %v20723_v50 = vld [vmem:[%s21998_s14 + $0xba8] ss:$16 sps:$4 sm:$0xff]  }
 0x93b   : > { %21160 = vpow2.f32 %v8742_v30  ;;  %v18093_v1 = vld [vmem:[%s21990_s19 + $0x18a0] sm:$0xff] }
 0x93c   : > { %9594 = vmatpush1.bf16.msra.mxu0 %v20648_v49  ;;  %9676 = vmatpush1.bf16.msra.mxu1 %v20651_v42  ;;  %v20731_v49 = vld [vmem:[%s21998_s14 + $0xbcc] ss:$16 sps:$4 sm:$0xff]   ;;  %v18105_v30 = vld [vmem:[%s21990_s19 + $0x1900] sm:$0xff] }
 0x93d   : > { %9595 = vmatprep.subr.bf16.mxu0 %v20656_v43  ;;  %9677 = vmatprep.subr.bf16.mxu1 %v20659_v41  ;;  %v20726_v43 = vld [vmem:[%s21998_s14 + $0xbc0] ss:$16 sps:$4 sm:$0xff]   ;;  %v20729_v41 = vld [vmem:[%s21998_s14 + $0xbc8] ss:$16 sps:$4 sm:$0xff]  }
 0x940   : > { %9596 = vmatpush1.bf16.msra.mxu0 %v20654_v44  ;;  %9678 = vmatpush1.bf16.msra.mxu1 %v20657_v47  ;;  %v20734_v44 = vld [vmem:[%s21998_s14 + $0xbe4] ss:$16 sps:$4 sm:$0xff]   ;;  %v20737_v47 = vld [vmem:[%s21998_s14 + $0xbec] ss:$16 sps:$4 sm:$0xff]  }
 0x941   : > { %9597 = vmatprep.subr.bf16.mxu0 %v20662_v15  ;;  %9679 = vmatprep.subr.bf16.mxu1 %v20665_v53  ;;  %v18073_v15 = vld [vmem:[%s21990_s19 + $0x1800] sm:$0xff] }
 0x944   : > { %9598 = vmatpush1.bf16.msra.mxu0 %v20660_v54  ;;  %9680 = vmatpush1.bf16.msra.mxu1 %v20663_v39  ;;  %v18077_v54 = vld [vmem:[%s21990_s19 + $0x1820] sm:$0xff]  ;;  %v18074_v39 = vld [vmem:[%s21990_s19 + $0x1808] sm:$0xff] }
 0x945   : > { %9599 = vmatprep.subr.bf16.mxu0 %v20668_v27  ;;  %9681 = vmatprep.subr.bf16.mxu1 %v20671_v56  ;;  %v21161_v42 = vpop.eup %21160  ;;  %v18078_v27 = vld [vmem:[%s21990_s19 + $0x1828] sm:$0xff]  ;;  %v20732_v56 = vld [vmem:[%s21998_s14 + $0xbe0] ss:$16 sps:$4 sm:$0xff]  }
 0x946   : > { %v17810_v53 = vadd.f32 -1.0, %v21161_v42 }
 0x948   : > { %9600 = vmatpush1.bf16.msra.mxu0 %v20666_v57  ;;  %9682 = vmatpush1.bf16.msra.mxu1 %v20669_v45  ;;  %v20735_v57 = vld [vmem:[%s21998_s14 + $0xbe8] ss:$16 sps:$4 sm:$0xff]   ;;  %v18331_v45 = vcombine.high %v18073_v15, %v18077_v54 }
 0x949   : > { %9601 = vmatprep.subr.bf16.mxu0 %v20674_v16  ;;  %9683 = vmatprep.subr.bf16.mxu1 %v20677_v19  ;;  %v18333_v16 = vcombine.high %v18074_v39, %v18078_v27  ;;  %v18081_v19 = vld [vmem:[%s21990_s19 + $0x1840] sm:$0xff] }
 0x94c   : > { %9602 = vmatpush1.bf16.msra.mxu0 %v20672_v40  ;;  %9684 = vmatpush1.bf16.msra.mxu1 %v20675_v46  ;;  %v8752_v40 = vsel %vm8732_vm11, %v23392_v7, %v17810_v53  ;;  %v18085_v46 = vld [vmem:[%s21990_s19 + $0x1860] sm:$0xff] }
 0x94d   : > { %9603 = vmatprep.subr.bf16.mxu0 %v20680_v51  ;;  %9685 = vmatprep.subr.bf16.mxu1 %v20683_v52  ;;  %v18082_v51 = vld [vmem:[%s21990_s19 + $0x1848] sm:$0xff] }
 0x94e   : > { %v18086_v52 = vld [vmem:[%s21990_s19 + $0x1868] sm:$0xff] }
 0x950   : > { %9604 = vmatpush1.bf16.msra.mxu0 %v20678_v10  ;;  %9686 = vmatpush1.bf16.msra.mxu1 %v20681_v59  ;;  %v18330_v10 = vcombine.low %v18073_v15, %v18077_v54  ;;  %v18332_v59 = vcombine.low %v18074_v39, %v18078_v27  ;;  %v18129_v27 = vld [vmem:[%s21990_s19 + $0x19c0] sm:$0xff] }
 0x951   : > { %9605 = vmatprep.subr.bf16.mxu0 %v20686_v60  ;;  %9687 = vmatprep.subr.bf16.mxu1 %v20689_v62  ;;  %v8756_v60 = vpack.c.bf16 %v8752_v40, %v8752_v40  ;;  %v18339_v62 = vcombine.high %v18081_v19, %v18085_v46 }
 0x954   : > { %9606 = vmatpush1.bf16.msra.mxu0 %v20684_v0  ;;  %9688 = vmatpush1.bf16.msra.mxu1 %v20687_v18  ;;  %v18341_v0 = vcombine.high %v18082_v51, %v18086_v52  ;;  %v18089_v18 = vld [vmem:[%s21990_s19 + $0x1880] sm:$0xff] }
 0x955   : > { %9607 = vmatprep.subr.bf16.mxu0 %v20692_v63  ;;  %9689 = vmatprep.subr.bf16.mxu1 %v20695_v5  ;;  %v18090_v63 = vld [vmem:[%s21990_s19 + $0x1888] sm:$0xff]  ;;  %v18347_v7 = vcombine.high %v18089_v18, %v18093_v1 }
 0x956   : > { %v18094_v5 = vld [vmem:[%s21990_s19 + $0x18a8] sm:$0xff] }
 0x958   : > { %9608 = vmatpush1.bf16.msra.mxu0 %v20690_v2  ;;  %9690 = vmatpush1.bf16.msra.mxu1 %v20693_v3  ;;  %v18338_v2 = vcombine.low %v18081_v19, %v18085_v46  ;;  %v18340_v3 = vcombine.low %v18082_v51, %v18086_v52 }
 0x959   : > { %9609 = vmatprep.subr.bf16.mxu0 %v20698_v8  ;;  %9691 = vmatprep.subr.bf16.mxu1 %v20701_v9  ;;  %v18349_v8 = vcombine.high %v18090_v63, %v18094_v5  ;;  %v18097_v9 = vld [vmem:[%s21990_s19 + $0x18c0] sm:$0xff] }
 0x95c   : > { %9610 = vmatpush1.bf16.msra.mxu0 %v20696_v11  ;;  %9692 = vmatpush1.bf16.msra.mxu1 %v20699_v12  ;;  %v18101_v11 = vld [vmem:[%s21990_s19 + $0x18e0] sm:$0xff]  ;;  %v18098_v12 = vld [vmem:[%s21990_s19 + $0x18c8] sm:$0xff] }
 0x95d   : > { %9611 = vmatprep.subr.bf16.mxu0 %v20704_v61  ;;  %9693 = vmatprep.subr.bf16.mxu1 %v20707_v33  ;;  %v18346_v61 = vcombine.low %v18089_v18, %v18093_v1  ;;  %v18348_v33 = vcombine.low %v18090_v63, %v18094_v5  ;;  %v18145_v5 = vld [vmem:[%s21990_s19 + $0x1a40] sm:$0xff] }
 0x960   : > { %9612 = vmatpush1.bf16.msra.mxu0 %v20702_v34  ;;  %9694 = vmatpush1.bf16.msra.mxu1 %v20705_v48  ;;  %v18355_v34 = vcombine.high %v18097_v9, %v18101_v11  ;;  %v18357_v48 = vcombine.high %v18098_v12, %v18102_v28 }
 0x961   : > { %9613 = vmatprep.subr.bf16.mxu0 %v20710_v35  ;;  %9695 = vmatprep.subr.bf16.mxu1 %v20713_v36  ;;  %v18109_v35 = vld [vmem:[%s21990_s19 + $0x1920] sm:$0xff]  ;;  %v18106_v36 = vld [vmem:[%s21990_s19 + $0x1908] sm:$0xff] }
 0x964   : > { %9614 = vmatpush1.bf16.msra.mxu0 %v20708_v13  ;;  %9696 = vmatpush1.bf16.msra.mxu1 %v20711_v14  ;;  %v18110_v13 = vld [vmem:[%s21990_s19 + $0x1928] sm:$0xff]  ;;  %v18354_v14 = vcombine.low %v18097_v9, %v18101_v11 }
 0x965   : > { %9615 = vmatprep.subr.bf16.mxu0 %v20716_v26  ;;  %9697 = vmatprep.subr.bf16.mxu1 %v20719_v23  ;;  %v18356_v26 = vcombine.low %v18098_v12, %v18102_v28  ;;  %v18363_v23 = vcombine.high %v18105_v30, %v18109_v35  ;;  %v18153_v28 = vld [vmem:[%s21990_s19 + $0x1a80] sm:$0xff] }
 0x968   : > { %9616 = vmatpush1.bf16.msra.mxu0 %v20714_v6  ;;  %9698 = vmatpush1.bf16.msra.mxu1 %v20717_v25  ;;  %v18365_v6 = vcombine.high %v18106_v36, %v18110_v13  ;;  %v18113_v25 = vld [vmem:[%s21990_s19 + $0x1940] sm:$0xff] }
 0x969   : > { %9617 = vmatprep.subr.bf16.mxu0 %v20722_v37  ;;  %9699 = vmatprep.subr.bf16.mxu1 %v20725_v24  ;;  %v18117_v37 = vld [vmem:[%s21990_s19 + $0x1960] sm:$0xff]  ;;  %v18114_v24 = vld [vmem:[%s21990_s19 + $0x1948] sm:$0xff] }
 0x96a   : > { %v18370_v15 = vcombine.low %v18113_v25, %v18117_v37 }
 0x96c   : > { %9618 = vmatpush1.bf16.msra.mxu0 %v20720_v4  ;;  %9700 = vmatpush1.bf16.msra.mxu1 %v20723_v50  ;;  %v18118_v4 = vld [vmem:[%s21990_s19 + $0x1968] sm:$0xff]  ;;  %v18362_v50 = vcombine.low %v18105_v30, %v18109_v35 }
 0x96d   : > { %9619 = vmatprep.subr.bf16.mxu0 %v20728_v38  ;;  %9701 = vmatprep.subr.bf16.mxu1 %v20731_v49  ;;  %v18364_v38 = vcombine.low %v18106_v36, %v18110_v13  ;;  %v18371_v49 = vcombine.high %v18113_v25, %v18117_v37  ;;  %v18373_v42 = vcombine.high %v18114_v24, %v18118_v4  ;;  %v18161_v13 = vld [vmem:[%s21990_s19 + $0x1ac0] sm:$0xff] }
 0x96e   : > { %v18372_v53 = vcombine.low %v18114_v24, %v18118_v4  ;;  %v18169_v4 = vld [vmem:[%s21990_s19 + $0x1b00] sm:$0xff] }
 0x970   : > { %9620 = vmatpush1.bf16.msra.mxu0 %v20726_v43  ;;  %9702 = vmatpush1.bf16.msra.mxu1 %v20729_v41  ;;  %v18121_v43 = vld [vmem:[%s21990_s19 + $0x1980] sm:$0xff] }
 0x971   : > { %9621 = vmatprep.subr.bf16.mxu0 %v20734_v44  ;;  %9703 = vmatprep.subr.bf16.mxu1 %v20737_v47  ;;  %v18125_v41 = vld [vmem:[%s21990_s19 + $0x19a0] sm:$0xff]  ;;  %v18122_v44 = vld [vmem:[%s21990_s19 + $0x1988] sm:$0xff] }
 0x972   : > { %v18126_v47 = vld [vmem:[%s21990_s19 + $0x19a8] sm:$0xff]  ;;  %v18379_v54 = vcombine.high %v18121_v43, %v18125_v41 }
 0x973   : > { %v18381_v39 = vcombine.high %v18122_v44, %v18126_v47  ;;  %v18380_v19 = vcombine.low %v18122_v44, %v18126_v47  ;;  %v18177_v47 = vld [vmem:[%s21990_s19 + $0x1b40] sm:$0xff] }
 0x974   : > { %9622 = vmatpush1.bf16.msra.mxu0 %v20732_v56  ;;  %9704 = vmatpush1.bf16.msra.mxu1 %v20735_v57  ;;  %v18133_v56 = vld [vmem:[%s21990_s19 + $0x19e0] sm:$0xff]  ;;  %v18130_v57 = vld [vmem:[%s21990_s19 + $0x19c8] sm:$0xff] }
 0x975   : > { %11334 = vmatprep.subr.bf16.mxu0 %v18331_v45  ;;  %11416 = vmatprep.subr.bf16.mxu1 %v18333_v16  ;;  %v18134_v45 = vld [vmem:[%s21990_s19 + $0x19e8] sm:$0xff]  ;;  %v18378_v16 = vcombine.low %v18121_v43, %v18125_v41  ;;  %v18387_v40 = vcombine.high %v18129_v27, %v18133_v56  ;;  %v18386_v51 = vcombine.low %v18129_v27, %v18133_v56 }
 0x976   : > { %v18389_v46 = vcombine.high %v18130_v57, %v18134_v45  ;;  %v18388_v52 = vcombine.low %v18130_v57, %v18134_v45  ;;  %v18185_v45 = vld [vmem:[%s21990_s19 + $0x1b80] sm:$0xff] }
 0x977   : > { %9624 = vmatmul.mubr.bf16.vlgmr.msra.gmra.mrb[20].mxu0 %v8756_v60  ;;  %9706 = vmatmul.mubr.bf16.vlgmr.msra.gmra.mrb[20].mxu1 %v8756_v60  ;;  %v18138_v60 = vld [vmem:[%s21990_s19 + $0x1a08] sm:$0xff] }
 0x978   : > { %11335 = vmatpush1.bf16.msra.mxu0 %v18330_v10  ;;  %11417 = vmatpush1.bf16.msra.mxu1 %v18332_v59  ;;  %v18137_v10 = vld [vmem:[%s21990_s19 + $0x1a00] sm:$0xff] }
 0x979   : > { %11336 = vmatprep.subr.bf16.mxu0 %v18339_v62  ;;  %11418 = vmatprep.subr.bf16.mxu1 %v18341_v0  ;;  %v18141_v59 = vld [vmem:[%s21990_s19 + $0x1a20] sm:$0xff]  ;;  %v18142_v0 = vld [vmem:[%s21990_s19 + $0x1a28] sm:$0xff] }
 0x97a   : > { %v18395_v62 = vcombine.high %v18137_v10, %v18141_v59  ;;  %v18394_v18 = vcombine.low %v18137_v10, %v18141_v59  ;;  %v18396_v1 = vcombine.low %v18138_v60, %v18142_v0  ;;  %v18397_v63 = vcombine.high %v18138_v60, %v18142_v0  ;;  %v18193_v59 = vld [vmem:[%s21990_s19 + $0x1bc0] sm:$0xff] }
 0x97b   : > { %v18197_v60 = vld [vmem:[%s21990_s19 + $0x1be0] sm:$0xff] }
 0x97c   : > { %11337 = vmatpush1.bf16.msra.mxu0 %v18338_v2  ;;  %11419 = vmatpush1.bf16.msra.mxu1 %v18340_v3  ;;  %v18149_v2 = vld [vmem:[%s21990_s19 + $0x1a60] sm:$0xff]  ;;  %v18146_v3 = vld [vmem:[%s21990_s19 + $0x1a48] sm:$0xff]  ;;  %v18451_v0 = vcombine.high %v18193_v59, %v18197_v60 }
 0x97d   : > { %11338 = vmatprep.subr.bf16.mxu0 %v18347_v7  ;;  %11420 = vmatprep.subr.bf16.mxu1 %v18349_v8  ;;  %v18403_v7 = vcombine.high %v18145_v5, %v18149_v2  ;;  %v18150_v8 = vld [vmem:[%s21990_s19 + $0x1a68] sm:$0xff]  ;;  %v18402_v9 = vcombine.low %v18145_v5, %v18149_v2  ;;  %v23490_v2 = vld [vmem:[%s21990_s19 + $0x1c00] sm:$0xff] }
 0x97e   : > { %v18404_v11 = vcombine.low %v18146_v3, %v18150_v8  ;;  %v18405_v12 = vcombine.high %v18146_v3, %v18150_v8  ;;  %v23493_v3 = vld [vmem:[%s21990_s19 + $0x1c20] sm:$0xff] }
 0x97f   : > { %v18459_v8 = vcombine.high %v23490_v2, %v23493_v3 }
 0x980   : > { %11339 = vmatpush1.bf16.msra.mxu0 %v18346_v61  ;;  %11421 = vmatpush1.bf16.msra.mxu1 %v18348_v33  ;;  %v18157_v61 = vld [vmem:[%s21990_s19 + $0x1aa0] sm:$0xff]  ;;  %v18154_v33 = vld [vmem:[%s21990_s19 + $0x1a88] sm:$0xff] }
 0x981   : > { %11340 = vmatprep.subr.bf16.mxu0 %v18355_v34  ;;  %11422 = vmatprep.subr.bf16.mxu1 %v18357_v48  ;;  %v18411_v34 = vcombine.high %v18153_v28, %v18157_v61  ;;  %v18158_v48 = vld [vmem:[%s21990_s19 + $0x1aa8] sm:$0xff]  ;;  %v18410_v30 = vcombine.low %v18153_v28, %v18157_v61 }
 0x982   : > { %v18412_v35 = vcombine.low %v18154_v33, %v18158_v48  ;;  %v18413_v36 = vcombine.high %v18154_v33, %v18158_v48  ;;  %v23510_v61 = vld [vmem:[%s22004_s30 + $0x8] sm:$0xf]  ;;  %v7101_v33 = vrot.slane %v23345_v58, %v22546_v29  ;;  %v7105_v48 = vrot.slane %v23345_v58, %v22552_v31 }
 0x984   : > { %11341 = vmatpush1.bf16.msra.mxu0 %v18354_v14  ;;  %11423 = vmatpush1.bf16.msra.mxu1 %v18356_v26  ;;  %v18165_v14 = vld [vmem:[%s21990_s19 + $0x1ae0] sm:$0xff]  ;;  %v18162_v26 = vld [vmem:[%s21990_s19 + $0x1ac8] sm:$0xff] }
 0x985   : > { %11342 = vmatprep.subr.bf16.mxu0 %v18363_v23  ;;  %11424 = vmatprep.subr.bf16.mxu1 %v18365_v6  ;;  %v18419_v23 = vcombine.high %v18161_v13, %v18165_v14  ;;  %v18166_v6 = vld [vmem:[%s21990_s19 + $0x1ae8] sm:$0xff]  ;;  %v18418_v25 = vcombine.low %v18161_v13, %v18165_v14 }
 0x986   : > { %v18420_v37 = vcombine.low %v18162_v26, %v18166_v6  ;;  %v18421_v24 = vcombine.high %v18162_v26, %v18166_v6 }
 0x988   : > { %11343 = vmatpush1.bf16.msra.mxu0 %v18362_v50  ;;  %11425 = vmatpush1.bf16.msra.mxu1 %v18364_v38  ;;  %v18173_v50 = vld [vmem:[%s21990_s19 + $0x1b20] sm:$0xff]  ;;  %v18170_v38 = vld [vmem:[%s21990_s19 + $0x1b08] sm:$0xff] }
 0x989   : > { %11344 = vmatprep.subr.bf16.mxu0 %v18371_v49  ;;  %11426 = vmatprep.subr.bf16.mxu1 %v18373_v42  ;;  %v18427_v49 = vcombine.high %v18169_v4, %v18173_v50  ;;  %v18174_v42 = vld [vmem:[%s21990_s19 + $0x1b28] sm:$0xff]  ;;  %v18426_v43 = vcombine.low %v18169_v4, %v18173_v50 }
 0x98a   : > { %v18428_v41 = vcombine.low %v18170_v38, %v18174_v42  ;;  %v18429_v44 = vcombine.high %v18170_v38, %v18174_v42 }
 0x98c   : > { %11345 = vmatpush1.bf16.msra.mxu0 %v18370_v15  ;;  %11427 = vmatpush1.bf16.msra.mxu1 %v18372_v53  ;;  %v18181_v15 = vld [vmem:[%s21990_s19 + $0x1b60] sm:$0xff]  ;;  %v18178_v53 = vld [vmem:[%s21990_s19 + $0x1b48] sm:$0xff] }
 0x98d   : > { %11346 = vmatprep.subr.bf16.mxu0 %v18379_v54  ;;  %11428 = vmatprep.subr.bf16.mxu1 %v18381_v39  ;;  %v18435_v54 = vcombine.high %v18177_v47, %v18181_v15  ;;  %v18182_v39 = vld [vmem:[%s21990_s19 + $0x1b68] sm:$0xff]  ;;  %v18434_v27 = vcombine.low %v18177_v47, %v18181_v15 }
 0x98e   : > { %v18436_v56 = vcombine.low %v18178_v53, %v18182_v39  ;;  %v18437_v57 = vcombine.high %v18178_v53, %v18182_v39 }
 0x990   : > { %11347 = vmatpush1.bf16.msra.mxu0 %v18378_v16  ;;  %11429 = vmatpush1.bf16.msra.mxu1 %v18380_v19  ;;  %v18189_v16 = vld [vmem:[%s21990_s19 + $0x1ba0] sm:$0xff]  ;;  %v18186_v19 = vld [vmem:[%s21990_s19 + $0x1b88] sm:$0xff] }
 0x991   : > { %11348 = vmatprep.subr.bf16.mxu0 %v18387_v40  ;;  %11430 = vmatprep.subr.bf16.mxu1 %v18389_v46  ;;  %v18443_v40 = vcombine.high %v18185_v45, %v18189_v16  ;;  %v18190_v46 = vld [vmem:[%s21990_s19 + $0x1ba8] sm:$0xff] }
 0x992   : > { %v18445_v10 = vcombine.high %v18186_v19, %v18190_v46 }
 0x994   : > { %11349 = vmatpush1.bf16.msra.mxu0 %v18386_v51  ;;  %11431 = vmatpush1.bf16.msra.mxu1 %v18388_v52  ;;  %v18442_v51 = vcombine.low %v18185_v45, %v18189_v16  ;;  %v18444_v52 = vcombine.low %v18186_v19, %v18190_v46 }
 0x995   : > { %11350 = vmatprep.subr.bf16.mxu0 %v18395_v62  ;;  %11432 = vmatprep.subr.bf16.mxu1 %v18397_v63  ;;  %v18194_v62 = vld [vmem:[%s21990_s19 + $0x1bc8] sm:$0xff] }
 0x998   : > { %11351 = vmatpush1.bf16.msra.mxu0 %v18394_v18  ;;  %11433 = vmatpush1.bf16.msra.mxu1 %v18396_v1  ;;  %v18198_v18 = vld [vmem:[%s21990_s19 + $0x1be8] sm:$0xff]  ;;  %v18450_v1 = vcombine.low %v18193_v59, %v18197_v60 }
 0x999   : > { %11352 = vmatprep.subr.bf16.mxu0 %v18403_v7  ;;  %11434 = vmatprep.subr.bf16.mxu1 %v18405_v12  ;;  %v18452_v63 = vcombine.low %v18194_v62, %v18198_v18  ;;  %v18453_v5 = vcombine.high %v18194_v62, %v18198_v18  ;;  %v23496_v7 = vld [vmem:[%s21990_s19 + $0x1c08] sm:$0xff] }
 0x99c   : > { %11353 = vmatpush1.bf16.msra.mxu0 %v18402_v9  ;;  %11435 = vmatpush1.bf16.msra.mxu1 %v18404_v11  ;;  %v23501_v9 = vld [vmem:[%s21990_s19 + $0x1c28] sm:$0xff]  ;;  %v18458_v11 = vcombine.low %v23490_v2, %v23493_v3  ;;  %v18229_v2 = vld [vmem:[%s21990_s19 + $0x1ce0] sm:$0xff] }
 0x99d   : > { %11354 = vmatprep.subr.bf16.mxu0 %v18411_v34  ;;  %11436 = vmatprep.subr.bf16.mxu1 %v18413_v36  ;;  %v18460_v12 = vcombine.low %v23496_v7, %v23501_v9  ;;  %v18461_v28 = vcombine.high %v23496_v7, %v23501_v9  ;;  %v8893_v34 = vrot.slane %v23510_v61, %v22372_v20  ;;  %v18226_v3 = vld [vmem:[%s21990_s19 + $0x1cc8] sm:$0xff] }
 0x99e   : > { %v8905_v36 = vrot.slane %v23510_v61, %v22378_v22 }
 0x99f   : > { %v19825_v13 = vadd.f32 %v8893_v34, %v7101_v33 }
 0x9a0   : > { %11355 = vmatpush1.bf16.msra.mxu0 %v18410_v30  ;;  %11437 = vmatpush1.bf16.msra.mxu1 %v18412_v35  ;;  %v8897_v30 = vrot.slane %v23510_v61, %v22375_v21  ;;  %v7113_v35 = vrot.slane %v23345_v58, %v22555_v32 }
 0x9a1   : > { %11356 = vmatprep.subr.bf16.mxu0 %v18419_v23  ;;  %11438 = vmatprep.subr.bf16.mxu1 %v18421_v24 }
 0x9a2   : > { %v19827_v14 = vadd.f32 %v8897_v30, %v7105_v48  ;;  %v19831_v26 = vadd.f32 %v8905_v36, %v7113_v35  ;;  %v18225_v35 = vld [vmem:[%s21990_s19 + $0x1cc0] sm:$0xff] }
 0x9a4   : > { %11357 = vmatpush1.bf16.msra.mxu0 %v18418_v25  ;;  %11439 = vmatpush1.bf16.msra.mxu1 %v18420_v37 }
 0x9a5   : > { %11358 = vmatprep.subr.bf16.mxu0 %v18427_v49  ;;  %11440 = vmatprep.subr.bf16.mxu1 %v18429_v44 }
 0x9a8   : > { %11359 = vmatpush1.bf16.msra.mxu0 %v18426_v43  ;;  %11441 = vmatpush1.bf16.msra.mxu1 %v18428_v41 }
 0x9a9   : > { %11360 = vmatprep.subr.bf16.mxu0 %v18435_v54  ;;  %11442 = vmatprep.subr.bf16.mxu1 %v18437_v57 }
 0x9ac   : > { %11361 = vmatpush1.bf16.msra.mxu0 %v18434_v27  ;;  %11443 = vmatpush1.bf16.msra.mxu1 %v18436_v56 }
 0x9ad   : > { %11362 = vmatprep.subr.bf16.mxu0 %v18443_v40  ;;  %11444 = vmatprep.subr.bf16.mxu1 %v18445_v10  ;;  %v18209_v40 = vld [vmem:[%s21990_s19 + $0x1c40] sm:$0xff]  ;;  %v18214_v10 = vld [vmem:[%s21990_s19 + $0x1c68] sm:$0xff] }
 0x9b0   : > { %11363 = vmatpush1.bf16.msra.mxu0 %v18442_v51  ;;  %11445 = vmatpush1.bf16.msra.mxu1 %v18444_v52  ;;  %v18213_v51 = vld [vmem:[%s21990_s19 + $0x1c60] sm:$0xff]  ;;  %v18210_v52 = vld [vmem:[%s21990_s19 + $0x1c48] sm:$0xff] }
 0x9b1   : > { %11364 = vmatprep.subr.bf16.mxu0 %v18451_v0  ;;  %11446 = vmatprep.subr.bf16.mxu1 %v18453_v5  ;;  %v18217_v0 = vld [vmem:[%s21990_s19 + $0x1c80] sm:$0xff]  ;;  %v18467_v18 = vcombine.high %v18209_v40, %v18213_v51  ;;  %v18218_v5 = vld [vmem:[%s21990_s19 + $0x1c88] sm:$0xff]  ;;  %v18466_v33 = vcombine.low %v18209_v40, %v18213_v51  ;;  %v18468_v34 = vcombine.low %v18210_v52, %v18214_v10 }
 0x9b2   : > { %v18258_v40 = vld [vmem:[%s21990_s19 + $0x1dc8] sm:$0xff]  ;;  %v7109_v51 = vrot.slane %v23345_v58, %v22614_v55 }
 0x9b4   : > { %11365 = vmatpush1.bf16.msra.mxu0 %v18450_v1  ;;  %11447 = vmatpush1.bf16.msra.mxu1 %v18452_v63  ;;  %v18469_v1 = vcombine.high %v18210_v52, %v18214_v10  ;;  %v18221_v63 = vld [vmem:[%s21990_s19 + $0x1ca0] sm:$0xff] }
 0x9b5   : > { %11375 = vmatprep.subr.bf16.mxu0 %v18459_v8  ;;  %11457 = vmatprep.subr.bf16.mxu1 %v18461_v28  ;;  %v18222_v8 = vld [vmem:[%s21990_s19 + $0x1ca8] sm:$0xff]  ;;  %v18475_v48 = vcombine.high %v18217_v0, %v18221_v63  ;;  %v18474_v7 = vcombine.low %v18217_v0, %v18221_v63  ;;  %v18269_v63 = vld [vmem:[%s21990_s19 + $0x1e20] sm:$0xff] }
 0x9b6   : > { %v18477_v30 = vcombine.high %v18218_v5, %v18222_v8  ;;  %v18476_v9 = vcombine.low %v18218_v5, %v18222_v8  ;;  %v18266_v5 = vld [vmem:[%s21990_s19 + $0x1e08] sm:$0xff] }
 0x9b7   : > { %v18270_v8 = vld [vmem:[%s21990_s19 + $0x1e28] sm:$0xff] }
 0xa4a   : > { %v9625_v23 = vpop.f32.mrb[20].mxu0  ;;  %v23524_v6 = vpop.f32.mrb[20].mxu1 }
 0xa4b   : > { %v19826_v25 = vadd.f32 %v19825_v13, %v9625_v23  ;;  %v9627_v37 = vpop.f32.mrb[21].mxu0  ;;  %v9709_v24 = vpop.f32.mrb[21].mxu1  ;;  %v18233_v13 = vld [vmem:[%s21990_s19 + $0x1d00] sm:$0xff]  ;;  %v18238_v23 = vld [vmem:[%s21990_s19 + $0x1d28] sm:$0xff] }
 0xa4c   : > { %v19828_v4 = vadd.f32 %v19827_v14, %v9627_v37  ;;  %v19832_v50 = vadd.f32 %v19831_v26, %v9709_v24  ;;  %v9629_v38 = vpop.f32.mrb[22].mxu0  ;;  %v9711_v49 = vpop.f32.mrb[22].mxu1  ;;  %v18237_v14 = vld [vmem:[%s21990_s19 + $0x1d20] sm:$0xff]  ;;  %v18234_v26 = vld [vmem:[%s21990_s19 + $0x1d08] sm:$0xff] }
 0xa4d   : > { %v9722_v42 = vmin.f32 %v19826_v25, 0.0  ;;  %v9630_v43 = vpop.f32.mrb[23].mxu0  ;;  %v9712_v41 = vpop.f32.mrb[23].mxu1  ;;  %vm9718_vm12 = vcmp.gt.f32.partialorder %v19826_v25, 0.0  ;;  %v18491_v24 = vcombine.high %v18233_v13, %v18237_v14  ;;  %v18245_v38 = vld [vmem:[%s21990_s19 + $0x1d60] sm:$0xff]  ;;  %v18242_v49 = vld [vmem:[%s21990_s19 + $0x1d48] sm:$0xff] }
 0xa4e   : > { %v9723_v44 = vmin.f32 %v19828_v4, 0.0  ;;  %v9725_v47 = vmin.f32 %v19832_v50, 0.0  ;;  %vm9719_vm13 = vcmp.gt.f32.partialorder %v19828_v4, 0.0  ;;  %vm9721_vm14 = vcmp.gt.f32.partialorder %v19832_v50, 0.0 }
 0xa4f   : > { %v9726_v15 = vmul.f32 1.442695, %v9722_v42  ;;  %v18246_v42 = vld [vmem:[%s21990_s19 + $0x1d68] sm:$0xff]  ;;  %v18490_v43 = vcombine.low %v18233_v13, %v18237_v14  ;;  %v18492_v41 = vcombine.low %v18234_v26, %v18238_v23  ;;  %v18281_v13 = vld [vmem:[%s21990_s19 + $0x1e80] sm:$0xff] }
 0xa50   : > { %v9728_v53 = vmul.f32 1.442695, %v9723_v44  ;;  %v9732_v54 = vmul.f32 1.442695, %v9725_v47  ;;  %v18501_v47 = vcombine.high %v18242_v49, %v18246_v42  ;;  %v18285_v14 = vld [vmem:[%s21990_s19 + $0x1ea0] sm:$0xff] }
 0xa51   : > { %21162 = vpow2.f32 %v9726_v15  ;;  %v18249_v15 = vld [vmem:[%s21990_s19 + $0x1d80] sm:$0xff] }
 0xa52   : > { %21164 = vpow2.f32 %v9728_v53  ;;  %v18253_v53 = vld [vmem:[%s21990_s19 + $0x1da0] sm:$0xff] }
 0xa53   : > { %21166 = vpow2.f32 %v9732_v54  ;;  %v18250_v54 = vld [vmem:[%s21990_s19 + $0x1d88] sm:$0xff]  ;;  %v18506_v52 = vcombine.low %v18249_v15, %v18253_v53 }
 0xa5b   : > { %v21163_v39 = vpop.eup %21162 }
 0xa5c   : > { %v18069_v27 = vadd.f32 -1.0, %v21163_v39  ;;  %v21165_v56 = vpop.eup %21164  ;;  %v18254_v39 = vld [vmem:[%s21990_s19 + $0x1da8] sm:$0xff] }
 0xa5d   : > { %v21167_v57 = vpop.eup %21166  ;;  %v18070_v45 = vadd.f32 -1.0, %v21165_v56  ;;  %v18500_v56 = vcombine.low %v18242_v49, %v18246_v42  ;;  %v18508_v10 = vcombine.low %v18250_v54, %v18254_v39  ;;  %v18290_v49 = vld [vmem:[%s21990_s19 + $0x1ec8] sm:$0xff] }
 0xa5e   : > { %v9738_v16 = vsel %vm9718_vm12, %v19826_v25, %v18069_v27  ;;  %v18072_v19 = vadd.f32 -1.0, %v21167_v57  ;;  %v18482_v25 = vcombine.low %v18225_v35, %v18229_v2  ;;  %v18507_v57 = vcombine.high %v18249_v15, %v18253_v53  ;;  %v18294_v42 = vld [vmem:[%s21990_s19 + $0x1ee8] sm:$0xff]  ;;  %v18297_v53 = vld [vmem:[%s21990_s19 + $0x1f00] sm:$0xff] }
 0xa5f   : > { %v9739_v46 = vsel %vm9719_vm13, %v19828_v4, %v18070_v45  ;;  %v23532_v62 = vpack.c.bf16 %v9738_v16, %v9738_v16  ;;  %v18493_v4 = vcombine.high %v18234_v26, %v18238_v23  ;;  %v18509_v45 = vcombine.high %v18250_v54, %v18254_v39  ;;  %v18257_v16 = vld [vmem:[%s21990_s19 + $0x1dc0] sm:$0xff]  ;;  %v18282_v26 = vld [vmem:[%s21990_s19 + $0x1e88] sm:$0xff] }
 0xa60   : > { %v9741_v59 = vsel %vm9721_vm14, %v19832_v50, %v18072_v19  ;;  %v23530_v60 = vpack.c.bf16 %v9739_v46, %v9739_v46  ;;  %v18241_v50 = vld [vmem:[%s21990_s19 + $0x1d40] sm:$0xff]  ;;  %v18262_v46 = vld [vmem:[%s21990_s19 + $0x1de8] sm:$0xff]  ;;  %v18549_v15 = vcombine.high %v18290_v49, %v18294_v42 }
 0xa61   : > { %v23542_v28 = vpack.c.bf16 %v9741_v59, %v9741_v59  ;;  %v18499_v44 = vcombine.high %v18241_v50, %v18245_v38  ;;  %v18498_v27 = vcombine.low %v18241_v50, %v18245_v38  ;;  %v18261_v19 = vld [vmem:[%s21990_s19 + $0x1de0] sm:$0xff]  ;;  %v8901_v59 = vrot.slane %v23510_v61, %v22415_v17  ;;  %v18286_v23 = vld [vmem:[%s21990_s19 + $0x1ea8] sm:$0xff] }
 0xa62   : > { %11366 = vmatprep.mubr.bf16.mxu0 %v23530_v60  ;;  %11448 = vmatprep.mubr.bf16.mxu1 %v23530_v60  ;;  %v18515_v0 = vcombine.high %v18257_v16, %v18261_v19  ;;  %v18514_v58 = vcombine.low %v18257_v16, %v18261_v19  ;;  %v18289_v50 = vld [vmem:[%s21990_s19 + $0x1ec0] sm:$0xff]  ;;  %v18298_v39 = vld [vmem:[%s21990_s19 + $0x1f08] sm:$0xff] }
 0xa63   : > { %11367 = vmatmul.mubr.bf16.vlgmr.msra.gmra.mrb[24].mxu0 %v23532_v62  ;;  %11449 = vmatmul.mubr.bf16.vlgmr.msra.gmra.mrb[24].mxu1 %v23532_v62  ;;  %v18293_v38 = vld [vmem:[%s21990_s19 + $0x1ee0] sm:$0xff] }
 0xa64   : > { %11376 = vmatpush1.bf16.msra.mxu0 %v18458_v11  ;;  %11458 = vmatpush1.bf16.msra.mxu1 %v18460_v12  ;;  %v18230_v11 = vld [vmem:[%s21990_s19 + $0x1ce8] sm:$0xff]  ;;  %v18483_v12 = vcombine.high %v18225_v35, %v18229_v2  ;;  %v18277_v35 = vld [vmem:[%s21990_s19 + $0x1e60] sm:$0xff] }
 0xa65   : > { %11407 = vmatprep.mubr.bf16.mxu0 %v23542_v28  ;;  %11489 = vmatprep.mubr.bf16.mxu1 %v23542_v28  ;;  %v18485_v36 = vcombine.high %v18226_v3, %v18230_v11  ;;  %v18484_v37 = vcombine.low %v18226_v3, %v18230_v11  ;;  %v18274_v2 = vld [vmem:[%s21990_s19 + $0x1e48] sm:$0xff]  ;;  %v18301_v54 = vld [vmem:[%s21990_s19 + $0x1f20] sm:$0xff] }
 0xa66   : > { %11377 = vmatprep.subr.bf16.mxu0 %v18467_v18  ;;  %11459 = vmatprep.subr.bf16.mxu1 %v18469_v1  ;;  %v18517_v18 = vcombine.high %v18258_v40, %v18262_v46  ;;  %v18265_v1 = vld [vmem:[%s21990_s19 + $0x1e00] sm:$0xff]  ;;  %v18278_v3 = vld [vmem:[%s21990_s19 + $0x1e68] sm:$0xff] }
 0xa67   : > { %v18523_v61 = vcombine.high %v18265_v1, %v18269_v63  ;;  %v18522_v11 = vcombine.low %v18265_v1, %v18269_v63  ;;  %v18305_v19 = vld [vmem:[%s21990_s19 + $0x1f40] sm:$0xff]  ;;  %v18314_v63 = vld [vmem:[%s21990_s19 + $0x1f88] sm:$0xff] }
 0xa68   : > { %11378 = vmatpush1.bf16.msra.mxu0 %v18466_v33  ;;  %11460 = vmatpush1.bf16.msra.mxu1 %v18468_v34  ;;  %v18516_v33 = vcombine.low %v18258_v40, %v18262_v46  ;;  %v19829_v34 = vadd.f32 %v8901_v59, %v7109_v51  ;;  %v18309_v40 = vld [vmem:[%s21990_s19 + $0x1f60] sm:$0xff]  ;;  %v18306_v46 = vld [vmem:[%s21990_s19 + $0x1f48] sm:$0xff] }
 0xa69   : > { %11379 = vmatprep.subr.bf16.mxu0 %v18475_v48  ;;  %11461 = vmatprep.subr.bf16.mxu1 %v18477_v30  ;;  %v18525_v48 = vcombine.high %v18266_v5, %v18270_v8  ;;  %v18273_v30 = vld [vmem:[%s21990_s19 + $0x1e40] sm:$0xff]  ;;  %v18310_v51 = vld [vmem:[%s21990_s19 + $0x1f68] sm:$0xff]  ;;  %v18563_v59 = vcombine.high %v18305_v19, %v18309_v40 }
 0xa6a   : > { %v18317_v1 = vld [vmem:[%s21990_s19 + $0x1fa0] sm:$0xff] }
 0xa6c   : > { %11380 = vmatpush1.bf16.msra.mxu0 %v18474_v7  ;;  %11462 = vmatpush1.bf16.msra.mxu1 %v18476_v9  ;;  %v18524_v7 = vcombine.low %v18266_v5, %v18270_v8  ;;  %v23585_v9 = vadd.f32 %v19829_v34, %v23524_v6  ;;  %v18539_v6 = vcombine.high %v18281_v13, %v18285_v14  ;;  %v18318_v5 = vld [vmem:[%s21990_s19 + $0x1fa8] sm:$0xff] }
 0xa6d   : > { %11381 = vmatprep.subr.bf16.mxu0 %v18483_v12  ;;  %11463 = vmatprep.subr.bf16.mxu1 %v18485_v36  ;;  %v18531_v12 = vcombine.high %v18273_v30, %v18277_v35  ;;  %v18533_v36 = vcombine.high %v18274_v2, %v18278_v3  ;;  %v18562_v8 = vcombine.low %v18305_v19, %v18309_v40  ;;  %v18103_v19 = vld [vmem:[%s21990_s19 + $0x18f0] sm:$0xff]  ;;  %v18100_v40 = vld [vmem:[%s21990_s19 + $0x18d8] sm:$0xff] }
 0xa6e   : > { %v18573_v34 = vcombine.high %v18314_v63, %v18318_v5  ;;  %vm9720_vm15 = vcmp.gt.f32.partialorder %v23585_v9, 0.0 }
 0xa70   : > { %11382 = vmatpush1.bf16.msra.mxu0 %v18482_v25  ;;  %11464 = vmatpush1.bf16.msra.mxu1 %v18484_v37  ;;  %v18530_v25 = vcombine.low %v18273_v30, %v18277_v35  ;;  %v18532_v37 = vcombine.low %v18274_v2, %v18278_v3  ;;  %v18322_v30 = vld [vmem:[%s21990_s19 + $0x1fc8] sm:$0xff] }
 0xa71   : > { %11383 = vmatprep.subr.bf16.mxu0 %v18491_v24  ;;  %11465 = vmatprep.subr.bf16.mxu1 %v18493_v4  ;;  %v9724_v24 = vmin.f32 %v23585_v9, 0.0  ;;  %v18541_v4 = vcombine.high %v18282_v26, %v18286_v23  ;;  %v18326_v35 = vld [vmem:[%s21990_s19 + $0x1fe8] sm:$0xff] }
 0xa74   : > { %11384 = vmatpush1.bf16.msra.mxu0 %v18490_v43  ;;  %11466 = vmatpush1.bf16.msra.mxu1 %v18492_v41  ;;  %v18538_v43 = vcombine.low %v18281_v13, %v18285_v14  ;;  %v18540_v41 = vcombine.low %v18282_v26, %v18286_v23  ;;  %v18079_v14 = vld [vmem:[%s21990_s19 + $0x1830] sm:$0xff]  ;;  %v18076_v26 = vld [vmem:[%s21990_s19 + $0x1818] sm:$0xff] }
 0xa75   : > { %11385 = vmatprep.subr.bf16.mxu0 %v18499_v44  ;;  %11467 = vmatprep.subr.bf16.mxu1 %v18501_v47  ;;  %v9730_v44 = vmul.f32 1.442695, %v9724_v24  ;;  %v18547_v47 = vcombine.high %v18289_v50, %v18293_v38  ;;  %v18080_v23 = vld [vmem:[%s21990_s19 + $0x1838] sm:$0xff] }
 0xa77   : > { %21168 = vpow2.f32 %v9730_v44  ;;  %v18336_v44 = vcombine.low %v18076_v26, %v18080_v23 }
 0xa78   : > { %11386 = vmatpush1.bf16.msra.mxu0 %v18498_v27  ;;  %11468 = vmatpush1.bf16.msra.mxu1 %v18500_v56  ;;  %v18302_v27 = vld [vmem:[%s21990_s19 + $0x1f28] sm:$0xff]  ;;  %v18546_v56 = vcombine.low %v18289_v50, %v18293_v38  ;;  %v18083_v50 = vld [vmem:[%s21990_s19 + $0x1850] sm:$0xff] }
 0xa79   : > { %11387 = vmatprep.subr.bf16.mxu0 %v18507_v57  ;;  %11469 = vmatprep.subr.bf16.mxu1 %v18509_v45  ;;  %v18548_v57 = vcombine.low %v18290_v49, %v18294_v42  ;;  %v18555_v45 = vcombine.high %v18297_v53, %v18301_v54  ;;  %v18557_v16 = vcombine.high %v18298_v39, %v18302_v27  ;;  %v18087_v38 = vld [vmem:[%s21990_s19 + $0x1870] sm:$0xff]  ;;  %v18084_v49 = vld [vmem:[%s21990_s19 + $0x1858] sm:$0xff] }
 0xa7a   : > { %v18088_v42 = vld [vmem:[%s21990_s19 + $0x1878] sm:$0xff] }
 0xa7c   : > { %11388 = vmatpush1.bf16.msra.mxu0 %v18506_v52  ;;  %11470 = vmatpush1.bf16.msra.mxu1 %v18508_v10  ;;  %v18554_v52 = vcombine.low %v18297_v53, %v18301_v54  ;;  %v18556_v10 = vcombine.low %v18298_v39, %v18302_v27  ;;  %v18091_v53 = vld [vmem:[%s21990_s19 + $0x1890] sm:$0xff]  ;;  %v18096_v39 = vld [vmem:[%s21990_s19 + $0x18b8] sm:$0xff]  ;;  %v18342_v27 = vcombine.low %v18083_v50, %v18087_v38 }
 0xa7d   : > { %11389 = vmatprep.subr.bf16.mxu0 %v18515_v0  ;;  %11471 = vmatprep.subr.bf16.mxu1 %v18517_v18  ;;  %v18565_v0 = vcombine.high %v18306_v46, %v18310_v51  ;;  %v18313_v18 = vld [vmem:[%s21990_s19 + $0x1f80] sm:$0xff]  ;;  %v18095_v54 = vld [vmem:[%s21990_s19 + $0x18b0] sm:$0xff] }
 0xa7e   : > { %v18570_v3 = vcombine.low %v18313_v18, %v18317_v1 }
 0xa80   : > { %11390 = vmatpush1.bf16.msra.mxu0 %v18514_v58  ;;  %11472 = vmatpush1.bf16.msra.mxu1 %v18516_v33  ;;  %v18564_v58 = vcombine.low %v18306_v46, %v18310_v51  ;;  %v18571_v33 = vcombine.high %v18313_v18, %v18317_v1  ;;  %v18104_v46 = vld [vmem:[%s21990_s19 + $0x18f8] sm:$0xff]  ;;  %v18350_v51 = vcombine.low %v18091_v53, %v18095_v54 }
 0xa81   : > { %11391 = vmatprep.subr.bf16.mxu0 %v18523_v61  ;;  %11473 = vmatprep.subr.bf16.mxu1 %v18525_v48  ;;  %v18321_v61 = vld [vmem:[%s21990_s19 + $0x1fc0] sm:$0xff]  ;;  %v21169_v2 = vpop.eup %21168  ;;  %v18108_v18 = vld [vmem:[%s21990_s19 + $0x1918] sm:$0xff] }
 0xa82   : > { %v18325_v48 = vld [vmem:[%s21990_s19 + $0x1fe0] sm:$0xff]  ;;  %v18071_v13 = vadd.f32 -1.0, %v21169_v2  ;;  %v18112_v1 = vld [vmem:[%s21990_s19 + $0x1938] sm:$0xff] }
 0xa84   : > { %11392 = vmatpush1.bf16.msra.mxu0 %v18522_v11  ;;  %11474 = vmatpush1.bf16.msra.mxu1 %v18524_v7  ;;  %v18572_v11 = vcombine.low %v18314_v63, %v18318_v5  ;;  %v18579_v7 = vcombine.high %v18321_v61, %v18325_v48  ;;  %v18360_v5 = vcombine.low %v18100_v40, %v18104_v46 }
 0xa85   : > { %11393 = vmatprep.subr.bf16.mxu0 %v18531_v12  ;;  %11475 = vmatprep.subr.bf16.mxu1 %v18533_v36  ;;  %v18581_v12 = vcombine.high %v18322_v30, %v18326_v35  ;;  %v18075_v36 = vld [vmem:[%s21990_s19 + $0x1810] sm:$0xff] }
 0xa86   : > { %v18335_v24 = vcombine.high %v18075_v36, %v18079_v14 }
 0xa88   : > { %11394 = vmatpush1.bf16.msra.mxu0 %v18530_v25  ;;  %11476 = vmatpush1.bf16.msra.mxu1 %v18532_v37  ;;  %v18578_v25 = vcombine.low %v18321_v61, %v18325_v48  ;;  %v18580_v37 = vcombine.low %v18322_v30, %v18326_v35  ;;  %v18116_v61 = vld [vmem:[%s21990_s19 + $0x1958] sm:$0xff]  ;;  %v18368_v35 = vcombine.low %v18108_v18, %v18112_v1 }
 0xa89   : > { %11395 = vmatprep.subr.bf16.mxu0 %v18539_v6  ;;  %11477 = vmatprep.subr.bf16.mxu1 %v18541_v4  ;;  %v18337_v6 = vcombine.high %v18076_v26, %v18080_v23  ;;  %v9740_v4 = vsel %vm9720_vm15, %v23585_v9, %v18071_v13  ;;  %v18092_v9 = vld [vmem:[%s21990_s19 + $0x1898] sm:$0xff] }
 0xa8a   : > { %v18120_v48 = vld [vmem:[%s21990_s19 + $0x1978] sm:$0xff] }
 0xa8c   : > { %11396 = vmatpush1.bf16.msra.mxu0 %v18538_v43  ;;  %11478 = vmatpush1.bf16.msra.mxu1 %v18540_v41  ;;  %v18334_v43 = vcombine.low %v18075_v36, %v18079_v14  ;;  %v23622_v41 = vpack.c.bf16 %v9740_v4, %v9740_v4  ;;  %v18128_v36 = vld [vmem:[%s21990_s19 + $0x19b8] sm:$0xff]  ;;  %v18376_v14 = vcombine.low %v18116_v61, %v18120_v48 }
 0xa8d   : > { %11397 = vmatprep.subr.bf16.mxu0 %v18547_v47  ;;  %11479 = vmatprep.subr.bf16.mxu1 %v18549_v15  ;;  %v18343_v47 = vcombine.high %v18083_v50, %v18087_v38  ;;  %v18345_v15 = vcombine.high %v18084_v49, %v18088_v42 }
 0xa90   : > { %11398 = vmatpush1.bf16.msra.mxu0 %v18546_v56  ;;  %11480 = vmatpush1.bf16.msra.mxu1 %v18548_v57  ;;  %v18344_v56 = vcombine.low %v18084_v49, %v18088_v42  ;;  %v18351_v57 = vcombine.high %v18091_v53, %v18095_v54  ;;  %v18139_v42 = vld [vmem:[%s21990_s19 + $0x1a10] sm:$0xff] }
 0xa91   : > { %11399 = vmatprep.subr.bf16.mxu0 %v18555_v45  ;;  %11481 = vmatprep.subr.bf16.mxu1 %v18557_v16  ;;  %v18353_v45 = vcombine.high %v18092_v9, %v18096_v39  ;;  %v18099_v16 = vld [vmem:[%s21990_s19 + $0x18d0] sm:$0xff] }
 0xa92   : > { %v18358_v63 = vcombine.low %v18099_v16, %v18103_v19 }
 0xa94   : > { %11400 = vmatpush1.bf16.msra.mxu0 %v18554_v52  ;;  %11482 = vmatpush1.bf16.msra.mxu1 %v18556_v10  ;;  %v18352_v52 = vcombine.low %v18092_v9, %v18096_v39  ;;  %v18361_v10 = vcombine.high %v18100_v40, %v18104_v46  ;;  %v18147_v39 = vld [vmem:[%s21990_s19 + $0x1a50] sm:$0xff] }
 0xa95   : > { %11401 = vmatprep.subr.bf16.mxu0 %v18563_v59  ;;  %11483 = vmatprep.subr.bf16.mxu1 %v18565_v0  ;;  %v18107_v59 = vld [vmem:[%s21990_s19 + $0x1910] sm:$0xff] }
 0xa96   : > { %v18111_v0 = vld [vmem:[%s21990_s19 + $0x1930] sm:$0xff] }
 0xa97   : > { %v18366_v30 = vcombine.low %v18107_v59, %v18111_v0  ;;  %v18155_v46 = vld [vmem:[%s21990_s19 + $0x1a90] sm:$0xff] }
 0xa98   : > { %11402 = vmatpush1.bf16.msra.mxu0 %v18562_v8  ;;  %11484 = vmatpush1.bf16.msra.mxu1 %v18564_v58  ;;  %v18367_v8 = vcombine.high %v18107_v59, %v18111_v0  ;;  %v18369_v58 = vcombine.high %v18108_v18, %v18112_v1  ;;  %v18163_v1 = vld [vmem:[%s21990_s19 + $0x1ad0] sm:$0xff] }
 0xa99   : > { %11403 = vmatprep.subr.bf16.mxu0 %v18571_v33  ;;  %11485 = vmatprep.subr.bf16.mxu1 %v18573_v34  ;;  %v18115_v33 = vld [vmem:[%s21990_s19 + $0x1950] sm:$0xff] }
 0xa9a   : > { %v18119_v34 = vld [vmem:[%s21990_s19 + $0x1970] sm:$0xff] }
 0xa9b   : > { %v18375_v2 = vcombine.high %v18115_v33, %v18119_v34  ;;  %v18374_v13 = vcombine.low %v18115_v33, %v18119_v34 }
 0xa9c   : > { %11404 = vmatpush1.bf16.msra.mxu0 %v18570_v3  ;;  %11486 = vmatpush1.bf16.msra.mxu1 %v18572_v11  ;;  %v18377_v3 = vcombine.high %v18116_v61, %v18120_v48  ;;  %v18123_v11 = vld [vmem:[%s21990_s19 + $0x1990] sm:$0xff] }
 0xa9d   : > { %11405 = vmatprep.subr.bf16.mxu0 %v18579_v7  ;;  %11487 = vmatprep.subr.bf16.mxu1 %v18581_v12  ;;  %v18127_v7 = vld [vmem:[%s21990_s19 + $0x19b0] sm:$0xff]  ;;  %v18124_v12 = vld [vmem:[%s21990_s19 + $0x1998] sm:$0xff] }
 0xa9e   : > { %v18383_v26 = vcombine.high %v18123_v11, %v18127_v7  ;;  %v18385_v23 = vcombine.high %v18124_v12, %v18128_v36  ;;  %v18382_v4 = vcombine.low %v18123_v11, %v18127_v7  ;;  %v18384_v50 = vcombine.low %v18124_v12, %v18128_v36  ;;  %v18171_v48 = vld [vmem:[%s21990_s19 + $0x1b10] sm:$0xff] }
 0xa9f   : > { %v18179_v36 = vld [vmem:[%s21990_s19 + $0x1b50] sm:$0xff] }
 0xaa0   : > { %11406 = vmatpush1.bf16.msra.mxu0 %v18578_v25  ;;  %11488 = vmatpush1.bf16.msra.mxu1 %v18580_v37  ;;  %v18131_v25 = vld [vmem:[%s21990_s19 + $0x19d0] sm:$0xff] }
 0xaa1   : > { %11498 = vmatprep.subr.bf16.mxu0 %v18335_v24  ;;  %11580 = vmatprep.subr.bf16.mxu1 %v18337_v6  ;;  %v18135_v37 = vld [vmem:[%s21990_s19 + $0x19f0] sm:$0xff]  ;;  %v18132_v24 = vld [vmem:[%s21990_s19 + $0x19d8] sm:$0xff] }
 0xaa2   : > { %v18136_v6 = vld [vmem:[%s21990_s19 + $0x19f8] sm:$0xff]  ;;  %v18391_v38 = vcombine.high %v18131_v25, %v18135_v37 }
 0xaa3   : > { %11408 = vmatmul.mubr.bf16.vlgmr.msra.gmra.mrb[24].mxu0 %v23622_v41  ;;  %11490 = vmatmul.mubr.bf16.vlgmr.msra.gmra.mrb[24].mxu1 %v23622_v41  ;;  %v18393_v49 = vcombine.high %v18132_v24, %v18136_v6  ;;  %v18392_v53 = vcombine.low %v18132_v24, %v18136_v6  ;;  %v18187_v6 = vld [vmem:[%s21990_s19 + $0x1b90] sm:$0xff] }
 0xaa4   : > { %11499 = vmatpush1.bf16.msra.mxu0 %v18334_v43  ;;  %11530 = vmatprep.mubr.bf16.mxu0 %v23530_v60  ;;  %v18143_v43 = vld [vmem:[%s21990_s19 + $0x1a30] sm:$0xff] }
 0xaa5   : > { %11581 = vmatpush1.bf16.msra.mxu1 %v18336_v44  ;;  %11612 = vmatprep.mubr.bf16.mxu1 %v23530_v60  ;;  %v18359_v60 = vcombine.high %v18099_v16, %v18103_v19  ;;  %v18140_v44 = vld [vmem:[%s21990_s19 + $0x1a18] sm:$0xff]  ;;  %v18399_v54 = vcombine.high %v18139_v42, %v18143_v43 }
 0xaa6   : > { %11500 = vmatprep.subr.bf16.mxu0 %v18343_v47  ;;  %11582 = vmatprep.subr.bf16.mxu1 %v18345_v15  ;;  %v18144_v47 = vld [vmem:[%s21990_s19 + $0x1a38] sm:$0xff]  ;;  %v18390_v15 = vcombine.low %v18131_v25, %v18135_v37 }
 0xaa7   : > { %v18401_v9 = vcombine.high %v18140_v44, %v18144_v47  ;;  %v18400_v16 = vcombine.low %v18140_v44, %v18144_v47  ;;  %v18195_v47 = vld [vmem:[%s21990_s19 + $0x1bd0] sm:$0xff] }
 0xaa8   : > { %11501 = vmatpush1.bf16.msra.mxu0 %v18342_v27  ;;  %v18151_v27 = vld [vmem:[%s21990_s19 + $0x1a70] sm:$0xff] }
 0xaa9   : > { %11583 = vmatpush1.bf16.msra.mxu1 %v18344_v56  ;;  %11502 = vmatprep.subr.bf16.mxu0 %v18351_v57  ;;  %v18148_v56 = vld [vmem:[%s21990_s19 + $0x1a58] sm:$0xff]  ;;  %v18407_v19 = vcombine.high %v18147_v39, %v18151_v27 }
 0xaaa   : > { %11584 = vmatprep.subr.bf16.mxu1 %v18353_v45  ;;  %v18152_v57 = vld [vmem:[%s21990_s19 + $0x1a78] sm:$0xff]  ;;  %v18398_v45 = vcombine.low %v18139_v42, %v18143_v43 }
 0xaab   : > { %v18409_v40 = vcombine.high %v18148_v56, %v18152_v57  ;;  %v18408_v59 = vcombine.low %v18148_v56, %v18152_v57  ;;  %v18203_v57 = vld [vmem:[%s21990_s19 + $0x1c10] sm:$0xff] }
 0xaac   : > { %11503 = vmatpush1.bf16.msra.mxu0 %v18350_v51  ;;  %v18159_v51 = vld [vmem:[%s21990_s19 + $0x1ab0] sm:$0xff] }
 0xaad   : > { %11585 = vmatpush1.bf16.msra.mxu1 %v18352_v52  ;;  %11504 = vmatprep.subr.bf16.mxu0 %v18359_v60  ;;  %v18156_v52 = vld [vmem:[%s21990_s19 + $0x1a98] sm:$0xff]  ;;  %v18415_v0 = vcombine.high %v18155_v46, %v18159_v51 }
 0xaae   : > { %11586 = vmatprep.subr.bf16.mxu1 %v18361_v10  ;;  %v18160_v60 = vld [vmem:[%s21990_s19 + $0x1ab8] sm:$0xff]  ;;  %v18406_v10 = vcombine.low %v18147_v39, %v18151_v27 }
 0xaaf   : > { %v18417_v18 = vcombine.high %v18156_v52, %v18160_v60  ;;  %v18416_v33 = vcombine.low %v18156_v52, %v18160_v60  ;;  %v18211_v60 = vld [vmem:[%s21990_s19 + $0x1c50] sm:$0xff] }
 0xab0   : > { %11505 = vmatpush1.bf16.msra.mxu0 %v18358_v63  ;;  %v18167_v63 = vld [vmem:[%s21990_s19 + $0x1af0] sm:$0xff] }
 0xab1   : > { %11587 = vmatpush1.bf16.msra.mxu1 %v18360_v5  ;;  %11506 = vmatprep.subr.bf16.mxu0 %v18367_v8  ;;  %v18164_v5 = vld [vmem:[%s21990_s19 + $0x1ad8] sm:$0xff]  ;;  %v18423_v34 = vcombine.high %v18163_v1, %v18167_v63 }
 0xab2   : > { %11588 = vmatprep.subr.bf16.mxu1 %v18369_v58  ;;  %v18168_v8 = vld [vmem:[%s21990_s19 + $0x1af8] sm:$0xff]  ;;  %v18414_v58 = vcombine.low %v18155_v46, %v18159_v51 }
 0xab3   : > { %v18425_v61 = vcombine.high %v18164_v5, %v18168_v8  ;;  %v18424_v11 = vcombine.low %v18164_v5, %v18168_v8  ;;  %v18219_v5 = vld [vmem:[%s21990_s19 + $0x1c90] sm:$0xff] }
 0xab4   : > { %11507 = vmatpush1.bf16.msra.mxu0 %v18366_v30  ;;  %v18175_v30 = vld [vmem:[%s21990_s19 + $0x1b30] sm:$0xff] }
 0xab5   : > { %11589 = vmatpush1.bf16.msra.mxu1 %v18368_v35  ;;  %11508 = vmatprep.subr.bf16.mxu0 %v18375_v2  ;;  %v18172_v35 = vld [vmem:[%s21990_s19 + $0x1b18] sm:$0xff]  ;;  %v18431_v7 = vcombine.high %v18171_v48, %v18175_v30  ;;  %v18223_v8 = vld [vmem:[%s21990_s19 + $0x1cb0] sm:$0xff] }
 0xab6   : > { %11590 = vmatprep.subr.bf16.mxu1 %v18377_v3  ;;  %v18176_v2 = vld [vmem:[%s21990_s19 + $0x1b38] sm:$0xff]  ;;  %v18422_v3 = vcombine.low %v18163_v1, %v18167_v63 }
 0xab7   : > { %v18433_v12 = vcombine.high %v18172_v35, %v18176_v2  ;;  %v18432_v25 = vcombine.low %v18172_v35, %v18176_v2  ;;  %v18227_v2 = vld [vmem:[%s21990_s19 + $0x1cd0] sm:$0xff] }
 0xab8   : > { %11509 = vmatpush1.bf16.msra.mxu0 %v18374_v13  ;;  %v18183_v13 = vld [vmem:[%s21990_s19 + $0x1b70] sm:$0xff] }
 0xab9   : > { %11591 = vmatpush1.bf16.msra.mxu1 %v18376_v14  ;;  %11510 = vmatprep.subr.bf16.mxu0 %v18383_v26  ;;  %v18180_v14 = vld [vmem:[%s21990_s19 + $0x1b58] sm:$0xff]  ;;  %v18439_v37 = vcombine.high %v18179_v36, %v18183_v13 }
 0xaba   : > { %11592 = vmatprep.subr.bf16.mxu1 %v18385_v23  ;;  %v18184_v26 = vld [vmem:[%s21990_s19 + $0x1b78] sm:$0xff]  ;;  %v18430_v23 = vcombine.low %v18171_v48, %v18175_v30  ;;  %v18479_v30 = vcombine.high %v18219_v5, %v18223_v8 }
 0xabb   : > { %v18441_v24 = vcombine.high %v18180_v14, %v18184_v26  ;;  %v18440_v42 = vcombine.low %v18180_v14, %v18184_v26  ;;  %v18239_v14 = vld [vmem:[%s21990_s19 + $0x1d30] sm:$0xff]  ;;  %v18236_v26 = vld [vmem:[%s21990_s19 + $0x1d18] sm:$0xff] }
 0xabc   : > { %11511 = vmatpush1.bf16.msra.mxu0 %v18382_v4  ;;  %v18191_v4 = vld [vmem:[%s21990_s19 + $0x1bb0] sm:$0xff] }
 0xabd   : > { %11593 = vmatpush1.bf16.msra.mxu1 %v18384_v50  ;;  %11512 = vmatprep.subr.bf16.mxu0 %v18391_v38  ;;  %v18188_v50 = vld [vmem:[%s21990_s19 + $0x1b98] sm:$0xff]  ;;  %v18447_v43 = vcombine.high %v18187_v6, %v18191_v4 }
 0xabe   : > { %11594 = vmatprep.subr.bf16.mxu1 %v18393_v49  ;;  %v18192_v38 = vld [vmem:[%s21990_s19 + $0x1bb8] sm:$0xff]  ;;  %v18438_v49 = vcombine.low %v18179_v36, %v18183_v13  ;;  %v18235_v13 = vld [vmem:[%s21990_s19 + $0x1d10] sm:$0xff] }
 0xabf   : > { %v18449_v44 = vcombine.high %v18188_v50, %v18192_v38  ;;  %v18448_v39 = vcombine.low %v18188_v50, %v18192_v38  ;;  %v18247_v50 = vld [vmem:[%s21990_s19 + $0x1d70] sm:$0xff]  ;;  %v18244_v38 = vld [vmem:[%s21990_s19 + $0x1d58] sm:$0xff] }
 0xac0   : > { %11513 = vmatpush1.bf16.msra.mxu0 %v18390_v15  ;;  %v18199_v15 = vld [vmem:[%s21990_s19 + $0x1bf0] sm:$0xff] }
 0xac1   : > { %11595 = vmatpush1.bf16.msra.mxu1 %v18392_v53  ;;  %11514 = vmatprep.subr.bf16.mxu0 %v18399_v54  ;;  %v18196_v53 = vld [vmem:[%s21990_s19 + $0x1bd8] sm:$0xff]  ;;  %v18455_v27 = vcombine.high %v18195_v47, %v18199_v15 }
 0xac2   : > { %11596 = vmatprep.subr.bf16.mxu1 %v18401_v9  ;;  %v18200_v54 = vld [vmem:[%s21990_s19 + $0x1bf8] sm:$0xff]  ;;  %v18446_v9 = vcombine.low %v18187_v6, %v18191_v4  ;;  %v18243_v4 = vld [vmem:[%s21990_s19 + $0x1d50] sm:$0xff] }
 0xac3   : > { %v18457_v56 = vcombine.high %v18196_v53, %v18200_v54  ;;  %v18456_v46 = vcombine.low %v18196_v53, %v18200_v54  ;;  %v18255_v53 = vld [vmem:[%s21990_s19 + $0x1db0] sm:$0xff]  ;;  %v18252_v54 = vld [vmem:[%s21990_s19 + $0x1d98] sm:$0xff] }
 0xac4   : > { %11515 = vmatpush1.bf16.msra.mxu0 %v18398_v45  ;;  %v18207_v45 = vld [vmem:[%s21990_s19 + $0x1c30] sm:$0xff] }
 0xac5   : > { %11597 = vmatpush1.bf16.msra.mxu1 %v18400_v16  ;;  %11516 = vmatprep.subr.bf16.mxu0 %v18407_v19  ;;  %v18204_v16 = vld [vmem:[%s21990_s19 + $0x1c18] sm:$0xff]  ;;  %v18463_v51 = vcombine.high %v18203_v57, %v18207_v45 }
 0xac6   : > { %11598 = vmatprep.subr.bf16.mxu1 %v18409_v40  ;;  %v18208_v19 = vld [vmem:[%s21990_s19 + $0x1c38] sm:$0xff]  ;;  %v18454_v40 = vcombine.low %v18195_v47, %v18199_v15  ;;  %v18251_v15 = vld [vmem:[%s21990_s19 + $0x1d90] sm:$0xff] }
 0xac7   : > { %v18465_v52 = vcombine.high %v18204_v16, %v18208_v19  ;;  %v18464_v1 = vcombine.low %v18204_v16, %v18208_v19  ;;  %v18263_v16 = vld [vmem:[%s21990_s19 + $0x1df0] sm:$0xff]  ;;  %v18260_v19 = vld [vmem:[%s21990_s19 + $0x1dd8] sm:$0xff] }
 0xac8   : > { %11517 = vmatpush1.bf16.msra.mxu0 %v18406_v10  ;;  %v18215_v10 = vld [vmem:[%s21990_s19 + $0x1c70] sm:$0xff] }
 0xac9   : > { %11599 = vmatpush1.bf16.msra.mxu1 %v18408_v59  ;;  %11518 = vmatprep.subr.bf16.mxu0 %v18415_v0  ;;  %v18462_v59 = vcombine.low %v18203_v57, %v18207_v45  ;;  %v18212_v0 = vld [vmem:[%s21990_s19 + $0x1c58] sm:$0xff]  ;;  %v18471_v63 = vcombine.high %v18211_v60, %v18215_v10  ;;  %v18259_v45 = vld [vmem:[%s21990_s19 + $0x1dd0] sm:$0xff] }
 0xaca   : > { %11600 = vmatprep.subr.bf16.mxu1 %v18417_v18  ;;  %v18216_v18 = vld [vmem:[%s21990_s19 + $0x1c78] sm:$0xff] }
 0xacb   : > { %v18472_v48 = vcombine.low %v18212_v0, %v18216_v18 }
 0xacc   : > { %11519 = vmatpush1.bf16.msra.mxu0 %v18414_v58  ;;  %v18473_v58 = vcombine.high %v18212_v0, %v18216_v18  ;;  %v18268_v0 = vld [vmem:[%s21990_s19 + $0x1e18] sm:$0xff] }
 0xacd   : > { %11601 = vmatpush1.bf16.msra.mxu1 %v18416_v33  ;;  %11520 = vmatprep.subr.bf16.mxu0 %v18423_v34  ;;  %v18220_v33 = vld [vmem:[%s21990_s19 + $0x1c98] sm:$0xff] }
 0xace   : > { %11602 = vmatprep.subr.bf16.mxu1 %v18425_v61  ;;  %v18224_v34 = vld [vmem:[%s21990_s19 + $0x1cb8] sm:$0xff]  ;;  %v18470_v61 = vcombine.low %v18211_v60, %v18215_v10  ;;  %v18267_v10 = vld [vmem:[%s21990_s19 + $0x1e10] sm:$0xff] }
 0xacf   : > { %v18481_v35 = vcombine.high %v18220_v33, %v18224_v34  ;;  %v18272_v18 = vld [vmem:[%s21990_s19 + $0x1e38] sm:$0xff] }
 0xad0   : > { %11521 = vmatpush1.bf16.msra.mxu0 %v18422_v3  ;;  %v18231_v3 = vld [vmem:[%s21990_s19 + $0x1cf0] sm:$0xff] }
 0xad1   : > { %11603 = vmatpush1.bf16.msra.mxu1 %v18424_v11  ;;  %11522 = vmatprep.subr.bf16.mxu0 %v18431_v7  ;;  %v18228_v11 = vld [vmem:[%s21990_s19 + $0x1cd8] sm:$0xff]  ;;  %v18478_v7 = vcombine.low %v18219_v5, %v18223_v8  ;;  %v18487_v36 = vcombine.high %v18227_v2, %v18231_v3  ;;  %v18529_v8 = vcombine.high %v18268_v0, %v18272_v18 }
 0xad2   : > { %11604 = vmatprep.subr.bf16.mxu1 %v18433_v12  ;;  %v18480_v12 = vcombine.low %v18220_v33, %v18224_v34  ;;  %v18279_v33 = vld [vmem:[%s21990_s19 + $0x1e70] sm:$0xff]  ;;  %v18276_v34 = vld [vmem:[%s21990_s19 + $0x1e58] sm:$0xff] }
 0xad4   : > { %11523 = vmatpush1.bf16.msra.mxu0 %v18430_v23  ;;  %v18240_v23 = vld [vmem:[%s21990_s19 + $0x1d38] sm:$0xff] }
 0xad5   : > { %11605 = vmatpush1.bf16.msra.mxu1 %v18432_v25  ;;  %11524 = vmatprep.subr.bf16.mxu0 %v18439_v37  ;;  %v18486_v25 = vcombine.low %v18227_v2, %v18231_v3  ;;  %v18497_v6 = vcombine.high %v18236_v26, %v18240_v23  ;;  %v18283_v3 = vld [vmem:[%s21990_s19 + $0x1e90] sm:$0xff] }
 0xad6   : > { %11606 = vmatprep.subr.bf16.mxu1 %v18441_v24  ;;  %v18495_v24 = vcombine.high %v18235_v13, %v18239_v14 }
 0xad8   : > { %11525 = vmatpush1.bf16.msra.mxu0 %v18438_v49  ;;  %v18248_v49 = vld [vmem:[%s21990_s19 + $0x1d78] sm:$0xff] }
 0xad9   : > { %11607 = vmatpush1.bf16.msra.mxu1 %v18440_v42  ;;  %11526 = vmatprep.subr.bf16.mxu0 %v18447_v43  ;;  %v18494_v42 = vcombine.low %v18235_v13, %v18239_v14  ;;  %v18496_v43 = vcombine.low %v18236_v26, %v18240_v23  ;;  %v18505_v47 = vcombine.high %v18244_v38, %v18248_v49  ;;  %v18291_v14 = vld [vmem:[%s21990_s19 + $0x1ed0] sm:$0xff]  ;;  %v18292_v23 = vld [vmem:[%s21990_s19 + $0x1ed8] sm:$0xff] }
 0xada   : > { %11608 = vmatprep.subr.bf16.mxu1 %v18449_v44  ;;  %v18503_v44 = vcombine.high %v18243_v4, %v18247_v50  ;;  %v18295_v26 = vld [vmem:[%s21990_s19 + $0x1ef0] sm:$0xff] }
 0xadc   : > { %11527 = vmatpush1.bf16.msra.mxu0 %v18446_v9  ;;  %v18256_v9 = vld [vmem:[%s21990_s19 + $0x1db8] sm:$0xff] }
 0xadd   : > { %11609 = vmatpush1.bf16.msra.mxu1 %v18448_v39  ;;  %11528 = vmatprep.subr.bf16.mxu0 %v18455_v27  ;;  %v18502_v39 = vcombine.low %v18243_v4, %v18247_v50  ;;  %v18504_v27 = vcombine.low %v18244_v38, %v18248_v49  ;;  %v18513_v57 = vcombine.high %v18252_v54, %v18256_v9  ;;  %v18299_v50 = vld [vmem:[%s21990_s19 + $0x1f10] sm:$0xff]  ;;  %v18300_v49 = vld [vmem:[%s21990_s19 + $0x1f18] sm:$0xff] }
 0xade   : > { %11610 = vmatprep.subr.bf16.mxu1 %v18457_v56  ;;  %v18511_v56 = vcombine.high %v18251_v15, %v18255_v53  ;;  %v18303_v38 = vld [vmem:[%s21990_s19 + $0x1f30] sm:$0xff] }
 0xae0   : > { %11529 = vmatpush1.bf16.msra.mxu0 %v18454_v40  ;;  %v18264_v40 = vld [vmem:[%s21990_s19 + $0x1df8] sm:$0xff] }
 0xae1   : > { %11611 = vmatpush1.bf16.msra.mxu1 %v18456_v46  ;;  %11539 = vmatprep.subr.bf16.mxu0 %v18463_v51  ;;  %v18510_v46 = vcombine.low %v18251_v15, %v18255_v53  ;;  %v18512_v51 = vcombine.low %v18252_v54, %v18256_v9  ;;  %v18521_v60 = vcombine.high %v18260_v19, %v18264_v40  ;;  %v18307_v53 = vld [vmem:[%s21990_s19 + $0x1f50] sm:$0xff]  ;;  %v18308_v9 = vld [vmem:[%s21990_s19 + $0x1f58] sm:$0xff] }
 0xae2   : > { %11621 = vmatprep.subr.bf16.mxu1 %v18465_v52  ;;  %v18519_v52 = vcombine.high %v18259_v45, %v18263_v16  ;;  %v18311_v54 = vld [vmem:[%s21990_s19 + $0x1f70] sm:$0xff] }
 0xae3   : > { %11531 = vmatmul.mubr.bf16.vlgmr.msra.gmra.mrb[28].mxu0 %v23532_v62 }
 0xae4   : > { %11613 = vmatmul.mubr.bf16.vlgmr.msra.gmra.mrb[28].mxu1 %v23532_v62  ;;  %11540 = vmatpush1.bf16.msra.mxu0 %v18462_v59  ;;  %v18232_v62 = vld [vmem:[%s21990_s19 + $0x1cf8] sm:$0xff]  ;;  %v18271_v59 = vld [vmem:[%s21990_s19 + $0x1e30] sm:$0xff] }
 0xae5   : > { %11571 = vmatprep.mubr.bf16.mxu0 %v23542_v28  ;;  %11622 = vmatpush1.bf16.msra.mxu1 %v18464_v1  ;;  %v18488_v37 = vcombine.low %v18228_v11, %v18232_v62  ;;  %v18518_v1 = vcombine.low %v18259_v45, %v18263_v16  ;;  %v18527_v5 = vcombine.high %v18267_v10, %v18271_v59  ;;  %v18315_v16 = vld [vmem:[%s21990_s19 + $0x1f90] sm:$0xff] }
 0xae6   : > { %11653 = vmatprep.mubr.bf16.mxu1 %v23542_v28  ;;  %11541 = vmatprep.subr.bf16.mxu0 %v18471_v63  ;;  %v18489_v28 = vcombine.high %v18228_v11, %v18232_v62  ;;  %v18520_v63 = vcombine.low %v18260_v19, %v18264_v40  ;;  %v18287_v11 = vld [vmem:[%s21990_s19 + $0x1eb0] sm:$0xff]  ;;  %v18284_v62 = vld [vmem:[%s21990_s19 + $0x1e98] sm:$0xff] }
 0xae7   : > { %11623 = vmatprep.subr.bf16.mxu1 %v18473_v58  ;;  %v18275_v58 = vld [vmem:[%s21990_s19 + $0x1e50] sm:$0xff]  ;;  %v18316_v40 = vld [vmem:[%s21990_s19 + $0x1f98] sm:$0xff] }
 0xae8   : > { %11542 = vmatpush1.bf16.msra.mxu0 %v18470_v61  ;;  %v18280_v61 = vld [vmem:[%s21990_s19 + $0x1e78] sm:$0xff]  ;;  %v18319_v19 = vld [vmem:[%s21990_s19 + $0x1fb0] sm:$0xff] }
 0xae9   : > { %11624 = vmatpush1.bf16.msra.mxu1 %v18472_v48  ;;  %11543 = vmatprep.subr.bf16.mxu0 %v18479_v30  ;;  %v18526_v48 = vcombine.low %v18267_v10, %v18271_v59  ;;  %v18528_v30 = vcombine.low %v18268_v0, %v18272_v18  ;;  %v18537_v2 = vcombine.high %v18276_v34, %v18280_v61  ;;  %v18323_v59 = vld [vmem:[%s21990_s19 + $0x1fd0] sm:$0xff]  ;;  %v18324_v18 = vld [vmem:[%s21990_s19 + $0x1fd8] sm:$0xff] }
 0xaea   : > { %11625 = vmatprep.subr.bf16.mxu1 %v18481_v35  ;;  %v18535_v35 = vcombine.high %v18275_v58, %v18279_v33  ;;  %v18327_v0 = vld [vmem:[%s21990_s19 + $0x1ff0] sm:$0xff] }
 0xaec   : > { %11544 = vmatpush1.bf16.msra.mxu0 %v18478_v7  ;;  %v18288_v7 = vld [vmem:[%s21990_s19 + $0x1eb8] sm:$0xff] }
 0xaed   : > { %11626 = vmatpush1.bf16.msra.mxu1 %v18480_v12  ;;  %11545 = vmatprep.subr.bf16.mxu0 %v18487_v36  ;;  %v18534_v12 = vcombine.low %v18275_v58, %v18279_v33  ;;  %v18536_v36 = vcombine.low %v18276_v34, %v18280_v61  ;;  %v18545_v13 = vcombine.high %v18284_v62, %v18288_v7  ;;  %v20740_v61 = vld [vmem:[%s21998_s14 + $0xc04] ss:$16 sps:$4 sm:$0xff]  }
 0xaee   : > { %11627 = vmatprep.subr.bf16.mxu1 %v18489_v28  ;;  %v18543_v28 = vcombine.high %v18283_v3, %v18287_v11  ;;  %v18582_v33 = vcombine.low %v18323_v59, %v18327_v0 }
 0xaf0   : > { %11546 = vmatpush1.bf16.msra.mxu0 %v18486_v25  ;;  %v18296_v25 = vld [vmem:[%s21990_s19 + $0x1ef8] sm:$0xff] }
 0xaf1   : > { %11628 = vmatpush1.bf16.msra.mxu1 %v18488_v37  ;;  %11547 = vmatprep.subr.bf16.mxu0 %v18495_v24  ;;  %v18542_v37 = vcombine.low %v18283_v3, %v18287_v11  ;;  %v18544_v24 = vcombine.low %v18284_v62, %v18288_v7  ;;  %v18553_v4 = vcombine.high %v18292_v23, %v18296_v25  ;;  %v20749_v3 = vld [vmem:[%s21998_s14 + $0xc2c] ss:$16 sps:$4 sm:$0xff]   ;;  %v20744_v11 = vld [vmem:[%s21998_s14 + $0xc20] ss:$16 sps:$4 sm:$0xff]   ;;  %v20747_v62 = vld [vmem:[%s21998_s14 + $0xc28] ss:$16 sps:$4 sm:$0xff]  }
 0xaf2   : > { %11629 = vmatprep.subr.bf16.mxu1 %v18497_v6  ;;  %v18551_v6 = vcombine.high %v18291_v14, %v18295_v26  ;;  %v20752_v7 = vld [vmem:[%s21998_s14 + $0xc44] ss:$16 sps:$4 sm:$0xff]  }
 0xaf4   : > { %11548 = vmatpush1.bf16.msra.mxu0 %v18494_v42  ;;  %v18304_v42 = vld [vmem:[%s21990_s19 + $0x1f38] sm:$0xff] }
 0xaf5   : > { %11630 = vmatpush1.bf16.msra.mxu1 %v18496_v43  ;;  %11549 = vmatprep.subr.bf16.mxu0 %v18503_v44  ;;  %v18550_v43 = vcombine.low %v18291_v14, %v18295_v26  ;;  %v18552_v44 = vcombine.low %v18292_v23, %v18296_v25  ;;  %v18561_v15 = vcombine.high %v18300_v49, %v18304_v42  ;;  %v20756_v14 = vld [vmem:[%s21998_s14 + $0xc60] ss:$16 sps:$4 sm:$0xff]   ;;  %v20759_v26 = vld [vmem:[%s21998_s14 + $0xc68] ss:$16 sps:$4 sm:$0xff]   ;;  %v20764_v23 = vld [vmem:[%s21998_s14 + $0xc84] ss:$16 sps:$4 sm:$0xff]  }
 0xaf6   : > { %11631 = vmatprep.subr.bf16.mxu1 %v18505_v47  ;;  %v18559_v47 = vcombine.high %v18299_v50, %v18303_v38  ;;  %v20767_v25 = vld [vmem:[%s21998_s14 + $0xc8c] ss:$16 sps:$4 sm:$0xff]  }
 0xaf8   : > { %11550 = vmatpush1.bf16.msra.mxu0 %v18502_v39  ;;  %v18312_v39 = vld [vmem:[%s21990_s19 + $0x1f78] sm:$0xff] }
 0xaf9   : > { %11632 = vmatpush1.bf16.msra.mxu1 %v18504_v27  ;;  %11551 = vmatprep.subr.bf16.mxu0 %v18511_v56  ;;  %v18558_v27 = vcombine.low %v18299_v50, %v18303_v38  ;;  %v18560_v56 = vcombine.low %v18300_v49, %v18304_v42  ;;  %v18569_v45 = vcombine.high %v18308_v9, %v18312_v39  ;;  %v20768_v50 = vld [vmem:[%s21998_s14 + $0xca0] ss:$16 sps:$4 sm:$0xff]   ;;  %v20771_v38 = vld [vmem:[%s21998_s14 + $0xca8] ss:$16 sps:$4 sm:$0xff]   ;;  %v20776_v49 = vld [vmem:[%s21998_s14 + $0xcc4] ss:$16 sps:$4 sm:$0xff]  }
 0xafa   : > { %11633 = vmatprep.subr.bf16.mxu1 %v18513_v57  ;;  %v18567_v57 = vcombine.high %v18307_v53, %v18311_v54  ;;  %v20779_v42 = vld [vmem:[%s21998_s14 + $0xccc] ss:$16 sps:$4 sm:$0xff]  }
 0xafc   : > { %11552 = vmatpush1.bf16.msra.mxu0 %v18510_v46  ;;  %v18320_v46 = vld [vmem:[%s21990_s19 + $0x1fb8] sm:$0xff] }
 0xafd   : > { %11634 = vmatpush1.bf16.msra.mxu1 %v18512_v51  ;;  %11553 = vmatprep.subr.bf16.mxu0 %v18519_v52  ;;  %v18566_v51 = vcombine.low %v18307_v53, %v18311_v54  ;;  %v18568_v52 = vcombine.low %v18308_v9, %v18312_v39  ;;  %v18577_v10 = vcombine.high %v18316_v40, %v18320_v46  ;;  %v20780_v53 = vld [vmem:[%s21998_s14 + $0xce0] ss:$16 sps:$4 sm:$0xff]   ;;  %v20783_v54 = vld [vmem:[%s21998_s14 + $0xce8] ss:$16 sps:$4 sm:$0xff]   ;;  %v20788_v9 = vld [vmem:[%s21998_s14 + $0xd04] ss:$16 sps:$4 sm:$0xff]  }
 0xafe   : > { %11635 = vmatprep.subr.bf16.mxu1 %v18521_v60  ;;  %v18575_v60 = vcombine.high %v18315_v16, %v18319_v19  ;;  %v20791_v39 = vld [vmem:[%s21998_s14 + $0xd0c] ss:$16 sps:$4 sm:$0xff]  }
 0xb00   : > { %11554 = vmatpush1.bf16.msra.mxu0 %v18518_v1  ;;  %v18328_v1 = vld [vmem:[%s21990_s19 + $0x1ff8] sm:$0xff] }
 0xb01   : > { %11636 = vmatpush1.bf16.msra.mxu1 %v18520_v63  ;;  %11555 = vmatprep.subr.bf16.mxu0 %v18527_v5  ;;  %v18574_v63 = vcombine.low %v18315_v16, %v18319_v19  ;;  %v18576_v5 = vcombine.low %v18316_v40, %v18320_v46  ;;  %v18585_v58 = vcombine.high %v18324_v18, %v18328_v1  ;;  %v20792_v16 = vld [vmem:[%s21998_s14 + $0xd20] ss:$16 sps:$4 sm:$0xff]   ;;  %v20795_v19 = vld [vmem:[%s21998_s14 + $0xd28] ss:$16 sps:$4 sm:$0xff]   ;;  %v20800_v40 = vld [vmem:[%s21998_s14 + $0xd44] ss:$16 sps:$4 sm:$0xff]  }
 0xb02   : > { %11637 = vmatprep.subr.bf16.mxu1 %v18529_v8  ;;  %v18583_v8 = vcombine.high %v18323_v59, %v18327_v0  ;;  %v18584_v34 = vcombine.low %v18324_v18, %v18328_v1  ;;  %v20803_v46 = vld [vmem:[%s21998_s14 + $0xd4c] ss:$16 sps:$4 sm:$0xff]   ;;  %v20804_v59 = vld [vmem:[%s21998_s14 + $0xd60] ss:$16 sps:$4 sm:$0xff]   ;;  %v20807_v0 = vld [vmem:[%s21998_s14 + $0xd68] ss:$16 sps:$4 sm:$0xff]  }
 0xb03   : > { %v20812_v18 = vld [vmem:[%s21998_s14 + $0xd84] ss:$16 sps:$4 sm:$0xff]   ;;  %v20815_v1 = vld [vmem:[%s21998_s14 + $0xd8c] ss:$16 sps:$4 sm:$0xff]  }
 0xb04   : > { %11556 = vmatpush1.bf16.msra.mxu0 %v18526_v48  ;;  %v20743_v48 = vld [vmem:[%s21998_s14 + $0xc0c] ss:$16 sps:$4 sm:$0xff]  }
 0xb05   : > { %11638 = vmatpush1.bf16.msra.mxu1 %v18528_v30  ;;  %11557 = vmatprep.subr.bf16.mxu0 %v18535_v35  ;;  %v20738_v30 = vld [vmem:[%s21998_s14 + $0xc00] ss:$16 sps:$4 sm:$0xff]   ;;  %v20741_v35 = vld [vmem:[%s21998_s14 + $0xc08] ss:$16 sps:$4 sm:$0xff]  }
 0xb06   : > { %11639 = vmatprep.subr.bf16.mxu1 %v18537_v2  ;;  %v20746_v2 = vld [vmem:[%s21998_s14 + $0xc24] ss:$16 sps:$4 sm:$0xff]  }
 0xb08   : > { %11558 = vmatpush1.bf16.msra.mxu0 %v18534_v12  ;;  %v20755_v12 = vld [vmem:[%s21998_s14 + $0xc4c] ss:$16 sps:$4 sm:$0xff]  }
 0xb09   : > { %11640 = vmatpush1.bf16.msra.mxu1 %v18536_v36  ;;  %11559 = vmatprep.subr.bf16.mxu0 %v18543_v28  ;;  %v20750_v36 = vld [vmem:[%s21998_s14 + $0xc40] ss:$16 sps:$4 sm:$0xff]   ;;  %v20753_v28 = vld [vmem:[%s21998_s14 + $0xc48] ss:$16 sps:$4 sm:$0xff]  }
 0xb0a   : > { %11641 = vmatprep.subr.bf16.mxu1 %v18545_v13  ;;  %v20761_v13 = vld [vmem:[%s21998_s14 + $0xc6c] ss:$16 sps:$4 sm:$0xff]  }
 0xb0c   : > { %11560 = vmatpush1.bf16.msra.mxu0 %v18542_v37  ;;  %v20762_v37 = vld [vmem:[%s21998_s14 + $0xc80] ss:$16 sps:$4 sm:$0xff]  }
 0xb0d   : > { %11642 = vmatpush1.bf16.msra.mxu1 %v18544_v24  ;;  %11561 = vmatprep.subr.bf16.mxu0 %v18551_v6  ;;  %v20765_v24 = vld [vmem:[%s21998_s14 + $0xc88] ss:$16 sps:$4 sm:$0xff]   ;;  %v20770_v6 = vld [vmem:[%s21998_s14 + $0xca4] ss:$16 sps:$4 sm:$0xff]  }
 0xb0e   : > { %11643 = vmatprep.subr.bf16.mxu1 %v18553_v4  ;;  %v20773_v4 = vld [vmem:[%s21998_s14 + $0xcac] ss:$16 sps:$4 sm:$0xff]  }
 0xb10   : > { %11562 = vmatpush1.bf16.msra.mxu0 %v18550_v43  ;;  %v20774_v43 = vld [vmem:[%s21998_s14 + $0xcc0] ss:$16 sps:$4 sm:$0xff]  }
 0xb11   : > { %11644 = vmatpush1.bf16.msra.mxu1 %v18552_v44  ;;  %11563 = vmatprep.subr.bf16.mxu0 %v18559_v47  ;;  %v20777_v44 = vld [vmem:[%s21998_s14 + $0xcc8] ss:$16 sps:$4 sm:$0xff]   ;;  %v20782_v47 = vld [vmem:[%s21998_s14 + $0xce4] ss:$16 sps:$4 sm:$0xff]  }
 0xb12   : > { %11645 = vmatprep.subr.bf16.mxu1 %v18561_v15  ;;  %v20785_v15 = vld [vmem:[%s21998_s14 + $0xcec] ss:$16 sps:$4 sm:$0xff]  }
 0xb14   : > { %11564 = vmatpush1.bf16.msra.mxu0 %v18558_v27  ;;  %v20786_v27 = vld [vmem:[%s21998_s14 + $0xd00] ss:$16 sps:$4 sm:$0xff]  }
 0xb15   : > { %11646 = vmatpush1.bf16.msra.mxu1 %v18560_v56  ;;  %11565 = vmatprep.subr.bf16.mxu0 %v18567_v57  ;;  %v20789_v56 = vld [vmem:[%s21998_s14 + $0xd08] ss:$16 sps:$4 sm:$0xff]   ;;  %v20794_v57 = vld [vmem:[%s21998_s14 + $0xd24] ss:$16 sps:$4 sm:$0xff]  }
 0xb16   : > { %11647 = vmatprep.subr.bf16.mxu1 %v18569_v45  ;;  %v20797_v45 = vld [vmem:[%s21998_s14 + $0xd2c] ss:$16 sps:$4 sm:$0xff]  }
 0xb18   : > { %11566 = vmatpush1.bf16.msra.mxu0 %v18566_v51  ;;  %v20798_v51 = vld [vmem:[%s21998_s14 + $0xd40] ss:$16 sps:$4 sm:$0xff]  }
 0xb19   : > { %11648 = vmatpush1.bf16.msra.mxu1 %v18568_v52  ;;  %11567 = vmatprep.subr.bf16.mxu0 %v18575_v60  ;;  %v20801_v52 = vld [vmem:[%s21998_s14 + $0xd48] ss:$16 sps:$4 sm:$0xff]   ;;  %v20806_v60 = vld [vmem:[%s21998_s14 + $0xd64] ss:$16 sps:$4 sm:$0xff]  }
 0xb1a   : > { %11649 = vmatprep.subr.bf16.mxu1 %v18577_v10  ;;  %v20809_v10 = vld [vmem:[%s21998_s14 + $0xd6c] ss:$16 sps:$4 sm:$0xff]  }
 0xb1c   : > { %11568 = vmatpush1.bf16.msra.mxu0 %v18574_v63  ;;  %v20810_v63 = vld [vmem:[%s21998_s14 + $0xd80] ss:$16 sps:$4 sm:$0xff]  }
 0xb1d   : > { %11650 = vmatpush1.bf16.msra.mxu1 %v18576_v5  ;;  %11569 = vmatprep.subr.bf16.mxu0 %v18583_v8  ;;  %v20813_v5 = vld [vmem:[%s21998_s14 + $0xd88] ss:$16 sps:$4 sm:$0xff]   ;;  %v20818_v8 = vld [vmem:[%s21998_s14 + $0xda4] ss:$16 sps:$4 sm:$0xff]  }
 0xb1e   : > { %11651 = vmatprep.subr.bf16.mxu1 %v18585_v58  ;;  %v20821_v58 = vld [vmem:[%s21998_s14 + $0xdac] ss:$16 sps:$4 sm:$0xff]  }
 0xb20   : > { %11570 = vmatpush1.bf16.msra.mxu0 %v18582_v33  ;;  %v20816_v33 = vld [vmem:[%s21998_s14 + $0xda0] ss:$16 sps:$4 sm:$0xff]  }
 0xb21   : > { %11652 = vmatpush1.bf16.msra.mxu1 %v18584_v34  ;;  %12482 = vmatprep.subr.bf16.mxu0 %v20740_v61  ;;  %v20819_v34 = vld [vmem:[%s21998_s14 + $0xda8] ss:$16 sps:$4 sm:$0xff]   ;;  %v20824_v61 = vld [vmem:[%s21998_s14 + $0xdc4] ss:$16 sps:$4 sm:$0xff]  }
 0xb22   : > { %12564 = vmatprep.subr.bf16.mxu1 %v20743_v48  ;;  %v20827_v48 = vld [vmem:[%s21998_s14 + $0xdcc] ss:$16 sps:$4 sm:$0xff]  }
 0xb23   : > { %11572 = vmatmul.mubr.bf16.vlgmr.msra.gmra.mrb[28].mxu0 %v23622_v41 }
 0xb24   : > { %11654 = vmatmul.mubr.bf16.vlgmr.msra.gmra.mrb[28].mxu1 %v23622_v41  ;;  %12483 = vmatpush1.bf16.msra.mxu0 %v20738_v30  ;;  %v20758_v41 = vld [vmem:[%s21998_s14 + $0xc64] ss:$16 sps:$4 sm:$0xff]   ;;  %v20822_v30 = vld [vmem:[%s21998_s14 + $0xdc0] ss:$16 sps:$4 sm:$0xff]  }
 0xb25   : > { %12565 = vmatpush1.bf16.msra.mxu1 %v20741_v35  ;;  %12484 = vmatprep.subr.bf16.mxu0 %v20746_v2  ;;  %v20825_v35 = vld [vmem:[%s21998_s14 + $0xdc8] ss:$16 sps:$4 sm:$0xff]   ;;  %v20830_v2 = vld [vmem:[%s21998_s14 + $0xde4] ss:$16 sps:$4 sm:$0xff]  }
 0xb26   : > { %12566 = vmatprep.subr.bf16.mxu1 %v20749_v3  ;;  %v20833_v3 = vld [vmem:[%s21998_s14 + $0xdec] ss:$16 sps:$4 sm:$0xff]  }
 0xb28   : > { %12485 = vmatpush1.bf16.msra.mxu0 %v20744_v11  ;;  %v20828_v11 = vld [vmem:[%s21998_s14 + $0xde0] ss:$16 sps:$4 sm:$0xff]  }
 0xb29   : > { %12567 = vmatpush1.bf16.msra.mxu1 %v20747_v62  ;;  %12486 = vmatprep.subr.bf16.mxu0 %v20752_v7  ;;  %v20831_v62 = vld [vmem:[%s21998_s14 + $0xde8] ss:$16 sps:$4 sm:$0xff]   ;;  %v20836_v7 = vld [vmem:[%s21998_s14 + $0xe04] ss:$16 sps:$4 sm:$0xff]  }
 0xb2a   : > { %12568 = vmatprep.subr.bf16.mxu1 %v20755_v12  ;;  %v20839_v12 = vld [vmem:[%s21998_s14 + $0xe0c] ss:$16 sps:$4 sm:$0xff]  }
 0xb2c   : > { %12487 = vmatpush1.bf16.msra.mxu0 %v20750_v36  ;;  %v23821_v36 = vld [vmem:[%s21996_s17 + $0x18] sm:$0xff] }
 0xb2d   : > { %12569 = vmatpush1.bf16.msra.mxu1 %v20753_v28  ;;  %12488 = vmatprep.subr.bf16.mxu0 %v20758_v41  ;;  %v10017_v28 = vrot.slane %v23821_v36, %v22372_v20  ;;  %v10021_v41 = vrot.slane %v23821_v36, %v22375_v21 }
 0xb2e   : > { %12570 = vmatprep.subr.bf16.mxu1 %v20761_v13  ;;  %v10029_v13 = vrot.slane %v23821_v36, %v22378_v22 }
 0xb30   : > { %12489 = vmatpush1.bf16.msra.mxu0 %v20756_v14 }
 0xb31   : > { %12571 = vmatpush1.bf16.msra.mxu1 %v20759_v26  ;;  %12490 = vmatprep.subr.bf16.mxu0 %v20764_v23 }
 0xb32   : > { %12572 = vmatprep.subr.bf16.mxu1 %v20767_v25 }
 0xb34   : > { %12491 = vmatpush1.bf16.msra.mxu0 %v20762_v37 }
 0xb35   : > { %12573 = vmatpush1.bf16.msra.mxu1 %v20765_v24  ;;  %12492 = vmatprep.subr.bf16.mxu0 %v20770_v6 }
 0xb36   : > { %12574 = vmatprep.subr.bf16.mxu1 %v20773_v4 }
 0xb38   : > { %12493 = vmatpush1.bf16.msra.mxu0 %v20768_v50 }
 0xb39   : > { %12575 = vmatpush1.bf16.msra.mxu1 %v20771_v38  ;;  %12494 = vmatprep.subr.bf16.mxu0 %v20776_v49 }
 0xb3a   : > { %12576 = vmatprep.subr.bf16.mxu1 %v20779_v42 }
 0xb3c   : > { %12495 = vmatpush1.bf16.msra.mxu0 %v20774_v43 }
 0xb3d   : > { %12577 = vmatpush1.bf16.msra.mxu1 %v20777_v44  ;;  %12496 = vmatprep.subr.bf16.mxu0 %v20782_v47 }
 0xb3e   : > { %12578 = vmatprep.subr.bf16.mxu1 %v20785_v15 }
 0xb40   : > { %12497 = vmatpush1.bf16.msra.mxu0 %v20780_v53 }
 0xb41   : > { %12579 = vmatpush1.bf16.msra.mxu1 %v20783_v54  ;;  %12498 = vmatprep.subr.bf16.mxu0 %v20788_v9 }
 0xb42   : > { %12580 = vmatprep.subr.bf16.mxu1 %v20791_v39 }
 0xb44   : > { %12499 = vmatpush1.bf16.msra.mxu0 %v20786_v27 }
 0xb45   : > { %12581 = vmatpush1.bf16.msra.mxu1 %v20789_v56  ;;  %12500 = vmatprep.subr.bf16.mxu0 %v20794_v57 }
 0xb46   : > { %12582 = vmatprep.subr.bf16.mxu1 %v20797_v45 }
 0xb48   : > { %12501 = vmatpush1.bf16.msra.mxu0 %v20792_v16 }
 0xb49   : > { %12583 = vmatpush1.bf16.msra.mxu1 %v20795_v19  ;;  %12502 = vmatprep.subr.bf16.mxu0 %v20800_v40  ;;  %v20834_v40 = vld [vmem:[%s21998_s14 + $0xe00] ss:$16 sps:$4 sm:$0xff]  }
 0xb4a   : > { %12584 = vmatprep.subr.bf16.mxu1 %v20803_v46  ;;  %v20837_v46 = vld [vmem:[%s21998_s14 + $0xe08] ss:$16 sps:$4 sm:$0xff]  }
 0xb4c   : > { %12503 = vmatpush1.bf16.msra.mxu0 %v20798_v51 }
 0xb4d   : > { %12585 = vmatpush1.bf16.msra.mxu1 %v20801_v52  ;;  %12504 = vmatprep.subr.bf16.mxu0 %v20806_v60  ;;  %v20842_v60 = vld [vmem:[%s21998_s14 + $0xe24] ss:$16 sps:$4 sm:$0xff]  }
 0xb4e   : > { %12586 = vmatprep.subr.bf16.mxu1 %v20809_v10  ;;  %v20845_v10 = vld [vmem:[%s21998_s14 + $0xe2c] ss:$16 sps:$4 sm:$0xff]  }
 0xb50   : > { %12505 = vmatpush1.bf16.msra.mxu0 %v20804_v59 }
 0xb51   : > { %12587 = vmatpush1.bf16.msra.mxu1 %v20807_v0  ;;  %12506 = vmatprep.subr.bf16.mxu0 %v20812_v18  ;;  %v20840_v0 = vld [vmem:[%s21998_s14 + $0xe20] ss:$16 sps:$4 sm:$0xff]   ;;  %v20843_v18 = vld [vmem:[%s21998_s14 + $0xe28] ss:$16 sps:$4 sm:$0xff]  }
 0xb52   : > { %12588 = vmatprep.subr.bf16.mxu1 %v20815_v1  ;;  %v20848_v1 = vld [vmem:[%s21998_s14 + $0xe44] ss:$16 sps:$4 sm:$0xff]  }
 0xb54   : > { %12507 = vmatpush1.bf16.msra.mxu0 %v20810_v63  ;;  %v20851_v63 = vld [vmem:[%s21998_s14 + $0xe4c] ss:$16 sps:$4 sm:$0xff]  }
 0xb55   : > { %12589 = vmatpush1.bf16.msra.mxu1 %v20813_v5  ;;  %12508 = vmatprep.subr.bf16.mxu0 %v20818_v8  ;;  %v20846_v5 = vld [vmem:[%s21998_s14 + $0xe40] ss:$16 sps:$4 sm:$0xff]   ;;  %v20849_v8 = vld [vmem:[%s21998_s14 + $0xe48] ss:$16 sps:$4 sm:$0xff]  }
 0xb56   : > { %12590 = vmatprep.subr.bf16.mxu1 %v20821_v58  ;;  %v20854_v58 = vld [vmem:[%s21998_s14 + $0xe64] ss:$16 sps:$4 sm:$0xff]  }
 0xb58   : > { %12509 = vmatpush1.bf16.msra.mxu0 %v20816_v33  ;;  %v20857_v33 = vld [vmem:[%s21998_s14 + $0xe6c] ss:$16 sps:$4 sm:$0xff]  }
 0xb59   : > { %12591 = vmatpush1.bf16.msra.mxu1 %v20819_v34  ;;  %12510 = vmatprep.subr.bf16.mxu0 %v20824_v61  ;;  %v20852_v34 = vld [vmem:[%s21998_s14 + $0xe60] ss:$16 sps:$4 sm:$0xff]   ;;  %v20855_v61 = vld [vmem:[%s21998_s14 + $0xe68] ss:$16 sps:$4 sm:$0xff]  }
 0xb5a   : > { %12592 = vmatprep.subr.bf16.mxu1 %v20827_v48  ;;  %v20860_v48 = vld [vmem:[%s21998_s14 + $0xe84] ss:$16 sps:$4 sm:$0xff]  }
 0xb5c   : > { %12511 = vmatpush1.bf16.msra.mxu0 %v20822_v30  ;;  %v20863_v30 = vld [vmem:[%s21998_s14 + $0xe8c] ss:$16 sps:$4 sm:$0xff]  }
 0xb5d   : > { %12593 = vmatpush1.bf16.msra.mxu1 %v20825_v35  ;;  %12512 = vmatprep.subr.bf16.mxu0 %v20830_v2  ;;  %v20858_v35 = vld [vmem:[%s21998_s14 + $0xe80] ss:$16 sps:$4 sm:$0xff]   ;;  %v20861_v2 = vld [vmem:[%s21998_s14 + $0xe88] ss:$16 sps:$4 sm:$0xff]  }
 0xb5e   : > { %12594 = vmatprep.subr.bf16.mxu1 %v20833_v3  ;;  %v20866_v3 = vld [vmem:[%s21998_s14 + $0xea4] ss:$16 sps:$4 sm:$0xff]  }
 0xb60   : > { %12513 = vmatpush1.bf16.msra.mxu0 %v20828_v11  ;;  %v20869_v11 = vld [vmem:[%s21998_s14 + $0xeac] ss:$16 sps:$4 sm:$0xff]  }
 0xb61   : > { %12595 = vmatpush1.bf16.msra.mxu1 %v20831_v62  ;;  %12523 = vmatprep.subr.bf16.mxu0 %v20836_v7  ;;  %v20864_v62 = vld [vmem:[%s21998_s14 + $0xea0] ss:$16 sps:$4 sm:$0xff]   ;;  %v20867_v7 = vld [vmem:[%s21998_s14 + $0xea8] ss:$16 sps:$4 sm:$0xff]  }
 0xb62   : > { %12605 = vmatprep.subr.bf16.mxu1 %v20839_v12  ;;  %v20872_v12 = vld [vmem:[%s21998_s14 + $0xec4] ss:$16 sps:$4 sm:$0xff]  }
 0xb76   : > { %v11409_v14 = vpop.f32.mrb[24].mxu0  ;;  %v23829_v26 = vpop.f32.mrb[24].mxu1 }
 0xb77   : > { %v19833_v23 = vadd.f32 %v11409_v14, %v10017_v28  ;;  %v11411_v25 = vpop.f32.mrb[25].mxu0  ;;  %v11493_v37 = vpop.f32.mrb[25].mxu1  ;;  %v20875_v28 = vld [vmem:[%s21998_s14 + $0xecc] ss:$16 sps:$4 sm:$0xff]   ;;  %v20878_v14 = vld [vmem:[%s21998_s14 + $0xee4] ss:$16 sps:$4 sm:$0xff]  }
 0xb78   : > { %v19834_v24 = vadd.f32 %v11411_v25, %v10021_v41  ;;  %v19836_v6 = vadd.f32 %v11493_v37, %v10029_v13  ;;  %v11413_v4 = vpop.f32.mrb[26].mxu0  ;;  %v11495_v50 = vpop.f32.mrb[26].mxu1  ;;  %v20870_v41 = vld [vmem:[%s21998_s14 + $0xec0] ss:$16 sps:$4 sm:$0xff]   ;;  %v20873_v13 = vld [vmem:[%s21998_s14 + $0xec8] ss:$16 sps:$4 sm:$0xff]  }
 0xb79   : > { %v11666_v38 = vmin.f32 %v19833_v23, 0.0  ;;  %v11414_v49 = vpop.f32.mrb[27].mxu0  ;;  %v11496_v42 = vpop.f32.mrb[27].mxu1  ;;  %vm11662_vm0 = vcmp.gt.f32.partialorder %v19833_v23, 0.0  ;;  %v20876_v25 = vld [vmem:[%s21998_s14 + $0xee0] ss:$16 sps:$4 sm:$0xff]  }
 0xb7a   : > { %v11667_v43 = vmin.f32 %v19834_v24, 0.0  ;;  %v11669_v44 = vmin.f32 %v19836_v6, 0.0  ;;  %vm11663_vm1 = vcmp.gt.f32.partialorder %v19834_v24, 0.0  ;;  %vm11665_vm2 = vcmp.gt.f32.partialorder %v19836_v6, 0.0  ;;  %v20879_v37 = vld [vmem:[%s21998_s14 + $0xee8] ss:$16 sps:$4 sm:$0xff]  }
 0xb7b   : > { %v11670_v47 = vmul.f32 1.442695, %v11666_v38  ;;  %v20887_v4 = vld [vmem:[%s21998_s14 + $0xf0c] ss:$16 sps:$4 sm:$0xff]   ;;  %v20882_v50 = vld [vmem:[%s21998_s14 + $0xf00] ss:$16 sps:$4 sm:$0xff]  }
 0xb7c   : > { %v11672_v15 = vmul.f32 1.442695, %v11667_v43  ;;  %v11676_v53 = vmul.f32 1.442695, %v11669_v44  ;;  %v20885_v38 = vld [vmem:[%s21998_s14 + $0xf08] ss:$16 sps:$4 sm:$0xff]  }
 0xb7d   : > { %21170 = vpow2.f32 %v11670_v47  ;;  %v20890_v42 = vld [vmem:[%s21998_s14 + $0xf24] ss:$16 sps:$4 sm:$0xff]   ;;  %v20893_v43 = vld [vmem:[%s21998_s14 + $0xf2c] ss:$16 sps:$4 sm:$0xff]   ;;  %v20888_v44 = vld [vmem:[%s21998_s14 + $0xf20] ss:$16 sps:$4 sm:$0xff]  }
 0xb7e   : > { %21172 = vpow2.f32 %v11672_v15  ;;  %v20891_v47 = vld [vmem:[%s21998_s14 + $0xf28] ss:$16 sps:$4 sm:$0xff]  }
 0xb7f   : > { %21174 = vpow2.f32 %v11676_v53  ;;  %v20899_v53 = vld [vmem:[%s21998_s14 + $0xf4c] ss:$16 sps:$4 sm:$0xff]  }
 0xb87   : > { %v21171_v54 = vpop.eup %21170 }
 0xb88   : > { %v18586_v9 = vadd.f32 -1.0, %v21171_v54  ;;  %v21173_v39 = vpop.eup %21172  ;;  %v20894_v54 = vld [vmem:[%s21998_s14 + $0xf40] ss:$16 sps:$4 sm:$0xff]  }
 0xb89   : > { %v21175_v27 = vpop.eup %21174  ;;  %v18587_v56 = vadd.f32 -1.0, %v21173_v39 }
 0xb8a   : > { %v11682_v57 = vsel %vm11662_vm0, %v19833_v23, %v18586_v9  ;;  %v18589_v45 = vadd.f32 -1.0, %v21175_v27  ;;  %v20881_v23 = vld [vmem:[%s21998_s14 + $0xeec] ss:$16 sps:$4 sm:$0xff]   ;;  %v20897_v9 = vld [vmem:[%s21998_s14 + $0xf48] ss:$16 sps:$4 sm:$0xff]   ;;  %vm15847_vm0 = vcmask (!%p19629_p0), 1045504  }
 0xb8b   : > { %v11683_v16 = vsel %vm11663_vm1, %v19834_v24, %v18587_v56  ;;  %v11686_v52 = vpack.c.bf16 %v11682_v57, %v11682_v57  ;;  %v10025_v24 = vrot.slane %v23821_v36, %v22415_v17  ;;  %v20902_v27 = vld [vmem:[%s21998_s14 + $0xf64] ss:$16 sps:$4 sm:$0xff]   ;;  %v20905_v56 = vld [vmem:[%s21998_s14 + $0xf6c] ss:$16 sps:$4 sm:$0xff]   ;;  %v20900_v57 = vld [vmem:[%s21998_s14 + $0xf60] ss:$16 sps:$4 sm:$0xff]  }
 0xb8c   : > { %v11687_v19 = vpack.c.bf16 %v11683_v16, %v11683_v16  ;;  %v11685_v51 = vsel %vm11665_vm2, %v19836_v6, %v18589_v45  ;;  %v20884_v6 = vld [vmem:[%s21998_s14 + $0xf04] ss:$16 sps:$4 sm:$0xff]   ;;  %v20903_v45 = vld [vmem:[%s21998_s14 + $0xf68] ss:$16 sps:$4 sm:$0xff]   ;;  %vm21570_vm1 = vmmov (!%p19629_p0), 0   ;;  %vm15843_vm2 = vcmask (!%p19629_p0), 48128  }
 0xb8d   : > { %v11689_v59 = vpack.c.bf16 %v11685_v51, %v11685_v51  ;;  %v23868_v49 = vadd.f32 %v23829_v26, %v10025_v24  ;;  %v20896_v26 = vld [vmem:[%s21998_s14 + $0xf44] ss:$16 sps:$4 sm:$0xff]  }
 0xb8e   : > { %12514 = vmatprep.mubr.bf16.mxu0 %v11687_v19  ;;  %12596 = vmatprep.mubr.bf16.mxu1 %v11687_v19  ;;  %v20908_v16 = vld [vmem:[%s21998_s14 + $0xf84] ss:$16 sps:$4 sm:$0xff]   ;;  %v20911_v19 = vld [vmem:[%s21998_s14 + $0xf8c] ss:$16 sps:$4 sm:$0xff]  }
 0xb8f   : > { %12515 = vmatmul.mubr.bf16.vlgmr.msra.gmra.mrb[28].mxu0 %v11686_v52  ;;  %12597 = vmatmul.mubr.bf16.vlgmr.msra.gmra.mrb[28].mxu1 %v11686_v52  ;;  %v11668_v15 = vmin.f32 %v23868_v49, 0.0  ;;  %v20914_v51 = vld [vmem:[%s21998_s14 + $0xfa4] ss:$16 sps:$4 sm:$0xff]   ;;  %v20917_v52 = vld [vmem:[%s21998_s14 + $0xfac] ss:$16 sps:$4 sm:$0xff]   ;;  %vm11664_vm3 = vcmp.gt.f32.partialorder %v23868_v49, 0.0 }
 0xb90   : > { %12524 = vmatpush1.bf16.msra.mxu0 %v20834_v40  ;;  %12606 = vmatpush1.bf16.msra.mxu1 %v20837_v46  ;;  %v20906_v40 = vld [vmem:[%s21998_s14 + $0xf80] ss:$16 sps:$4 sm:$0xff]   ;;  %v20909_v46 = vld [vmem:[%s21998_s14 + $0xf88] ss:$16 sps:$4 sm:$0xff]  }
 0xb91   : > { %12555 = vmatprep.mubr.bf16.mxu0 %v11689_v59  ;;  %12637 = vmatprep.mubr.bf16.mxu1 %v11689_v59  ;;  %v11674_v39 = vmul.f32 1.442695, %v11668_v15  ;;  %v20920_v59 = vld [vmem:[%s21998_s14 + $0xfc4] ss:$16 sps:$4 sm:$0xff]   ;;  %v18880_v15 = vld [vmem:[%s21990_s19 + $0x20e8] sm:$0xff] }
 0xb92   : > { %12525 = vmatprep.subr.bf16.mxu0 %v20842_v60  ;;  %12607 = vmatprep.subr.bf16.mxu1 %v20845_v10  ;;  %v20912_v60 = vld [vmem:[%s21998_s14 + $0xfa0] ss:$16 sps:$4 sm:$0xff]   ;;  %v20915_v10 = vld [vmem:[%s21998_s14 + $0xfa8] ss:$16 sps:$4 sm:$0xff]  }
 0xb93   : > { %21176 = vpow2.f32 %v11674_v39  ;;  %v18871_v24 = vld [vmem:[%s21990_s19 + $0x20a0] sm:$0xff] }
 0xb94   : > { %12526 = vmatpush1.bf16.msra.mxu0 %v20840_v0  ;;  %12608 = vmatpush1.bf16.msra.mxu1 %v20843_v18  ;;  %v20923_v0 = vld [vmem:[%s21998_s14 + $0xfcc] ss:$16 sps:$4 sm:$0xff]   ;;  %v18883_v39 = vld [vmem:[%s21990_s19 + $0x2100] sm:$0xff] }
 0xb95   : > { %12527 = vmatprep.subr.bf16.mxu0 %v20848_v1  ;;  %12609 = vmatprep.subr.bf16.mxu1 %v20851_v63  ;;  %v20918_v1 = vld [vmem:[%s21998_s14 + $0xfc0] ss:$16 sps:$4 sm:$0xff]   ;;  %v20921_v63 = vld [vmem:[%s21998_s14 + $0xfc8] ss:$16 sps:$4 sm:$0xff]  }
 0xb98   : > { %12528 = vmatpush1.bf16.msra.mxu0 %v20846_v5  ;;  %12610 = vmatpush1.bf16.msra.mxu1 %v20849_v8  ;;  %v20926_v5 = vld [vmem:[%s21998_s14 + $0xfe4] ss:$16 sps:$4 sm:$0xff]   ;;  %v20929_v8 = vld [vmem:[%s21998_s14 + $0xfec] ss:$16 sps:$4 sm:$0xff]  }
 0xb99   : > { %12529 = vmatprep.subr.bf16.mxu0 %v20854_v58  ;;  %12611 = vmatprep.subr.bf16.mxu1 %v20857_v33  ;;  %v18851_v58 = vld [vmem:[%s21990_s19 + $0x2000] sm:$0xff] }
 0xb9c   : > { %12530 = vmatpush1.bf16.msra.mxu0 %v20852_v34  ;;  %12612 = vmatpush1.bf16.msra.mxu1 %v20855_v61  ;;  %v18855_v34 = vld [vmem:[%s21990_s19 + $0x2020] sm:$0xff]  ;;  %v18852_v61 = vld [vmem:[%s21990_s19 + $0x2008] sm:$0xff] }
 0xb9d   : > { %12531 = vmatprep.subr.bf16.mxu0 %v20860_v48  ;;  %12613 = vmatprep.subr.bf16.mxu1 %v20863_v30  ;;  %v21177_v18 = vpop.eup %21176  ;;  %v18856_v48 = vld [vmem:[%s21990_s19 + $0x2028] sm:$0xff]  ;;  %v20924_v30 = vld [vmem:[%s21998_s14 + $0xfe0] ss:$16 sps:$4 sm:$0xff]  }
 0xb9e   : > { %v18588_v33 = vadd.f32 -1.0, %v21177_v18 }
 0xba0   : > { %12532 = vmatpush1.bf16.msra.mxu0 %v20858_v35  ;;  %12614 = vmatpush1.bf16.msra.mxu1 %v20861_v2  ;;  %v20927_v35 = vld [vmem:[%s21998_s14 + $0xfe8] ss:$16 sps:$4 sm:$0xff]   ;;  %v19109_v2 = vcombine.high %v18851_v58, %v18855_v34 }
 0xba1   : > { %12533 = vmatprep.subr.bf16.mxu0 %v20866_v3  ;;  %12615 = vmatprep.subr.bf16.mxu1 %v20869_v11  ;;  %v19111_v3 = vcombine.high %v18852_v61, %v18856_v48  ;;  %v18859_v11 = vld [vmem:[%s21990_s19 + $0x2040] sm:$0xff] }
 0xba4   : > { %12534 = vmatpush1.bf16.msra.mxu0 %v20864_v62  ;;  %12616 = vmatpush1.bf16.msra.mxu1 %v20867_v7  ;;  %v11684_v62 = vsel %vm11664_vm3, %v23868_v49, %v18588_v33  ;;  %v18863_v7 = vld [vmem:[%s21990_s19 + $0x2060] sm:$0xff] }
 0xba5   : > { %12535 = vmatprep.subr.bf16.mxu0 %v20872_v12  ;;  %12617 = vmatprep.subr.bf16.mxu1 %v20875_v28  ;;  %v18860_v12 = vld [vmem:[%s21990_s19 + $0x2048] sm:$0xff] }
 0xba6   : > { %v18864_v28 = vld [vmem:[%s21990_s19 + $0x2068] sm:$0xff] }
 0xba8   : > { %12536 = vmatpush1.bf16.msra.mxu0 %v20870_v41  ;;  %12618 = vmatpush1.bf16.msra.mxu1 %v20873_v13  ;;  %v19108_v41 = vcombine.low %v18851_v58, %v18855_v34  ;;  %v19110_v13 = vcombine.low %v18852_v61, %v18856_v48  ;;  %v18907_v48 = vld [vmem:[%s21990_s19 + $0x21c0] sm:$0xff] }
 0xba9   : > { %12537 = vmatprep.subr.bf16.mxu0 %v20878_v14  ;;  %12619 = vmatprep.subr.bf16.mxu1 %v20881_v23  ;;  %v11688_v14 = vpack.c.bf16 %v11684_v62, %v11684_v62  ;;  %v19117_v23 = vcombine.high %v18859_v11, %v18863_v7 }
 0xbac   : > { %12538 = vmatpush1.bf16.msra.mxu0 %v20876_v25  ;;  %12620 = vmatpush1.bf16.msra.mxu1 %v20879_v37  ;;  %v19119_v25 = vcombine.high %v18860_v12, %v18864_v28  ;;  %v18867_v37 = vld [vmem:[%s21990_s19 + $0x2080] sm:$0xff] }
 0xbad   : > { %12539 = vmatprep.subr.bf16.mxu0 %v20884_v6  ;;  %12621 = vmatprep.subr.bf16.mxu1 %v20887_v4  ;;  %v18868_v6 = vld [vmem:[%s21990_s19 + $0x2088] sm:$0xff]  ;;  %v19125_v49 = vcombine.high %v18867_v37, %v18871_v24 }
 0xbae   : > { %v18872_v4 = vld [vmem:[%s21990_s19 + $0x20a8] sm:$0xff] }
 0xbb0   : > { %12540 = vmatpush1.bf16.msra.mxu0 %v20882_v50  ;;  %12622 = vmatpush1.bf16.msra.mxu1 %v20885_v38  ;;  %v19116_v50 = vcombine.low %v18859_v11, %v18863_v7  ;;  %v19118_v38 = vcombine.low %v18860_v12, %v18864_v28 }
 0xbb1   : > { %12541 = vmatprep.subr.bf16.mxu0 %v20890_v42  ;;  %12623 = vmatprep.subr.bf16.mxu1 %v20893_v43  ;;  %v19127_v42 = vcombine.high %v18868_v6, %v18872_v4  ;;  %v18875_v43 = vld [vmem:[%s21990_s19 + $0x20c0] sm:$0xff] }
 0xbb4   : > { %12542 = vmatpush1.bf16.msra.mxu0 %v20888_v44  ;;  %12624 = vmatpush1.bf16.msra.mxu1 %v20891_v47  ;;  %v18879_v44 = vld [vmem:[%s21990_s19 + $0x20e0] sm:$0xff]  ;;  %v18876_v47 = vld [vmem:[%s21990_s19 + $0x20c8] sm:$0xff] }
 0xbb5   : > { %12543 = vmatprep.subr.bf16.mxu0 %v20896_v26  ;;  %12625 = vmatprep.subr.bf16.mxu1 %v20899_v53  ;;  %v19124_v26 = vcombine.low %v18867_v37, %v18871_v24  ;;  %v19126_v53 = vcombine.low %v18868_v6, %v18872_v4  ;;  %v18923_v4 = vld [vmem:[%s21990_s19 + $0x2240] sm:$0xff] }
 0xbb8   : > { %12544 = vmatpush1.bf16.msra.mxu0 %v20894_v54  ;;  %12626 = vmatpush1.bf16.msra.mxu1 %v20897_v9  ;;  %v19133_v54 = vcombine.high %v18875_v43, %v18879_v44  ;;  %v19135_v9 = vcombine.high %v18876_v47, %v18880_v15 }
 0xbb9   : > { %12545 = vmatprep.subr.bf16.mxu0 %v20902_v27  ;;  %12627 = vmatprep.subr.bf16.mxu1 %v20905_v56  ;;  %v18887_v27 = vld [vmem:[%s21990_s19 + $0x2120] sm:$0xff]  ;;  %v18884_v56 = vld [vmem:[%s21990_s19 + $0x2108] sm:$0xff] }
 0xbbc   : > { %12546 = vmatpush1.bf16.msra.mxu0 %v20900_v57  ;;  %12628 = vmatpush1.bf16.msra.mxu1 %v20903_v45  ;;  %v18888_v57 = vld [vmem:[%s21990_s19 + $0x2128] sm:$0xff]  ;;  %v19132_v45 = vcombine.low %v18875_v43, %v18879_v44 }
 0xbbd   : > { %12547 = vmatprep.subr.bf16.mxu0 %v20908_v16  ;;  %12629 = vmatprep.subr.bf16.mxu1 %v20911_v19  ;;  %v19134_v16 = vcombine.low %v18876_v47, %v18880_v15  ;;  %v19141_v19 = vcombine.high %v18883_v39, %v18887_v27  ;;  %v18931_v15 = vld [vmem:[%s21990_s19 + $0x2280] sm:$0xff] }
 0xbc0   : > { %12548 = vmatpush1.bf16.msra.mxu0 %v20906_v40  ;;  %12630 = vmatpush1.bf16.msra.mxu1 %v20909_v46  ;;  %v19143_v40 = vcombine.high %v18884_v56, %v18888_v57  ;;  %v18891_v46 = vld [vmem:[%s21990_s19 + $0x2140] sm:$0xff] }
 0xbc1   : > { %12549 = vmatprep.subr.bf16.mxu0 %v20914_v51  ;;  %12631 = vmatprep.subr.bf16.mxu1 %v20917_v52  ;;  %v18895_v51 = vld [vmem:[%s21990_s19 + $0x2160] sm:$0xff]  ;;  %v18892_v52 = vld [vmem:[%s21990_s19 + $0x2148] sm:$0xff] }
 0xbc2   : > { %v19148_v58 = vcombine.low %v18891_v46, %v18895_v51 }
 0xbc4   : > { %12550 = vmatpush1.bf16.msra.mxu0 %v20912_v60  ;;  %12632 = vmatpush1.bf16.msra.mxu1 %v20915_v10  ;;  %v18896_v60 = vld [vmem:[%s21990_s19 + $0x2168] sm:$0xff]  ;;  %v19140_v10 = vcombine.low %v18883_v39, %v18887_v27 }
 0xbc5   : > { %12551 = vmatprep.subr.bf16.mxu0 %v20920_v59  ;;  %12633 = vmatprep.subr.bf16.mxu1 %v20923_v0  ;;  %v19142_v59 = vcombine.low %v18884_v56, %v18888_v57  ;;  %v19149_v0 = vcombine.high %v18891_v46, %v18895_v51  ;;  %v19151_v18 = vcombine.high %v18892_v52, %v18896_v60  ;;  %v18939_v57 = vld [vmem:[%s21990_s19 + $0x22c0] sm:$0xff] }
 0xbc6   : > { %v19150_v33 = vcombine.low %v18892_v52, %v18896_v60  ;;  %v18947_v60 = vld [vmem:[%s21990_s19 + $0x2300] sm:$0xff] }
 0xbc8   : > { %12552 = vmatpush1.bf16.msra.mxu0 %v20918_v1  ;;  %12634 = vmatpush1.bf16.msra.mxu1 %v20921_v63  ;;  %v18899_v1 = vld [vmem:[%s21990_s19 + $0x2180] sm:$0xff] }
 0xbc9   : > { %12553 = vmatprep.subr.bf16.mxu0 %v20926_v5  ;;  %12635 = vmatprep.subr.bf16.mxu1 %v20929_v8  ;;  %v18903_v63 = vld [vmem:[%s21990_s19 + $0x21a0] sm:$0xff]  ;;  %v18900_v5 = vld [vmem:[%s21990_s19 + $0x2188] sm:$0xff] }
 0xbca   : > { %v18904_v8 = vld [vmem:[%s21990_s19 + $0x21a8] sm:$0xff]  ;;  %v19157_v34 = vcombine.high %v18899_v1, %v18903_v63 }
 0xbcb   : > { %v19159_v61 = vcombine.high %v18900_v5, %v18904_v8  ;;  %v19158_v11 = vcombine.low %v18900_v5, %v18904_v8  ;;  %v18955_v8 = vld [vmem:[%s21990_s19 + $0x2340] sm:$0xff] }
 0xbcc   : > { %12554 = vmatpush1.bf16.msra.mxu0 %v20924_v30  ;;  %12636 = vmatpush1.bf16.msra.mxu1 %v20927_v35  ;;  %v18911_v30 = vld [vmem:[%s21990_s19 + $0x21e0] sm:$0xff]  ;;  %v18908_v35 = vld [vmem:[%s21990_s19 + $0x21c8] sm:$0xff] }
 0xbcd   : > { %14266 = vmatprep.subr.bf16.mxu0 %v19109_v2  ;;  %14348 = vmatprep.subr.bf16.mxu1 %v19111_v3  ;;  %v18912_v2 = vld [vmem:[%s21990_s19 + $0x21e8] sm:$0xff]  ;;  %v19156_v3 = vcombine.low %v18899_v1, %v18903_v63  ;;  %v19165_v62 = vcombine.high %v18907_v48, %v18911_v30  ;;  %v19164_v12 = vcombine.low %v18907_v48, %v18911_v30 }
 0xbce   : > { %v19167_v7 = vcombine.high %v18908_v35, %v18912_v2  ;;  %v19166_v28 = vcombine.low %v18908_v35, %v18912_v2  ;;  %v18963_v2 = vld [vmem:[%s21990_s19 + $0x2380] sm:$0xff] }
 0xbcf   : > { %12556 = vmatmul.mubr.bf16.vlgmr.msra.gmra.mrb[28].mxu0 %v11688_v14  ;;  %12638 = vmatmul.mubr.bf16.vlgmr.msra.gmra.mrb[28].mxu1 %v11688_v14  ;;  %v18916_v14 = vld [vmem:[%s21990_s19 + $0x2208] sm:$0xff] }
 0xbd0   : > { %14267 = vmatpush1.bf16.msra.mxu0 %v19108_v41  ;;  %14349 = vmatpush1.bf16.msra.mxu1 %v19110_v13  ;;  %v18915_v41 = vld [vmem:[%s21990_s19 + $0x2200] sm:$0xff] }
 0xbd1   : > { %14268 = vmatprep.subr.bf16.mxu0 %v19117_v23  ;;  %14350 = vmatprep.subr.bf16.mxu1 %v19119_v25  ;;  %v18919_v13 = vld [vmem:[%s21990_s19 + $0x2220] sm:$0xff]  ;;  %v18920_v25 = vld [vmem:[%s21990_s19 + $0x2228] sm:$0xff] }
 0xbd2   : > { %v19173_v23 = vcombine.high %v18915_v41, %v18919_v13  ;;  %v19172_v37 = vcombine.low %v18915_v41, %v18919_v13  ;;  %v19174_v24 = vcombine.low %v18916_v14, %v18920_v25  ;;  %v19175_v6 = vcombine.high %v18916_v14, %v18920_v25  ;;  %v18971_v13 = vld [vmem:[%s21990_s19 + $0x23c0] sm:$0xff] }
 0xbd3   : > { %v18975_v14 = vld [vmem:[%s21990_s19 + $0x23e0] sm:$0xff] }
 0xbd4   : > { %14269 = vmatpush1.bf16.msra.mxu0 %v19116_v50  ;;  %14351 = vmatpush1.bf16.msra.mxu1 %v19118_v38  ;;  %v18927_v50 = vld [vmem:[%s21990_s19 + $0x2260] sm:$0xff]  ;;  %v18924_v38 = vld [vmem:[%s21990_s19 + $0x2248] sm:$0xff]  ;;  %v19229_v25 = vcombine.high %v18971_v13, %v18975_v14 }
 0xbd5   : > { %14270 = vmatprep.subr.bf16.mxu0 %v19125_v49  ;;  %14352 = vmatprep.subr.bf16.mxu1 %v19127_v42  ;;  %v19181_v49 = vcombine.high %v18923_v4, %v18927_v50  ;;  %v18928_v42 = vld [vmem:[%s21990_s19 + $0x2268] sm:$0xff]  ;;  %v19180_v43 = vcombine.low %v18923_v4, %v18927_v50  ;;  %v23966_v50 = vld [vmem:[%s21990_s19 + $0x2400] sm:$0xff] }
 0xbd6   : > { %v19182_v44 = vcombine.low %v18924_v38, %v18928_v42  ;;  %v19183_v47 = vcombine.high %v18924_v38, %v18928_v42  ;;  %v23969_v38 = vld [vmem:[%s21990_s19 + $0x2420] sm:$0xff] }
 0xbd7   : > { %v19237_v42 = vcombine.high %v23966_v50, %v23969_v38 }
 0xbd8   : > { %14271 = vmatpush1.bf16.msra.mxu0 %v19124_v26  ;;  %14353 = vmatpush1.bf16.msra.mxu1 %v19126_v53  ;;  %v18935_v26 = vld [vmem:[%s21990_s19 + $0x22a0] sm:$0xff]  ;;  %v18932_v53 = vld [vmem:[%s21990_s19 + $0x2288] sm:$0xff] }
 0xbd9   : > { %14272 = vmatprep.subr.bf16.mxu0 %v19133_v54  ;;  %14354 = vmatprep.subr.bf16.mxu1 %v19135_v9  ;;  %v19189_v54 = vcombine.high %v18931_v15, %v18935_v26  ;;  %v18936_v9 = vld [vmem:[%s21990_s19 + $0x22a8] sm:$0xff]  ;;  %v19188_v39 = vcombine.low %v18931_v15, %v18935_v26  ;;  %v23986_v26 = vld [vmem:[%s22004_s30 + $0xc] sm:$0xf] }
 0xbda   : > { %v19190_v27 = vcombine.low %v18932_v53, %v18936_v9  ;;  %v19191_v56 = vcombine.high %v18932_v53, %v18936_v9  ;;  %v10033_v53 = vrot.slane %v23821_v36, %v22546_v29  ;;  %v10037_v9 = vrot.slane %v23821_v36, %v22552_v31 }
 0xbdc   : > { %14273 = vmatpush1.bf16.msra.mxu0 %v19132_v45  ;;  %14355 = vmatpush1.bf16.msra.mxu1 %v19134_v16  ;;  %v18943_v45 = vld [vmem:[%s21990_s19 + $0x22e0] sm:$0xff]  ;;  %v18940_v16 = vld [vmem:[%s21990_s19 + $0x22c8] sm:$0xff] }
 0xbdd   : > { %14274 = vmatprep.subr.bf16.mxu0 %v19141_v19  ;;  %14356 = vmatprep.subr.bf16.mxu1 %v19143_v40  ;;  %v19197_v19 = vcombine.high %v18939_v57, %v18943_v45  ;;  %v18944_v40 = vld [vmem:[%s21990_s19 + $0x22e8] sm:$0xff]  ;;  %v19196_v46 = vcombine.low %v18939_v57, %v18943_v45 }
 0xbde   : > { %v19198_v51 = vcombine.low %v18940_v16, %v18944_v40  ;;  %v19199_v52 = vcombine.high %v18940_v16, %v18944_v40 }
 0xbe0   : > { %14275 = vmatpush1.bf16.msra.mxu0 %v19140_v10  ;;  %14357 = vmatpush1.bf16.msra.mxu1 %v19142_v59  ;;  %v18951_v10 = vld [vmem:[%s21990_s19 + $0x2320] sm:$0xff]  ;;  %v18948_v59 = vld [vmem:[%s21990_s19 + $0x2308] sm:$0xff] }
 0xbe1   : > { %14276 = vmatprep.subr.bf16.mxu0 %v19149_v0  ;;  %14358 = vmatprep.subr.bf16.mxu1 %v19151_v18  ;;  %v19205_v0 = vcombine.high %v18947_v60, %v18951_v10  ;;  %v18952_v18 = vld [vmem:[%s21990_s19 + $0x2328] sm:$0xff]  ;;  %v19204_v1 = vcombine.low %v18947_v60, %v18951_v10 }
 0xbe2   : > { %v19206_v63 = vcombine.low %v18948_v59, %v18952_v18  ;;  %v19207_v5 = vcombine.high %v18948_v59, %v18952_v18 }
 0xbe4   : > { %14277 = vmatpush1.bf16.msra.mxu0 %v19148_v58  ;;  %14359 = vmatpush1.bf16.msra.mxu1 %v19150_v33  ;;  %v18959_v58 = vld [vmem:[%s21990_s19 + $0x2360] sm:$0xff]  ;;  %v18956_v33 = vld [vmem:[%s21990_s19 + $0x2348] sm:$0xff] }
 0xbe5   : > { %14278 = vmatprep.subr.bf16.mxu0 %v19157_v34  ;;  %14360 = vmatprep.subr.bf16.mxu1 %v19159_v61  ;;  %v19213_v34 = vcombine.high %v18955_v8, %v18959_v58  ;;  %v18960_v61 = vld [vmem:[%s21990_s19 + $0x2368] sm:$0xff]  ;;  %v19212_v48 = vcombine.low %v18955_v8, %v18959_v58 }
 0xbe6   : > { %v19214_v30 = vcombine.low %v18956_v33, %v18960_v61  ;;  %v19215_v35 = vcombine.high %v18956_v33, %v18960_v61 }
 0xbe8   : > { %14279 = vmatpush1.bf16.msra.mxu0 %v19156_v3  ;;  %14361 = vmatpush1.bf16.msra.mxu1 %v19158_v11  ;;  %v18967_v3 = vld [vmem:[%s21990_s19 + $0x23a0] sm:$0xff]  ;;  %v18964_v11 = vld [vmem:[%s21990_s19 + $0x2388] sm:$0xff] }
 0xbe9   : > { %14280 = vmatprep.subr.bf16.mxu0 %v19165_v62  ;;  %14362 = vmatprep.subr.bf16.mxu1 %v19167_v7  ;;  %v19221_v62 = vcombine.high %v18963_v2, %v18967_v3  ;;  %v18968_v7 = vld [vmem:[%s21990_s19 + $0x23a8] sm:$0xff] }
 0xbea   : > { %v19223_v41 = vcombine.high %v18964_v11, %v18968_v7 }
 0xbec   : > { %14281 = vmatpush1.bf16.msra.mxu0 %v19164_v12  ;;  %14363 = vmatpush1.bf16.msra.mxu1 %v19166_v28  ;;  %v19220_v12 = vcombine.low %v18963_v2, %v18967_v3  ;;  %v19222_v28 = vcombine.low %v18964_v11, %v18968_v7 }
 0xbed   : > { %14282 = vmatprep.subr.bf16.mxu0 %v19173_v23  ;;  %14364 = vmatprep.subr.bf16.mxu1 %v19175_v6  ;;  %v18972_v23 = vld [vmem:[%s21990_s19 + $0x23c8] sm:$0xff] }
 0xbf0   : > { %14283 = vmatpush1.bf16.msra.mxu0 %v19172_v37  ;;  %14365 = vmatpush1.bf16.msra.mxu1 %v19174_v24  ;;  %v18976_v37 = vld [vmem:[%s21990_s19 + $0x23e8] sm:$0xff]  ;;  %v19228_v24 = vcombine.low %v18971_v13, %v18975_v14 }
 0xbf1   : > { %14284 = vmatprep.subr.bf16.mxu0 %v19181_v49  ;;  %14366 = vmatprep.subr.bf16.mxu1 %v19183_v47  ;;  %v19230_v6 = vcombine.low %v18972_v23, %v18976_v37  ;;  %v19231_v4 = vcombine.high %v18972_v23, %v18976_v37  ;;  %v23972_v49 = vld [vmem:[%s21990_s19 + $0x2408] sm:$0xff] }
 0xbf4   : > { %14285 = vmatpush1.bf16.msra.mxu0 %v19180_v43  ;;  %14367 = vmatpush1.bf16.msra.mxu1 %v19182_v44  ;;  %v23977_v43 = vld [vmem:[%s21990_s19 + $0x2428] sm:$0xff]  ;;  %v19236_v44 = vcombine.low %v23966_v50, %v23969_v38  ;;  %v19007_v50 = vld [vmem:[%s21990_s19 + $0x24e0] sm:$0xff] }
 0xbf5   : > { %14286 = vmatprep.subr.bf16.mxu0 %v19189_v54  ;;  %14368 = vmatprep.subr.bf16.mxu1 %v19191_v56  ;;  %v19238_v47 = vcombine.low %v23972_v49, %v23977_v43  ;;  %v19239_v15 = vcombine.high %v23972_v49, %v23977_v43  ;;  %v11825_v54 = vrot.slane %v23986_v26, %v22372_v20  ;;  %v19004_v38 = vld [vmem:[%s21990_s19 + $0x24c8] sm:$0xff] }
 0xbf6   : > { %v11837_v56 = vrot.slane %v23986_v26, %v22378_v22 }
 0xbf7   : > { %v19837_v57 = vadd.f32 %v11825_v54, %v10033_v53 }
 0xbf8   : > { %14287 = vmatpush1.bf16.msra.mxu0 %v19188_v39  ;;  %14369 = vmatpush1.bf16.msra.mxu1 %v19190_v27  ;;  %v11829_v39 = vrot.slane %v23986_v26, %v22375_v21  ;;  %v10045_v27 = vrot.slane %v23821_v36, %v22555_v32 }
 0xbf9   : > { %14288 = vmatprep.subr.bf16.mxu0 %v19197_v19  ;;  %14370 = vmatprep.subr.bf16.mxu1 %v19199_v52 }
 0xbfa   : > { %v19839_v45 = vadd.f32 %v11829_v39, %v10037_v9  ;;  %v19843_v16 = vadd.f32 %v11837_v56, %v10045_v27  ;;  %v19003_v27 = vld [vmem:[%s21990_s19 + $0x24c0] sm:$0xff] }
 0xbfc   : > { %14289 = vmatpush1.bf16.msra.mxu0 %v19196_v46  ;;  %14371 = vmatpush1.bf16.msra.mxu1 %v19198_v51 }
 0xbfd   : > { %14290 = vmatprep.subr.bf16.mxu0 %v19205_v0  ;;  %14372 = vmatprep.subr.bf16.mxu1 %v19207_v5 }
 0xc00   : > { %14291 = vmatpush1.bf16.msra.mxu0 %v19204_v1  ;;  %14373 = vmatpush1.bf16.msra.mxu1 %v19206_v63 }
 0xc01   : > { %14292 = vmatprep.subr.bf16.mxu0 %v19213_v34  ;;  %14374 = vmatprep.subr.bf16.mxu1 %v19215_v35 }
 0xc04   : > { %14293 = vmatpush1.bf16.msra.mxu0 %v19212_v48  ;;  %14375 = vmatpush1.bf16.msra.mxu1 %v19214_v30 }
 0xc05   : > { %14294 = vmatprep.subr.bf16.mxu0 %v19221_v62  ;;  %14376 = vmatprep.subr.bf16.mxu1 %v19223_v41  ;;  %v18987_v62 = vld [vmem:[%s21990_s19 + $0x2440] sm:$0xff]  ;;  %v18992_v41 = vld [vmem:[%s21990_s19 + $0x2468] sm:$0xff] }
 0xc08   : > { %14295 = vmatpush1.bf16.msra.mxu0 %v19220_v12  ;;  %14377 = vmatpush1.bf16.msra.mxu1 %v19222_v28  ;;  %v18991_v12 = vld [vmem:[%s21990_s19 + $0x2460] sm:$0xff]  ;;  %v18988_v28 = vld [vmem:[%s21990_s19 + $0x2448] sm:$0xff] }
 0xc09   : > { %14296 = vmatprep.subr.bf16.mxu0 %v19229_v25  ;;  %14378 = vmatprep.subr.bf16.mxu1 %v19231_v4  ;;  %v18995_v25 = vld [vmem:[%s21990_s19 + $0x2480] sm:$0xff]  ;;  %v19245_v37 = vcombine.high %v18987_v62, %v18991_v12  ;;  %v18996_v4 = vld [vmem:[%s21990_s19 + $0x2488] sm:$0xff]  ;;  %v19244_v53 = vcombine.low %v18987_v62, %v18991_v12  ;;  %v19246_v54 = vcombine.low %v18988_v28, %v18992_v41 }
 0xc0a   : > { %v19036_v62 = vld [vmem:[%s21990_s19 + $0x25c8] sm:$0xff]  ;;  %v10041_v12 = vrot.slane %v23821_v36, %v22614_v55 }
 0xc0c   : > { %14297 = vmatpush1.bf16.msra.mxu0 %v19228_v24  ;;  %14379 = vmatpush1.bf16.msra.mxu1 %v19230_v6  ;;  %v19247_v24 = vcombine.high %v18988_v28, %v18992_v41  ;;  %v18999_v6 = vld [vmem:[%s21990_s19 + $0x24a0] sm:$0xff] }
 0xc0d   : > { %14307 = vmatprep.subr.bf16.mxu0 %v19237_v42  ;;  %14389 = vmatprep.subr.bf16.mxu1 %v19239_v15  ;;  %v19000_v42 = vld [vmem:[%s21990_s19 + $0x24a8] sm:$0xff]  ;;  %v19253_v9 = vcombine.high %v18995_v25, %v18999_v6  ;;  %v19252_v49 = vcombine.low %v18995_v25, %v18999_v6  ;;  %v19047_v6 = vld [vmem:[%s21990_s19 + $0x2620] sm:$0xff] }
 0xc0e   : > { %v19255_v39 = vcombine.high %v18996_v4, %v19000_v42  ;;  %v19254_v43 = vcombine.low %v18996_v4, %v19000_v42  ;;  %v19044_v4 = vld [vmem:[%s21990_s19 + $0x2608] sm:$0xff] }
 0xc0f   : > { %v19048_v42 = vld [vmem:[%s21990_s19 + $0x2628] sm:$0xff] }
 0xca2   : > { %v12557_v19 = vpop.f32.mrb[28].mxu0  ;;  %v24000_v40 = vpop.f32.mrb[28].mxu1 }
 0xca3   : > { %v19838_v46 = vadd.f32 %v19837_v57, %v12557_v19  ;;  %v12559_v51 = vpop.f32.mrb[29].mxu0  ;;  %v12641_v52 = vpop.f32.mrb[29].mxu1  ;;  %v19011_v57 = vld [vmem:[%s21990_s19 + $0x2500] sm:$0xff]  ;;  %v19016_v19 = vld [vmem:[%s21990_s19 + $0x2528] sm:$0xff] }
 0xca4   : > { %v19840_v60 = vadd.f32 %v19839_v45, %v12559_v51  ;;  %v19844_v10 = vadd.f32 %v19843_v16, %v12641_v52  ;;  %v12561_v59 = vpop.f32.mrb[30].mxu0  ;;  %v12643_v0 = vpop.f32.mrb[30].mxu1  ;;  %v19015_v45 = vld [vmem:[%s21990_s19 + $0x2520] sm:$0xff]  ;;  %v19012_v16 = vld [vmem:[%s21990_s19 + $0x2508] sm:$0xff] }
 0xca5   : > { %v12654_v18 = vmin.f32 %v19838_v46, 0.0  ;;  %v12562_v1 = vpop.f32.mrb[31].mxu0  ;;  %v12644_v63 = vpop.f32.mrb[31].mxu1  ;;  %vm12650_vm4 = vcmp.gt.f32.partialorder %v19838_v46, 0.0  ;;  %v19269_v52 = vcombine.high %v19011_v57, %v19015_v45  ;;  %v19023_v59 = vld [vmem:[%s21990_s19 + $0x2560] sm:$0xff]  ;;  %v19020_v0 = vld [vmem:[%s21990_s19 + $0x2548] sm:$0xff] }
 0xca6   : > { %v12655_v5 = vmin.f32 %v19840_v60, 0.0  ;;  %v12657_v8 = vmin.f32 %v19844_v10, 0.0  ;;  %vm12651_vm5 = vcmp.gt.f32.partialorder %v19840_v60, 0.0  ;;  %vm12653_vm6 = vcmp.gt.f32.partialorder %v19844_v10, 0.0 }
 0xca7   : > { %v12658_v58 = vmul.f32 1.442695, %v12654_v18  ;;  %v19024_v18 = vld [vmem:[%s21990_s19 + $0x2568] sm:$0xff]  ;;  %v19268_v1 = vcombine.low %v19011_v57, %v19015_v45  ;;  %v19270_v63 = vcombine.low %v19012_v16, %v19016_v19  ;;  %v19059_v57 = vld [vmem:[%s21990_s19 + $0x2680] sm:$0xff] }
 0xca8   : > { %v12660_v33 = vmul.f32 1.442695, %v12655_v5  ;;  %v12664_v34 = vmul.f32 1.442695, %v12657_v8  ;;  %v19279_v8 = vcombine.high %v19020_v0, %v19024_v18  ;;  %v19063_v45 = vld [vmem:[%s21990_s19 + $0x26a0] sm:$0xff] }
 0xca9   : > { %21178 = vpow2.f32 %v12658_v58  ;;  %v19027_v58 = vld [vmem:[%s21990_s19 + $0x2580] sm:$0xff] }
 0xcaa   : > { %21180 = vpow2.f32 %v12660_v33  ;;  %v19031_v33 = vld [vmem:[%s21990_s19 + $0x25a0] sm:$0xff] }
 0xcab   : > { %21182 = vpow2.f32 %v12664_v34  ;;  %v19028_v34 = vld [vmem:[%s21990_s19 + $0x2588] sm:$0xff]  ;;  %v19284_v28 = vcombine.low %v19027_v58, %v19031_v33 }
 0xcb3   : > { %v21179_v61 = vpop.eup %21178 }
 0xcb4   : > { %v18847_v48 = vadd.f32 -1.0, %v21179_v61  ;;  %v21181_v30 = vpop.eup %21180  ;;  %v19032_v61 = vld [vmem:[%s21990_s19 + $0x25a8] sm:$0xff] }
 0xcb5   : > { %v21183_v35 = vpop.eup %21182  ;;  %v18848_v2 = vadd.f32 -1.0, %v21181_v30  ;;  %v19278_v30 = vcombine.low %v19020_v0, %v19024_v18  ;;  %v19286_v41 = vcombine.low %v19028_v34, %v19032_v61  ;;  %v19068_v0 = vld [vmem:[%s21990_s19 + $0x26c8] sm:$0xff] }
 0xcb6   : > { %v12670_v3 = vsel %vm12650_vm4, %v19838_v46, %v18847_v48  ;;  %v18850_v11 = vadd.f32 -1.0, %v21183_v35  ;;  %v19260_v46 = vcombine.low %v19003_v27, %v19007_v50  ;;  %v19285_v35 = vcombine.high %v19027_v58, %v19031_v33  ;;  %v19072_v18 = vld [vmem:[%s21990_s19 + $0x26e8] sm:$0xff]  ;;  %v19075_v33 = vld [vmem:[%s21990_s19 + $0x2700] sm:$0xff] }
 0xcb7   : > { %v12671_v7 = vsel %vm12651_vm5, %v19840_v60, %v18848_v2  ;;  %v24008_v23 = vpack.c.bf16 %v12670_v3, %v12670_v3  ;;  %v19271_v60 = vcombine.high %v19012_v16, %v19016_v19  ;;  %v19287_v2 = vcombine.high %v19028_v34, %v19032_v61  ;;  %v19035_v3 = vld [vmem:[%s21990_s19 + $0x25c0] sm:$0xff]  ;;  %v19060_v16 = vld [vmem:[%s21990_s19 + $0x2688] sm:$0xff] }
 0xcb8   : > { %v12673_v13 = vsel %vm12653_vm6, %v19844_v10, %v18850_v11  ;;  %v24006_v14 = vpack.c.bf16 %v12671_v7, %v12671_v7  ;;  %v19019_v10 = vld [vmem:[%s21990_s19 + $0x2540] sm:$0xff]  ;;  %v19040_v7 = vld [vmem:[%s21990_s19 + $0x25e8] sm:$0xff]  ;;  %v19327_v58 = vcombine.high %v19068_v0, %v19072_v18  ;;  %vm15922_vm4 = vcmask (!%p19629_p0), 7168  }
 0xcb9   : > { %v24018_v15 = vpack.c.bf16 %v12673_v13, %v12673_v13  ;;  %v19277_v5 = vcombine.high %v19019_v10, %v19023_v59  ;;  %v19276_v48 = vcombine.low %v19019_v10, %v19023_v59  ;;  %v19039_v11 = vld [vmem:[%s21990_s19 + $0x25e0] sm:$0xff]  ;;  %v11833_v13 = vrot.slane %v23986_v26, %v22415_v17  ;;  %v19064_v19 = vld [vmem:[%s21990_s19 + $0x26a8] sm:$0xff] }
 0xcba   : > { %14298 = vmatprep.mubr.bf16.mxu0 %v24006_v14  ;;  %14380 = vmatprep.mubr.bf16.mxu1 %v24006_v14  ;;  %v19293_v25 = vcombine.high %v19035_v3, %v19039_v11  ;;  %v19292_v36 = vcombine.low %v19035_v3, %v19039_v11  ;;  %v19067_v10 = vld [vmem:[%s21990_s19 + $0x26c0] sm:$0xff]  ;;  %v19076_v61 = vld [vmem:[%s21990_s19 + $0x2708] sm:$0xff] }
 0xcbb   : > { %14299 = vmatmul.mubr.bf16.vlgmr.msra.gmra.mrb[32].mxu0 %v24008_v23  ;;  %14381 = vmatmul.mubr.bf16.vlgmr.msra.gmra.mrb[32].mxu1 %v24008_v23  ;;  %v19071_v59 = vld [vmem:[%s21990_s19 + $0x26e0] sm:$0xff] }
 0xcbc   : > { %14308 = vmatpush1.bf16.msra.mxu0 %v19236_v44  ;;  %14390 = vmatpush1.bf16.msra.mxu1 %v19238_v47  ;;  %v19008_v44 = vld [vmem:[%s21990_s19 + $0x24e8] sm:$0xff]  ;;  %v19261_v47 = vcombine.high %v19003_v27, %v19007_v50  ;;  %v19055_v27 = vld [vmem:[%s21990_s19 + $0x2660] sm:$0xff] }
 0xcbd   : > { %14339 = vmatprep.mubr.bf16.mxu0 %v24018_v15  ;;  %14421 = vmatprep.mubr.bf16.mxu1 %v24018_v15  ;;  %v19263_v56 = vcombine.high %v19004_v38, %v19008_v44  ;;  %v19262_v51 = vcombine.low %v19004_v38, %v19008_v44  ;;  %v19052_v50 = vld [vmem:[%s21990_s19 + $0x2648] sm:$0xff]  ;;  %v19079_v34 = vld [vmem:[%s21990_s19 + $0x2720] sm:$0xff] }
 0xcbe   : > { %14309 = vmatprep.subr.bf16.mxu0 %v19245_v37  ;;  %14391 = vmatprep.subr.bf16.mxu1 %v19247_v24  ;;  %v19295_v37 = vcombine.high %v19036_v62, %v19040_v7  ;;  %v19043_v24 = vld [vmem:[%s21990_s19 + $0x2600] sm:$0xff]  ;;  %v19056_v38 = vld [vmem:[%s21990_s19 + $0x2668] sm:$0xff] }
 0xcbf   : > { %v19301_v26 = vcombine.high %v19043_v24, %v19047_v6  ;;  %v19300_v44 = vcombine.low %v19043_v24, %v19047_v6  ;;  %v19083_v11 = vld [vmem:[%s21990_s19 + $0x2740] sm:$0xff]  ;;  %v19092_v6 = vld [vmem:[%s21990_s19 + $0x2788] sm:$0xff] }
 0xcc0   : > { %14310 = vmatpush1.bf16.msra.mxu0 %v19244_v53  ;;  %14392 = vmatpush1.bf16.msra.mxu1 %v19246_v54  ;;  %v19294_v53 = vcombine.low %v19036_v62, %v19040_v7  ;;  %v19841_v54 = vadd.f32 %v11833_v13, %v10041_v12  ;;  %v19087_v62 = vld [vmem:[%s21990_s19 + $0x2760] sm:$0xff]  ;;  %v19084_v7 = vld [vmem:[%s21990_s19 + $0x2748] sm:$0xff] }
 0xcc1   : > { %14311 = vmatprep.subr.bf16.mxu0 %v19253_v9  ;;  %14393 = vmatprep.subr.bf16.mxu1 %v19255_v39  ;;  %v19303_v9 = vcombine.high %v19044_v4, %v19048_v42  ;;  %v19051_v39 = vld [vmem:[%s21990_s19 + $0x2640] sm:$0xff]  ;;  %v19088_v12 = vld [vmem:[%s21990_s19 + $0x2768] sm:$0xff]  ;;  %v19341_v13 = vcombine.high %v19083_v11, %v19087_v62 }
 0xcc2   : > { %v19095_v24 = vld [vmem:[%s21990_s19 + $0x27a0] sm:$0xff] }
 0xcc4   : > { %14312 = vmatpush1.bf16.msra.mxu0 %v19252_v49  ;;  %14394 = vmatpush1.bf16.msra.mxu1 %v19254_v43  ;;  %v19302_v49 = vcombine.low %v19044_v4, %v19048_v42  ;;  %v24061_v43 = vadd.f32 %v19841_v54, %v24000_v40  ;;  %v19317_v40 = vcombine.high %v19059_v57, %v19063_v45  ;;  %v19096_v4 = vld [vmem:[%s21990_s19 + $0x27a8] sm:$0xff] }
 0xcc5   : > { %14313 = vmatprep.subr.bf16.mxu0 %v19261_v47  ;;  %14395 = vmatprep.subr.bf16.mxu1 %v19263_v56  ;;  %v19309_v47 = vcombine.high %v19051_v39, %v19055_v27  ;;  %v19311_v56 = vcombine.high %v19052_v50, %v19056_v38  ;;  %v19340_v42 = vcombine.low %v19083_v11, %v19087_v62  ;;  %v18881_v11 = vld [vmem:[%s21990_s19 + $0x20f0] sm:$0xff]  ;;  %v18878_v62 = vld [vmem:[%s21990_s19 + $0x20d8] sm:$0xff] }
 0xcc6   : > { %v19351_v54 = vcombine.high %v19092_v6, %v19096_v4  ;;  %vm12652_vm7 = vcmp.gt.f32.partialorder %v24061_v43, 0.0 }
 0xcc8   : > { %14314 = vmatpush1.bf16.msra.mxu0 %v19260_v46  ;;  %14396 = vmatpush1.bf16.msra.mxu1 %v19262_v51  ;;  %v19308_v46 = vcombine.low %v19051_v39, %v19055_v27  ;;  %v19310_v51 = vcombine.low %v19052_v50, %v19056_v38  ;;  %v19100_v39 = vld [vmem:[%s21990_s19 + $0x27c8] sm:$0xff] }
 0xcc9   : > { %14315 = vmatprep.subr.bf16.mxu0 %v19269_v52  ;;  %14397 = vmatprep.subr.bf16.mxu1 %v19271_v60  ;;  %v12656_v52 = vmin.f32 %v24061_v43, 0.0  ;;  %v19319_v60 = vcombine.high %v19060_v16, %v19064_v19  ;;  %v19104_v27 = vld [vmem:[%s21990_s19 + $0x27e8] sm:$0xff] }
 0xccc   : > { %14316 = vmatpush1.bf16.msra.mxu0 %v19268_v1  ;;  %14398 = vmatpush1.bf16.msra.mxu1 %v19270_v63  ;;  %v19316_v1 = vcombine.low %v19059_v57, %v19063_v45  ;;  %v19318_v63 = vcombine.low %v19060_v16, %v19064_v19  ;;  %v18857_v45 = vld [vmem:[%s21990_s19 + $0x2030] sm:$0xff]  ;;  %v18854_v16 = vld [vmem:[%s21990_s19 + $0x2018] sm:$0xff] }
 0xccd   : > { %14317 = vmatprep.subr.bf16.mxu0 %v19277_v5  ;;  %14399 = vmatprep.subr.bf16.mxu1 %v19279_v8  ;;  %v12662_v5 = vmul.f32 1.442695, %v12656_v52  ;;  %v19325_v8 = vcombine.high %v19067_v10, %v19071_v59  ;;  %v18858_v19 = vld [vmem:[%s21990_s19 + $0x2038] sm:$0xff] }
 0xccf   : > { %21184 = vpow2.f32 %v12662_v5  ;;  %v19114_v5 = vcombine.low %v18854_v16, %v18858_v19 }
 0xcd0   : > { %14318 = vmatpush1.bf16.msra.mxu0 %v19276_v48  ;;  %14400 = vmatpush1.bf16.msra.mxu1 %v19278_v30  ;;  %v19080_v48 = vld [vmem:[%s21990_s19 + $0x2728] sm:$0xff]  ;;  %v19324_v30 = vcombine.low %v19067_v10, %v19071_v59  ;;  %v18861_v10 = vld [vmem:[%s21990_s19 + $0x2050] sm:$0xff] }
 0xcd1   : > { %14319 = vmatprep.subr.bf16.mxu0 %v19285_v35  ;;  %14401 = vmatprep.subr.bf16.mxu1 %v19287_v2  ;;  %v19326_v35 = vcombine.low %v19068_v0, %v19072_v18  ;;  %v19333_v2 = vcombine.high %v19075_v33, %v19079_v34  ;;  %v19335_v3 = vcombine.high %v19076_v61, %v19080_v48  ;;  %v18865_v59 = vld [vmem:[%s21990_s19 + $0x2070] sm:$0xff]  ;;  %v18862_v0 = vld [vmem:[%s21990_s19 + $0x2058] sm:$0xff] }
 0xcd2   : > { %v18866_v18 = vld [vmem:[%s21990_s19 + $0x2078] sm:$0xff] }
 0xcd4   : > { %14320 = vmatpush1.bf16.msra.mxu0 %v19284_v28  ;;  %14402 = vmatpush1.bf16.msra.mxu1 %v19286_v41  ;;  %v19332_v28 = vcombine.low %v19075_v33, %v19079_v34  ;;  %v19334_v41 = vcombine.low %v19076_v61, %v19080_v48  ;;  %v18869_v33 = vld [vmem:[%s21990_s19 + $0x2090] sm:$0xff]  ;;  %v18874_v61 = vld [vmem:[%s21990_s19 + $0x20b8] sm:$0xff]  ;;  %v19120_v48 = vcombine.low %v18861_v10, %v18865_v59 }
 0xcd5   : > { %14321 = vmatprep.subr.bf16.mxu0 %v19293_v25  ;;  %14403 = vmatprep.subr.bf16.mxu1 %v19295_v37  ;;  %v19343_v25 = vcombine.high %v19084_v7, %v19088_v12  ;;  %v19091_v37 = vld [vmem:[%s21990_s19 + $0x2780] sm:$0xff]  ;;  %v18873_v34 = vld [vmem:[%s21990_s19 + $0x20b0] sm:$0xff] }
 0xcd6   : > { %v19348_v38 = vcombine.low %v19091_v37, %v19095_v24 }
 0xcd8   : > { %14322 = vmatpush1.bf16.msra.mxu0 %v19292_v36  ;;  %14404 = vmatpush1.bf16.msra.mxu1 %v19294_v53  ;;  %v19342_v36 = vcombine.low %v19084_v7, %v19088_v12  ;;  %v19349_v53 = vcombine.high %v19091_v37, %v19095_v24  ;;  %v18882_v7 = vld [vmem:[%s21990_s19 + $0x20f8] sm:$0xff]  ;;  %v19128_v12 = vcombine.low %v18869_v33, %v18873_v34 }
 0xcd9   : > { %14323 = vmatprep.subr.bf16.mxu0 %v19301_v26  ;;  %14405 = vmatprep.subr.bf16.mxu1 %v19303_v9  ;;  %v19099_v26 = vld [vmem:[%s21990_s19 + $0x27c0] sm:$0xff]  ;;  %v21185_v50 = vpop.eup %21184  ;;  %v18886_v37 = vld [vmem:[%s21990_s19 + $0x2118] sm:$0xff] }
 0xcda   : > { %v19103_v9 = vld [vmem:[%s21990_s19 + $0x27e0] sm:$0xff]  ;;  %v18849_v57 = vadd.f32 -1.0, %v21185_v50  ;;  %v18890_v24 = vld [vmem:[%s21990_s19 + $0x2138] sm:$0xff] }
 0xcdc   : > { %14324 = vmatpush1.bf16.msra.mxu0 %v19300_v44  ;;  %14406 = vmatpush1.bf16.msra.mxu1 %v19302_v49  ;;  %v19350_v44 = vcombine.low %v19092_v6, %v19096_v4  ;;  %v19357_v49 = vcombine.high %v19099_v26, %v19103_v9  ;;  %v19138_v4 = vcombine.low %v18878_v62, %v18882_v7 }
 0xcdd   : > { %14325 = vmatprep.subr.bf16.mxu0 %v19309_v47  ;;  %14407 = vmatprep.subr.bf16.mxu1 %v19311_v56  ;;  %v19359_v47 = vcombine.high %v19100_v39, %v19104_v27  ;;  %v18853_v56 = vld [vmem:[%s21990_s19 + $0x2010] sm:$0xff] }
 0xcde   : > { %v19113_v52 = vcombine.high %v18853_v56, %v18857_v45 }
 0xce0   : > { %14326 = vmatpush1.bf16.msra.mxu0 %v19308_v46  ;;  %14408 = vmatpush1.bf16.msra.mxu1 %v19310_v51  ;;  %v19356_v46 = vcombine.low %v19099_v26, %v19103_v9  ;;  %v19358_v51 = vcombine.low %v19100_v39, %v19104_v27  ;;  %v18894_v26 = vld [vmem:[%s21990_s19 + $0x2158] sm:$0xff]  ;;  %v19146_v27 = vcombine.low %v18886_v37, %v18890_v24 }
 0xce1   : > { %14327 = vmatprep.subr.bf16.mxu0 %v19317_v40  ;;  %14409 = vmatprep.subr.bf16.mxu1 %v19319_v60  ;;  %v19115_v40 = vcombine.high %v18854_v16, %v18858_v19  ;;  %v12672_v60 = vsel %vm12652_vm7, %v24061_v43, %v18849_v57  ;;  %v18870_v43 = vld [vmem:[%s21990_s19 + $0x2098] sm:$0xff] }
 0xce2   : > { %v18898_v9 = vld [vmem:[%s21990_s19 + $0x2178] sm:$0xff] }
 0xce4   : > { %14328 = vmatpush1.bf16.msra.mxu0 %v19316_v1  ;;  %14410 = vmatpush1.bf16.msra.mxu1 %v19318_v63  ;;  %v19112_v1 = vcombine.low %v18853_v56, %v18857_v45  ;;  %v24098_v63 = vpack.c.bf16 %v12672_v60, %v12672_v60  ;;  %v18906_v56 = vld [vmem:[%s21990_s19 + $0x21b8] sm:$0xff]  ;;  %v19154_v45 = vcombine.low %v18894_v26, %v18898_v9 }
 0xce5   : > { %14329 = vmatprep.subr.bf16.mxu0 %v19325_v8  ;;  %14411 = vmatprep.subr.bf16.mxu1 %v19327_v58  ;;  %v19121_v8 = vcombine.high %v18861_v10, %v18865_v59  ;;  %v19123_v58 = vcombine.high %v18862_v0, %v18866_v18 }
 0xce8   : > { %14330 = vmatpush1.bf16.msra.mxu0 %v19324_v30  ;;  %14412 = vmatpush1.bf16.msra.mxu1 %v19326_v35  ;;  %v19122_v30 = vcombine.low %v18862_v0, %v18866_v18  ;;  %v19129_v35 = vcombine.high %v18869_v33, %v18873_v34  ;;  %v18917_v18 = vld [vmem:[%s21990_s19 + $0x2210] sm:$0xff] }
 0xce9   : > { %14331 = vmatprep.subr.bf16.mxu0 %v19333_v2  ;;  %14413 = vmatprep.subr.bf16.mxu1 %v19335_v3  ;;  %v19131_v2 = vcombine.high %v18870_v43, %v18874_v61  ;;  %v18877_v3 = vld [vmem:[%s21990_s19 + $0x20d0] sm:$0xff] }
 0xcea   : > { %v19136_v6 = vcombine.low %v18877_v3, %v18881_v11 }
 0xcec   : > { %14332 = vmatpush1.bf16.msra.mxu0 %v19332_v28  ;;  %14414 = vmatpush1.bf16.msra.mxu1 %v19334_v41  ;;  %v19130_v28 = vcombine.low %v18870_v43, %v18874_v61  ;;  %v19139_v41 = vcombine.high %v18878_v62, %v18882_v7  ;;  %v18925_v61 = vld [vmem:[%s21990_s19 + $0x2250] sm:$0xff] }
 0xced   : > { %14333 = vmatprep.subr.bf16.mxu0 %v19341_v13  ;;  %14415 = vmatprep.subr.bf16.mxu1 %v19343_v25  ;;  %v18885_v13 = vld [vmem:[%s21990_s19 + $0x2110] sm:$0xff] }
 0xcee   : > { %v18889_v25 = vld [vmem:[%s21990_s19 + $0x2130] sm:$0xff] }
 0xcef   : > { %v19144_v39 = vcombine.low %v18885_v13, %v18889_v25  ;;  %v18933_v7 = vld [vmem:[%s21990_s19 + $0x2290] sm:$0xff] }
 0xcf0   : > { %14334 = vmatpush1.bf16.msra.mxu0 %v19340_v42  ;;  %14416 = vmatpush1.bf16.msra.mxu1 %v19342_v36  ;;  %v19145_v42 = vcombine.high %v18885_v13, %v18889_v25  ;;  %v19147_v36 = vcombine.high %v18886_v37, %v18890_v24  ;;  %v18941_v24 = vld [vmem:[%s21990_s19 + $0x22d0] sm:$0xff] }
 0xcf1   : > { %14335 = vmatprep.subr.bf16.mxu0 %v19349_v53  ;;  %14417 = vmatprep.subr.bf16.mxu1 %v19351_v54  ;;  %v18893_v53 = vld [vmem:[%s21990_s19 + $0x2150] sm:$0xff] }
 0xcf2   : > { %v18897_v54 = vld [vmem:[%s21990_s19 + $0x2170] sm:$0xff] }
 0xcf3   : > { %v19153_v50 = vcombine.high %v18893_v53, %v18897_v54  ;;  %v19152_v57 = vcombine.low %v18893_v53, %v18897_v54 }
 0xcf4   : > { %14336 = vmatpush1.bf16.msra.mxu0 %v19348_v38  ;;  %14418 = vmatpush1.bf16.msra.mxu1 %v19350_v44  ;;  %v19155_v38 = vcombine.high %v18894_v26, %v18898_v9  ;;  %v18901_v44 = vld [vmem:[%s21990_s19 + $0x2190] sm:$0xff] }
 0xcf5   : > { %14337 = vmatprep.subr.bf16.mxu0 %v19357_v49  ;;  %14419 = vmatprep.subr.bf16.mxu1 %v19359_v47  ;;  %v18905_v49 = vld [vmem:[%s21990_s19 + $0x21b0] sm:$0xff]  ;;  %v18902_v47 = vld [vmem:[%s21990_s19 + $0x2198] sm:$0xff] }
 0xcf6   : > { %v19161_v16 = vcombine.high %v18901_v44, %v18905_v49  ;;  %v19163_v19 = vcombine.high %v18902_v47, %v18906_v56  ;;  %v19160_v60 = vcombine.low %v18901_v44, %v18905_v49  ;;  %v19162_v10 = vcombine.low %v18902_v47, %v18906_v56  ;;  %v18949_v9 = vld [vmem:[%s21990_s19 + $0x2310] sm:$0xff] }
 0xcf7   : > { %v18957_v56 = vld [vmem:[%s21990_s19 + $0x2350] sm:$0xff] }
 0xcf8   : > { %14338 = vmatpush1.bf16.msra.mxu0 %v19356_v46  ;;  %14420 = vmatpush1.bf16.msra.mxu1 %v19358_v51  ;;  %v18909_v46 = vld [vmem:[%s21990_s19 + $0x21d0] sm:$0xff] }
 0xcf9   : > { %14430 = vmatprep.subr.bf16.mxu0 %v19113_v52  ;;  %14512 = vmatprep.subr.bf16.mxu1 %v19115_v40  ;;  %v18913_v51 = vld [vmem:[%s21990_s19 + $0x21f0] sm:$0xff]  ;;  %v18910_v52 = vld [vmem:[%s21990_s19 + $0x21d8] sm:$0xff] }
 0xcfa   : > { %v18914_v40 = vld [vmem:[%s21990_s19 + $0x21f8] sm:$0xff]  ;;  %v19169_v59 = vcombine.high %v18909_v46, %v18913_v51 }
 0xcfb   : > { %14340 = vmatmul.mubr.bf16.vlgmr.msra.gmra.mrb[32].mxu0 %v24098_v63  ;;  %14422 = vmatmul.mubr.bf16.vlgmr.msra.gmra.mrb[32].mxu1 %v24098_v63  ;;  %v19171_v0 = vcombine.high %v18910_v52, %v18914_v40  ;;  %v19170_v33 = vcombine.low %v18910_v52, %v18914_v40  ;;  %v18965_v40 = vld [vmem:[%s21990_s19 + $0x2390] sm:$0xff] }
 0xcfc   : > { %14431 = vmatpush1.bf16.msra.mxu0 %v19112_v1  ;;  %14462 = vmatprep.mubr.bf16.mxu0 %v24006_v14  ;;  %v18921_v1 = vld [vmem:[%s21990_s19 + $0x2230] sm:$0xff] }
 0xcfd   : > { %14513 = vmatpush1.bf16.msra.mxu1 %v19114_v5  ;;  %14544 = vmatprep.mubr.bf16.mxu1 %v24006_v14  ;;  %v19137_v14 = vcombine.high %v18877_v3, %v18881_v11  ;;  %v18918_v5 = vld [vmem:[%s21990_s19 + $0x2218] sm:$0xff]  ;;  %v19177_v34 = vcombine.high %v18917_v18, %v18921_v1 }
 0xcfe   : > { %14432 = vmatprep.subr.bf16.mxu0 %v19121_v8  ;;  %14514 = vmatprep.subr.bf16.mxu1 %v19123_v58  ;;  %v18922_v8 = vld [vmem:[%s21990_s19 + $0x2238] sm:$0xff]  ;;  %v19168_v58 = vcombine.low %v18909_v46, %v18913_v51 }
 0xcff   : > { %v19179_v43 = vcombine.high %v18918_v5, %v18922_v8  ;;  %v19178_v3 = vcombine.low %v18918_v5, %v18922_v8  ;;  %v18973_v8 = vld [vmem:[%s21990_s19 + $0x23d0] sm:$0xff] }
 0xd00   : > { %14433 = vmatpush1.bf16.msra.mxu0 %v19120_v48  ;;  %v18929_v48 = vld [vmem:[%s21990_s19 + $0x2270] sm:$0xff] }
 0xd01   : > { %14515 = vmatpush1.bf16.msra.mxu1 %v19122_v30  ;;  %14434 = vmatprep.subr.bf16.mxu0 %v19129_v35  ;;  %v18926_v30 = vld [vmem:[%s21990_s19 + $0x2258] sm:$0xff]  ;;  %v19185_v11 = vcombine.high %v18925_v61, %v18929_v48 }
 0xd02   : > { %14516 = vmatprep.subr.bf16.mxu1 %v19131_v2  ;;  %v18930_v35 = vld [vmem:[%s21990_s19 + $0x2278] sm:$0xff]  ;;  %v19176_v2 = vcombine.low %v18917_v18, %v18921_v1 }
 0xd03   : > { %v19187_v62 = vcombine.high %v18926_v30, %v18930_v35  ;;  %v19186_v13 = vcombine.low %v18926_v30, %v18930_v35  ;;  %v18981_v35 = vld [vmem:[%s21990_s19 + $0x2410] sm:$0xff] }
 0xd04   : > { %14435 = vmatpush1.bf16.msra.mxu0 %v19128_v12  ;;  %v18937_v12 = vld [vmem:[%s21990_s19 + $0x22b0] sm:$0xff] }
 0xd05   : > { %14517 = vmatpush1.bf16.msra.mxu1 %v19130_v28  ;;  %14436 = vmatprep.subr.bf16.mxu0 %v19137_v14  ;;  %v18934_v28 = vld [vmem:[%s21990_s19 + $0x2298] sm:$0xff]  ;;  %v19193_v25 = vcombine.high %v18933_v7, %v18937_v12 }
 0xd06   : > { %14518 = vmatprep.subr.bf16.mxu1 %v19139_v41  ;;  %v18938_v14 = vld [vmem:[%s21990_s19 + $0x22b8] sm:$0xff]  ;;  %v19184_v41 = vcombine.low %v18925_v61, %v18929_v48 }
 0xd07   : > { %v19195_v37 = vcombine.high %v18934_v28, %v18938_v14  ;;  %v19194_v53 = vcombine.low %v18934_v28, %v18938_v14  ;;  %v18989_v14 = vld [vmem:[%s21990_s19 + $0x2450] sm:$0xff] }
 0xd08   : > { %14437 = vmatpush1.bf16.msra.mxu0 %v19136_v6  ;;  %v18945_v6 = vld [vmem:[%s21990_s19 + $0x22f0] sm:$0xff] }
 0xd09   : > { %14519 = vmatpush1.bf16.msra.mxu1 %v19138_v4  ;;  %14438 = vmatprep.subr.bf16.mxu0 %v19145_v42  ;;  %v18942_v4 = vld [vmem:[%s21990_s19 + $0x22d8] sm:$0xff]  ;;  %v19201_v54 = vcombine.high %v18941_v24, %v18945_v6 }
 0xd0a   : > { %14520 = vmatprep.subr.bf16.mxu1 %v19147_v36  ;;  %v18946_v42 = vld [vmem:[%s21990_s19 + $0x22f8] sm:$0xff]  ;;  %v19192_v36 = vcombine.low %v18933_v7, %v18937_v12 }
 0xd0b   : > { %v19203_v26 = vcombine.high %v18942_v4, %v18946_v42  ;;  %v19202_v44 = vcombine.low %v18942_v4, %v18946_v42  ;;  %v18997_v4 = vld [vmem:[%s21990_s19 + $0x2490] sm:$0xff] }
 0xd0c   : > { %14439 = vmatpush1.bf16.msra.mxu0 %v19144_v39  ;;  %v18953_v39 = vld [vmem:[%s21990_s19 + $0x2330] sm:$0xff] }
 0xd0d   : > { %14521 = vmatpush1.bf16.msra.mxu1 %v19146_v27  ;;  %14440 = vmatprep.subr.bf16.mxu0 %v19153_v50  ;;  %v18950_v27 = vld [vmem:[%s21990_s19 + $0x2318] sm:$0xff]  ;;  %v19209_v49 = vcombine.high %v18949_v9, %v18953_v39  ;;  %v19001_v42 = vld [vmem:[%s21990_s19 + $0x24b0] sm:$0xff] }
 0xd0e   : > { %14522 = vmatprep.subr.bf16.mxu1 %v19155_v38  ;;  %v18954_v50 = vld [vmem:[%s21990_s19 + $0x2338] sm:$0xff]  ;;  %v19200_v38 = vcombine.low %v18941_v24, %v18945_v6 }
 0xd0f   : > { %v19211_v47 = vcombine.high %v18950_v27, %v18954_v50  ;;  %v19210_v46 = vcombine.low %v18950_v27, %v18954_v50  ;;  %v19005_v50 = vld [vmem:[%s21990_s19 + $0x24d0] sm:$0xff] }
 0xd10   : > { %14441 = vmatpush1.bf16.msra.mxu0 %v19152_v57  ;;  %v18961_v57 = vld [vmem:[%s21990_s19 + $0x2370] sm:$0xff] }
 0xd11   : > { %14523 = vmatpush1.bf16.msra.mxu1 %v19154_v45  ;;  %14442 = vmatprep.subr.bf16.mxu0 %v19161_v16  ;;  %v18958_v45 = vld [vmem:[%s21990_s19 + $0x2358] sm:$0xff]  ;;  %v19217_v51 = vcombine.high %v18957_v56, %v18961_v57 }
 0xd12   : > { %14524 = vmatprep.subr.bf16.mxu1 %v19163_v19  ;;  %v18962_v16 = vld [vmem:[%s21990_s19 + $0x2378] sm:$0xff]  ;;  %v19208_v19 = vcombine.low %v18949_v9, %v18953_v39  ;;  %v19257_v39 = vcombine.high %v18997_v4, %v19001_v42 }
 0xd13   : > { %v19219_v52 = vcombine.high %v18958_v45, %v18962_v16  ;;  %v19218_v18 = vcombine.low %v18958_v45, %v18962_v16  ;;  %v19017_v45 = vld [vmem:[%s21990_s19 + $0x2530] sm:$0xff]  ;;  %v19014_v16 = vld [vmem:[%s21990_s19 + $0x2518] sm:$0xff] }
 0xd14   : > { %14443 = vmatpush1.bf16.msra.mxu0 %v19160_v60  ;;  %v18969_v60 = vld [vmem:[%s21990_s19 + $0x23b0] sm:$0xff] }
 0xd15   : > { %14525 = vmatpush1.bf16.msra.mxu1 %v19162_v10  ;;  %14444 = vmatprep.subr.bf16.mxu0 %v19169_v59  ;;  %v18966_v10 = vld [vmem:[%s21990_s19 + $0x2398] sm:$0xff]  ;;  %v19225_v1 = vcombine.high %v18965_v40, %v18969_v60 }
 0xd16   : > { %14526 = vmatprep.subr.bf16.mxu1 %v19171_v0  ;;  %v18970_v59 = vld [vmem:[%s21990_s19 + $0x23b8] sm:$0xff]  ;;  %v19216_v0 = vcombine.low %v18957_v56, %v18961_v57  ;;  %v19013_v57 = vld [vmem:[%s21990_s19 + $0x2510] sm:$0xff] }
 0xd17   : > { %v19227_v5 = vcombine.high %v18966_v10, %v18970_v59  ;;  %v19226_v61 = vcombine.low %v18966_v10, %v18970_v59  ;;  %v19025_v10 = vld [vmem:[%s21990_s19 + $0x2570] sm:$0xff]  ;;  %v19022_v59 = vld [vmem:[%s21990_s19 + $0x2558] sm:$0xff] }
 0xd18   : > { %14445 = vmatpush1.bf16.msra.mxu0 %v19168_v58  ;;  %v18977_v58 = vld [vmem:[%s21990_s19 + $0x23f0] sm:$0xff] }
 0xd19   : > { %14527 = vmatpush1.bf16.msra.mxu1 %v19170_v33  ;;  %14446 = vmatprep.subr.bf16.mxu0 %v19177_v34  ;;  %v18974_v33 = vld [vmem:[%s21990_s19 + $0x23d8] sm:$0xff]  ;;  %v19233_v48 = vcombine.high %v18973_v8, %v18977_v58 }
 0xd1a   : > { %14528 = vmatprep.subr.bf16.mxu1 %v19179_v43  ;;  %v18978_v34 = vld [vmem:[%s21990_s19 + $0x23f8] sm:$0xff]  ;;  %v19224_v43 = vcombine.low %v18965_v40, %v18969_v60  ;;  %v19021_v60 = vld [vmem:[%s21990_s19 + $0x2550] sm:$0xff] }
 0xd1b   : > { %v19235_v30 = vcombine.high %v18974_v33, %v18978_v34  ;;  %v19234_v7 = vcombine.low %v18974_v33, %v18978_v34  ;;  %v19033_v33 = vld [vmem:[%s21990_s19 + $0x25b0] sm:$0xff]  ;;  %v19030_v34 = vld [vmem:[%s21990_s19 + $0x2598] sm:$0xff] }
 0xd1c   : > { %14447 = vmatpush1.bf16.msra.mxu0 %v19176_v2  ;;  %v18985_v2 = vld [vmem:[%s21990_s19 + $0x2430] sm:$0xff] }
 0xd1d   : > { %14529 = vmatpush1.bf16.msra.mxu1 %v19178_v3  ;;  %14448 = vmatprep.subr.bf16.mxu0 %v19185_v11  ;;  %v18982_v3 = vld [vmem:[%s21990_s19 + $0x2418] sm:$0xff]  ;;  %v19241_v12 = vcombine.high %v18981_v35, %v18985_v2 }
 0xd1e   : > { %14530 = vmatprep.subr.bf16.mxu1 %v19187_v62  ;;  %v18986_v11 = vld [vmem:[%s21990_s19 + $0x2438] sm:$0xff]  ;;  %v19232_v62 = vcombine.low %v18973_v8, %v18977_v58  ;;  %v19029_v58 = vld [vmem:[%s21990_s19 + $0x2590] sm:$0xff] }
 0xd1f   : > { %v19243_v28 = vcombine.high %v18982_v3, %v18986_v11  ;;  %v19242_v24 = vcombine.low %v18982_v3, %v18986_v11  ;;  %v19041_v3 = vld [vmem:[%s21990_s19 + $0x25f0] sm:$0xff]  ;;  %v19038_v11 = vld [vmem:[%s21990_s19 + $0x25d8] sm:$0xff] }
 0xd20   : > { %14449 = vmatpush1.bf16.msra.mxu0 %v19184_v41  ;;  %v18993_v41 = vld [vmem:[%s21990_s19 + $0x2470] sm:$0xff] }
 0xd21   : > { %14531 = vmatpush1.bf16.msra.mxu1 %v19186_v13  ;;  %14450 = vmatprep.subr.bf16.mxu0 %v19193_v25  ;;  %v19240_v13 = vcombine.low %v18981_v35, %v18985_v2  ;;  %v18990_v25 = vld [vmem:[%s21990_s19 + $0x2458] sm:$0xff]  ;;  %v19249_v6 = vcombine.high %v18989_v14, %v18993_v41  ;;  %v19037_v2 = vld [vmem:[%s21990_s19 + $0x25d0] sm:$0xff] }
 0xd22   : > { %14532 = vmatprep.subr.bf16.mxu1 %v19195_v37  ;;  %v18994_v37 = vld [vmem:[%s21990_s19 + $0x2478] sm:$0xff] }
 0xd23   : > { %v19250_v9 = vcombine.low %v18990_v25, %v18994_v37 }
 0xd24   : > { %14451 = vmatpush1.bf16.msra.mxu0 %v19192_v36  ;;  %v19251_v36 = vcombine.high %v18990_v25, %v18994_v37  ;;  %v19046_v25 = vld [vmem:[%s21990_s19 + $0x2618] sm:$0xff] }
 0xd25   : > { %14533 = vmatpush1.bf16.msra.mxu1 %v19194_v53  ;;  %14452 = vmatprep.subr.bf16.mxu0 %v19201_v54  ;;  %v18998_v53 = vld [vmem:[%s21990_s19 + $0x2498] sm:$0xff] }
 0xd26   : > { %14534 = vmatprep.subr.bf16.mxu1 %v19203_v26  ;;  %v19002_v54 = vld [vmem:[%s21990_s19 + $0x24b8] sm:$0xff]  ;;  %v19248_v26 = vcombine.low %v18989_v14, %v18993_v41  ;;  %v19045_v41 = vld [vmem:[%s21990_s19 + $0x2610] sm:$0xff] }
 0xd27   : > { %v19259_v27 = vcombine.high %v18998_v53, %v19002_v54  ;;  %v19050_v37 = vld [vmem:[%s21990_s19 + $0x2638] sm:$0xff] }
 0xd28   : > { %14453 = vmatpush1.bf16.msra.mxu0 %v19200_v38  ;;  %v19009_v38 = vld [vmem:[%s21990_s19 + $0x24f0] sm:$0xff] }
 0xd29   : > { %14535 = vmatpush1.bf16.msra.mxu1 %v19202_v44  ;;  %14454 = vmatprep.subr.bf16.mxu0 %v19209_v49  ;;  %v19006_v44 = vld [vmem:[%s21990_s19 + $0x24d8] sm:$0xff]  ;;  %v19256_v49 = vcombine.low %v18997_v4, %v19001_v42  ;;  %v19265_v56 = vcombine.high %v19005_v50, %v19009_v38  ;;  %v19307_v42 = vcombine.high %v19046_v25, %v19050_v37 }
 0xd2a   : > { %14536 = vmatprep.subr.bf16.mxu1 %v19211_v47  ;;  %v19258_v47 = vcombine.low %v18998_v53, %v19002_v54  ;;  %v19057_v53 = vld [vmem:[%s21990_s19 + $0x2670] sm:$0xff]  ;;  %v19054_v54 = vld [vmem:[%s21990_s19 + $0x2658] sm:$0xff] }
 0xd2c   : > { %14455 = vmatpush1.bf16.msra.mxu0 %v19208_v19  ;;  %v19018_v19 = vld [vmem:[%s21990_s19 + $0x2538] sm:$0xff] }
 0xd2d   : > { %14537 = vmatpush1.bf16.msra.mxu1 %v19210_v46  ;;  %14456 = vmatprep.subr.bf16.mxu0 %v19217_v51  ;;  %v19264_v46 = vcombine.low %v19005_v50, %v19009_v38  ;;  %v19275_v40 = vcombine.high %v19014_v16, %v19018_v19  ;;  %v19061_v38 = vld [vmem:[%s21990_s19 + $0x2690] sm:$0xff] }
 0xd2e   : > { %14538 = vmatprep.subr.bf16.mxu1 %v19219_v52  ;;  %v19273_v52 = vcombine.high %v19013_v57, %v19017_v45 }
 0xd30   : > { %14457 = vmatpush1.bf16.msra.mxu0 %v19216_v0  ;;  %v19026_v0 = vld [vmem:[%s21990_s19 + $0x2578] sm:$0xff] }
 0xd31   : > { %14539 = vmatpush1.bf16.msra.mxu1 %v19218_v18  ;;  %14458 = vmatprep.subr.bf16.mxu0 %v19225_v1  ;;  %v19272_v18 = vcombine.low %v19013_v57, %v19017_v45  ;;  %v19274_v1 = vcombine.low %v19014_v16, %v19018_v19  ;;  %v19283_v8 = vcombine.high %v19022_v59, %v19026_v0  ;;  %v19069_v45 = vld [vmem:[%s21990_s19 + $0x26d0] sm:$0xff]  ;;  %v19070_v19 = vld [vmem:[%s21990_s19 + $0x26d8] sm:$0xff] }
 0xd32   : > { %14540 = vmatprep.subr.bf16.mxu1 %v19227_v5  ;;  %v19281_v5 = vcombine.high %v19021_v60, %v19025_v10  ;;  %v19073_v16 = vld [vmem:[%s21990_s19 + $0x26f0] sm:$0xff] }
 0xd34   : > { %14459 = vmatpush1.bf16.msra.mxu0 %v19224_v43  ;;  %v19034_v43 = vld [vmem:[%s21990_s19 + $0x25b8] sm:$0xff] }
 0xd35   : > { %14541 = vmatpush1.bf16.msra.mxu1 %v19226_v61  ;;  %14460 = vmatprep.subr.bf16.mxu0 %v19233_v48  ;;  %v19280_v61 = vcombine.low %v19021_v60, %v19025_v10  ;;  %v19282_v48 = vcombine.low %v19022_v59, %v19026_v0  ;;  %v19291_v35 = vcombine.high %v19030_v34, %v19034_v43  ;;  %v19077_v10 = vld [vmem:[%s21990_s19 + $0x2710] sm:$0xff]  ;;  %v19078_v0 = vld [vmem:[%s21990_s19 + $0x2718] sm:$0xff] }
 0xd36   : > { %14542 = vmatprep.subr.bf16.mxu1 %v19235_v30  ;;  %v19289_v30 = vcombine.high %v19029_v58, %v19033_v33  ;;  %v19081_v59 = vld [vmem:[%s21990_s19 + $0x2730] sm:$0xff] }
 0xd38   : > { %14461 = vmatpush1.bf16.msra.mxu0 %v19232_v62  ;;  %v19042_v62 = vld [vmem:[%s21990_s19 + $0x25f8] sm:$0xff] }
 0xd39   : > { %14543 = vmatpush1.bf16.msra.mxu1 %v19234_v7  ;;  %14471 = vmatprep.subr.bf16.mxu0 %v19241_v12  ;;  %v19288_v7 = vcombine.low %v19029_v58, %v19033_v33  ;;  %v19290_v12 = vcombine.low %v19030_v34, %v19034_v43  ;;  %v19299_v14 = vcombine.high %v19038_v11, %v19042_v62  ;;  %v19085_v33 = vld [vmem:[%s21990_s19 + $0x2750] sm:$0xff]  ;;  %v19086_v43 = vld [vmem:[%s21990_s19 + $0x2758] sm:$0xff] }
 0xd3a   : > { %14553 = vmatprep.subr.bf16.mxu1 %v19243_v28  ;;  %v19297_v28 = vcombine.high %v19037_v2, %v19041_v3  ;;  %v19089_v34 = vld [vmem:[%s21990_s19 + $0x2770] sm:$0xff] }
 0xd3b   : > { %14463 = vmatmul.mubr.bf16.vlgmr.msra.gmra.mrb[36].mxu0 %v24008_v23 }
 0xd3c   : > { %14545 = vmatmul.mubr.bf16.vlgmr.msra.gmra.mrb[36].mxu1 %v24008_v23  ;;  %14472 = vmatpush1.bf16.msra.mxu0 %v19240_v13  ;;  %v19010_v23 = vld [vmem:[%s21990_s19 + $0x24f8] sm:$0xff]  ;;  %v19049_v13 = vld [vmem:[%s21990_s19 + $0x2630] sm:$0xff] }
 0xd3d   : > { %14503 = vmatprep.mubr.bf16.mxu0 %v24018_v15  ;;  %14554 = vmatpush1.bf16.msra.mxu1 %v19242_v24  ;;  %v19266_v51 = vcombine.low %v19006_v44, %v19010_v23  ;;  %v19296_v24 = vcombine.low %v19037_v2, %v19041_v3  ;;  %v19305_v4 = vcombine.high %v19045_v41, %v19049_v13  ;;  %v19093_v3 = vld [vmem:[%s21990_s19 + $0x2790] sm:$0xff] }
 0xd3e   : > { %14585 = vmatprep.mubr.bf16.mxu1 %v24018_v15  ;;  %14473 = vmatprep.subr.bf16.mxu0 %v19249_v6  ;;  %v19267_v15 = vcombine.high %v19006_v44, %v19010_v23  ;;  %v19298_v6 = vcombine.low %v19038_v11, %v19042_v62  ;;  %v19065_v44 = vld [vmem:[%s21990_s19 + $0x26b0] sm:$0xff]  ;;  %v19062_v23 = vld [vmem:[%s21990_s19 + $0x2698] sm:$0xff] }
 0xd3f   : > { %14555 = vmatprep.subr.bf16.mxu1 %v19251_v36  ;;  %v19053_v36 = vld [vmem:[%s21990_s19 + $0x2650] sm:$0xff]  ;;  %v19094_v62 = vld [vmem:[%s21990_s19 + $0x2798] sm:$0xff] }
 0xd40   : > { %14474 = vmatpush1.bf16.msra.mxu0 %v19248_v26  ;;  %v19058_v26 = vld [vmem:[%s21990_s19 + $0x2678] sm:$0xff]  ;;  %v19097_v11 = vld [vmem:[%s21990_s19 + $0x27b0] sm:$0xff] }
 0xd41   : > { %14556 = vmatpush1.bf16.msra.mxu1 %v19250_v9  ;;  %14475 = vmatprep.subr.bf16.mxu0 %v19257_v39  ;;  %v19304_v9 = vcombine.low %v19045_v41, %v19049_v13  ;;  %v19306_v39 = vcombine.low %v19046_v25, %v19050_v37  ;;  %v19315_v50 = vcombine.high %v19054_v54, %v19058_v26  ;;  %v19101_v13 = vld [vmem:[%s21990_s19 + $0x27d0] sm:$0xff]  ;;  %v19102_v37 = vld [vmem:[%s21990_s19 + $0x27d8] sm:$0xff] }
 0xd42   : > { %14557 = vmatprep.subr.bf16.mxu1 %v19259_v27  ;;  %v19313_v27 = vcombine.high %v19053_v36, %v19057_v53  ;;  %v19105_v25 = vld [vmem:[%s21990_s19 + $0x27f0] sm:$0xff] }
 0xd44   : > { %14476 = vmatpush1.bf16.msra.mxu0 %v19256_v49  ;;  %v19066_v49 = vld [vmem:[%s21990_s19 + $0x26b8] sm:$0xff] }
 0xd45   : > { %14558 = vmatpush1.bf16.msra.mxu1 %v19258_v47  ;;  %14477 = vmatprep.subr.bf16.mxu0 %v19265_v56  ;;  %v19312_v47 = vcombine.low %v19053_v36, %v19057_v53  ;;  %v19314_v56 = vcombine.low %v19054_v54, %v19058_v26  ;;  %v19323_v57 = vcombine.high %v19062_v23, %v19066_v49  ;;  %v20932_v26 = vld [vmem:[%s21998_s14 + $0x1004] ss:$16 sps:$4 sm:$0xff]  }
 0xd46   : > { %14559 = vmatprep.subr.bf16.mxu1 %v19267_v15  ;;  %v19321_v15 = vcombine.high %v19061_v38, %v19065_v44  ;;  %v19360_v53 = vcombine.low %v19101_v13, %v19105_v25 }
 0xd48   : > { %14478 = vmatpush1.bf16.msra.mxu0 %v19264_v46  ;;  %v19074_v46 = vld [vmem:[%s21990_s19 + $0x26f8] sm:$0xff] }
 0xd49   : > { %14560 = vmatpush1.bf16.msra.mxu1 %v19266_v51  ;;  %14479 = vmatprep.subr.bf16.mxu0 %v19273_v52  ;;  %v19320_v51 = vcombine.low %v19061_v38, %v19065_v44  ;;  %v19322_v52 = vcombine.low %v19062_v23, %v19066_v49  ;;  %v19331_v60 = vcombine.high %v19070_v19, %v19074_v46  ;;  %v20941_v38 = vld [vmem:[%s21998_s14 + $0x102c] ss:$16 sps:$4 sm:$0xff]   ;;  %v20936_v44 = vld [vmem:[%s21998_s14 + $0x1020] ss:$16 sps:$4 sm:$0xff]   ;;  %v20939_v23 = vld [vmem:[%s21998_s14 + $0x1028] ss:$16 sps:$4 sm:$0xff]  }
 0xd4a   : > { %14561 = vmatprep.subr.bf16.mxu1 %v19275_v40  ;;  %v19329_v40 = vcombine.high %v19069_v45, %v19073_v16  ;;  %v20944_v49 = vld [vmem:[%s21998_s14 + $0x1044] ss:$16 sps:$4 sm:$0xff]  }
 0xd4c   : > { %14480 = vmatpush1.bf16.msra.mxu0 %v19272_v18  ;;  %v19082_v18 = vld [vmem:[%s21990_s19 + $0x2738] sm:$0xff] }
 0xd4d   : > { %14562 = vmatpush1.bf16.msra.mxu1 %v19274_v1  ;;  %14481 = vmatprep.subr.bf16.mxu0 %v19281_v5  ;;  %v19328_v1 = vcombine.low %v19069_v45, %v19073_v16  ;;  %v19330_v5 = vcombine.low %v19070_v19, %v19074_v46  ;;  %v19339_v58 = vcombine.high %v19078_v0, %v19082_v18  ;;  %v20948_v45 = vld [vmem:[%s21998_s14 + $0x1060] ss:$16 sps:$4 sm:$0xff]   ;;  %v20951_v16 = vld [vmem:[%s21998_s14 + $0x1068] ss:$16 sps:$4 sm:$0xff]   ;;  %v20956_v19 = vld [vmem:[%s21998_s14 + $0x1084] ss:$16 sps:$4 sm:$0xff]  }
 0xd4e   : > { %14563 = vmatprep.subr.bf16.mxu1 %v19283_v8  ;;  %v19337_v8 = vcombine.high %v19077_v10, %v19081_v59  ;;  %v20959_v46 = vld [vmem:[%s21998_s14 + $0x108c] ss:$16 sps:$4 sm:$0xff]  }
 0xd50   : > { %14482 = vmatpush1.bf16.msra.mxu0 %v19280_v61  ;;  %v19090_v61 = vld [vmem:[%s21990_s19 + $0x2778] sm:$0xff] }
 0xd51   : > { %14564 = vmatpush1.bf16.msra.mxu1 %v19282_v48  ;;  %14483 = vmatprep.subr.bf16.mxu0 %v19289_v30  ;;  %v19336_v48 = vcombine.low %v19077_v10, %v19081_v59  ;;  %v19338_v30 = vcombine.low %v19078_v0, %v19082_v18  ;;  %v19347_v2 = vcombine.high %v19086_v43, %v19090_v61  ;;  %v20960_v10 = vld [vmem:[%s21998_s14 + $0x10a0] ss:$16 sps:$4 sm:$0xff]   ;;  %v20963_v59 = vld [vmem:[%s21998_s14 + $0x10a8] ss:$16 sps:$4 sm:$0xff]   ;;  %v20968_v0 = vld [vmem:[%s21998_s14 + $0x10c4] ss:$16 sps:$4 sm:$0xff]  }
 0xd52   : > { %14565 = vmatprep.subr.bf16.mxu1 %v19291_v35  ;;  %v19345_v35 = vcombine.high %v19085_v33, %v19089_v34  ;;  %v20971_v18 = vld [vmem:[%s21998_s14 + $0x10cc] ss:$16 sps:$4 sm:$0xff]  }
 0xd54   : > { %14484 = vmatpush1.bf16.msra.mxu0 %v19288_v7  ;;  %v19098_v7 = vld [vmem:[%s21990_s19 + $0x27b8] sm:$0xff] }
 0xd55   : > { %14566 = vmatpush1.bf16.msra.mxu1 %v19290_v12  ;;  %14485 = vmatprep.subr.bf16.mxu0 %v19297_v28  ;;  %v19344_v12 = vcombine.low %v19085_v33, %v19089_v34  ;;  %v19346_v28 = vcombine.low %v19086_v43, %v19090_v61  ;;  %v19355_v41 = vcombine.high %v19094_v62, %v19098_v7  ;;  %v20972_v33 = vld [vmem:[%s21998_s14 + $0x10e0] ss:$16 sps:$4 sm:$0xff]   ;;  %v20975_v34 = vld [vmem:[%s21998_s14 + $0x10e8] ss:$16 sps:$4 sm:$0xff]   ;;  %v20980_v43 = vld [vmem:[%s21998_s14 + $0x1104] ss:$16 sps:$4 sm:$0xff]  }
 0xd56   : > { %14567 = vmatprep.subr.bf16.mxu1 %v19299_v14  ;;  %v19353_v14 = vcombine.high %v19093_v3, %v19097_v11  ;;  %v20983_v61 = vld [vmem:[%s21998_s14 + $0x110c] ss:$16 sps:$4 sm:$0xff]  }
 0xd58   : > { %14486 = vmatpush1.bf16.msra.mxu0 %v19296_v24  ;;  %v19106_v24 = vld [vmem:[%s21990_s19 + $0x27f8] sm:$0xff] }
 0xd59   : > { %14568 = vmatpush1.bf16.msra.mxu1 %v19298_v6  ;;  %14487 = vmatprep.subr.bf16.mxu0 %v19305_v4  ;;  %v19352_v6 = vcombine.low %v19093_v3, %v19097_v11  ;;  %v19354_v4 = vcombine.low %v19094_v62, %v19098_v7  ;;  %v19363_v36 = vcombine.high %v19102_v37, %v19106_v24  ;;  %v20984_v3 = vld [vmem:[%s21998_s14 + $0x1120] ss:$16 sps:$4 sm:$0xff]   ;;  %v20987_v11 = vld [vmem:[%s21998_s14 + $0x1128] ss:$16 sps:$4 sm:$0xff]   ;;  %v20992_v62 = vld [vmem:[%s21998_s14 + $0x1144] ss:$16 sps:$4 sm:$0xff]  }
 0xd5a   : > { %14569 = vmatprep.subr.bf16.mxu1 %v19307_v42  ;;  %v19361_v42 = vcombine.high %v19101_v13, %v19105_v25  ;;  %v19362_v54 = vcombine.low %v19102_v37, %v19106_v24  ;;  %v20995_v7 = vld [vmem:[%s21998_s14 + $0x114c] ss:$16 sps:$4 sm:$0xff]   ;;  %v20996_v13 = vld [vmem:[%s21998_s14 + $0x1160] ss:$16 sps:$4 sm:$0xff]   ;;  %v20999_v25 = vld [vmem:[%s21998_s14 + $0x1168] ss:$16 sps:$4 sm:$0xff]  }
 0xd5b   : > { %v21004_v37 = vld [vmem:[%s21998_s14 + $0x1184] ss:$16 sps:$4 sm:$0xff]   ;;  %v21007_v24 = vld [vmem:[%s21998_s14 + $0x118c] ss:$16 sps:$4 sm:$0xff]  }
 0xd5c   : > { %14488 = vmatpush1.bf16.msra.mxu0 %v19304_v9  ;;  %v20935_v9 = vld [vmem:[%s21998_s14 + $0x100c] ss:$16 sps:$4 sm:$0xff]  }
 0xd5d   : > { %14570 = vmatpush1.bf16.msra.mxu1 %v19306_v39  ;;  %14489 = vmatprep.subr.bf16.mxu0 %v19313_v27  ;;  %v20930_v39 = vld [vmem:[%s21998_s14 + $0x1000] ss:$16 sps:$4 sm:$0xff]   ;;  %v20933_v27 = vld [vmem:[%s21998_s14 + $0x1008] ss:$16 sps:$4 sm:$0xff]  }
 0xd5e   : > { %14571 = vmatprep.subr.bf16.mxu1 %v19315_v50  ;;  %v20938_v50 = vld [vmem:[%s21998_s14 + $0x1024] ss:$16 sps:$4 sm:$0xff]  }
 0xd60   : > { %14490 = vmatpush1.bf16.msra.mxu0 %v19312_v47  ;;  %v20947_v47 = vld [vmem:[%s21998_s14 + $0x104c] ss:$16 sps:$4 sm:$0xff]  }
 0xd61   : > { %14572 = vmatpush1.bf16.msra.mxu1 %v19314_v56  ;;  %14491 = vmatprep.subr.bf16.mxu0 %v19321_v15  ;;  %v20942_v56 = vld [vmem:[%s21998_s14 + $0x1040] ss:$16 sps:$4 sm:$0xff]   ;;  %v20945_v15 = vld [vmem:[%s21998_s14 + $0x1048] ss:$16 sps:$4 sm:$0xff]  }
 0xd62   : > { %14573 = vmatprep.subr.bf16.mxu1 %v19323_v57  ;;  %v20953_v57 = vld [vmem:[%s21998_s14 + $0x106c] ss:$16 sps:$4 sm:$0xff]  }
 0xd64   : > { %14492 = vmatpush1.bf16.msra.mxu0 %v19320_v51  ;;  %v20954_v51 = vld [vmem:[%s21998_s14 + $0x1080] ss:$16 sps:$4 sm:$0xff]  }
 0xd65   : > { %14574 = vmatpush1.bf16.msra.mxu1 %v19322_v52  ;;  %14493 = vmatprep.subr.bf16.mxu0 %v19329_v40  ;;  %v20957_v52 = vld [vmem:[%s21998_s14 + $0x1088] ss:$16 sps:$4 sm:$0xff]   ;;  %v20962_v40 = vld [vmem:[%s21998_s14 + $0x10a4] ss:$16 sps:$4 sm:$0xff]  }
 0xd66   : > { %14575 = vmatprep.subr.bf16.mxu1 %v19331_v60  ;;  %v20965_v60 = vld [vmem:[%s21998_s14 + $0x10ac] ss:$16 sps:$4 sm:$0xff]  }
 0xd68   : > { %14494 = vmatpush1.bf16.msra.mxu0 %v19328_v1  ;;  %v20966_v1 = vld [vmem:[%s21998_s14 + $0x10c0] ss:$16 sps:$4 sm:$0xff]  }
 0xd69   : > { %14576 = vmatpush1.bf16.msra.mxu1 %v19330_v5  ;;  %14495 = vmatprep.subr.bf16.mxu0 %v19337_v8  ;;  %v20969_v5 = vld [vmem:[%s21998_s14 + $0x10c8] ss:$16 sps:$4 sm:$0xff]   ;;  %v20974_v8 = vld [vmem:[%s21998_s14 + $0x10e4] ss:$16 sps:$4 sm:$0xff]  }
 0xd6a   : > { %14577 = vmatprep.subr.bf16.mxu1 %v19339_v58  ;;  %v20977_v58 = vld [vmem:[%s21998_s14 + $0x10ec] ss:$16 sps:$4 sm:$0xff]  }
 0xd6c   : > { %14496 = vmatpush1.bf16.msra.mxu0 %v19336_v48  ;;  %v20978_v48 = vld [vmem:[%s21998_s14 + $0x1100] ss:$16 sps:$4 sm:$0xff]  }
 0xd6d   : > { %14578 = vmatpush1.bf16.msra.mxu1 %v19338_v30  ;;  %14497 = vmatprep.subr.bf16.mxu0 %v19345_v35  ;;  %v20981_v30 = vld [vmem:[%s21998_s14 + $0x1108] ss:$16 sps:$4 sm:$0xff]   ;;  %v20986_v35 = vld [vmem:[%s21998_s14 + $0x1124] ss:$16 sps:$4 sm:$0xff]  }
 0xd6e   : > { %14579 = vmatprep.subr.bf16.mxu1 %v19347_v2  ;;  %v20989_v2 = vld [vmem:[%s21998_s14 + $0x112c] ss:$16 sps:$4 sm:$0xff]  }
 0xd70   : > { %14498 = vmatpush1.bf16.msra.mxu0 %v19344_v12  ;;  %v20990_v12 = vld [vmem:[%s21998_s14 + $0x1140] ss:$16 sps:$4 sm:$0xff]  }
 0xd71   : > { %14580 = vmatpush1.bf16.msra.mxu1 %v19346_v28  ;;  %14499 = vmatprep.subr.bf16.mxu0 %v19353_v14  ;;  %v20993_v28 = vld [vmem:[%s21998_s14 + $0x1148] ss:$16 sps:$4 sm:$0xff]   ;;  %v20998_v14 = vld [vmem:[%s21998_s14 + $0x1164] ss:$16 sps:$4 sm:$0xff]  }
 0xd72   : > { %14581 = vmatprep.subr.bf16.mxu1 %v19355_v41  ;;  %v21001_v41 = vld [vmem:[%s21998_s14 + $0x116c] ss:$16 sps:$4 sm:$0xff]  }
 0xd74   : > { %14500 = vmatpush1.bf16.msra.mxu0 %v19352_v6  ;;  %v21002_v6 = vld [vmem:[%s21998_s14 + $0x1180] ss:$16 sps:$4 sm:$0xff]  }
 0xd75   : > { %14582 = vmatpush1.bf16.msra.mxu1 %v19354_v4  ;;  %14501 = vmatprep.subr.bf16.mxu0 %v19361_v42  ;;  %v21005_v4 = vld [vmem:[%s21998_s14 + $0x1188] ss:$16 sps:$4 sm:$0xff]   ;;  %v21010_v42 = vld [vmem:[%s21998_s14 + $0x11a4] ss:$16 sps:$4 sm:$0xff]  }
 0xd76   : > { %14583 = vmatprep.subr.bf16.mxu1 %v19363_v36  ;;  %v21013_v36 = vld [vmem:[%s21998_s14 + $0x11ac] ss:$16 sps:$4 sm:$0xff]  }
 0xd78   : > { %14502 = vmatpush1.bf16.msra.mxu0 %v19360_v53  ;;  %v21008_v53 = vld [vmem:[%s21998_s14 + $0x11a0] ss:$16 sps:$4 sm:$0xff]  }
 0xd79   : > { %14584 = vmatpush1.bf16.msra.mxu1 %v19362_v54  ;;  %15414 = vmatprep.subr.bf16.mxu0 %v20932_v26  ;;  %v21011_v54 = vld [vmem:[%s21998_s14 + $0x11a8] ss:$16 sps:$4 sm:$0xff]   ;;  %v21016_v26 = vld [vmem:[%s21998_s14 + $0x11c4] ss:$16 sps:$4 sm:$0xff]  }
 0xd7a   : > { %15496 = vmatprep.subr.bf16.mxu1 %v20935_v9  ;;  %v21019_v9 = vld [vmem:[%s21998_s14 + $0x11cc] ss:$16 sps:$4 sm:$0xff]  }
 0xd7b   : > { %14504 = vmatmul.mubr.bf16.vlgmr.msra.gmra.mrb[36].mxu0 %v24098_v63 }
 0xd7c   : > { %14586 = vmatmul.mubr.bf16.vlgmr.msra.gmra.mrb[36].mxu1 %v24098_v63  ;;  %15415 = vmatpush1.bf16.msra.mxu0 %v20930_v39  ;;  %v20950_v63 = vld [vmem:[%s21998_s14 + $0x1064] ss:$16 sps:$4 sm:$0xff]   ;;  %v21014_v39 = vld [vmem:[%s21998_s14 + $0x11c0] ss:$16 sps:$4 sm:$0xff]  }
 0xd7d   : > { %15497 = vmatpush1.bf16.msra.mxu1 %v20933_v27  ;;  %15416 = vmatprep.subr.bf16.mxu0 %v20938_v50  ;;  %v21017_v27 = vld [vmem:[%s21998_s14 + $0x11c8] ss:$16 sps:$4 sm:$0xff]   ;;  %v21022_v50 = vld [vmem:[%s21998_s14 + $0x11e4] ss:$16 sps:$4 sm:$0xff]  }
 0xd7e   : > { %15498 = vmatprep.subr.bf16.mxu1 %v20941_v38  ;;  %v21025_v38 = vld [vmem:[%s21998_s14 + $0x11ec] ss:$16 sps:$4 sm:$0xff]  }
 0xd80   : > { %15417 = vmatpush1.bf16.msra.mxu0 %v20936_v44  ;;  %v21020_v44 = vld [vmem:[%s21998_s14 + $0x11e0] ss:$16 sps:$4 sm:$0xff]  }
 0xd81   : > { %15499 = vmatpush1.bf16.msra.mxu1 %v20939_v23  ;;  %15418 = vmatprep.subr.bf16.mxu0 %v20944_v49  ;;  %v21023_v23 = vld [vmem:[%s21998_s14 + $0x11e8] ss:$16 sps:$4 sm:$0xff]   ;;  %v21028_v49 = vld [vmem:[%s21998_s14 + $0x1204] ss:$16 sps:$4 sm:$0xff]  }
 0xd82   : > { %15500 = vmatprep.subr.bf16.mxu1 %v20947_v47  ;;  %v21031_v47 = vld [vmem:[%s21998_s14 + $0x120c] ss:$16 sps:$4 sm:$0xff]  }
 0xd84   : > { %15419 = vmatpush1.bf16.msra.mxu0 %v20942_v56  ;;  %v24297_v56 = vld [vmem:[%s21996_s17 + $0x20] sm:$0xff] }
 0xd85   : > { %15501 = vmatpush1.bf16.msra.mxu1 %v20945_v15  ;;  %15420 = vmatprep.subr.bf16.mxu0 %v20950_v63  ;;  %v12949_v15 = vrot.slane %v24297_v56, %v22372_v20  ;;  %v12953_v63 = vrot.slane %v24297_v56, %v22375_v21 }
 0xd86   : > { %15502 = vmatprep.subr.bf16.mxu1 %v20953_v57  ;;  %v12961_v57 = vrot.slane %v24297_v56, %v22378_v22 }
 0xd88   : > { %15421 = vmatpush1.bf16.msra.mxu0 %v20948_v45 }
 0xd89   : > { %15503 = vmatpush1.bf16.msra.mxu1 %v20951_v16  ;;  %15422 = vmatprep.subr.bf16.mxu0 %v20956_v19 }
 0xd8a   : > { %15504 = vmatprep.subr.bf16.mxu1 %v20959_v46 }
 0xd8c   : > { %15423 = vmatpush1.bf16.msra.mxu0 %v20954_v51 }
 0xd8d   : > { %15505 = vmatpush1.bf16.msra.mxu1 %v20957_v52  ;;  %15424 = vmatprep.subr.bf16.mxu0 %v20962_v40 }
 0xd8e   : > { %15506 = vmatprep.subr.bf16.mxu1 %v20965_v60 }
 0xd90   : > { %15425 = vmatpush1.bf16.msra.mxu0 %v20960_v10 }
 0xd91   : > { %15507 = vmatpush1.bf16.msra.mxu1 %v20963_v59  ;;  %15426 = vmatprep.subr.bf16.mxu0 %v20968_v0 }
 0xd92   : > { %15508 = vmatprep.subr.bf16.mxu1 %v20971_v18 }
 0xd94   : > { %15427 = vmatpush1.bf16.msra.mxu0 %v20966_v1 }
 0xd95   : > { %15509 = vmatpush1.bf16.msra.mxu1 %v20969_v5  ;;  %15428 = vmatprep.subr.bf16.mxu0 %v20974_v8 }
 0xd96   : > { %15510 = vmatprep.subr.bf16.mxu1 %v20977_v58 }
 0xd98   : > { %15429 = vmatpush1.bf16.msra.mxu0 %v20972_v33 }
 0xd99   : > { %15511 = vmatpush1.bf16.msra.mxu1 %v20975_v34  ;;  %15430 = vmatprep.subr.bf16.mxu0 %v20980_v43 }
 0xd9a   : > { %15512 = vmatprep.subr.bf16.mxu1 %v20983_v61 }
 0xd9c   : > { %15431 = vmatpush1.bf16.msra.mxu0 %v20978_v48 }
 0xd9d   : > { %15513 = vmatpush1.bf16.msra.mxu1 %v20981_v30  ;;  %15432 = vmatprep.subr.bf16.mxu0 %v20986_v35 }
 0xd9e   : > { %15514 = vmatprep.subr.bf16.mxu1 %v20989_v2 }
 0xda0   : > { %15433 = vmatpush1.bf16.msra.mxu0 %v20984_v3 }
 0xda1   : > { %15515 = vmatpush1.bf16.msra.mxu1 %v20987_v11  ;;  %15434 = vmatprep.subr.bf16.mxu0 %v20992_v62  ;;  %v21026_v62 = vld [vmem:[%s21998_s14 + $0x1200] ss:$16 sps:$4 sm:$0xff]  }
 0xda2   : > { %15516 = vmatprep.subr.bf16.mxu1 %v20995_v7  ;;  %v21029_v7 = vld [vmem:[%s21998_s14 + $0x1208] ss:$16 sps:$4 sm:$0xff]  }
 0xda4   : > { %15435 = vmatpush1.bf16.msra.mxu0 %v20990_v12 }
 0xda5   : > { %15517 = vmatpush1.bf16.msra.mxu1 %v20993_v28  ;;  %15436 = vmatprep.subr.bf16.mxu0 %v20998_v14  ;;  %v21034_v14 = vld [vmem:[%s21998_s14 + $0x1224] ss:$16 sps:$4 sm:$0xff]  }
 0xda6   : > { %15518 = vmatprep.subr.bf16.mxu1 %v21001_v41  ;;  %v21037_v41 = vld [vmem:[%s21998_s14 + $0x122c] ss:$16 sps:$4 sm:$0xff]  }
 0xda8   : > { %15437 = vmatpush1.bf16.msra.mxu0 %v20996_v13 }
 0xda9   : > { %15519 = vmatpush1.bf16.msra.mxu1 %v20999_v25  ;;  %15438 = vmatprep.subr.bf16.mxu0 %v21004_v37  ;;  %v21032_v25 = vld [vmem:[%s21998_s14 + $0x1220] ss:$16 sps:$4 sm:$0xff]   ;;  %v21035_v37 = vld [vmem:[%s21998_s14 + $0x1228] ss:$16 sps:$4 sm:$0xff]  }
 0xdaa   : > { %15520 = vmatprep.subr.bf16.mxu1 %v21007_v24  ;;  %v21040_v24 = vld [vmem:[%s21998_s14 + $0x1244] ss:$16 sps:$4 sm:$0xff]  }
 0xdac   : > { %15439 = vmatpush1.bf16.msra.mxu0 %v21002_v6  ;;  %v21043_v6 = vld [vmem:[%s21998_s14 + $0x124c] ss:$16 sps:$4 sm:$0xff]  }
 0xdad   : > { %15521 = vmatpush1.bf16.msra.mxu1 %v21005_v4  ;;  %15440 = vmatprep.subr.bf16.mxu0 %v21010_v42  ;;  %v21038_v4 = vld [vmem:[%s21998_s14 + $0x1240] ss:$16 sps:$4 sm:$0xff]   ;;  %v21041_v42 = vld [vmem:[%s21998_s14 + $0x1248] ss:$16 sps:$4 sm:$0xff]  }
 0xdae   : > { %15522 = vmatprep.subr.bf16.mxu1 %v21013_v36  ;;  %v21046_v36 = vld [vmem:[%s21998_s14 + $0x1264] ss:$16 sps:$4 sm:$0xff]  }
 0xdb0   : > { %15441 = vmatpush1.bf16.msra.mxu0 %v21008_v53  ;;  %v21049_v53 = vld [vmem:[%s21998_s14 + $0x126c] ss:$16 sps:$4 sm:$0xff]  }
 0xdb1   : > { %15523 = vmatpush1.bf16.msra.mxu1 %v21011_v54  ;;  %15442 = vmatprep.subr.bf16.mxu0 %v21016_v26  ;;  %v21044_v54 = vld [vmem:[%s21998_s14 + $0x1260] ss:$16 sps:$4 sm:$0xff]   ;;  %v21047_v26 = vld [vmem:[%s21998_s14 + $0x1268] ss:$16 sps:$4 sm:$0xff]  }
 0xdb2   : > { %15524 = vmatprep.subr.bf16.mxu1 %v21019_v9  ;;  %v21052_v9 = vld [vmem:[%s21998_s14 + $0x1284] ss:$16 sps:$4 sm:$0xff]  }
 0xdb4   : > { %15443 = vmatpush1.bf16.msra.mxu0 %v21014_v39  ;;  %v21055_v39 = vld [vmem:[%s21998_s14 + $0x128c] ss:$16 sps:$4 sm:$0xff]  }
 0xdb5   : > { %15525 = vmatpush1.bf16.msra.mxu1 %v21017_v27  ;;  %15444 = vmatprep.subr.bf16.mxu0 %v21022_v50  ;;  %v21050_v27 = vld [vmem:[%s21998_s14 + $0x1280] ss:$16 sps:$4 sm:$0xff]   ;;  %v21053_v50 = vld [vmem:[%s21998_s14 + $0x1288] ss:$16 sps:$4 sm:$0xff]  }
 0xdb6   : > { %15526 = vmatprep.subr.bf16.mxu1 %v21025_v38  ;;  %v21058_v38 = vld [vmem:[%s21998_s14 + $0x12a4] ss:$16 sps:$4 sm:$0xff]  }
 0xdb8   : > { %15445 = vmatpush1.bf16.msra.mxu0 %v21020_v44  ;;  %v21061_v44 = vld [vmem:[%s21998_s14 + $0x12ac] ss:$16 sps:$4 sm:$0xff]  }
 0xdb9   : > { %15527 = vmatpush1.bf16.msra.mxu1 %v21023_v23  ;;  %15455 = vmatprep.subr.bf16.mxu0 %v21028_v49  ;;  %v21056_v23 = vld [vmem:[%s21998_s14 + $0x12a0] ss:$16 sps:$4 sm:$0xff]   ;;  %v21059_v49 = vld [vmem:[%s21998_s14 + $0x12a8] ss:$16 sps:$4 sm:$0xff]  }
 0xdba   : > { %15537 = vmatprep.subr.bf16.mxu1 %v21031_v47  ;;  %v21064_v47 = vld [vmem:[%s21998_s14 + $0x12c4] ss:$16 sps:$4 sm:$0xff]  }
 0xdce   : > { %v14341_v45 = vpop.f32.mrb[32].mxu0  ;;  %v24305_v16 = vpop.f32.mrb[32].mxu1 }
 0xdcf   : > { %v19845_v19 = vadd.f32 %v14341_v45, %v12949_v15  ;;  %v14343_v46 = vpop.f32.mrb[33].mxu0  ;;  %v14425_v51 = vpop.f32.mrb[33].mxu1  ;;  %v21067_v15 = vld [vmem:[%s21998_s14 + $0x12cc] ss:$16 sps:$4 sm:$0xff]   ;;  %v21070_v45 = vld [vmem:[%s21998_s14 + $0x12e4] ss:$16 sps:$4 sm:$0xff]  }
 0xdd0   : > { %v19846_v52 = vadd.f32 %v14343_v46, %v12953_v63  ;;  %v19848_v40 = vadd.f32 %v14425_v51, %v12961_v57  ;;  %v14345_v60 = vpop.f32.mrb[34].mxu0  ;;  %v14427_v10 = vpop.f32.mrb[34].mxu1  ;;  %v21062_v63 = vld [vmem:[%s21998_s14 + $0x12c0] ss:$16 sps:$4 sm:$0xff]   ;;  %v21065_v57 = vld [vmem:[%s21998_s14 + $0x12c8] ss:$16 sps:$4 sm:$0xff]  }
 0xdd1   : > { %v14598_v59 = vmin.f32 %v19845_v19, 0.0  ;;  %v14346_v0 = vpop.f32.mrb[35].mxu0  ;;  %v14428_v18 = vpop.f32.mrb[35].mxu1  ;;  %vm14594_vm8 = vcmp.gt.f32.partialorder %v19845_v19, 0.0  ;;  %v21068_v46 = vld [vmem:[%s21998_s14 + $0x12e0] ss:$16 sps:$4 sm:$0xff]  }
 0xdd2   : > { %v14599_v1 = vmin.f32 %v19846_v52, 0.0  ;;  %v14601_v5 = vmin.f32 %v19848_v40, 0.0  ;;  %vm14595_vm9 = vcmp.gt.f32.partialorder %v19846_v52, 0.0  ;;  %vm14597_vm10 = vcmp.gt.f32.partialorder %v19848_v40, 0.0  ;;  %v21071_v51 = vld [vmem:[%s21998_s14 + $0x12e8] ss:$16 sps:$4 sm:$0xff]  }
 0xdd3   : > { %v14602_v8 = vmul.f32 1.442695, %v14598_v59  ;;  %v21079_v60 = vld [vmem:[%s21998_s14 + $0x130c] ss:$16 sps:$4 sm:$0xff]   ;;  %v21074_v10 = vld [vmem:[%s21998_s14 + $0x1300] ss:$16 sps:$4 sm:$0xff]  }
 0xdd4   : > { %v14604_v58 = vmul.f32 1.442695, %v14599_v1  ;;  %v14608_v33 = vmul.f32 1.442695, %v14601_v5  ;;  %v21077_v59 = vld [vmem:[%s21998_s14 + $0x1308] ss:$16 sps:$4 sm:$0xff]  }
 0xdd5   : > { %21186 = vpow2.f32 %v14602_v8  ;;  %v21082_v18 = vld [vmem:[%s21998_s14 + $0x1324] ss:$16 sps:$4 sm:$0xff]   ;;  %v21085_v1 = vld [vmem:[%s21998_s14 + $0x132c] ss:$16 sps:$4 sm:$0xff]   ;;  %v21080_v5 = vld [vmem:[%s21998_s14 + $0x1320] ss:$16 sps:$4 sm:$0xff]  }
 0xdd6   : > { %21188 = vpow2.f32 %v14604_v58  ;;  %v21083_v8 = vld [vmem:[%s21998_s14 + $0x1328] ss:$16 sps:$4 sm:$0xff]  }
 0xdd7   : > { %21190 = vpow2.f32 %v14608_v33  ;;  %v21091_v33 = vld [vmem:[%s21998_s14 + $0x134c] ss:$16 sps:$4 sm:$0xff]  }
 0xddf   : > { %v21187_v34 = vpop.eup %21186 }
 0xde0   : > { %v19364_v43 = vadd.f32 -1.0, %v21187_v34  ;;  %v21189_v61 = vpop.eup %21188  ;;  %v21086_v34 = vld [vmem:[%s21998_s14 + $0x1340] ss:$16 sps:$4 sm:$0xff]  }
 0xde1   : > { %v21191_v48 = vpop.eup %21190  ;;  %v19365_v30 = vadd.f32 -1.0, %v21189_v61 }
 0xde2   : > { %v14614_v35 = vsel %vm14594_vm8, %v19845_v19, %v19364_v43  ;;  %v19367_v2 = vadd.f32 -1.0, %v21191_v48  ;;  %v21073_v19 = vld [vmem:[%s21998_s14 + $0x12ec] ss:$16 sps:$4 sm:$0xff]   ;;  %v21089_v43 = vld [vmem:[%s21998_s14 + $0x1348] ss:$16 sps:$4 sm:$0xff]  }
 0xde3   : > { %v14615_v3 = vsel %vm14595_vm9, %v19846_v52, %v19365_v30  ;;  %v14618_v28 = vpack.c.bf16 %v14614_v35, %v14614_v35  ;;  %v12957_v52 = vrot.slane %v24297_v56, %v22415_v17  ;;  %v21094_v48 = vld [vmem:[%s21998_s14 + $0x1364] ss:$16 sps:$4 sm:$0xff]   ;;  %v21097_v30 = vld [vmem:[%s21998_s14 + $0x136c] ss:$16 sps:$4 sm:$0xff]   ;;  %v21092_v35 = vld [vmem:[%s21998_s14 + $0x1360] ss:$16 sps:$4 sm:$0xff]  }
 0xde4   : > { %v14619_v11 = vpack.c.bf16 %v14615_v3, %v14615_v3  ;;  %v14617_v12 = vsel %vm14597_vm10, %v19848_v40, %v19367_v2  ;;  %v21076_v40 = vld [vmem:[%s21998_s14 + $0x1304] ss:$16 sps:$4 sm:$0xff]   ;;  %v21095_v2 = vld [vmem:[%s21998_s14 + $0x1368] ss:$16 sps:$4 sm:$0xff]  }
 0xde5   : > { %v14621_v13 = vpack.c.bf16 %v14617_v12, %v14617_v12  ;;  %v24344_v0 = vadd.f32 %v24305_v16, %v12957_v52  ;;  %v21088_v16 = vld [vmem:[%s21998_s14 + $0x1344] ss:$16 sps:$4 sm:$0xff]  }
 0xde6   : > { %15446 = vmatprep.mubr.bf16.mxu0 %v14619_v11  ;;  %15528 = vmatprep.mubr.bf16.mxu1 %v14619_v11  ;;  %v21100_v3 = vld [vmem:[%s21998_s14 + $0x1384] ss:$16 sps:$4 sm:$0xff]   ;;  %v21103_v11 = vld [vmem:[%s21998_s14 + $0x138c] ss:$16 sps:$4 sm:$0xff]  }
 0xde7   : > { %15447 = vmatmul.mubr.bf16.vlgmr.msra.gmra.mrb[36].mxu0 %v14618_v28  ;;  %15529 = vmatmul.mubr.bf16.vlgmr.msra.gmra.mrb[36].mxu1 %v14618_v28  ;;  %v14600_v58 = vmin.f32 %v24344_v0, 0.0  ;;  %v21106_v12 = vld [vmem:[%s21998_s14 + $0x13a4] ss:$16 sps:$4 sm:$0xff]   ;;  %v21109_v28 = vld [vmem:[%s21998_s14 + $0x13ac] ss:$16 sps:$4 sm:$0xff]   ;;  %vm14596_vm11 = vcmp.gt.f32.partialorder %v24344_v0, 0.0 }
 0xde8   : > { %15456 = vmatpush1.bf16.msra.mxu0 %v21026_v62  ;;  %15538 = vmatpush1.bf16.msra.mxu1 %v21029_v7  ;;  %v21098_v62 = vld [vmem:[%s21998_s14 + $0x1380] ss:$16 sps:$4 sm:$0xff]   ;;  %v21101_v7 = vld [vmem:[%s21998_s14 + $0x1388] ss:$16 sps:$4 sm:$0xff]  }
 0xde9   : > { %15487 = vmatprep.mubr.bf16.mxu0 %v14621_v13  ;;  %15569 = vmatprep.mubr.bf16.mxu1 %v14621_v13  ;;  %v14606_v61 = vmul.f32 1.442695, %v14600_v58  ;;  %v21112_v13 = vld [vmem:[%s21998_s14 + $0x13c4] ss:$16 sps:$4 sm:$0xff]  }
 0xdea   : > { %15457 = vmatprep.subr.bf16.mxu0 %v21034_v14  ;;  %15539 = vmatprep.subr.bf16.mxu1 %v21037_v41  ;;  %v21104_v14 = vld [vmem:[%s21998_s14 + $0x13a0] ss:$16 sps:$4 sm:$0xff]   ;;  %v21107_v41 = vld [vmem:[%s21998_s14 + $0x13a8] ss:$16 sps:$4 sm:$0xff]  }
 0xdeb   : > { %21192 = vpow2.f32 %v14606_v61 }
 0xdec   : > { %15458 = vmatpush1.bf16.msra.mxu0 %v21032_v25  ;;  %15540 = vmatpush1.bf16.msra.mxu1 %v21035_v37  ;;  %v21115_v25 = vld [vmem:[%s21998_s14 + $0x13cc] ss:$16 sps:$4 sm:$0xff]  }
 0xded   : > { %15459 = vmatprep.subr.bf16.mxu0 %v21040_v24  ;;  %15541 = vmatprep.subr.bf16.mxu1 %v21043_v6  ;;  %v21110_v24 = vld [vmem:[%s21998_s14 + $0x13c0] ss:$16 sps:$4 sm:$0xff]   ;;  %v21113_v6 = vld [vmem:[%s21998_s14 + $0x13c8] ss:$16 sps:$4 sm:$0xff]  }
 0xdf0   : > { %15460 = vmatpush1.bf16.msra.mxu0 %v21038_v4  ;;  %15542 = vmatpush1.bf16.msra.mxu1 %v21041_v42  ;;  %v21118_v4 = vld [vmem:[%s21998_s14 + $0x13e4] ss:$16 sps:$4 sm:$0xff]   ;;  %v21121_v42 = vld [vmem:[%s21998_s14 + $0x13ec] ss:$16 sps:$4 sm:$0xff]  }
 0xdf1   : > { %15461 = vmatprep.subr.bf16.mxu0 %v21046_v36  ;;  %15543 = vmatprep.subr.bf16.mxu1 %v21049_v53  ;;  %v21116_v53 = vld [vmem:[%s21998_s14 + $0x13e0] ss:$16 sps:$4 sm:$0xff]  }
 0xdf4   : > { %15462 = vmatpush1.bf16.msra.mxu0 %v21044_v54  ;;  %15544 = vmatpush1.bf16.msra.mxu1 %v21047_v26  ;;  %v21119_v54 = vld [vmem:[%s21998_s14 + $0x13e8] ss:$16 sps:$4 sm:$0xff]  }
 0xdf5   : > { %15463 = vmatprep.subr.bf16.mxu0 %v21052_v9  ;;  %15545 = vmatprep.subr.bf16.mxu1 %v21055_v39  ;;  %v21193_v37 = vpop.eup %21192  ;;  %v19496_v39 = vld [vmem:[%s22004_s30 + $0x10] sm:$0xf] }
 0xdf6   : > { %v19366_v36 = vadd.f32 -1.0, %v21193_v37  ;;  %v15650_v37 = vld [vmem:[%s24671_s21 + $0x100] sm:$0xff] (!%p19629_p0) }
 0xdf8   : > { %15464 = vmatpush1.bf16.msra.mxu0 %v21050_v27  ;;  %15546 = vmatpush1.bf16.msra.mxu1 %v21053_v50  ;;  %v14616_v26 = vsel %vm14596_vm11, %v24344_v0, %v19366_v36  ;;  %v12965_v27 = vrot.slane %v24297_v56, %v22546_v29  ;;  %v14757_v50 = vrot.slane %v19496_v39, %v22372_v20  ;;  %v15620_v36 = vld [vmem:[%s24671_s21 + $0x10] sm:$0xff] (!%p19629_p0) }
 0xdf9   : > { %15465 = vmatprep.subr.bf16.mxu0 %v21058_v38  ;;  %15547 = vmatprep.subr.bf16.mxu1 %v21061_v44  ;;  %v14620_v9 = vpack.c.bf16 %v14616_v26, %v14616_v26  ;;  %v12973_v38 = vrot.slane %v24297_v56, %v22614_v55  ;;  %v14765_v44 = vrot.slane %v19496_v39, %v22415_v17 }
 0xdfc   : > { %15466 = vmatpush1.bf16.msra.mxu0 %v21056_v23  ;;  %15548 = vmatpush1.bf16.msra.mxu1 %v21059_v49  ;;  %v12969_v23 = vrot.slane %v24297_v56, %v22552_v31  ;;  %v14761_v49 = vrot.slane %v19496_v39, %v22375_v21 }
 0xdfd   : > { %15467 = vmatprep.subr.bf16.mxu0 %v21064_v47  ;;  %15549 = vmatprep.subr.bf16.mxu1 %v21067_v15  ;;  %v12977_v47 = vrot.slane %v24297_v56, %v22555_v32  ;;  %v14769_v15 = vrot.slane %v19496_v39, %v22378_v22  ;;  %v15669_v39 = vld [vmem:[%s24671_s21 + $0x198] sm:$0xff] (!%p19629_p0) }
 0xdfe   : > { %v19851_v29 = vadd.f32 %v14761_v49, %v12969_v23  ;;  %v15639_v23 = vld [vmem:[%s24671_s21 + $0xa8] sm:$0xff] (!%p19629_p0) }
 0xe00   : > { %15468 = vmatpush1.bf16.msra.mxu0 %v21062_v63  ;;  %15550 = vmatpush1.bf16.msra.mxu1 %v21065_v57  ;;  %v19849_v63 = vadd.f32 %v14757_v50, %v12965_v27  ;;  %v19853_v57 = vadd.f32 %v14765_v44, %v12973_v38  ;;  %v15652_v27 = vld [vmem:[%s24671_s21 + $0x110] sm:$0xff] (!%p19629_p0)  ;;  %v15653_v38 = vld [vmem:[%s24671_s21 + $0x118] sm:$0xff] (!%p19629_p0)  ;;  %v15638_v44 = vld [vmem:[%s24671_s21 + $0xa0] sm:$0xff] (!%p19629_p0) }
 0xe01   : > { %15469 = vmatprep.subr.bf16.mxu0 %v21070_v45  ;;  %15551 = vmatprep.subr.bf16.mxu1 %v21073_v19  ;;  %v19855_v45 = vadd.f32 %v14769_v15, %v12977_v47  ;;  %v19771_v49 = vpack.c.bf16 (!%p19629_p0), %v15653_v38, %v15652_v27  ;;  %v19741_v47 = vpack.c.bf16 (!%p19629_p0), %v15639_v23, %v15638_v44  ;;  %v15622_v15 = vld [vmem:[%s24671_s21 + $0x20] sm:$0xff] (!%p19629_p0)  ;;  %v15649_v27 = vld [vmem:[%s24671_s21 + $0xf8] sm:$0xff] (!%p19629_p0)  ;;  %v15680_v38 = vld [vmem:[%s24671_s21 + $0x1f0] sm:$0xff] (!%p19629_p0) }
 0xe02   : > { %v15681_v44 = vld [vmem:[%s24671_s21 + $0x1f8] sm:$0xff] (!%p19629_p0) }
 0xe04   : > { %15470 = vmatpush1.bf16.msra.mxu0 %v21068_v46  ;;  %15552 = vmatpush1.bf16.msra.mxu1 %v21071_v51 }
 0xe05   : > { %15471 = vmatprep.subr.bf16.mxu0 %v21076_v40  ;;  %15553 = vmatprep.subr.bf16.mxu1 %v21079_v60 }
 0xe08   : > { %15472 = vmatpush1.bf16.msra.mxu0 %v21074_v10  ;;  %15554 = vmatpush1.bf16.msra.mxu1 %v21077_v59 }
 0xe09   : > { %15473 = vmatprep.subr.bf16.mxu0 %v21082_v18  ;;  %15555 = vmatprep.subr.bf16.mxu1 %v21085_v1 }
 0xe0c   : > { %15474 = vmatpush1.bf16.msra.mxu0 %v21080_v5  ;;  %15556 = vmatpush1.bf16.msra.mxu1 %v21083_v8 }
 0xe0d   : > { %15475 = vmatprep.subr.bf16.mxu0 %v21088_v16  ;;  %15557 = vmatprep.subr.bf16.mxu1 %v21091_v33 }
 0xe10   : > { %15476 = vmatpush1.bf16.msra.mxu0 %v21086_v34  ;;  %15558 = vmatpush1.bf16.msra.mxu1 %v21089_v43 }
 0xe11   : > { %15477 = vmatprep.subr.bf16.mxu0 %v21094_v48  ;;  %15559 = vmatprep.subr.bf16.mxu1 %v21097_v30 }
 0xe14   : > { %15478 = vmatpush1.bf16.msra.mxu0 %v21092_v35  ;;  %15560 = vmatpush1.bf16.msra.mxu1 %v21095_v2 }
 0xe15   : > { %15479 = vmatprep.subr.bf16.mxu0 %v21100_v3  ;;  %15561 = vmatprep.subr.bf16.mxu1 %v21103_v11  ;;  %v15634_v11 = vld [vmem:[%s24671_s21 + $0x80] sm:$0xff] (!%p19629_p0) }
 0xe18   : > { %15480 = vmatpush1.bf16.msra.mxu0 %v21098_v62  ;;  %15562 = vmatpush1.bf16.msra.mxu1 %v21101_v7  ;;  %v15635_v62 = vld [vmem:[%s24671_s21 + $0x88] sm:$0xff] (!%p19629_p0)  ;;  %v15618_v7 = vld [vmem:[%s24671_s21] sm:$0xff] (!%p19629_p0) }
 0xe19   : > { %15481 = vmatprep.subr.bf16.mxu0 %v21106_v12  ;;  %15563 = vmatprep.subr.bf16.mxu1 %v21109_v28  ;;  %v19733_v12 = vpack.c.bf16 (!%p19629_p0), %v15635_v62, %v15634_v11  ;;  %v15619_v28 = vld [vmem:[%s24671_s21 + $0x8] sm:$0xff] (!%p19629_p0)  ;;  %v15628_v62 = vld [vmem:[%s24671_s21 + $0x50] sm:$0xff] (!%p19629_p0) }
 0xe1c   : > { %15482 = vmatpush1.bf16.msra.mxu0 %v21104_v14  ;;  %15564 = vmatpush1.bf16.msra.mxu1 %v21107_v41  ;;  %v15666_v14 = vld [vmem:[%s24671_s21 + $0x180] sm:$0xff] (!%p19629_p0)  ;;  %v15667_v41 = vld [vmem:[%s24671_s21 + $0x188] sm:$0xff] (!%p19629_p0) }
 0xe1d   : > { %15483 = vmatprep.subr.bf16.mxu0 %v21112_v13  ;;  %15565 = vmatprep.subr.bf16.mxu1 %v21115_v25  ;;  %v19735_v13 = vpack.c.bf16 (!%p19629_p0), %v15619_v28, %v15618_v7  ;;  %v19765_v25 = vpack.c.bf16 (!%p19629_p0), %v15667_v41, %v15666_v14  ;;  %v15629_v7 = vld [vmem:[%s24671_s21 + $0x58] sm:$0xff] (!%p19629_p0)  ;;  %v15646_v41 = vld [vmem:[%s24671_s21 + $0xe0] sm:$0xff] (!%p19629_p0) }
 0xe1e   : > { %v15661_v14 = vld [vmem:[%s24671_s21 + $0x158] sm:$0xff] (!%p19629_p0) }
 0xe20   : > { %15484 = vmatpush1.bf16.msra.mxu0 %v21110_v24  ;;  %15566 = vmatpush1.bf16.msra.mxu1 %v21113_v6  ;;  %v15651_v24 = vld [vmem:[%s24671_s21 + $0x108] sm:$0xff] (!%p19629_p0)  ;;  %v15636_v6 = vld [vmem:[%s24671_s21 + $0x90] sm:$0xff] (!%p19629_p0) }
 0xe21   : > { %15485 = vmatprep.subr.bf16.mxu0 %v21118_v4  ;;  %15567 = vmatprep.subr.bf16.mxu1 %v21121_v42  ;;  %v19767_v4 = vpack.c.bf16 (!%p19629_p0), %v15651_v24, %v15650_v37  ;;  %v15637_v42 = vld [vmem:[%s24671_s21 + $0x98] sm:$0xff] (!%p19629_p0)  ;;  %v15679_v37 = vld [vmem:[%s24671_s21 + $0x1e8] sm:$0xff] (!%p19629_p0)  ;;  %v19755_v24 = vpack.c.bf16 (!%p19629_p0), %v15629_v7, %v15628_v62 }
 0xe24   : > { %15486 = vmatpush1.bf16.msra.mxu0 %v21116_v53  ;;  %15568 = vmatpush1.bf16.msra.mxu1 %v21119_v54  ;;  %v15621_v53 = vld [vmem:[%s24671_s21 + $0x18] sm:$0xff] (!%p19629_p0)  ;;  %v19737_v54 = vpack.c.bf16 (!%p19629_p0), %v15637_v42, %v15636_v6  ;;  %v15630_v6 = vld [vmem:[%s24671_s21 + $0x60] sm:$0xff] (!%p19629_p0) }
 0xe25   : > { %19734 = vmatprep.subr.bf16.mxu0 (!%p19629_p0), %v19733_v12  ;;  %19766 = vmatprep.subr.bf16.mxu1 (!%p19629_p0), %v19765_v25  ;;  %v19739_v26 = vpack.c.bf16 (!%p19629_p0), %v15621_v53, %v15620_v36  ;;  %v15660_v12 = vld [vmem:[%s24671_s21 + $0x150] sm:$0xff] (!%p19629_p0)  ;;  %v15678_v25 = vld [vmem:[%s24671_s21 + $0x1e0] sm:$0xff] (!%p19629_p0) }
 0xe26   : > { %v19787_v42 = vpack.c.bf16 (!%p19629_p0), %v15661_v14, %v15660_v12  ;;  %v15662_v53 = vld [vmem:[%s24671_s21 + $0x160] sm:$0xff] (!%p19629_p0) }
 0xe27   : > { %15488 = vmatmul.mubr.bf16.vlgmr.msra.gmra.mrb[36].mxu0 %v14620_v9  ;;  %15570 = vmatmul.mubr.bf16.vlgmr.msra.gmra.mrb[36].mxu1 %v14620_v9  ;;  %v15668_v9 = vld [vmem:[%s24671_s21 + $0x190] sm:$0xff] (!%p19629_p0) }
 0xe28   : > { %19736 = vmatpush3.bf16.msra.mxu0 (!%p19629_p0), %v19735_v13  ;;  %19768 = vmatpush3.bf16.msra.mxu1 (!%p19629_p0), %v19767_v4  ;;  %v19769_v50 = vpack.c.bf16 (!%p19629_p0), %v15669_v39, %v15668_v9  ;;  %v15647_v13 = vld [vmem:[%s24671_s21 + $0xe8] sm:$0xff] (!%p19629_p0)  ;;  %v19789_v9 = vpack.c.bf16 (!%p19629_p0), %v15679_v37, %v15678_v25  ;;  %v15648_v39 = vld [vmem:[%s24671_s21 + $0xf0] sm:$0xff] (!%p19629_p0) }
 0xe29   : > { %19738 = vmatprep.subr.bf16.mxu0 (!%p19629_p0), %v19737_v54  ;;  %v15631_v4 = vld [vmem:[%s24671_s21 + $0x68] sm:$0xff] (!%p19629_p0)  ;;  %v19757_v36 = vpack.c.bf16 (!%p19629_p0), %v15647_v13, %v15646_v41 }
 0xe2a   : > { %19770 = vmatprep.subr.bf16.mxu1 (!%p19629_p0), %v19769_v50  ;;  %v15663_v54 = vld [vmem:[%s24671_s21 + $0x168] sm:$0xff] (!%p19629_p0)  ;;  %v19759_v23 = vpack.c.bf16 (!%p19629_p0), %v15631_v4, %v15630_v6 }
 0xe2c   : > { %19740 = vmatpush3.bf16.msra.mxu0 (!%p19629_p0), %v19739_v26  ;;  %19772 = vmatpush3.bf16.msra.mxu1 (!%p19629_p0), %v19771_v49  ;;  %v19791_v49 = vpack.c.bf16 (!%p19629_p0), %v15663_v54, %v15662_v53 }
 0xe2d   : > { %19742 = vmatprep.subr.bf16.mxu0 (!%p19629_p0), %v19741_v47  ;;  %v19761_v47 = vpack.c.bf16 (!%p19629_p0), %v15649_v27, %v15648_v39 }
 0xefa   : > { %v15489_v20 = vpop.f32.mrb[36].mxu0  ;;  %v15571_v19 = vpop.f32.mrb[36].mxu1 }
 0xefb   : > { %v19850_v46 = vadd.f32 %v19849_v63, %v15489_v20  ;;  %v19854_v55 = vadd.f32 %v19853_v57, %v15571_v19  ;;  %v15491_v51 = vpop.f32.mrb[37].mxu0  ;;  %v15573_v17 = vpop.f32.mrb[37].mxu1  ;;  %v15623_v63 = vld [vmem:[%s24671_s21 + $0x28] sm:$0xff] (!%p19629_p0)  ;;  %v15670_v57 = vld [vmem:[%s24671_s21 + $0x1a0] sm:$0xff] (!%p19629_p0) }
 0xefc   : > { %v19852_v52 = vadd.f32 %v19851_v29, %v15491_v51  ;;  %v19856_v40 = vadd.f32 %v19855_v45, %v15573_v17  ;;  %v15493_v31 = vpop.f32.mrb[38].mxu0  ;;  %v15575_v60 = vpop.f32.mrb[38].mxu1  ;;  %v15671_v29 = vld [vmem:[%s24671_s21 + $0x1a8] sm:$0xff] (!%p19629_p0)  ;;  %v15654_v45 = vld [vmem:[%s24671_s21 + $0x120] sm:$0xff] (!%p19629_p0)  ;;  %v19743_v19 = vpack.c.bf16 (!%p19629_p0), %v15623_v63, %v15622_v15  ;;  %v15641_v51 = vld [vmem:[%s24671_s21 + $0xb8] sm:$0xff] (!%p19629_p0) }
 0xefd   : > { %v15586_v21 = vmin.f32 %v19850_v46, 0.0  ;;  %v15588_v10 = vmin.f32 %v19854_v55, 0.0  ;;  %v15494_v59 = vpop.f32.mrb[39].mxu0  ;;  %v15576_v32 = vpop.f32.mrb[39].mxu1  ;;  %vm15582_vm12 = vcmp.gt.f32.partialorder %v19850_v46, 0.0  ;;  %vm15584_vm13 = vcmp.gt.f32.partialorder %v19854_v55, 0.0 }
 0xefe   : > { %v15587_v56 = vmin.f32 %v19852_v52, 0.0  ;;  %v15589_v22 = vmin.f32 %v19856_v40, 0.0  ;;  %vm15583_vm14 = vcmp.gt.f32.partialorder %v19852_v52, 0.0  ;;  %vm15585_vm15 = vcmp.gt.f32.partialorder %v19856_v40, 0.0  ;;  %v15655_v20 = vld [vmem:[%s24671_s21 + $0x128] sm:$0xff] (!%p19629_p0)  ;;  %v15624_v17 = vld [vmem:[%s24671_s21 + $0x30] sm:$0xff] (!%p19629_p0)  ;;  %19744 = vmatpush3.bf16.msra.mxu0 (!%p19629_p0), %v19743_v19 }
 0xeff   : > { %v15590_v0 = vmul.f32 1.442695, %v15586_v21  ;;  %v15594_v18 = vmul.f32 1.442695, %v15588_v10  ;;  %v15625_v31 = vld [vmem:[%s24671_s21 + $0x38] sm:$0xff] (!%p19629_p0)  ;;  %v15672_v60 = vld [vmem:[%s24671_s21 + $0x1b0] sm:$0xff] (!%p19629_p0) }
 0xf00   : > { %v15592_v1 = vmul.f32 1.442695, %v15587_v56  ;;  %v15596_v5 = vmul.f32 1.442695, %v15589_v22  ;;  %v15673_v21 = vld [vmem:[%s24671_s21 + $0x1b8] sm:$0xff] (!%p19629_p0)  ;;  %v15656_v59 = vld [vmem:[%s24671_s21 + $0x130] sm:$0xff] (!%p19629_p0) }
 0xf01   : > { %21194 = vpow2.f32 %v15590_v0  ;;  %v19777_v10 = vpack.c.bf16 (!%p19629_p0), %v15673_v21, %v15672_v60  ;;  %v15657_v32 = vld [vmem:[%s24671_s21 + $0x138] sm:$0xff] (!%p19629_p0)  ;;  %v15642_v56 = vld [vmem:[%s24671_s21 + $0xc0] sm:$0xff] (!%p19629_p0)  ;;  %v15643_v22 = vld [vmem:[%s24671_s21 + $0xc8] sm:$0xff] (!%p19629_p0)  ;;  %v19747_v0 = vpack.c.bf16 (!%p19629_p0), %v15625_v31, %v15624_v17  ;;  %v21569_v17 = vmov (!%p19629_p0), 0.0  }
 0xf02   : > { %21196 = vpow2.f32 %v15594_v18  ;;  %v15674_v18 = vld [vmem:[%s24671_s21 + $0x1c0] sm:$0xff] (!%p19629_p0)  ;;  %v15632_v15 = vld [vmem:[%s24671_s21 + $0x70] sm:$0xff] (!%p19629_p0)  ;;  %v15633_v63 = vld [vmem:[%s24671_s21 + $0x78] sm:$0xff] (!%p19629_p0) }
 0xf03   : > { %21198 = vpow2.f32 %v15592_v1  ;;  %v15675_v1 = vld [vmem:[%s24671_s21 + $0x1c8] sm:$0xff] (!%p19629_p0) }
 0xf04   : > { %21200 = vpow2.f32 %v15596_v5  ;;  %v19779_v5 = vpack.c.bf16 (!%p19629_p0), %v15657_v32, %v15656_v59 }
 0xf0b   : > { %v21195_v8 = vpop.eup %21194 }
 0xf0c   : > { %v21197_v58 = vpop.eup %21196  ;;  %v19625_v16 = vadd.f32 -1.0, %v21195_v8  ;;  %15613 = sbr.rel (%p19629_p0) target bundleno = 4333 (0x10ed), region = 120  ;;  %v19749_v8 = vpack.c.bf16 (!%p19629_p0), %v15643_v22, %v15642_v56 }
 0xf0d   : > { %v21199_v33 = vpop.eup %21198  ;;  %v19627_v34 = vadd.f32 -1.0, %v21197_v58  ;;  %v15626_v58 = vld [vmem:[%s24671_s21 + $0x40] sm:$0xff] (!%p19629_p0) }
 0xf0e   : > { %v21201_v43 = vpop.eup %21200  ;;  %v15602_v61 = vsel %vm15582_vm12, %v19850_v46, %v19625_v16  ;;  %v19626_v48 = vadd.f32 -1.0, %v21199_v33  ;;  %v19773_v46 = vpack.c.bf16 (!%p19629_p0), %v15671_v29, %v15670_v57  ;;  %v15627_v16 = vld [vmem:[%s24671_s21 + $0x48] sm:$0xff] (!%p19629_p0)  ;;  %v15658_v33 = vld [vmem:[%s24671_s21 + $0x140] sm:$0xff] (!%p19629_p0)  ;;  %v19793_v57 = vpack.c.bf16 (!%p19629_p0), %v15681_v44, %v15680_v38  ;;  %v15664_v29 = vld [vmem:[%s24671_s21 + $0x170] sm:$0xff] (!%p19629_p0) }
 0xf0f   : > { %15606 = vst [vmem:[#allocation2] sm:$0xff] %v15602_v61  ;;  %v15604_v30 = vsel %vm15584_vm13, %v19854_v55, %v19627_v34  ;;  %v19628_v35 = vadd.f32 -1.0, %v21201_v43  ;;  %v15640_v55 = vld [vmem:[%s24671_s21 + $0xb0] sm:$0xff] (!%p19629_p0)  ;;  %v19781_v34 = vpack.c.bf16 (!%p19629_p0), %v15675_v1, %v15674_v18  ;;  %v15659_v43 = vld [vmem:[%s24671_s21 + $0x148] sm:$0xff] (!%p19629_p0) }
 0xf10   : > { %15608 = vst [vmem:[#allocation2 + $0x10] sm:$0xff] %v15604_v30  ;;  %v15603_v2 = vsel %vm15583_vm14, %v19852_v52, %v19626_v48  ;;  %v19775_v52 = vpack.c.bf16 (!%p19629_p0), %v15655_v20, %v15654_v45  ;;  %19774 = vmatprep.subr.bf16.mxu1 (!%p19629_p0), %v19773_v46  ;;  %v15644_v61 = vld [vmem:[%s24671_s21 + $0xd0] sm:$0xff] (!%p19629_p0)  ;;  %v15645_v48 = vld [vmem:[%s24671_s21 + $0xd8] sm:$0xff] (!%p19629_p0)  ;;  %v19763_v20 = vpack.c.bf16 (!%p19629_p0), %v15633_v63, %v15632_v15 }
 0xf11   : > { %15607 = vst [vmem:[#allocation2 + $0x8] sm:$0xff] %v15603_v2  ;;  %v15605_v3 = vsel %vm15585_vm15, %v19856_v40, %v19628_v35  ;;  %v19745_v40 = vpack.c.bf16 (!%p19629_p0), %v15641_v51, %v15640_v55  ;;  %v15676_v30 = vld [vmem:[%s24671_s21 + $0x1d0] sm:$0xff] (!%p19629_p0)  ;;  %v15677_v35 = vld [vmem:[%s24671_s21 + $0x1d8] sm:$0xff] (!%p19629_p0)  ;;  %v19751_v2 = vpack.c.bf16 (!%p19629_p0), %v15627_v16, %v15626_v58  ;;  %v19753_v11 = vpack.c.bf16 (!%p19629_p0), %v15645_v48, %v15644_v61  ;;  %v15835_v51 = vld [vmem:[%s24672_s3] sm:$0x3f] (!%p19629_p0) }
 0xf12   : > { %15609 = vst [vmem:[#allocation2 + $0x18] sm:$0xff] %v15605_v3  ;;  %19776 = vmatpush3.bf16.msra.mxu1 (!%p19629_p0), %v19775_v52  ;;  %v19783_v3 = vpack.c.bf16 (!%p19629_p0), %v15659_v43, %v15658_v33  ;;  %v19785_v28 = vpack.c.bf16 (!%p19629_p0), %v15677_v35, %v15676_v30  ;;  %v15665_v45 = vld [vmem:[%s24671_s21 + $0x178] sm:$0xff] (!%p19629_p0) }
 0xf13   : > { %19746 = vmatprep.subr.bf16.mxu0 %v19745_v40  ;;  %19778 = vmatprep.subr.bf16.mxu1 %v19777_v10  ;;  %v19795_v19 = vpack.c.bf16 %v15665_v45, %v15664_v29  ;;  %v19630_v40 = vld [vmem:[#allocation18] ss:$0 sm:$0xff] }
 0xf14   : > { %19748 = vmatpush3.bf16.msra.mxu0 %v19747_v0 }
 0xf15   : > { %19750 = vmatprep.subr.bf16.mxu0 %v19749_v8  ;;  %v19632_v8 = vld [vmem:[#allocation3] ss:$0 sm:$0xff] }
 0xf16   : > { %19780 = vmatpush3.bf16.msra.mxu1 %v19779_v5  ;;  %v15614_v46 = vld [vmem:[#allocation2] sm:$0xff] }
 0xf17   : > { %19782 = vmatprep.subr.bf16.mxu1 %v19781_v34  ;;  %v15616_v55 = vld [vmem:[#allocation2 + $0x10] sm:$0xff] }
 0xf18   : > { %19752 = vmatpush3.bf16.msra.mxu0 %v19751_v2  ;;  %v15615_v26 = vld [vmem:[#allocation2 + $0x8] sm:$0xff] }
 0xf19   : > { %19754 = vmatprep.subr.bf16.mxu0 %v19753_v11  ;;  %15753 = vmatprep.mubr.f32.mxu0 %v15615_v26  ;;  %v15617_v50 = vld [vmem:[#allocation2 + $0x18] sm:$0xff] }
 0xf1a   : > { %19784 = vmatpush3.bf16.msra.mxu1 %v19783_v3  ;;  %15823 = vmatprep.mubr.f32.mxu1 %v15617_v50 }
 0xf1b   : > { %19786 = vmatprep.subr.bf16.mxu1 %v19785_v28 }
 0xf1c   : > { %19756 = vmatpush3.bf16.msra.mxu0 %v19755_v24 }
 0xf1d   : > { %19758 = vmatprep.subr.bf16.mxu0 %v19757_v36 }
 0xf1e   : > { %19788 = vmatpush3.bf16.msra.mxu1 %v19787_v42 }
 0xf1f   : > { %19790 = vmatprep.subr.bf16.mxu1 %v19789_v9 }
 0xf20   : > { %19760 = vmatpush3.bf16.msra.mxu0 %v19759_v23 }
 0xf21   : > { %19762 = vmatprep.subr.bf16.mxu0 %v19761_v47 }
 0xf22   : > { %19792 = vmatpush3.bf16.msra.mxu1 %v19791_v49 }
 0xf23   : > { %19794 = vmatprep.subr.bf16.mxu1 %v19793_v57 }
 0xf24   : > { %19764 = vmatpush3.bf16.msra.mxu0 %v19763_v20 }
 0xf25   : > { %19728 = vmatprep.subr.mxu0 %v21569_v17 }
 0xf26   : > { %19796 = vmatpush3.bf16.msra.mxu1 %v19795_v19 }
 0xf27   : > { %15754 = vmatmul.mubr.f32.vlgmr.msra.gmra.mrb[0].mxu0 %v15614_v46 }
 0xf28   : > { %19730 = vmatprep.mubr.msk.f32.mxu0 %vm21570_vm1, %v21569_v17  ;;  %19729 = vmatpush3.msk.msra.mxu0 %vm15847_vm0, %v15835_v51 }
 0xf29   : > { %15824 = vmatmul.mubr.f32.vlgmr.msra.gmra.mrb[0].mxu1 %v15616_v55 }
 0xffa   : > { %v19683_v52 = vpop.f32.mrb[0].mxu0 }
 0xffb   : > { %v19684_v31 = vpop.f32.mrb[1].mxu0 }
 0xffc   : > { %v19718_v60 = vpop.f32.mrb[0].mxu1  ;;  %v19685_v21 = vadd.f32 %v19684_v31, %v19683_v52 }
 0xffd   : > { %v19719_v10 = vpop.f32.mrb[1].mxu1 }
 0xffe   : > { %v19720_v59 = vadd.f32 %v19719_v10, %v19718_v60  ;;  %v15756_v32 = vadd.f32 %v19685_v21, %v19630_v40 }
0x1000   : > { %v15826_v56 = vadd.f32 %v19720_v59, %v15756_v32 }
0x1002   : > { %v15830_v22 = vmin.f32 %v15826_v56, 0.0  ;;  %vm15829_vm3 = vcmp.gt.f32.partialorder %v15826_v56, 0.0 }
0x1004   : > { %v15831_v0 = vmul.f32 1.442695, %v15830_v22 }
0x1006   : > { %21203 = vpow2.f32 %v15831_v0 }
0x1010   : > { %v21204_v18 = vpop.eup %21203 }
0x1011   : > { %v19631_v1 = vadd.f32 -1.0, %v21204_v18 }
0x1013   : > { %v15834_v5 = vsel %vm15829_vm3, %v15826_v56, %v19631_v1 }
0x1014   : > { %19731 = vmatmul.mubr.msk.f32.vlgmr.msra.gmra.mrb[2].mxu0 %vm15843_vm2, %v15834_v5 }
0x10e7   : > { %v15917_v58 = vpop.f32.mrb[2].mxu0 }
0x10e8   : > { %v15918_v16 = vadd.f32 %v19632_v8, %v15917_v58  ;;  %v19732_v33 = vpop.f32.mrb[3].mxu0 }
0x10ea   : > { %v15921_v34 = vand.u32 2147483647, %v15918_v16 }
0x10ec   : > { %15923 = vst.msk [vmem:[%s24673_s20] sm:$0xff] %vm15922_vm4, %v15921_v34 }
0x10ed PF: > { %s24674_s30 = sld [smem:[#allocation27_spill]]  ;;  %s24675_s1 = sld [smem:[#allocation26_spill]] }
0x10ee   : > { %s24676_s29 = sld [smem:[#allocation28_spill]]  ;;  %s24677_s27 = smov %s21539_s28 }
0x10f3   : > { %p32_p9 = scmp.ge.s32.totalorder %s24674_s30, 4   ;;  %s24678_s28 = smov %s24675_s1 }
0x10f5   :  { %34 = sbr.rel (!%p32_p9) target bundleno = 16 (0x10), region = 192 }
0x10fc   :  { %15935 = vsyncpa [#allocation5], 1 }
0x10fd   :  { %15937 = vsyncpa [#allocation5 + $0x1], 1 }
0x10fe   :  { %15938 = vsyncpa [#allocation7], 1 }
0x10ff   :  { %15939 = vsyncpa [#allocation10], 1 }
0x1100   :  { %15940 = vsyncpa [#allocation13], 1 }
0x1101   :  { %15942 = vsyncpa [#allocation13 + $0x1], 1 }
0x1102   :  { %15943 = vsyncpa [#allocation16], 1 }
0x1103   :  { %15945 = vsyncpa [#allocation16 + $0x1], 1 }
0x1104   :  { %15946 = vsyncpa [#allocation19], 1 }

</bundles_post_ra>
